<compile_context>
chip_gen: v7x
topology: tpu7x:2x2x1
jax: 0.10.0
libtpu: 0.0.40
codegen_flags: <defaults>
</compile_context>

<pallas_src>
import functools

import jax
import jax.numpy as jnp
from jax.experimental import pallas as pl
from jax.experimental.pallas import tpu as pltpu

BN_EPS = 1e-5


# --------------------------------------------------------------------------
# TPU-generation aware tiling knobs
# --------------------------------------------------------------------------
@functools.lru_cache(maxsize=None)
def _tpu_generation():
    """Best-effort TPU generation (5, 6, 7, ...); defaults to 6."""
    try:
        kind = jax.devices()[0].device_kind.lower()
    except Exception:
        return 6
    for gen in (7, 6, 5, 4):
        if f"v{gen}" in kind or f"tpu{gen}" in kind:
            return gen
    return 6


def _vmem_limit_bytes():
    # v7x: 64 MiB physical VMEM per TensorCore; v5e/v6e: 128 MiB.  Keep
    # double-buffering headroom in both cases.
    return (48 << 20) if _tpu_generation() >= 7 else (64 << 20)


def _pick_tn(cout):
    # 256 fills the 2x256 MXU on v6e/v7x; v5e's 4x128x128 MXU prefers 128
    # (a 256-wide tile there only doubles VMEM/vst pressure).
    if _tpu_generation() >= 6 and cout % 256 == 0:
        return 256
    return 128


# --------------------------------------------------------------------------
# Fused conv3x3 (+BN +ReLU) kernel with in-kernel im2col (tap accumulation)
# --------------------------------------------------------------------------
def _conv_bn_relu_kernel(x_ref, w_ref, mask_ref, scale_ref, shift_ref, o_ref,
                         *, kh, kw, h, w, pad_w):
    """One sample x one Cout tile of a stride-1 'same' conv + BN + ReLU.

    x_ref    : ((h + kh - 1) * w + 2*pad_w, cin)  padded, flattened sample (bf16)
    w_ref    : (kh*kw, cin, tn)                   conv weights, HWIO order (bf16)
    mask_ref : (kw, h*w, 1)                       horizontal-padding masks (bf16)
    scale_ref, shift_ref : (1, tn)                BN scale / shift (f32)
    o_ref    : (h*w, tn)                          output tile (bf16)
    """
    hw = h * w
    acc = jnp.zeros((hw, o_ref.shape[-1]), jnp.float32)
    for dy in range(kh):
        for dx in range(kw):
            # Tap (dy, dx) of the 3x3 stencil is a CONTIGUOUS row window of
            # the flattened, vertically padded sample (im2col fused in VMEM).
            tap = x_ref[pl.ds(dy * w + dx, hw), :]          # (hw, cin) bf16
            if dx != pad_w:
                # zero the columns that fall outside the image (left/right
                # 'same' padding); the center column needs no mask.
                tap = tap * mask_ref[dx]
            acc = acc + jnp.dot(tap, w_ref[dy * kw + dx],
                                preferred_element_type=jnp.float32)
    y = acc * scale_ref[...] + shift_ref[...]
    y = jnp.maximum(y, 0.0)
    o_ref[...] = y.astype(o_ref.dtype)


def conv_bn_relu(x_nhwc, w_hwio, bn_scale, bn_shift):
    """kxk conv (stride 1, 'same', no bias) + inference BN + ReLU, fully fused."""
    N, H, W, C = x_nhwc.shape
    kh, kw, cin, cout = w_hwio.shape
    assert cin == C, (cin, C)
    pad_h, pad_w = (kh - 1) // 2, (kw - 1) // 2
    HW = H * W
    R = (H + 2 * pad_h) * W + 2 * pad_w   # flattened rows incl. guard rows

    # Vertical 'same' padding with real zero rows, flatten (y, x) -> rows,
    # then add pad_w guard rows so every tap window is in-bounds.  This is the
    # only pre-kernel copy (~1.1x the activation, vs the old 9x im2col).
    xp = jnp.pad(x_nhwc.astype(jnp.bfloat16),
                 ((0, 0), (pad_h, pad_h), (0, 0), (0, 0)))
    xf = jnp.pad(xp.reshape(N, (H + 2 * pad_h) * W, C),
                 ((0, 0), (pad_w, pad_w), (0, 0)))

    wt = w_hwio.astype(jnp.bfloat16).reshape(kh * kw, cin, cout)
    scale2 = bn_scale.astype(jnp.float32).reshape(1, cout)
    shift2 = bn_shift.astype(jnp.float32).reshape(1, cout)

    # Per-tap column-validity masks for the horizontal 'same' padding (tiny).
    xcol = jnp.arange(HW, dtype=jnp.int32) % W
    mask = jnp.stack(
        [((xcol + (dx - pad_w) >= 0) & (xcol + (dx - pad_w) < W))
         for dx in range(kw)], axis=0)
    mask = mask.astype(jnp.bfloat16).reshape(kw, HW, 1)

    tn = _pick_tn(cout)
    grid_c = cout // tn

    # Hold the operand with the larger redundant-HBM-read cost constant across
    # the inner grid axis (Pallas skips the DMA when the block index repeats).
    act_bytes = xf.size * xf.dtype.itemsize
    wgt_bytes = wt.size * wt.dtype.itemsize
    if act_bytes * (grid_c - 1) <= wgt_bytes * (N - 1):
        grid = (grid_c, N)               # Cout tiles outer, samples inner
        x_map = lambda c, b: (b, 0, 0)
        w_map = lambda c, b: (0, 0, c)
        m_map = lambda c, b: (0, 0, 0)
        v_map = lambda c, b: (0, c)
        o_map = lambda c, b: (b, 0, c)
    else:
        grid = (N, grid_c)               # samples outer, Cout tiles inner
        x_map = lambda b, c: (b, 0, 0)
        w_map = lambda b, c: (0, 0, c)
        m_map = lambda b, c: (0, 0, 0)
        v_map = lambda b, c: (0, c)
        o_map = lambda b, c: (b, 0, c)

    out = pl.pallas_call(
        functools.partial(_conv_bn_relu_kernel,
                          kh=kh, kw=kw, h=H, w=W, pad_w=pad_w),
        out_shape=jax.ShapeDtypeStruct((N, HW, cout), jnp.bfloat16),
        grid=grid,
        in_specs=[
            pl.BlockSpec((None, R, C), x_map),        # one padded sample
            pl.BlockSpec((kh * kw, C, tn), w_map),    # weight Cout tile
            pl.BlockSpec((kw, HW, 1), m_map),         # column masks (constant)
            pl.BlockSpec((1, tn), v_map),             # BN scale
            pl.BlockSpec((1, tn), v_map),             # BN shift
        ],
        out_specs=pl.BlockSpec((None, HW, tn), o_map),
        compiler_params=pltpu.CompilerParams(
            dimension_semantics=("parallel", "parallel"),
            vmem_limit_bytes=_vmem_limit_bytes()),
    )(xf, wt, mask, scale2, shift2)
    return out.reshape(N, H, W, cout)


# --------------------------------------------------------------------------
# Fused matmul (+scale +shift [+ReLU]) kernel -- used by the classifier
# --------------------------------------------------------------------------
def _fused_matmul_kernel(x_ref, w_ref, scale_ref, shift_ref, o_ref, *, relu):
    acc = jnp.dot(x_ref[...], w_ref[...], preferred_element_type=jnp.float32)
    y = acc * scale_ref[...] + shift_ref[...]
    if relu:
        y = jnp.maximum(y, 0.0)
    o_ref[...] = y.astype(o_ref.dtype)


def fused_matmul(x, w, scale, shift, *, relu, out_dtype=jnp.float32):
    """y = maybe_relu((x @ w) * scale + shift); scale/shift broadcast over rows."""
    M, K = x.shape
    Kw, N = w.shape
    assert K == Kw, (K, Kw)

    x = x.astype(jnp.bfloat16)
    w = w.astype(jnp.bfloat16)
    scale = scale.astype(jnp.float32)
    shift = shift.astype(jnp.float32)

    # Lane-dense output: pad N to a multiple of 128 (sliced back only if padded).
    Npad = ((N + 127) // 128) * 128
    if Npad != N:
        w = jnp.pad(w, ((0, 0), (0, Npad - N)))
        scale = jnp.pad(scale, (0, Npad - N))
        shift = jnp.pad(shift, (0, Npad - N))

    tn = _pick_tn(Npad)
    grid_n = Npad // tn

    # Row tile: up to 512 (amortises per-step overhead and weight re-reads),
    # bounded by the per-generation VMEM budget (64 MiB physical on v7x).
    out_isz = jnp.dtype(out_dtype).itemsize
    budget = _vmem_limit_bytes() // 2
    tm = 512
    while tm > 8:
        need = (2 * (tm * K + K * tn) * 2        # bf16 x / w tiles, double-buffered
                + 4 * tn * 4                     # scale + shift tiles
                + 2 * tm * tn * out_isz)         # output tile, double-buffered
        if need <= budget:
            break
        tm //= 2
    if M <= tm:
        tm, Mpad = M, M                          # full-extent row block, no pad
    else:
        Mpad = pl.cdiv(M, tm) * tm
    if Mpad != M:
        x = jnp.pad(x, ((0, Mpad - M), (0, 0)))
    grid_m = Mpad // tm

    scale2 = scale.reshape(1, Npad)
    shift2 = shift.reshape(1, Npad)

    # Operand ordering: hold the operand with the larger redundant-read cost
    # constant across the inner grid axis.
    act_bytes = Mpad * K * 2
    wgt_bytes = K * Npad * 2
    if act_bytes * (grid_n - 1) <= wgt_bytes * (grid_m - 1):
        grid = (grid_n, grid_m)                  # weight tile constant inner
        x_map = lambda j, i: (i, 0)
        w_map = lambda j, i: (0, j)
        v_map = lambda j, i: (0, j)
        o_map = lambda j, i: (i, j)
    else:
        grid = (grid_m, grid_n)                  # activation tile constant inner
        x_map = lambda i, j: (i, 0)
        w_map = lambda i, j: (0, j)
        v_map = lambda i, j: (0, j)
        o_map = lambda i, j: (i, j)

    out = pl.pallas_call(
        functools.partial(_fused_matmul_kernel, relu=relu),
        out_shape=jax.ShapeDtypeStruct((Mpad, Npad), out_dtype),
        grid=grid,
        in_specs=[
            pl.BlockSpec((tm, K), x_map),
            pl.BlockSpec((K, tn), w_map),
            pl.BlockSpec((1, tn), v_map),
            pl.BlockSpec((1, tn), v_map),
        ],
        out_specs=pl.BlockSpec((tm, tn), o_map),
        compiler_params=pltpu.CompilerParams(
            dimension_semantics=("parallel", "parallel"),
            vmem_limit_bytes=_vmem_limit_bytes()),
    )(x, w, scale2, shift2)
    if Mpad != M or Npad != N:
        out = out[:M, :N]
    return out


# --------------------------------------------------------------------------
# Plain-JAX glue: avg-pool, params, forward
# --------------------------------------------------------------------------
def avgpool2(x_nhwc):
    """AvgPool2d(kernel=2, stride=2), floor mode.  bf16 in/out in HBM; the f32
    accumulation + casts fuse into one XLA pass (no f32 HBM materialisation)."""
    # TODO(synk): fold the 2x2/stride-2 pooling into the next conv's fused
    # halo-pad read pattern to remove this intermediate activation entirely.
    N, H, W, C = x_nhwc.shape
    Ho, Wo = H // 2, W // 2
    x = x_nhwc[:, :Ho * 2, :Wo * 2, :].astype(jnp.float32)
    y = x.reshape(N, Ho, 2, Wo, 2, C).mean(axis=(2, 4))
    return y.astype(x_nhwc.dtype)


def init_params(key, input_channels, n_classes, patch_size):
    """Deterministic parameter init mirroring the module's shapes (HWIO convs)."""
    ks = jax.random.split(key, 4)

    def conv_w(k, kh, kw, cin, cout):
        # ConvEtAl init: normal(0, sqrt(2 / (kh*kw*cout)))
        std = (2.0 / (kh * kw * cout)) ** 0.5
        return jax.random.normal(k, (kh, kw, cin, cout), jnp.float32) * std

    def bn(c):
        # gamma=1, beta=0, running_mean=0, running_var=1  ->  inference BN
        scale = jnp.full((c,), 1.0 / jnp.sqrt(1.0 + BN_EPS), jnp.float32)
        shift = jnp.zeros((c,), jnp.float32)
        return scale, shift

    # feature extractor spatial trace: 15 -> pool -> 7 -> pool -> 3
    sp = patch_size // 2 // 2
    feat_size = 512 * sp * sp

    params = {
        "w1": conv_w(ks[0], 3, 3, input_channels, 128), "bn1": bn(128),
        "w2": conv_w(ks[1], 3, 3, 128, 256),            "bn2": bn(256),
        "w3": conv_w(ks[2], 3, 3, 256, 512),            "bn3": bn(512),
        # classifier: Linear(feat_size, n_classes)
        "wc": jax.random.normal(ks[3], (feat_size, n_classes), jnp.float32)
              * (2.0 / feat_size) ** 0.5,
        "bc": jnp.zeros((n_classes,), jnp.float32),
    }
    return params


def test_et_al_forward(params, x_nchw):
    """Forward pass of TESTEtAl.  Input is NCHW (PyTorch convention), batch>1."""
    x = jnp.transpose(x_nchw, (0, 2, 3, 1)).astype(jnp.bfloat16)   # -> NHWC

    # layer1: conv3x3 -> BN -> ReLU -> avgpool2
    h = conv_bn_relu(x, params["w1"], *params["bn1"])
    h = avgpool2(h)
    # layer2
    h = conv_bn_relu(h, params["w2"], *params["bn2"])
    h = avgpool2(h)
    # layer3 (no pool)
    h = conv_bn_relu(h, params["w3"], *params["bn3"])
    # note: layer4 is defined in ConvEtAl but never used in forward()

    # flatten in NCHW order to match nn.Flatten on NCHW tensors
    N = h.shape[0]
    h = jnp.transpose(h, (0, 3, 1, 2)).reshape(N, -1)

    # classifier: Linear (same fused kernel; scale=1, shift=bias, no ReLU).
    # At tiny batch this is launch-bound; kept in Pallas for uniformity.
    ones = jnp.ones((params["wc"].shape[1],), jnp.float32)
    logits = fused_matmul(h, params["wc"], ones, params["bc"],
                          relu=False, out_dtype=jnp.float32)
    return logits


if __name__ == "__main__":
    input_channels = 4
    n_classes = 10
    patch_size = 15
    batch = 2

    key = jax.random.PRNGKey(0)
    k_param, k_x = jax.random.split(key)
    params = init_params(k_param, input_channels, n_classes, patch_size)
    x = jax.random.normal(k_x, (batch, input_channels, patch_size, patch_size),
                          jnp.float32)

    fwd = jax.jit(test_et_al_forward)
    out = fwd(params, x)
    jax.block_until_ready(out)
    assert out.shape == (batch, n_classes), out.shape
    assert jnp.all(jnp.isfinite(out))
    print("KERNEL_OK")
</pallas_src>

<mosaic_0001>
module attributes {stable_mosaic.version = 11 : i64} {
  func.func @_conv_bn_relu_kernel(%arg0: i32, %arg1: i32, %arg2: memref<1x257x4xbf16, #tpu.memory_space<vmem>>, %arg3: memref<9x4x128xbf16, #tpu.memory_space<vmem>>, %arg4: memref<3x225x1xbf16, #tpu.memory_space<vmem>>, %arg5: memref<1x128xf32, #tpu.memory_space<vmem>>, %arg6: memref<1x128xf32, #tpu.memory_space<vmem>>, %arg7: memref<1x225x128xbf16, #tpu.memory_space<vmem>>) attributes {dimension_semantics = [#tpu.dimension_semantics<parallel>, #tpu.dimension_semantics<parallel>], iteration_bounds = array<i64: 1, 2>, scalar_prefetch = 0 : i64, scratch_operands = 0 : i64, tpu.core_type = #tpu.core_type<tc>, window_params = [{transform_indices = @transform_0, window_bounds = array<i64: 1, 257, 4>}, {transform_indices = @transform_1, window_bounds = array<i64: 9, 4, 128>}, {pipeline_mode = #tpu.pipeline_mode<synchronous>, transform_indices = @transform_2, window_bounds = array<i64: 3, 225, 1>}, {transform_indices = @transform_3, window_bounds = array<i64: 1, 128>}, {transform_indices = @transform_4, window_bounds = array<i64: 1, 128>}, {transform_indices = @transform_5, window_bounds = array<i64: 1, 225, 128>}]} {
    %cst = arith.constant 0.000000e+00 : f32
    %0 = vector.broadcast %cst : f32 to vector<225x128xf32>
    %c0 = arith.constant 0 : index
    %c0_0 = arith.constant 0 : index
    %c0_1 = arith.constant 0 : index
    %1 = vector.load %arg2[%c0, %c0_0, %c0_1] : memref<1x257x4xbf16, #tpu.memory_space<vmem>>, vector<1x225x4xbf16>
    %2 = vector.shape_cast %1 : vector<1x225x4xbf16> to vector<225x4xbf16>
    %c0_2 = arith.constant 0 : index
    %c0_3 = arith.constant 0 : index
    %c0_4 = arith.constant 0 : index
    %3 = vector.load %arg4[%c0_2, %c0_3, %c0_4] : memref<3x225x1xbf16, #tpu.memory_space<vmem>>, vector<1x225x1xbf16>
    %4 = vector.shape_cast %3 : vector<1x225x1xbf16> to vector<225x1xbf16>
    %5 = vector.broadcast %4 : vector<225x1xbf16> to vector<225x4xbf16>
    %6 = arith.mulf %2, %5 : vector<225x4xbf16>
    %c0_5 = arith.constant 0 : index
    %c0_6 = arith.constant 0 : index
    %c0_7 = arith.constant 0 : index
    %7 = vector.load %arg3[%c0_5, %c0_6, %c0_7] : memref<9x4x128xbf16, #tpu.memory_space<vmem>>, vector<1x4x128xbf16>
    %8 = vector.shape_cast %7 : vector<1x4x128xbf16> to vector<4x128xbf16>
    %cst_8 = arith.constant dense<0.000000e+00> : vector<225x128xf32>
    %9 = tpu.matmul %6, %8, %cst_8 {dimension_numbers = #tpu.dot_dimension_numbers<[1], [0], [0], [1], [0, 0, 1, 1], [], []>} : vector<225x4xbf16>, vector<4x128xbf16>, vector<225x128xf32> -> vector<225x128xf32>
    %10 = arith.addf %0, %9 : vector<225x128xf32>
    %c0_9 = arith.constant 0 : index
    %c1 = arith.constant 1 : index
    %c0_10 = arith.constant 0 : index
    %11 = vector.load %arg2[%c0_9, %c1, %c0_10] : memref<1x257x4xbf16, #tpu.memory_space<vmem>>, vector<1x225x4xbf16>
    %12 = vector.shape_cast %11 : vector<1x225x4xbf16> to vector<225x4xbf16>
    %c1_11 = arith.constant 1 : index
    %c0_12 = arith.constant 0 : index
    %c0_13 = arith.constant 0 : index
    %13 = vector.load %arg3[%c1_11, %c0_12, %c0_13] : memref<9x4x128xbf16, #tpu.memory_space<vmem>>, vector<1x4x128xbf16>
    %14 = vector.shape_cast %13 : vector<1x4x128xbf16> to vector<4x128xbf16>
    %cst_14 = arith.constant dense<0.000000e+00> : vector<225x128xf32>
    %15 = tpu.matmul %12, %14, %cst_14 {dimension_numbers = #tpu.dot_dimension_numbers<[1], [0], [0], [1], [0, 0, 1, 1], [], []>} : vector<225x4xbf16>, vector<4x128xbf16>, vector<225x128xf32> -> vector<225x128xf32>
    %16 = arith.addf %10, %15 : vector<225x128xf32>
    %c0_15 = arith.constant 0 : index
    %c2 = arith.constant 2 : index
    %c0_16 = arith.constant 0 : index
    %17 = vector.load %arg2[%c0_15, %c2, %c0_16] : memref<1x257x4xbf16, #tpu.memory_space<vmem>>, vector<1x225x4xbf16>
    %18 = vector.shape_cast %17 : vector<1x225x4xbf16> to vector<225x4xbf16>
    %c2_17 = arith.constant 2 : index
    %c0_18 = arith.constant 0 : index
    %c0_19 = arith.constant 0 : index
    %19 = vector.load %arg4[%c2_17, %c0_18, %c0_19] : memref<3x225x1xbf16, #tpu.memory_space<vmem>>, vector<1x225x1xbf16>
    %20 = vector.shape_cast %19 : vector<1x225x1xbf16> to vector<225x1xbf16>
    %21 = vector.broadcast %20 : vector<225x1xbf16> to vector<225x4xbf16>
    %22 = arith.mulf %18, %21 : vector<225x4xbf16>
    %c2_20 = arith.constant 2 : index
    %c0_21 = arith.constant 0 : index
    %c0_22 = arith.constant 0 : index
    %23 = vector.load %arg3[%c2_20, %c0_21, %c0_22] : memref<9x4x128xbf16, #tpu.memory_space<vmem>>, vector<1x4x128xbf16>
    %24 = vector.shape_cast %23 : vector<1x4x128xbf16> to vector<4x128xbf16>
    %cst_23 = arith.constant dense<0.000000e+00> : vector<225x128xf32>
    %25 = tpu.matmul %22, %24, %cst_23 {dimension_numbers = #tpu.dot_dimension_numbers<[1], [0], [0], [1], [0, 0, 1, 1], [], []>} : vector<225x4xbf16>, vector<4x128xbf16>, vector<225x128xf32> -> vector<225x128xf32>
    %26 = arith.addf %16, %25 : vector<225x128xf32>
    %c0_24 = arith.constant 0 : index
    %c15 = arith.constant 15 : index
    %c0_25 = arith.constant 0 : index
    %27 = vector.load %arg2[%c0_24, %c15, %c0_25] : memref<1x257x4xbf16, #tpu.memory_space<vmem>>, vector<1x225x4xbf16>
    %28 = vector.shape_cast %27 : vector<1x225x4xbf16> to vector<225x4xbf16>
    %c0_26 = arith.constant 0 : index
    %c0_27 = arith.constant 0 : index
    %c0_28 = arith.constant 0 : index
    %29 = vector.load %arg4[%c0_26, %c0_27, %c0_28] : memref<3x225x1xbf16, #tpu.memory_space<vmem>>, vector<1x225x1xbf16>
    %30 = vector.shape_cast %29 : vector<1x225x1xbf16> to vector<225x1xbf16>
    %31 = vector.broadcast %30 : vector<225x1xbf16> to vector<225x4xbf16>
    %32 = arith.mulf %28, %31 : vector<225x4xbf16>
    %c3 = arith.constant 3 : index
    %c0_29 = arith.constant 0 : index
    %c0_30 = arith.constant 0 : index
    %33 = vector.load %arg3[%c3, %c0_29, %c0_30] : memref<9x4x128xbf16, #tpu.memory_space<vmem>>, vector<1x4x128xbf16>
    %34 = vector.shape_cast %33 : vector<1x4x128xbf16> to vector<4x128xbf16>
    %cst_31 = arith.constant dense<0.000000e+00> : vector<225x128xf32>
    %35 = tpu.matmul %32, %34, %cst_31 {dimension_numbers = #tpu.dot_dimension_numbers<[1], [0], [0], [1], [0, 0, 1, 1], [], []>} : vector<225x4xbf16>, vector<4x128xbf16>, vector<225x128xf32> -> vector<225x128xf32>
    %36 = arith.addf %26, %35 : vector<225x128xf32>
    %c0_32 = arith.constant 0 : index
    %c16 = arith.constant 16 : index
    %c0_33 = arith.constant 0 : index
    %37 = vector.load %arg2[%c0_32, %c16, %c0_33] : memref<1x257x4xbf16, #tpu.memory_space<vmem>>, vector<1x225x4xbf16>
    %38 = vector.shape_cast %37 : vector<1x225x4xbf16> to vector<225x4xbf16>
    %c4 = arith.constant 4 : index
    %c0_34 = arith.constant 0 : index
    %c0_35 = arith.constant 0 : index
    %39 = vector.load %arg3[%c4, %c0_34, %c0_35] : memref<9x4x128xbf16, #tpu.memory_space<vmem>>, vector<1x4x128xbf16>
    %40 = vector.shape_cast %39 : vector<1x4x128xbf16> to vector<4x128xbf16>
    %cst_36 = arith.constant dense<0.000000e+00> : vector<225x128xf32>
    %41 = tpu.matmul %38, %40, %cst_36 {dimension_numbers = #tpu.dot_dimension_numbers<[1], [0], [0], [1], [0, 0, 1, 1], [], []>} : vector<225x4xbf16>, vector<4x128xbf16>, vector<225x128xf32> -> vector<225x128xf32>
    %42 = arith.addf %36, %41 : vector<225x128xf32>
    %c0_37 = arith.constant 0 : index
    %c17 = arith.constant 17 : index
    %c0_38 = arith.constant 0 : index
    %43 = vector.load %arg2[%c0_37, %c17, %c0_38] : memref<1x257x4xbf16, #tpu.memory_space<vmem>>, vector<1x225x4xbf16>
    %44 = vector.shape_cast %43 : vector<1x225x4xbf16> to vector<225x4xbf16>
    %c2_39 = arith.constant 2 : index
    %c0_40 = arith.constant 0 : index
    %c0_41 = arith.constant 0 : index
    %45 = vector.load %arg4[%c2_39, %c0_40, %c0_41] : memref<3x225x1xbf16, #tpu.memory_space<vmem>>, vector<1x225x1xbf16>
    %46 = vector.shape_cast %45 : vector<1x225x1xbf16> to vector<225x1xbf16>
    %47 = vector.broadcast %46 : vector<225x1xbf16> to vector<225x4xbf16>
    %48 = arith.mulf %44, %47 : vector<225x4xbf16>
    %c5 = arith.constant 5 : index
    %c0_42 = arith.constant 0 : index
    %c0_43 = arith.constant 0 : index
    %49 = vector.load %arg3[%c5, %c0_42, %c0_43] : memref<9x4x128xbf16, #tpu.memory_space<vmem>>, vector<1x4x128xbf16>
    %50 = vector.shape_cast %49 : vector<1x4x128xbf16> to vector<4x128xbf16>
    %cst_44 = arith.constant dense<0.000000e+00> : vector<225x128xf32>
    %51 = tpu.matmul %48, %50, %cst_44 {dimension_numbers = #tpu.dot_dimension_numbers<[1], [0], [0], [1], [0, 0, 1, 1], [], []>} : vector<225x4xbf16>, vector<4x128xbf16>, vector<225x128xf32> -> vector<225x128xf32>
    %52 = arith.addf %42, %51 : vector<225x128xf32>
    %c0_45 = arith.constant 0 : index
    %c30 = arith.constant 30 : index
    %c0_46 = arith.constant 0 : index
    %53 = vector.load %arg2[%c0_45, %c30, %c0_46] : memref<1x257x4xbf16, #tpu.memory_space<vmem>>, vector<1x225x4xbf16>
    %54 = vector.shape_cast %53 : vector<1x225x4xbf16> to vector<225x4xbf16>
    %c0_47 = arith.constant 0 : index
    %c0_48 = arith.constant 0 : index
    %c0_49 = arith.constant 0 : index
    %55 = vector.load %arg4[%c0_47, %c0_48, %c0_49] : memref<3x225x1xbf16, #tpu.memory_space<vmem>>, vector<1x225x1xbf16>
    %56 = vector.shape_cast %55 : vector<1x225x1xbf16> to vector<225x1xbf16>
    %57 = vector.broadcast %56 : vector<225x1xbf16> to vector<225x4xbf16>
    %58 = arith.mulf %54, %57 : vector<225x4xbf16>
    %c6 = arith.constant 6 : index
    %c0_50 = arith.constant 0 : index
    %c0_51 = arith.constant 0 : index
    %59 = vector.load %arg3[%c6, %c0_50, %c0_51] : memref<9x4x128xbf16, #tpu.memory_space<vmem>>, vector<1x4x128xbf16>
    %60 = vector.shape_cast %59 : vector<1x4x128xbf16> to vector<4x128xbf16>
    %cst_52 = arith.constant dense<0.000000e+00> : vector<225x128xf32>
    %61 = tpu.matmul %58, %60, %cst_52 {dimension_numbers = #tpu.dot_dimension_numbers<[1], [0], [0], [1], [0, 0, 1, 1], [], []>} : vector<225x4xbf16>, vector<4x128xbf16>, vector<225x128xf32> -> vector<225x128xf32>
    %62 = arith.addf %52, %61 : vector<225x128xf32>
    %c0_53 = arith.constant 0 : index
    %c31 = arith.constant 31 : index
    %c0_54 = arith.constant 0 : index
    %63 = vector.load %arg2[%c0_53, %c31, %c0_54] : memref<1x257x4xbf16, #tpu.memory_space<vmem>>, vector<1x225x4xbf16>
    %64 = vector.shape_cast %63 : vector<1x225x4xbf16> to vector<225x4xbf16>
    %c7 = arith.constant 7 : index
    %c0_55 = arith.constant 0 : index
    %c0_56 = arith.constant 0 : index
    %65 = vector.load %arg3[%c7, %c0_55, %c0_56] : memref<9x4x128xbf16, #tpu.memory_space<vmem>>, vector<1x4x128xbf16>
    %66 = vector.shape_cast %65 : vector<1x4x128xbf16> to vector<4x128xbf16>
    %cst_57 = arith.constant dense<0.000000e+00> : vector<225x128xf32>
    %67 = tpu.matmul %64, %66, %cst_57 {dimension_numbers = #tpu.dot_dimension_numbers<[1], [0], [0], [1], [0, 0, 1, 1], [], []>} : vector<225x4xbf16>, vector<4x128xbf16>, vector<225x128xf32> -> vector<225x128xf32>
    %68 = arith.addf %62, %67 : vector<225x128xf32>
    %c0_58 = arith.constant 0 : index
    %c32 = arith.constant 32 : index
    %c0_59 = arith.constant 0 : index
    %69 = vector.load %arg2[%c0_58, %c32, %c0_59] : memref<1x257x4xbf16, #tpu.memory_space<vmem>>, vector<1x225x4xbf16>
    %70 = vector.shape_cast %69 : vector<1x225x4xbf16> to vector<225x4xbf16>
    %c2_60 = arith.constant 2 : index
    %c0_61 = arith.constant 0 : index
    %c0_62 = arith.constant 0 : index
    %71 = vector.load %arg4[%c2_60, %c0_61, %c0_62] : memref<3x225x1xbf16, #tpu.memory_space<vmem>>, vector<1x225x1xbf16>
    %72 = vector.shape_cast %71 : vector<1x225x1xbf16> to vector<225x1xbf16>
    %73 = vector.broadcast %72 : vector<225x1xbf16> to vector<225x4xbf16>
    %74 = arith.mulf %70, %73 : vector<225x4xbf16>
    %c8 = arith.constant 8 : index
    %c0_63 = arith.constant 0 : index
    %c0_64 = arith.constant 0 : index
    %75 = vector.load %arg3[%c8, %c0_63, %c0_64] : memref<9x4x128xbf16, #tpu.memory_space<vmem>>, vector<1x4x128xbf16>
    %76 = vector.shape_cast %75 : vector<1x4x128xbf16> to vector<4x128xbf16>
    %cst_65 = arith.constant dense<0.000000e+00> : vector<225x128xf32>
    %77 = tpu.matmul %74, %76, %cst_65 {dimension_numbers = #tpu.dot_dimension_numbers<[1], [0], [0], [1], [0, 0, 1, 1], [], []>} : vector<225x4xbf16>, vector<4x128xbf16>, vector<225x128xf32> -> vector<225x128xf32>
    %78 = arith.addf %68, %77 : vector<225x128xf32>
    %c0_66 = arith.constant 0 : index
    %c0_67 = arith.constant 0 : index
    %79 = vector.load %arg5[%c0_66, %c0_67] : memref<1x128xf32, #tpu.memory_space<vmem>>, vector<1x128xf32>
    %80 = vector.broadcast %79 : vector<1x128xf32> to vector<225x128xf32>
    %81 = arith.mulf %78, %80 : vector<225x128xf32>
    %c0_68 = arith.constant 0 : index
    %c0_69 = arith.constant 0 : index
    %82 = vector.load %arg6[%c0_68, %c0_69] : memref<1x128xf32, #tpu.memory_space<vmem>>, vector<1x128xf32>
    %83 = vector.broadcast %82 : vector<1x128xf32> to vector<225x128xf32>
    %84 = arith.addf %81, %83 : vector<225x128xf32>
    %cst_70 = arith.constant 0.000000e+00 : f32
    %85 = vector.broadcast %cst_70 : f32 to vector<225x128xf32>
    %86 = arith.maximumf %84, %85 : vector<225x128xf32>
    %87 = arith.truncf %86 : vector<225x128xf32> to vector<225x128xbf16>
    %c0_71 = arith.constant 0 : index
    %c0_72 = arith.constant 0 : index
    %c0_73 = arith.constant 0 : index
    %88 = vector.load %arg7[%c0_71, %c0_72, %c0_73] : memref<1x225x128xbf16, #tpu.memory_space<vmem>>, vector<1x225x128xbf16>
    %89 = vector.shape_cast %88 : vector<1x225x128xbf16> to vector<225x128xbf16>
    %90 = vector.shape_cast %87 : vector<225x128xbf16> to vector<1x225x128xbf16>
    tpu.vector_store %arg7[%c0_71, %c0_72, %c0_73], %90 {strides = array<i32>} : memref<1x225x128xbf16, #tpu.memory_space<vmem>>, vector<1x225x128xbf16>,
    return
  }
  func.func @transform_0(%arg0: i32, %arg1: i32) -> (i32, i32, i32) {
    %c0_i32 = arith.constant 0 : i32
    %c0_i32_0 = arith.constant 0 : i32
    %c0_i32_1 = arith.constant 0 : i32
    return %arg1, %c0_i32, %c0_i32_0 : i32, i32, i32
  }
  func.func @transform_1(%arg0: i32, %arg1: i32) -> (i32, i32, i32) {
    %c0_i32 = arith.constant 0 : i32
    %c0_i32_0 = arith.constant 0 : i32
    %c0_i32_1 = arith.constant 0 : i32
    return %c0_i32, %c0_i32_0, %arg0 : i32, i32, i32
  }
  func.func @transform_2(%arg0: i32, %arg1: i32) -> (i32, i32, i32) {
    %c0_i32 = arith.constant 0 : i32
    %c0_i32_0 = arith.constant 0 : i32
    %c0_i32_1 = arith.constant 0 : i32
    %c0_i32_2 = arith.constant 0 : i32
    return %c0_i32, %c0_i32_0, %c0_i32_1 : i32, i32, i32
  }
  func.func @transform_3(%arg0: i32, %arg1: i32) -> (i32, i32) {
    %c0_i32 = arith.constant 0 : i32
    %c0_i32_0 = arith.constant 0 : i32
    return %c0_i32, %arg0 : i32, i32
  }
  func.func @transform_4(%arg0: i32, %arg1: i32) -> (i32, i32) {
    %c0_i32 = arith.constant 0 : i32
    %c0_i32_0 = arith.constant 0 : i32
    return %c0_i32, %arg0 : i32, i32
  }
  func.func @transform_5(%arg0: i32, %arg1: i32) -> (i32, i32, i32) {
    %c0_i32 = arith.constant 0 : i32
    %c0_i32_0 = arith.constant 0 : i32
    return %arg1, %c0_i32, %arg0 : i32, i32, i32
  }
}

module attributes {stable_mosaic.version = 11 : i64} {
  func.func @_conv_bn_relu_kernel(%arg0: i32, %arg1: i32, %arg2: memref<1x65x128xbf16, #tpu.memory_space<vmem>>, %arg3: memref<9x128x256xbf16, #tpu.memory_space<vmem>>, %arg4: memref<3x49x1xbf16, #tpu.memory_space<vmem>>, %arg5: memref<1x256xf32, #tpu.memory_space<vmem>>, %arg6: memref<1x256xf32, #tpu.memory_space<vmem>>, %arg7: memref<1x49x256xbf16, #tpu.memory_space<vmem>>) attributes {dimension_semantics = [#tpu.dimension_semantics<parallel>, #tpu.dimension_semantics<parallel>], iteration_bounds = array<i64: 1, 2>, scalar_prefetch = 0 : i64, scratch_operands = 0 : i64, tpu.core_type = #tpu.core_type<tc>, window_params = [{transform_indices = @transform_0, window_bounds = array<i64: 1, 65, 128>}, {transform_indices = @transform_1, window_bounds = array<i64: 9, 128, 256>}, {pipeline_mode = #tpu.pipeline_mode<synchronous>, transform_indices = @transform_2, window_bounds = array<i64: 3, 49, 1>}, {transform_indices = @transform_3, window_bounds = array<i64: 1, 256>}, {transform_indices = @transform_4, window_bounds = array<i64: 1, 256>}, {transform_indices = @transform_5, window_bounds = array<i64: 1, 49, 256>}]} {
    %cst = arith.constant 0.000000e+00 : f32
    %0 = vector.broadcast %cst : f32 to vector<49x256xf32>
    %c0 = arith.constant 0 : index
    %c0_0 = arith.constant 0 : index
    %c0_1 = arith.constant 0 : index
    %1 = vector.load %arg2[%c0, %c0_0, %c0_1] : memref<1x65x128xbf16, #tpu.memory_space<vmem>>, vector<1x49x128xbf16>
    %2 = vector.shape_cast %1 : vector<1x49x128xbf16> to vector<49x128xbf16>
    %c0_2 = arith.constant 0 : index
    %c0_3 = arith.constant 0 : index
    %c0_4 = arith.constant 0 : index
    %3 = vector.load %arg4[%c0_2, %c0_3, %c0_4] : memref<3x49x1xbf16, #tpu.memory_space<vmem>>, vector<1x49x1xbf16>
    %4 = vector.shape_cast %3 : vector<1x49x1xbf16> to vector<49x1xbf16>
    %5 = vector.broadcast %4 : vector<49x1xbf16> to vector<49x128xbf16>
    %6 = arith.mulf %2, %5 : vector<49x128xbf16>
    %c0_5 = arith.constant 0 : index
    %c0_6 = arith.constant 0 : index
    %c0_7 = arith.constant 0 : index
    %7 = vector.load %arg3[%c0_5, %c0_6, %c0_7] : memref<9x128x256xbf16, #tpu.memory_space<vmem>>, vector<1x128x256xbf16>
    %8 = vector.shape_cast %7 : vector<1x128x256xbf16> to vector<128x256xbf16>
    %cst_8 = arith.constant dense<0.000000e+00> : vector<49x256xf32>
    %9 = tpu.matmul %6, %8, %cst_8 {dimension_numbers = #tpu.dot_dimension_numbers<[1], [0], [0], [1], [0, 0, 1, 1], [], []>} : vector<49x128xbf16>, vector<128x256xbf16>, vector<49x256xf32> -> vector<49x256xf32>
    %10 = arith.addf %0, %9 : vector<49x256xf32>
    %c0_9 = arith.constant 0 : index
    %c1 = arith.constant 1 : index
    %c0_10 = arith.constant 0 : index
    %11 = vector.load %arg2[%c0_9, %c1, %c0_10] : memref<1x65x128xbf16, #tpu.memory_space<vmem>>, vector<1x49x128xbf16>
    %12 = vector.shape_cast %11 : vector<1x49x128xbf16> to vector<49x128xbf16>
    %c1_11 = arith.constant 1 : index
    %c0_12 = arith.constant 0 : index
    %c0_13 = arith.constant 0 : index
    %13 = vector.load %arg3[%c1_11, %c0_12, %c0_13] : memref<9x128x256xbf16, #tpu.memory_space<vmem>>, vector<1x128x256xbf16>
    %14 = vector.shape_cast %13 : vector<1x128x256xbf16> to vector<128x256xbf16>
    %cst_14 = arith.constant dense<0.000000e+00> : vector<49x256xf32>
    %15 = tpu.matmul %12, %14, %cst_14 {dimension_numbers = #tpu.dot_dimension_numbers<[1], [0], [0], [1], [0, 0, 1, 1], [], []>} : vector<49x128xbf16>, vector<128x256xbf16>, vector<49x256xf32> -> vector<49x256xf32>
    %16 = arith.addf %10, %15 : vector<49x256xf32>
    %c0_15 = arith.constant 0 : index
    %c2 = arith.constant 2 : index
    %c0_16 = arith.constant 0 : index
    %17 = vector.load %arg2[%c0_15, %c2, %c0_16] : memref<1x65x128xbf16, #tpu.memory_space<vmem>>, vector<1x49x128xbf16>
    %18 = vector.shape_cast %17 : vector<1x49x128xbf16> to vector<49x128xbf16>
    %c2_17 = arith.constant 2 : index
    %c0_18 = arith.constant 0 : index
    %c0_19 = arith.constant 0 : index
    %19 = vector.load %arg4[%c2_17, %c0_18, %c0_19] : memref<3x49x1xbf16, #tpu.memory_space<vmem>>, vector<1x49x1xbf16>
    %20 = vector.shape_cast %19 : vector<1x49x1xbf16> to vector<49x1xbf16>
    %21 = vector.broadcast %20 : vector<49x1xbf16> to vector<49x128xbf16>
    %22 = arith.mulf %18, %21 : vector<49x128xbf16>
    %c2_20 = arith.constant 2 : index
    %c0_21 = arith.constant 0 : index
    %c0_22 = arith.constant 0 : index
    %23 = vector.load %arg3[%c2_20, %c0_21, %c0_22] : memref<9x128x256xbf16, #tpu.memory_space<vmem>>, vector<1x128x256xbf16>
    %24 = vector.shape_cast %23 : vector<1x128x256xbf16> to vector<128x256xbf16>
    %cst_23 = arith.constant dense<0.000000e+00> : vector<49x256xf32>
    %25 = tpu.matmul %22, %24, %cst_23 {dimension_numbers = #tpu.dot_dimension_numbers<[1], [0], [0], [1], [0, 0, 1, 1], [], []>} : vector<49x128xbf16>, vector<128x256xbf16>, vector<49x256xf32> -> vector<49x256xf32>
    %26 = arith.addf %16, %25 : vector<49x256xf32>
    %c0_24 = arith.constant 0 : index
    %c7 = arith.constant 7 : index
    %c0_25 = arith.constant 0 : index
    %27 = vector.load %arg2[%c0_24, %c7, %c0_25] : memref<1x65x128xbf16, #tpu.memory_space<vmem>>, vector<1x49x128xbf16>
    %28 = vector.shape_cast %27 : vector<1x49x128xbf16> to vector<49x128xbf16>
    %c0_26 = arith.constant 0 : index
    %c0_27 = arith.constant 0 : index
    %c0_28 = arith.constant 0 : index
    %29 = vector.load %arg4[%c0_26, %c0_27, %c0_28] : memref<3x49x1xbf16, #tpu.memory_space<vmem>>, vector<1x49x1xbf16>
    %30 = vector.shape_cast %29 : vector<1x49x1xbf16> to vector<49x1xbf16>
    %31 = vector.broadcast %30 : vector<49x1xbf16> to vector<49x128xbf16>
    %32 = arith.mulf %28, %31 : vector<49x128xbf16>
    %c3 = arith.constant 3 : index
    %c0_29 = arith.constant 0 : index
    %c0_30 = arith.constant 0 : index
    %33 = vector.load %arg3[%c3, %c0_29, %c0_30] : memref<9x128x256xbf16, #tpu.memory_space<vmem>>, vector<1x128x256xbf16>
    %34 = vector.shape_cast %33 : vector<1x128x256xbf16> to vector<128x256xbf16>
    %cst_31 = arith.constant dense<0.000000e+00> : vector<49x256xf32>
    %35 = tpu.matmul %32, %34, %cst_31 {dimension_numbers = #tpu.dot_dimension_numbers<[1], [0], [0], [1], [0, 0, 1, 1], [], []>} : vector<49x128xbf16>, vector<128x256xbf16>, vector<49x256xf32> -> vector<49x256xf32>
    %36 = arith.addf %26, %35 : vector<49x256xf32>
    %c0_32 = arith.constant 0 : index
    %c8 = arith.constant 8 : index
    %c0_33 = arith.constant 0 : index
    %37 = vector.load %arg2[%c0_32, %c8, %c0_33] : memref<1x65x128xbf16, #tpu.memory_space<vmem>>, vector<1x49x128xbf16>
    %38 = vector.shape_cast %37 : vector<1x49x128xbf16> to vector<49x128xbf16>
    %c4 = arith.constant 4 : index
    %c0_34 = arith.constant 0 : index
    %c0_35 = arith.constant 0 : index
    %39 = vector.load %arg3[%c4, %c0_34, %c0_35] : memref<9x128x256xbf16, #tpu.memory_space<vmem>>, vector<1x128x256xbf16>
    %40 = vector.shape_cast %39 : vector<1x128x256xbf16> to vector<128x256xbf16>
    %cst_36 = arith.constant dense<0.000000e+00> : vector<49x256xf32>
    %41 = tpu.matmul %38, %40, %cst_36 {dimension_numbers = #tpu.dot_dimension_numbers<[1], [0], [0], [1], [0, 0, 1, 1], [], []>} : vector<49x128xbf16>, vector<128x256xbf16>, vector<49x256xf32> -> vector<49x256xf32>
    %42 = arith.addf %36, %41 : vector<49x256xf32>
    %c0_37 = arith.constant 0 : index
    %c9 = arith.constant 9 : index
    %c0_38 = arith.constant 0 : index
    %43 = vector.load %arg2[%c0_37, %c9, %c0_38] : memref<1x65x128xbf16, #tpu.memory_space<vmem>>, vector<1x49x128xbf16>
    %44 = vector.shape_cast %43 : vector<1x49x128xbf16> to vector<49x128xbf16>
    %c2_39 = arith.constant 2 : index
    %c0_40 = arith.constant 0 : index
    %c0_41 = arith.constant 0 : index
    %45 = vector.load %arg4[%c2_39, %c0_40, %c0_41] : memref<3x49x1xbf16, #tpu.memory_space<vmem>>, vector<1x49x1xbf16>
    %46 = vector.shape_cast %45 : vector<1x49x1xbf16> to vector<49x1xbf16>
    %47 = vector.broadcast %46 : vector<49x1xbf16> to vector<49x128xbf16>
    %48 = arith.mulf %44, %47 : vector<49x128xbf16>
    %c5 = arith.constant 5 : index
    %c0_42 = arith.constant 0 : index
    %c0_43 = arith.constant 0 : index
    %49 = vector.load %arg3[%c5, %c0_42, %c0_43] : memref<9x128x256xbf16, #tpu.memory_space<vmem>>, vector<1x128x256xbf16>
    %50 = vector.shape_cast %49 : vector<1x128x256xbf16> to vector<128x256xbf16>
    %cst_44 = arith.constant dense<0.000000e+00> : vector<49x256xf32>
    %51 = tpu.matmul %48, %50, %cst_44 {dimension_numbers = #tpu.dot_dimension_numbers<[1], [0], [0], [1], [0, 0, 1, 1], [], []>} : vector<49x128xbf16>, vector<128x256xbf16>, vector<49x256xf32> -> vector<49x256xf32>
    %52 = arith.addf %42, %51 : vector<49x256xf32>
    %c0_45 = arith.constant 0 : index
    %c14 = arith.constant 14 : index
    %c0_46 = arith.constant 0 : index
    %53 = vector.load %arg2[%c0_45, %c14, %c0_46] : memref<1x65x128xbf16, #tpu.memory_space<vmem>>, vector<1x49x128xbf16>
    %54 = vector.shape_cast %53 : vector<1x49x128xbf16> to vector<49x128xbf16>
    %c0_47 = arith.constant 0 : index
    %c0_48 = arith.constant 0 : index
    %c0_49 = arith.constant 0 : index
    %55 = vector.load %arg4[%c0_47, %c0_48, %c0_49] : memref<3x49x1xbf16, #tpu.memory_space<vmem>>, vector<1x49x1xbf16>
    %56 = vector.shape_cast %55 : vector<1x49x1xbf16> to vector<49x1xbf16>
    %57 = vector.broadcast %56 : vector<49x1xbf16> to vector<49x128xbf16>
    %58 = arith.mulf %54, %57 : vector<49x128xbf16>
    %c6 = arith.constant 6 : index
    %c0_50 = arith.constant 0 : index
    %c0_51 = arith.constant 0 : index
    %59 = vector.load %arg3[%c6, %c0_50, %c0_51] : memref<9x128x256xbf16, #tpu.memory_space<vmem>>, vector<1x128x256xbf16>
    %60 = vector.shape_cast %59 : vector<1x128x256xbf16> to vector<128x256xbf16>
    %cst_52 = arith.constant dense<0.000000e+00> : vector<49x256xf32>
    %61 = tpu.matmul %58, %60, %cst_52 {dimension_numbers = #tpu.dot_dimension_numbers<[1], [0], [0], [1], [0, 0, 1, 1], [], []>} : vector<49x128xbf16>, vector<128x256xbf16>, vector<49x256xf32> -> vector<49x256xf32>
    %62 = arith.addf %52, %61 : vector<49x256xf32>
    %c0_53 = arith.constant 0 : index
    %c15 = arith.constant 15 : index
    %c0_54 = arith.constant 0 : index
    %63 = vector.load %arg2[%c0_53, %c15, %c0_54] : memref<1x65x128xbf16, #tpu.memory_space<vmem>>, vector<1x49x128xbf16>
    %64 = vector.shape_cast %63 : vector<1x49x128xbf16> to vector<49x128xbf16>
    %c7_55 = arith.constant 7 : index
    %c0_56 = arith.constant 0 : index
    %c0_57 = arith.constant 0 : index
    %65 = vector.load %arg3[%c7_55, %c0_56, %c0_57] : memref<9x128x256xbf16, #tpu.memory_space<vmem>>, vector<1x128x256xbf16>
    %66 = vector.shape_cast %65 : vector<1x128x256xbf16> to vector<128x256xbf16>
    %cst_58 = arith.constant dense<0.000000e+00> : vector<49x256xf32>
    %67 = tpu.matmul %64, %66, %cst_58 {dimension_numbers = #tpu.dot_dimension_numbers<[1], [0], [0], [1], [0, 0, 1, 1], [], []>} : vector<49x128xbf16>, vector<128x256xbf16>, vector<49x256xf32> -> vector<49x256xf32>
    %68 = arith.addf %62, %67 : vector<49x256xf32>
    %c0_59 = arith.constant 0 : index
    %c16 = arith.constant 16 : index
    %c0_60 = arith.constant 0 : index
    %69 = vector.load %arg2[%c0_59, %c16, %c0_60] : memref<1x65x128xbf16, #tpu.memory_space<vmem>>, vector<1x49x128xbf16>
    %70 = vector.shape_cast %69 : vector<1x49x128xbf16> to vector<49x128xbf16>
    %c2_61 = arith.constant 2 : index
    %c0_62 = arith.constant 0 : index
    %c0_63 = arith.constant 0 : index
    %71 = vector.load %arg4[%c2_61, %c0_62, %c0_63] : memref<3x49x1xbf16, #tpu.memory_space<vmem>>, vector<1x49x1xbf16>
    %72 = vector.shape_cast %71 : vector<1x49x1xbf16> to vector<49x1xbf16>
    %73 = vector.broadcast %72 : vector<49x1xbf16> to vector<49x128xbf16>
    %74 = arith.mulf %70, %73 : vector<49x128xbf16>
    %c8_64 = arith.constant 8 : index
    %c0_65 = arith.constant 0 : index
    %c0_66 = arith.constant 0 : index
    %75 = vector.load %arg3[%c8_64, %c0_65, %c0_66] : memref<9x128x256xbf16, #tpu.memory_space<vmem>>, vector<1x128x256xbf16>
    %76 = vector.shape_cast %75 : vector<1x128x256xbf16> to vector<128x256xbf16>
    %cst_67 = arith.constant dense<0.000000e+00> : vector<49x256xf32>
    %77 = tpu.matmul %74, %76, %cst_67 {dimension_numbers = #tpu.dot_dimension_numbers<[1], [0], [0], [1], [0, 0, 1, 1], [], []>} : vector<49x128xbf16>, vector<128x256xbf16>, vector<49x256xf32> -> vector<49x256xf32>
    %78 = arith.addf %68, %77 : vector<49x256xf32>
    %c0_68 = arith.constant 0 : index
    %c0_69 = arith.constant 0 : index
    %79 = vector.load %arg5[%c0_68, %c0_69] : memref<1x256xf32, #tpu.memory_space<vmem>>, vector<1x256xf32>
    %80 = vector.broadcast %79 : vector<1x256xf32> to vector<49x256xf32>
    %81 = arith.mulf %78, %80 : vector<49x256xf32>
    %c0_70 = arith.constant 0 : index
    %c0_71 = arith.constant 0 : index
    %82 = vector.load %arg6[%c0_70, %c0_71] : memref<1x256xf32, #tpu.memory_space<vmem>>, vector<1x256xf32>
    %83 = vector.broadcast %82 : vector<1x256xf32> to vector<49x256xf32>
    %84 = arith.addf %81, %83 : vector<49x256xf32>
    %cst_72 = arith.constant 0.000000e+00 : f32
    %85 = vector.broadcast %cst_72 : f32 to vector<49x256xf32>
    %86 = arith.maximumf %84, %85 : vector<49x256xf32>
    %87 = arith.truncf %86 : vector<49x256xf32> to vector<49x256xbf16>
    %c0_73 = arith.constant 0 : index
    %c0_74 = arith.constant 0 : index
    %c0_75 = arith.constant 0 : index
    %88 = vector.load %arg7[%c0_73, %c0_74, %c0_75] : memref<1x49x256xbf16, #tpu.memory_space<vmem>>, vector<1x49x256xbf16>
    %89 = vector.shape_cast %88 : vector<1x49x256xbf16> to vector<49x256xbf16>
    %90 = vector.shape_cast %87 : vector<49x256xbf16> to vector<1x49x256xbf16>
    tpu.vector_store %arg7[%c0_73, %c0_74, %c0_75], %90 {strides = array<i32>} : memref<1x49x256xbf16, #tpu.memory_space<vmem>>, vector<1x49x256xbf16>,
    return
  }
  func.func @transform_0(%arg0: i32, %arg1: i32) -> (i32, i32, i32) {
    %c0_i32 = arith.constant 0 : i32
    %c0_i32_0 = arith.constant 0 : i32
    %c0_i32_1 = arith.constant 0 : i32
    return %arg1, %c0_i32, %c0_i32_0 : i32, i32, i32
  }
  func.func @transform_1(%arg0: i32, %arg1: i32) -> (i32, i32, i32) {
    %c0_i32 = arith.constant 0 : i32
    %c0_i32_0 = arith.constant 0 : i32
    %c0_i32_1 = arith.constant 0 : i32
    return %c0_i32, %c0_i32_0, %arg0 : i32, i32, i32
  }
  func.func @transform_2(%arg0: i32, %arg1: i32) -> (i32, i32, i32) {
    %c0_i32 = arith.constant 0 : i32
    %c0_i32_0 = arith.constant 0 : i32
    %c0_i32_1 = arith.constant 0 : i32
    %c0_i32_2 = arith.constant 0 : i32
    return %c0_i32, %c0_i32_0, %c0_i32_1 : i32, i32, i32
  }
  func.func @transform_3(%arg0: i32, %arg1: i32) -> (i32, i32) {
    %c0_i32 = arith.constant 0 : i32
    %c0_i32_0 = arith.constant 0 : i32
    return %c0_i32, %arg0 : i32, i32
  }
  func.func @transform_4(%arg0: i32, %arg1: i32) -> (i32, i32) {
    %c0_i32 = arith.constant 0 : i32
    %c0_i32_0 = arith.constant 0 : i32
    return %c0_i32, %arg0 : i32, i32
  }
  func.func @transform_5(%arg0: i32, %arg1: i32) -> (i32, i32, i32) {
    %c0_i32 = arith.constant 0 : i32
    %c0_i32_0 = arith.constant 0 : i32
    return %arg1, %c0_i32, %arg0 : i32, i32, i32
  }
}

module attributes {stable_mosaic.version = 11 : i64} {
  func.func @_conv_bn_relu_kernel(%arg0: i32, %arg1: i32, %arg2: memref<1x17x256xbf16, #tpu.memory_space<vmem>>, %arg3: memref<9x256x256xbf16, #tpu.memory_space<vmem>>, %arg4: memref<3x9x1xbf16, #tpu.memory_space<vmem>>, %arg5: memref<1x256xf32, #tpu.memory_space<vmem>>, %arg6: memref<1x256xf32, #tpu.memory_space<vmem>>, %arg7: memref<1x9x256xbf16, #tpu.memory_space<vmem>>) attributes {dimension_semantics = [#tpu.dimension_semantics<parallel>, #tpu.dimension_semantics<parallel>], iteration_bounds = array<i64: 2, 2>, scalar_prefetch = 0 : i64, scratch_operands = 0 : i64, tpu.core_type = #tpu.core_type<tc>, window_params = [{transform_indices = @transform_0, window_bounds = array<i64: 1, 17, 256>}, {transform_indices = @transform_1, window_bounds = array<i64: 9, 256, 256>}, {pipeline_mode = #tpu.pipeline_mode<synchronous>, transform_indices = @transform_2, window_bounds = array<i64: 3, 9, 1>}, {transform_indices = @transform_3, window_bounds = array<i64: 1, 256>}, {transform_indices = @transform_4, window_bounds = array<i64: 1, 256>}, {transform_indices = @transform_5, window_bounds = array<i64: 1, 9, 256>}]} {
    %cst = arith.constant 0.000000e+00 : f32
    %0 = vector.broadcast %cst : f32 to vector<9x256xf32>
    %c0 = arith.constant 0 : index
    %c0_0 = arith.constant 0 : index
    %c0_1 = arith.constant 0 : index
    %1 = vector.load %arg2[%c0, %c0_0, %c0_1] : memref<1x17x256xbf16, #tpu.memory_space<vmem>>, vector<1x9x256xbf16>
    %2 = vector.shape_cast %1 : vector<1x9x256xbf16> to vector<9x256xbf16>
    %c0_2 = arith.constant 0 : index
    %c0_3 = arith.constant 0 : index
    %c0_4 = arith.constant 0 : index
    %3 = vector.load %arg4[%c0_2, %c0_3, %c0_4] : memref<3x9x1xbf16, #tpu.memory_space<vmem>>, vector<1x9x1xbf16>
    %4 = vector.shape_cast %3 : vector<1x9x1xbf16> to vector<9x1xbf16>
    %5 = vector.broadcast %4 : vector<9x1xbf16> to vector<9x256xbf16>
    %6 = arith.mulf %2, %5 : vector<9x256xbf16>
    %c0_5 = arith.constant 0 : index
    %c0_6 = arith.constant 0 : index
    %c0_7 = arith.constant 0 : index
    %7 = vector.load %arg3[%c0_5, %c0_6, %c0_7] : memref<9x256x256xbf16, #tpu.memory_space<vmem>>, vector<1x256x256xbf16>
    %8 = vector.shape_cast %7 : vector<1x256x256xbf16> to vector<256x256xbf16>
    %cst_8 = arith.constant dense<0.000000e+00> : vector<9x256xf32>
    %9 = tpu.matmul %6, %8, %cst_8 {dimension_numbers = #tpu.dot_dimension_numbers<[1], [0], [0], [1], [0, 0, 1, 1], [], []>} : vector<9x256xbf16>, vector<256x256xbf16>, vector<9x256xf32> -> vector<9x256xf32>
    %10 = arith.addf %0, %9 : vector<9x256xf32>
    %c0_9 = arith.constant 0 : index
    %c1 = arith.constant 1 : index
    %c0_10 = arith.constant 0 : index
    %11 = vector.load %arg2[%c0_9, %c1, %c0_10] : memref<1x17x256xbf16, #tpu.memory_space<vmem>>, vector<1x9x256xbf16>
    %12 = vector.shape_cast %11 : vector<1x9x256xbf16> to vector<9x256xbf16>
    %c1_11 = arith.constant 1 : index
    %c0_12 = arith.constant 0 : index
    %c0_13 = arith.constant 0 : index
    %13 = vector.load %arg3[%c1_11, %c0_12, %c0_13] : memref<9x256x256xbf16, #tpu.memory_space<vmem>>, vector<1x256x256xbf16>
    %14 = vector.shape_cast %13 : vector<1x256x256xbf16> to vector<256x256xbf16>
    %cst_14 = arith.constant dense<0.000000e+00> : vector<9x256xf32>
    %15 = tpu.matmul %12, %14, %cst_14 {dimension_numbers = #tpu.dot_dimension_numbers<[1], [0], [0], [1], [0, 0, 1, 1], [], []>} : vector<9x256xbf16>, vector<256x256xbf16>, vector<9x256xf32> -> vector<9x256xf32>
    %16 = arith.addf %10, %15 : vector<9x256xf32>
    %c0_15 = arith.constant 0 : index
    %c2 = arith.constant 2 : index
    %c0_16 = arith.constant 0 : index
    %17 = vector.load %arg2[%c0_15, %c2, %c0_16] : memref<1x17x256xbf16, #tpu.memory_space<vmem>>, vector<1x9x256xbf16>
    %18 = vector.shape_cast %17 : vector<1x9x256xbf16> to vector<9x256xbf16>
    %c2_17 = arith.constant 2 : index
    %c0_18 = arith.constant 0 : index
    %c0_19 = arith.constant 0 : index
    %19 = vector.load %arg4[%c2_17, %c0_18, %c0_19] : memref<3x9x1xbf16, #tpu.memory_space<vmem>>, vector<1x9x1xbf16>
    %20 = vector.shape_cast %19 : vector<1x9x1xbf16> to vector<9x1xbf16>
    %21 = vector.broadcast %20 : vector<9x1xbf16> to vector<9x256xbf16>
    %22 = arith.mulf %18, %21 : vector<9x256xbf16>
    %c2_20 = arith.constant 2 : index
    %c0_21 = arith.constant 0 : index
    %c0_22 = arith.constant 0 : index
    %23 = vector.load %arg3[%c2_20, %c0_21, %c0_22] : memref<9x256x256xbf16, #tpu.memory_space<vmem>>, vector<1x256x256xbf16>
    %24 = vector.shape_cast %23 : vector<1x256x256xbf16> to vector<256x256xbf16>
    %cst_23 = arith.constant dense<0.000000e+00> : vector<9x256xf32>
    %25 = tpu.matmul %22, %24, %cst_23 {dimension_numbers = #tpu.dot_dimension_numbers<[1], [0], [0], [1], [0, 0, 1, 1], [], []>} : vector<9x256xbf16>, vector<256x256xbf16>, vector<9x256xf32> -> vector<9x256xf32>
    %26 = arith.addf %16, %25 : vector<9x256xf32>
    %c0_24 = arith.constant 0 : index
    %c3 = arith.constant 3 : index
    %c0_25 = arith.constant 0 : index
    %27 = vector.load %arg2[%c0_24, %c3, %c0_25] : memref<1x17x256xbf16, #tpu.memory_space<vmem>>, vector<1x9x256xbf16>
    %28 = vector.shape_cast %27 : vector<1x9x256xbf16> to vector<9x256xbf16>
    %c0_26 = arith.constant 0 : index
    %c0_27 = arith.constant 0 : index
    %c0_28 = arith.constant 0 : index
    %29 = vector.load %arg4[%c0_26, %c0_27, %c0_28] : memref<3x9x1xbf16, #tpu.memory_space<vmem>>, vector<1x9x1xbf16>
    %30 = vector.shape_cast %29 : vector<1x9x1xbf16> to vector<9x1xbf16>
    %31 = vector.broadcast %30 : vector<9x1xbf16> to vector<9x256xbf16>
    %32 = arith.mulf %28, %31 : vector<9x256xbf16>
    %c3_29 = arith.constant 3 : index
    %c0_30 = arith.constant 0 : index
    %c0_31 = arith.constant 0 : index
    %33 = vector.load %arg3[%c3_29, %c0_30, %c0_31] : memref<9x256x256xbf16, #tpu.memory_space<vmem>>, vector<1x256x256xbf16>
    %34 = vector.shape_cast %33 : vector<1x256x256xbf16> to vector<256x256xbf16>
    %cst_32 = arith.constant dense<0.000000e+00> : vector<9x256xf32>
    %35 = tpu.matmul %32, %34, %cst_32 {dimension_numbers = #tpu.dot_dimension_numbers<[1], [0], [0], [1], [0, 0, 1, 1], [], []>} : vector<9x256xbf16>, vector<256x256xbf16>, vector<9x256xf32> -> vector<9x256xf32>
    %36 = arith.addf %26, %35 : vector<9x256xf32>
    %c0_33 = arith.constant 0 : index
    %c4 = arith.constant 4 : index
    %c0_34 = arith.constant 0 : index
    %37 = vector.load %arg2[%c0_33, %c4, %c0_34] : memref<1x17x256xbf16, #tpu.memory_space<vmem>>, vector<1x9x256xbf16>
    %38 = vector.shape_cast %37 : vector<1x9x256xbf16> to vector<9x256xbf16>
    %c4_35 = arith.constant 4 : index
    %c0_36 = arith.constant 0 : index
    %c0_37 = arith.constant 0 : index
    %39 = vector.load %arg3[%c4_35, %c0_36, %c0_37] : memref<9x256x256xbf16, #tpu.memory_space<vmem>>, vector<1x256x256xbf16>
    %40 = vector.shape_cast %39 : vector<1x256x256xbf16> to vector<256x256xbf16>
    %cst_38 = arith.constant dense<0.000000e+00> : vector<9x256xf32>
    %41 = tpu.matmul %38, %40, %cst_38 {dimension_numbers = #tpu.dot_dimension_numbers<[1], [0], [0], [1], [0, 0, 1, 1], [], []>} : vector<9x256xbf16>, vector<256x256xbf16>, vector<9x256xf32> -> vector<9x256xf32>
    %42 = arith.addf %36, %41 : vector<9x256xf32>
    %c0_39 = arith.constant 0 : index
    %c5 = arith.constant 5 : index
    %c0_40 = arith.constant 0 : index
    %43 = vector.load %arg2[%c0_39, %c5, %c0_40] : memref<1x17x256xbf16, #tpu.memory_space<vmem>>, vector<1x9x256xbf16>
    %44 = vector.shape_cast %43 : vector<1x9x256xbf16> to vector<9x256xbf16>
    %c2_41 = arith.constant 2 : index
    %c0_42 = arith.constant 0 : index
    %c0_43 = arith.constant 0 : index
    %45 = vector.load %arg4[%c2_41, %c0_42, %c0_43] : memref<3x9x1xbf16, #tpu.memory_space<vmem>>, vector<1x9x1xbf16>
    %46 = vector.shape_cast %45 : vector<1x9x1xbf16> to vector<9x1xbf16>
    %47 = vector.broadcast %46 : vector<9x1xbf16> to vector<9x256xbf16>
    %48 = arith.mulf %44, %47 : vector<9x256xbf16>
    %c5_44 = arith.constant 5 : index
    %c0_45 = arith.constant 0 : index
    %c0_46 = arith.constant 0 : index
    %49 = vector.load %arg3[%c5_44, %c0_45, %c0_46] : memref<9x256x256xbf16, #tpu.memory_space<vmem>>, vector<1x256x256xbf16>
    %50 = vector.shape_cast %49 : vector<1x256x256xbf16> to vector<256x256xbf16>
    %cst_47 = arith.constant dense<0.000000e+00> : vector<9x256xf32>
    %51 = tpu.matmul %48, %50, %cst_47 {dimension_numbers = #tpu.dot_dimension_numbers<[1], [0], [0], [1], [0, 0, 1, 1], [], []>} : vector<9x256xbf16>, vector<256x256xbf16>, vector<9x256xf32> -> vector<9x256xf32>
    %52 = arith.addf %42, %51 : vector<9x256xf32>
    %c0_48 = arith.constant 0 : index
    %c6 = arith.constant 6 : index
    %c0_49 = arith.constant 0 : index
    %53 = vector.load %arg2[%c0_48, %c6, %c0_49] : memref<1x17x256xbf16, #tpu.memory_space<vmem>>, vector<1x9x256xbf16>
    %54 = vector.shape_cast %53 : vector<1x9x256xbf16> to vector<9x256xbf16>
    %c0_50 = arith.constant 0 : index
    %c0_51 = arith.constant 0 : index
    %c0_52 = arith.constant 0 : index
    %55 = vector.load %arg4[%c0_50, %c0_51, %c0_52] : memref<3x9x1xbf16, #tpu.memory_space<vmem>>, vector<1x9x1xbf16>
    %56 = vector.shape_cast %55 : vector<1x9x1xbf16> to vector<9x1xbf16>
    %57 = vector.broadcast %56 : vector<9x1xbf16> to vector<9x256xbf16>
    %58 = arith.mulf %54, %57 : vector<9x256xbf16>
    %c6_53 = arith.constant 6 : index
    %c0_54 = arith.constant 0 : index
    %c0_55 = arith.constant 0 : index
    %59 = vector.load %arg3[%c6_53, %c0_54, %c0_55] : memref<9x256x256xbf16, #tpu.memory_space<vmem>>, vector<1x256x256xbf16>
    %60 = vector.shape_cast %59 : vector<1x256x256xbf16> to vector<256x256xbf16>
    %cst_56 = arith.constant dense<0.000000e+00> : vector<9x256xf32>
    %61 = tpu.matmul %58, %60, %cst_56 {dimension_numbers = #tpu.dot_dimension_numbers<[1], [0], [0], [1], [0, 0, 1, 1], [], []>} : vector<9x256xbf16>, vector<256x256xbf16>, vector<9x256xf32> -> vector<9x256xf32>
    %62 = arith.addf %52, %61 : vector<9x256xf32>
    %c0_57 = arith.constant 0 : index
    %c7 = arith.constant 7 : index
    %c0_58 = arith.constant 0 : index
    %63 = vector.load %arg2[%c0_57, %c7, %c0_58] : memref<1x17x256xbf16, #tpu.memory_space<vmem>>, vector<1x9x256xbf16>
    %64 = vector.shape_cast %63 : vector<1x9x256xbf16> to vector<9x256xbf16>
    %c7_59 = arith.constant 7 : index
    %c0_60 = arith.constant 0 : index
    %c0_61 = arith.constant 0 : index
    %65 = vector.load %arg3[%c7_59, %c0_60, %c0_61] : memref<9x256x256xbf16, #tpu.memory_space<vmem>>, vector<1x256x256xbf16>
    %66 = vector.shape_cast %65 : vector<1x256x256xbf16> to vector<256x256xbf16>
    %cst_62 = arith.constant dense<0.000000e+00> : vector<9x256xf32>
    %67 = tpu.matmul %64, %66, %cst_62 {dimension_numbers = #tpu.dot_dimension_numbers<[1], [0], [0], [1], [0, 0, 1, 1], [], []>} : vector<9x256xbf16>, vector<256x256xbf16>, vector<9x256xf32> -> vector<9x256xf32>
    %68 = arith.addf %62, %67 : vector<9x256xf32>
    %c0_63 = arith.constant 0 : index
    %c8 = arith.constant 8 : index
    %c0_64 = arith.constant 0 : index
    %69 = vector.load %arg2[%c0_63, %c8, %c0_64] : memref<1x17x256xbf16, #tpu.memory_space<vmem>>, vector<1x9x256xbf16>
    %70 = vector.shape_cast %69 : vector<1x9x256xbf16> to vector<9x256xbf16>
    %c2_65 = arith.constant 2 : index
    %c0_66 = arith.constant 0 : index
    %c0_67 = arith.constant 0 : index
    %71 = vector.load %arg4[%c2_65, %c0_66, %c0_67] : memref<3x9x1xbf16, #tpu.memory_space<vmem>>, vector<1x9x1xbf16>
    %72 = vector.shape_cast %71 : vector<1x9x1xbf16> to vector<9x1xbf16>
    %73 = vector.broadcast %72 : vector<9x1xbf16> to vector<9x256xbf16>
    %74 = arith.mulf %70, %73 : vector<9x256xbf16>
    %c8_68 = arith.constant 8 : index
    %c0_69 = arith.constant 0 : index
    %c0_70 = arith.constant 0 : index
    %75 = vector.load %arg3[%c8_68, %c0_69, %c0_70] : memref<9x256x256xbf16, #tpu.memory_space<vmem>>, vector<1x256x256xbf16>
    %76 = vector.shape_cast %75 : vector<1x256x256xbf16> to vector<256x256xbf16>
    %cst_71 = arith.constant dense<0.000000e+00> : vector<9x256xf32>
    %77 = tpu.matmul %74, %76, %cst_71 {dimension_numbers = #tpu.dot_dimension_numbers<[1], [0], [0], [1], [0, 0, 1, 1], [], []>} : vector<9x256xbf16>, vector<256x256xbf16>, vector<9x256xf32> -> vector<9x256xf32>
    %78 = arith.addf %68, %77 : vector<9x256xf32>
    %c0_72 = arith.constant 0 : index
    %c0_73 = arith.constant 0 : index
    %79 = vector.load %arg5[%c0_72, %c0_73] : memref<1x256xf32, #tpu.memory_space<vmem>>, vector<1x256xf32>
    %80 = vector.broadcast %79 : vector<1x256xf32> to vector<9x256xf32>
    %81 = arith.mulf %78, %80 : vector<9x256xf32>
    %c0_74 = arith.constant 0 : index
    %c0_75 = arith.constant 0 : index
    %82 = vector.load %arg6[%c0_74, %c0_75] : memref<1x256xf32, #tpu.memory_space<vmem>>, vector<1x256xf32>
    %83 = vector.broadcast %82 : vector<1x256xf32> to vector<9x256xf32>
    %84 = arith.addf %81, %83 : vector<9x256xf32>
    %cst_76 = arith.constant 0.000000e+00 : f32
    %85 = vector.broadcast %cst_76 : f32 to vector<9x256xf32>
    %86 = arith.maximumf %84, %85 : vector<9x256xf32>
    %87 = arith.truncf %86 : vector<9x256xf32> to vector<9x256xbf16>
    %c0_77 = arith.constant 0 : index
    %c0_78 = arith.constant 0 : index
    %c0_79 = arith.constant 0 : index
    %88 = vector.load %arg7[%c0_77, %c0_78, %c0_79] : memref<1x9x256xbf16, #tpu.memory_space<vmem>>, vector<1x9x256xbf16>
    %89 = vector.shape_cast %88 : vector<1x9x256xbf16> to vector<9x256xbf16>
    %90 = vector.shape_cast %87 : vector<9x256xbf16> to vector<1x9x256xbf16>
    tpu.vector_store %arg7[%c0_77, %c0_78, %c0_79], %90 {strides = array<i32>} : memref<1x9x256xbf16, #tpu.memory_space<vmem>>, vector<1x9x256xbf16>,
    return
  }
  func.func @transform_0(%arg0: i32, %arg1: i32) -> (i32, i32, i32) {
    %c0_i32 = arith.constant 0 : i32
    %c0_i32_0 = arith.constant 0 : i32
    %c0_i32_1 = arith.constant 0 : i32
    return %arg1, %c0_i32, %c0_i32_0 : i32, i32, i32
  }
  func.func @transform_1(%arg0: i32, %arg1: i32) -> (i32, i32, i32) {
    %c0_i32 = arith.constant 0 : i32
    %c0_i32_0 = arith.constant 0 : i32
    %c0_i32_1 = arith.constant 0 : i32
    return %c0_i32, %c0_i32_0, %arg0 : i32, i32, i32
  }
  func.func @transform_2(%arg0: i32, %arg1: i32) -> (i32, i32, i32) {
    %c0_i32 = arith.constant 0 : i32
    %c0_i32_0 = arith.constant 0 : i32
    %c0_i32_1 = arith.constant 0 : i32
    %c0_i32_2 = arith.constant 0 : i32
    return %c0_i32, %c0_i32_0, %c0_i32_1 : i32, i32, i32
  }
  func.func @transform_3(%arg0: i32, %arg1: i32) -> (i32, i32) {
    %c0_i32 = arith.constant 0 : i32
    %c0_i32_0 = arith.constant 0 : i32
    return %c0_i32, %arg0 : i32, i32
  }
  func.func @transform_4(%arg0: i32, %arg1: i32) -> (i32, i32) {
    %c0_i32 = arith.constant 0 : i32
    %c0_i32_0 = arith.constant 0 : i32
    return %c0_i32, %arg0 : i32, i32
  }
  func.func @transform_5(%arg0: i32, %arg1: i32) -> (i32, i32, i32) {
    %c0_i32 = arith.constant 0 : i32
    %c0_i32_0 = arith.constant 0 : i32
    return %arg1, %c0_i32, %arg0 : i32, i32, i32
  }
}

module attributes {stable_mosaic.version = 11 : i64} {
  func.func @_fused_matmul_kernel(%arg0: i32, %arg1: i32, %arg2: memref<2x4608xbf16, #tpu.memory_space<vmem>>, %arg3: memref<4608x128xbf16, #tpu.memory_space<vmem>>, %arg4: memref<1x128xf32, #tpu.memory_space<vmem>>, %arg5: memref<1x128xf32, #tpu.memory_space<vmem>>, %arg6: memref<2x128xf32, #tpu.memory_space<vmem>>) attributes {dimension_semantics = [#tpu.dimension_semantics<parallel>, #tpu.dimension_semantics<parallel>], iteration_bounds = array<i64: 1, 1>, scalar_prefetch = 0 : i64, scratch_operands = 0 : i64, tpu.core_type = #tpu.core_type<tc>, window_params = [{transform_indices = @transform_0, window_bounds = array<i64: 2, 4608>}, {transform_indices = @transform_1, window_bounds = array<i64: 4608, 128>}, {transform_indices = @transform_2, window_bounds = array<i64: 1, 128>}, {transform_indices = @transform_3, window_bounds = array<i64: 1, 128>}, {transform_indices = @transform_4, window_bounds = array<i64: 2, 128>}]} {
    %c0 = arith.constant 0 : index
    %c0_0 = arith.constant 0 : index
    %0 = vector.load %arg2[%c0, %c0_0] : memref<2x4608xbf16, #tpu.memory_space<vmem>>, vector<2x4608xbf16>
    %c0_1 = arith.constant 0 : index
    %c0_2 = arith.constant 0 : index
    %1 = vector.load %arg3[%c0_1, %c0_2] : memref<4608x128xbf16, #tpu.memory_space<vmem>>, vector<4608x128xbf16>
    %cst = arith.constant dense<0.000000e+00> : vector<2x128xf32>
    %2 = tpu.matmul %0, %1, %cst {dimension_numbers = #tpu.dot_dimension_numbers<[1], [0], [0], [1], [0, 0, 1, 1], [], []>} : vector<2x4608xbf16>, vector<4608x128xbf16>, vector<2x128xf32> -> vector<2x128xf32>
    %c0_3 = arith.constant 0 : index
    %c0_4 = arith.constant 0 : index
    %3 = vector.load %arg4[%c0_3, %c0_4] : memref<1x128xf32, #tpu.memory_space<vmem>>, vector<1x128xf32>
    %4 = vector.broadcast %3 : vector<1x128xf32> to vector<2x128xf32>
    %5 = arith.mulf %2, %4 : vector<2x128xf32>
    %c0_5 = arith.constant 0 : index
    %c0_6 = arith.constant 0 : index
    %6 = vector.load %arg5[%c0_5, %c0_6] : memref<1x128xf32, #tpu.memory_space<vmem>>, vector<1x128xf32>
    %7 = vector.broadcast %6 : vector<1x128xf32> to vector<2x128xf32>
    %8 = arith.addf %5, %7 : vector<2x128xf32>
    %c0_7 = arith.constant 0 : index
    %c0_8 = arith.constant 0 : index
    %9 = vector.load %arg6[%c0_7, %c0_8] : memref<2x128xf32, #tpu.memory_space<vmem>>, vector<2x128xf32>
    tpu.vector_store %arg6[%c0_7, %c0_8], %8 {strides = array<i32>} : memref<2x128xf32, #tpu.memory_space<vmem>>, vector<2x128xf32>,
    return
  }
  func.func @transform_0(%arg0: i32, %arg1: i32) -> (i32, i32) {
    %c0_i32 = arith.constant 0 : i32
    %c0_i32_0 = arith.constant 0 : i32
    return %arg1, %c0_i32 : i32, i32
  }
  func.func @transform_1(%arg0: i32, %arg1: i32) -> (i32, i32) {
    %c0_i32 = arith.constant 0 : i32
    %c0_i32_0 = arith.constant 0 : i32
    return %c0_i32, %arg0 : i32, i32
  }
  func.func @transform_2(%arg0: i32, %arg1: i32) -> (i32, i32) {
    %c0_i32 = arith.constant 0 : i32
    %c0_i32_0 = arith.constant 0 : i32
    return %c0_i32, %arg0 : i32, i32
  }
  func.func @transform_3(%arg0: i32, %arg1: i32) -> (i32, i32) {
    %c0_i32 = arith.constant 0 : i32
    %c0_i32_0 = arith.constant 0 : i32
    return %c0_i32, %arg0 : i32, i32
  }
  func.func @transform_4(%arg0: i32, %arg1: i32) -> (i32, i32) {
    %c0_i32 = arith.constant 0 : i32
    return %arg1, %arg0 : i32, i32
  }
}

</mosaic_0001>

<bundles_post_ra>
// kernel: test_et_al_forward.5
= control target key start
LH: loop header
LB: loop body
LE: loop exit
PB: predicated region body
PF: predicated region fallthrough
CT: control target
= control target key end

     0   :  { %10 = vsyncpa [#allocation3], 0  ;;  %s4849_s0 = inlined_call_operand.hbm [shape: bf16[2,65,128], index: 0, kind: input, shape index: {}]   ;;  %s4850_s1 = inlined_call_operand.hbm [shape: bf16[9,128,256], index: 1, kind: input, shape index: {}]   ;;  %s4851_s2 = inlined_call_operand.hbm [shape: bf16[3,49,1], index: 2, kind: input, shape index: {}]   ;;  %s4852_s3 = inlined_call_operand.hbm [shape: f32[1,256], index: 3, kind: input, shape index: {}]   ;;  %s4853_s4 = inlined_call_operand.hbm [shape: f32[1,256], index: 4, kind: input, shape index: {}]   ;;  %s4854_s5 = inlined_call_operand.hbm [shape: bf16[2,49,256], index: 5, kind: output, shape index: {}]  }
   0x1   :  { %12 = vsyncpa [#allocation3 + $0x1], 0 }
   0x2   :  { %13 = vsyncpa [#allocation6], 0 }
   0x3   :  { %14 = vsyncpa [#allocation9], 0 }
   0x4   :  { %15 = vsyncpa [#allocation4], 0 }
   0x5   :  { %17 = vsyncpa [#allocation4 + $0x1], 0  ;;  %s3991_s18 = smov 0   ;;  %s3993_s19 = smov 0  }
   0x6   :  { %s3995_s20 = smov 0   ;;  %s3997_s21 = smov 0  }
   0x7   :  { %s3999_s22 = smov 0   ;;  %s4001_s23 = smov 0  }
   0x8 LB: > { %4861 = sst [smem:[#allocation16_spill]] %s3925_s18  ;;  %s3014_s24 = sadd.s32 4294967295, %s3945_s23   ;;  %s3945_s23 = sphi %s4001_s23, %s23_s23   ;;  %s3941_s22 = sphi %s3999_s22, %s4897_s22   ;;  %s3937_s21 = sphi %s3997_s21, %s4896_s21   ;;  %s3933_s20 = sphi %s3995_s20, %s4895_s20   ;;  %s3929_s19 = sphi %s3993_s19, %s4894_s19   ;;  %s3925_s18 = sphi %s3991_s18, %s4893_s18  }
   0x9   : > { %s3015_s25 = sadd.s32 4294967294, %s3945_s23   ;;  %p55_p0 = scmp.ne.s32.totalorder %s3929_s19, %s3925_s18 }
   0xa   : > { %p4025_p1 = scmp.eq.s32.totalorder %s3014_s24, 0  ;;  %p4029_p2 = scmp.eq.s32.totalorder %s3014_s24, 1 }
   0xb   : > { %p186_p3 = scmp.eq.s32.totalorder %s3015_s25, 1  ;;  %p3016_p5 = scmp.ge.s32.totalorder %s3945_s23, 1 }
   0xc   : > { %s4862_s26 = scalar_select %p4025_p1, 1, 0 }
   0xd   : > { %s4863_s27 = scalar_select %p4029_p2, 1, 0 }
   0xe   : > { %p4035_p4 = por %p4025_p1, %p55_p0  ;;  %p4040_p6 = por %p186_p3, %p55_p0 }
   0xf   : > { %p193_p7 = scmp.lt.s32.totalorder %s3945_s23, 3  ;;  %s3947_s6 = smov [#allocation5]  }
  0x10   : > { %s4864_s28 = scalar_select %p4035_p4, 1, 0 }
  0x11   : > { %s4865_s29 = scalar_select %p4040_p6, 1, 0 }
  0x12   : > { %p4045_p8 = pnand %p3016_p5, %p193_p7  ;;  %s208_s7 = sshll.u32 %s3947_s6, 4  ;;  %s4049_s7 = int_to_ptr.vmem [resolvable:$true] %s208_s7 }
  0x13   : > { %4866 = sst [smem:[#allocation17_spill]] %s4865_s29  ;;  %s3948_s9 = smov [#allocation8]  }
  0x14   : > { %s4867_s30 = scalar_select %p4045_p8, 1, 0 }
  0x15   : > { %p3388_p9 = pneg %p4045_p8  ;;  %s238_s10 = sshll.u32 %s3948_s9, 4  ;;  %s4060_s10 = int_to_ptr.vmem [resolvable:$true] %s238_s10 }
  0x16   : > { %s3949_s11 = smov [#allocation7]   ;;  %s3713_s15 = scalar_lea.hbm %s4850_s1, 18432 }
  0x17   : > { %p4056_p11 = pnand %p3388_p9, %p4025_p1  ;;  %s4062_s12 = sshll.u32 %s3949_s11, 4  ;;  %s222_s12 = int_to_ptr.vmem [resolvable:$true] %s4062_s12 }
  0x18   : > { %p3714_p12 = scmp.ne.s32.totalorder %s4850_s1, %s3713_s15  ;;  %p3720_p5 = scmp.lt.u32.totalorder %s3713_s15, %s4850_s1 }
  0x19   : > { %p4072_p13 = pneg %p4056_p11 }
  0x1b   : > { %p3716_p0 = pnand %p4072_p13, %p3714_p12 }
  0x1d   : > { %p3717_p3 = pneg %p3716_p0 }
  0x1f   : > { %p3722_p7 = pnand %p3720_p5, %p3717_p3 }
  0x21   : > { %3725 = shalt.err (!%p3722_p7)
}
  0x22   : > { %s3726_s9 = scalar_lea.vmem %s4049_s7, 18432  ;;  %p3734_p1 = scmp.lt.s32.totalorder %s4049_s7, %s4049_s7 }
  0x23   : > { %p3727_p9 = scmp.ne.s32.totalorder %s4049_s7, %s3726_s9  ;;  %p3735_p4 = scmp.lt.s32.totalorder %s3726_s9, %s3726_s9 }
  0x25   : > { %p3729_p10 = pnand %p3727_p9, %p4072_p13  ;;  %p3736_p12 = por %p3735_p4, %p3734_p1 }
  0x27   : > { %p3730_p6 = pneg %p3729_p10 }
  0x29   : > { %p3737_p0 = pnand %p3736_p12, %p3730_p6 }
  0x2b   : > { %3740 = shalt.err (!%p3737_p0)
}
  0x2c   : > { %s3950_s11 = smov 128   ;;  %s3951_s13 = smov 8  }
  0x2d   : > { %3391 = dma.hbm_to_vmem [thread:$0]  (!%p4056_p11), %s4850_s1, 18432, %s4049_s7, [#allocation6], %s3950_s11, %s3950_s11, %s3951_s13  }
  0x2e   : > { %s3741_s25 = scalar_lea.hbm %s4852_s3, 32 }
  0x2f   : > { %p3742_p1 = scmp.ne.s32.totalorder %s4852_s3, %s3741_s25  ;;  %p3748_p10 = scmp.lt.u32.totalorder %s3741_s25, %s4852_s3 }
  0x31   : > { %p3744_p4 = pnand %p3742_p1, %p4072_p13 }
  0x33   : > { %p3745_p6 = pneg %p3744_p4 }
  0x35   : > { %p3750_p3 = pnand %p3748_p10, %p3745_p6 }
  0x37   : > { %3753 = shalt.err (!%p3750_p3)
}
  0x38   : > { %s3754_s7 = scalar_lea.vmem %s4060_s10, 32  ;;  %p3762_p12 = scmp.lt.s32.totalorder %s4060_s10, %s4060_s10 }
  0x39   : > { %p3755_p5 = scmp.ne.s32.totalorder %s4060_s10, %s3754_s7  ;;  %p3763_p0 = scmp.lt.s32.totalorder %s3754_s7, %s3754_s7 }
  0x3b   : > { %p3757_p7 = pnand %p3755_p5, %p4072_p13  ;;  %p3764_p1 = por %p3763_p0, %p3762_p12 }
  0x3d   : > { %p3758_p9 = pneg %p3757_p7 }
  0x3f   : > { %p3765_p4 = pnand %p3764_p1, %p3758_p9 }
  0x41   : > { %3768 = shalt.err (!%p3765_p4)
}
  0x42   : > { %3397 = dma.hbm_to_vmem [thread:$0]  (!%p4056_p11), %s4852_s3, 32, %s4060_s10, [#allocation9]  }
  0x43   : > { %s3769_s14 = scalar_lea.hbm %s4851_s2, 1344 }
  0x44   : > { %p3770_p6 = scmp.ne.s32.totalorder %s4851_s2, %s3769_s14  ;;  %p3776_p5 = scmp.lt.u32.totalorder %s3769_s14, %s4851_s2 }
  0x46   : > { %p3772_p10 = pnand %p3770_p6, %p4072_p13 }
  0x48   : > { %p3773_p3 = pneg %p3772_p10 }
  0x4a   : > { %p3778_p7 = pnand %p3776_p5, %p3773_p3 }
  0x4c   : > { %3781 = shalt.err (!%p3778_p7)
}
  0x4d   : > { %s3782_s6 = scalar_lea.vmem %s222_s12, 1344  ;;  %p3790_p1 = scmp.lt.s32.totalorder %s222_s12, %s222_s12 }
  0x4e   : > { %p3783_p9 = scmp.ne.s32.totalorder %s222_s12, %s3782_s6  ;;  %p3791_p4 = scmp.lt.s32.totalorder %s3782_s6, %s3782_s6 }
  0x50   : > { %p3785_p12 = pnand %p3783_p9, %p4072_p13  ;;  %p3792_p8 = por %p3791_p4, %p3790_p1 }
  0x52   : > { %p3786_p0 = pneg %p3785_p12 }
  0x54   : > { %p3793_p2 = pnand %p3792_p8, %p3786_p0 }
  0x56   : > { %3796 = shalt.err (!%p3793_p2)
}
  0x57   : > { %s3952_s10 = smov 64   ;;  %s3953_s9 = smov 4  }
  0x58   : > { %3394 = dma.hbm_to_vmem [thread:$0]  (!%p4056_p11), %s4851_s2, 1344, %s222_s12, [#allocation6], %s3952_s10, %s3952_s10, %s3953_s9  }
  0x59   : > { %s3954_s29 = smov [#allocation10]   ;;  %s3797_s15 = scalar_lea.hbm %s4853_s4, 32 }
  0x5a   : > { %s252_s11 = sshll.u32 %s3954_s29, 4  ;;  %p3798_p2 = scmp.ne.s32.totalorder %s4853_s4, %s3797_s15  ;;  %s253_s11 = int_to_ptr.vmem [resolvable:$true] %s252_s11 }
  0x5b   : > { %p3804_p10 = scmp.lt.u32.totalorder %s3797_s15, %s4853_s4 }
  0x5c   : > { %p3800_p8 = pnand %p3798_p2, %p4072_p13 }
  0x5e   : > { %p3801_p6 = pneg %p3800_p8 }
  0x60   : > { %p3806_p3 = pnand %p3804_p10, %p3801_p6 }
  0x62   : > { %3809 = shalt.err (!%p3806_p3)
}
  0x63   : > { %s3810_s12 = scalar_lea.vmem %s253_s11, 32  ;;  %p3818_p12 = scmp.lt.s32.totalorder %s253_s11, %s253_s11 }
  0x64   : > { %p3811_p5 = scmp.ne.s32.totalorder %s253_s11, %s3810_s12  ;;  %p3819_p0 = scmp.lt.s32.totalorder %s3810_s12, %s3810_s12 }
  0x66   : > { %p3813_p7 = pnand %p3811_p5, %p4072_p13  ;;  %p3820_p1 = por %p3819_p0, %p3818_p12 }
  0x68   : > { %p3814_p9 = pneg %p3813_p7 }
  0x6a   : > { %p3821_p4 = pnand %p3820_p1, %p3814_p9 }
  0x6c   : > { %3824 = shalt.err (!%p3821_p4)
}
  0x6d   : > { %3400 = dma.hbm_to_vmem [thread:$0]  (!%p4056_p11), %s4853_s4, 32, %s253_s11, [#allocation9]  }
  0x6e   : > { %s32_s24 = sadd.s32 1, %s3941_s22  ;;  %s42_s29 = sadd.s32 1, %s3933_s20 }
  0x6f   : > { %p33_p13 = scmp.ge.s32.totalorder %s32_s24, 2  ;;  %p49_p2 = scmp.ne.s32.totalorder %s3933_s20, %s3929_s19 }
  0x70   : > { %p50_p8 = scmp.eq.s32.totalorder %s3945_s23, 0  ;;  %p3413_p6 = scmp.lt.s32.totalorder %s3945_s23, 2 }
  0x71   : > { %s4899_s24 = smov (%p33_p13, %s32_s24), 0  ;;  %p4870_p3 = scmp.ne.s32.totalorder %s4863_s27, 0 }
  0x72   : > { %p51_p10 = por %p50_p8, %p49_p2  ;;  %s39_s13 = ssub.s32 %s3941_s22, %s4899_s24 }
  0x73   : > { %p4166_p5 = por %p4870_p3, %p49_p2  ;;  %s263_s14 = sand.u32 1, %s3933_s20  }
  0x74   : > { %p40_p7 = scmp.eq.s32.totalorder %s39_s13, 0  ;;  %s3363_s11 = smul.u32 36, %s263_s14 }
  0x75   : > { %p4173_p11 = pnand %p3413_p6, %p51_p10  ;;  %s3364_s17 = smul.u32 576, %s3941_s22 }
  0x76   : > { %s4178_s16 = scalar_select %p40_p7, %s3933_s20, %s42_s29  }
  0x77   : > { %s267_s25 = scalar_lea.vmem [#allocation2], %s3363_s11  ;;  %s4184_s7 = scalar_lea.hbm %s4849_s0, %s3364_s17 }
  0x78   : > { %s274_s6 = sshll.u32 %s267_s25, 4  ;;  %s4188_s18 = scalar_lea.sflag [#allocation3], %s263_s14  ;;  %s4186_s6 = int_to_ptr.vmem [resolvable:$true] %s274_s6 }
  0x79   : > { %s3825_s13 = scalar_lea.hbm %s4184_s7, 576  ;;  %p3827_p12 = pneg %p4173_p11 }
  0x7a   : > { %p3826_p9 = scmp.ne.s32.totalorder %s4184_s7, %s3825_s13  ;;  %s3830_s17 = scalar_lea.hbm %s4849_s0, 1152 }
  0x7b   : > { %p3831_p4 = scmp.lt.u32.totalorder %s4184_s7, %s4849_s0  ;;  %p3832_p13 = scmp.lt.u32.totalorder %s3830_s17, %s3825_s13 }
  0x7c   : > { %p3828_p0 = pnand %p3827_p12, %p3826_p9  ;;  %p3834_p8 = scmp.lt.u32.totalorder %s3825_s13, %s4184_s7 }
  0x7d   : > { %p3833_p2 = por %p3832_p13, %p3831_p4 }
  0x7e   : > { %p3829_p1 = pneg %p3828_p0 }
  0x7f   : > { %p3835_p6 = por %p3834_p8, %p3833_p2 }
  0x81   : > { %p3836_p10 = pnand %p3835_p6, %p3829_p1 }
  0x83   : > { %3839 = shalt.err (!%p3836_p10)
}
  0x84   : > { %s3840_s14 = scalar_lea.vmem %s4186_s6, 576  ;;  %s3955_s12 = smov [#allocation2]  }
  0x85   : > { %p3841_p3 = scmp.ne.s32.totalorder %s4186_s6, %s3840_s14  ;;  %s3845_s29 = sshll.u32 %s3955_s12, 4  ;;  %s3846_s29 = int_to_ptr.vmem [resolvable:$false] %s3845_s29 }
  0x86   : > { %s3847_s11 = scalar_lea.vmem %s3846_s29, 1152  ;;  %p3848_p0 = scmp.lt.s32.totalorder %s4186_s6, %s3846_s29 }
  0x87   : > { %p3843_p7 = pnand %p3841_p3, %p3827_p12  ;;  %p3849_p4 = scmp.lt.s32.totalorder %s3847_s11, %s3840_s14 }
  0x89   : > { %p3844_p9 = pneg %p3843_p7  ;;  %p3850_p13 = por %p3849_p4, %p3848_p0 }
  0x8b   : > { %p3851_p2 = pnand %p3850_p13, %p3844_p9 }
  0x8d   : > { %3854 = shalt.err (!%p3851_p2)
}
  0x8e   : > { %3404 = dma.hbm_to_vmem [thread:$0]  (!%p4173_p11), %s4184_s7, 576, %s4186_s6, %s4188_s18, %s3952_s10, %s3952_s10, %s3953_s9  }
  0x8f   : > { %p4873_p12 = scmp.ne.s32.totalorder %s4867_s30, 0 }
  0x90   : > { %s4222_s13 = sand.u32 (!%p4873_p12), 1, %s3929_s19   ;;  %p4874_p1 = scmp.ne.s32.totalorder (!%p4873_p12), %s4864_s28, 0 }
  0x91   : > { %286 = sbr.rel (%p4873_p12) target bundleno = 670 (0x29e), region = 40  ;;  %s289_s25 = scalar_lea.sflag (!%p4873_p12), [#allocation3], %s4222_s13 }
  0x92   : > { %s3365_s17 = smul.u32 (!%p4873_p12), 36, %s4222_s13 }
  0x94   : > { %s4226_s27 = scalar_lea.vmem (!%p4873_p12), [#allocation2], %s3365_s17 }
  0x98   : > { %3908 = dma.done.wait (%p4874_p1), %s289_s25, 576  }
  0x99   : > { %3910 = vsyncadd (%p4874_p1), %s289_s25, 4294966720  ;;  %p4875_p11 = scmp.ne.s32.totalorder %s4862_s26, 0 }
  0x9b   : > { %3912 = dma.done.wait (%p4875_p11), [#allocation6], 19776  }
  0x9c   : > { %3914 = vsyncadd (%p4875_p11), [#allocation6], 4294947520 }
  0x9d   : > { %3916 = dma.done.wait (%p4875_p11), [#allocation9], 64  }
  0x9e   : > { %3918 = vsyncadd (%p4875_p11), [#allocation9], 4294967232  ;;  %v3956_v0 = vmov 0   ;;  %v860_v1 = vld [vmem:[#allocation7 + $0x40] sm:$0xf]  ;;  %vm956_vm5 = vcmask 1040384  }
  0x9f   : > { %3480 = vset.pattern.permute.xlu1 %v3956_v0  ;;  %3479 = vset.pattern.permute.xlu0 %v3956_v0  ;;  %v858_v2 = vld [vmem:[#allocation7 + $0x38] sm:$0xf]  ;;  %v861_v3 = vld [vmem:[#allocation7 + $0x44] sm:$0xf]  ;;  %v859_v4 = vld [vmem:[#allocation7 + $0x3c] sm:$0xf] }
  0xa0   : > { %643 = vmatprep.mubr.bf16.mxu1 %v3956_v0  ;;  %1685 = vmatprep.mubr.bf16.mxu0 %v3956_v0  ;;  %v863_v5 = vld [vmem:[#allocation7 + $0x4c] sm:$0xf]  ;;  %v862_v6 = vld [vmem:[#allocation7 + $0x48] sm:$0xf]  ;;  %v3484_v9 = vld [vmem:[#allocation5 + $0x94] ss:$8 sps:$4 sm:$0xff]  }
  0xa1   : > { %891 = vperm.xlu1 %3480, %v860_v1   ;;  %867 = vperm.xlu0 %3479, %v858_v2   ;;  %v3481_v7 = vld [vmem:[#allocation5 + $0x84] ss:$8 sps:$4 sm:$0xff]   ;;  %v3483_v8 = vld [vmem:[#allocation5 + $0x80] ss:$8 sps:$4 sm:$0xff]   ;;  %v3486_v10 = vld [vmem:[#allocation5 + $0x90] ss:$8 sps:$4 sm:$0xff]  }
  0xa2   : > { %611 = vmatprep.subr.bf16.mxu1 %v3481_v7  ;;  %v348_v11 = vld [vmem:[#allocation7 + $0x4] sm:$0xf]  ;;  %v3489_v13 = vld [vmem:[#allocation5 + $0x200] ss:$8 sps:$4 sm:$0xff]   ;;  %v3493_v16 = vld [vmem:[#allocation5 + $0x214] ss:$8 sps:$4 sm:$0xff]  }
  0xa3   : > { %612 = vmatpush1.bf16.msra.mxu1 %v3483_v8  ;;  %v3487_v12 = vld [vmem:[#allocation5 + $0x204] ss:$8 sps:$4 sm:$0xff]   ;;  %v347_v14 = vld [vmem:[#allocation7] sm:$0xf]  ;;  %v3495_v17 = vld [vmem:[#allocation5 + $0x210] ss:$8 sps:$4 sm:$0xff]  }
  0xa4   : > { %v3490_v15 = vld [vmem:[#allocation5 + $0xa4] ss:$8 sps:$4 sm:$0xff]   ;;  %613 = vmatprep.subr.bf16.mxu1 %v3484_v9  ;;  %1653 = vmatprep.subr.bf16.mxu0 %v3487_v12  ;;  %v349_v18 = vld [vmem:[#allocation7 + $0x8] sm:$0xf]  ;;  %v864_v20 = vld [vmem:[#allocation7 + $0x50] sm:$0x1] }
  0xa5   : > { %903 = vperm.xlu1 %3480, %v861_v3   ;;  %879 = vperm.xlu0 %3479, %v859_v4   ;;  %v3492_v19 = vld [vmem:[#allocation5 + $0xa0] ss:$8 sps:$4 sm:$0xff]   ;;  %v3499_v21 = vld [vmem:[#allocation5 + $0x224] ss:$8 sps:$4 sm:$0xff]   ;;  %v3496_v22 = vld [vmem:[#allocation5 + $0xb4] ss:$8 sps:$4 sm:$0xff]  }
  0xa6   : > { %1654 = vmatpush1.bf16.msra.mxu0 %v3489_v13  ;;  %v3501_v23 = vld [vmem:[#allocation5 + $0x220] ss:$8 sps:$4 sm:$0xff]   ;;  %v3498_v24 = vld [vmem:[#allocation5 + $0xb0] ss:$8 sps:$4 sm:$0xff]   ;;  %v3505_v25 = vld [vmem:[#allocation5 + $0x234] ss:$8 sps:$4 sm:$0xff]  }
  0xa7   : > { %614 = vmatpush1.bf16.msra.mxu1 %v3486_v10  ;;  %1655 = vmatprep.subr.bf16.mxu0 %v3493_v16  ;;  %v351_v26 = vld [vmem:[#allocation7 + $0x10] sm:$0xf]  ;;  %v350_v27 = vld [vmem:[#allocation7 + $0xc] sm:$0xf]  ;;  %v353_v30 = vld [vmem:[#allocation7 + $0x18] sm:$0x1] }
  0xa8   : > { %615 = vmatprep.subr.bf16.mxu1 %v3490_v15  ;;  %v3502_v28 = vld [vmem:[#allocation5 + $0xc4] ss:$8 sps:$4 sm:$0xff]   ;;  %v3507_v29 = vld [vmem:[#allocation5 + $0x230] ss:$8 sps:$4 sm:$0xff]   ;;  %v3504_v31 = vld [vmem:[#allocation5 + $0xc0] ss:$8 sps:$4 sm:$0xff]  }
  0xa9   : > { %927 = vperm.xlu1 %3480, %v863_v5   ;;  %915 = vperm.xlu0 %3479, %v862_v6   ;;  %v3511_v32 = vld [vmem:[#allocation5 + $0x244] ss:$8 sps:$4 sm:$0xff]   ;;  %v352_v33 = vld [vmem:[#allocation7 + $0x14] sm:$0xf]  ;;  %v3510_v35 = vld [vmem:[#allocation5 + $0xd0] ss:$8 sps:$4 sm:$0xff]  }
  0xaa   : > { %1656 = vmatpush1.bf16.msra.mxu0 %v3495_v17  ;;  %v3508_v34 = vld [vmem:[#allocation5 + $0xd4] ss:$8 sps:$4 sm:$0xff]   ;;  %v3513_v36 = vld [vmem:[#allocation5 + $0x240] ss:$8 sps:$4 sm:$0xff]   ;;  %v3514_v37 = vld [vmem:[#allocation5 + $0xe4] ss:$8 sps:$4 sm:$0xff]  }
  0xab   : > { %616 = vmatpush1.bf16.msra.mxu1 %v3492_v19  ;;  %1657 = vmatprep.subr.bf16.mxu0 %v3499_v21  ;;  %v3517_v38 = vld [vmem:[#allocation5 + $0x254] ss:$8 sps:$4 sm:$0xff]   ;;  %v4251_v41 = vld [vmem:[%s4226_s27 + $0x8] sm:$0xf]  ;;  %v4254_v42 = vld [vmem:[%s4226_s27 + $0xc] sm:$0xf] }
  0xac   : > { %617 = vmatprep.subr.bf16.mxu1 %v3496_v22  ;;  %v4245_v39 = vld [vmem:[%s4226_s27] sm:$0xf]  ;;  %v4248_v40 = vld [vmem:[%s4226_s27 + $0x4] sm:$0xf]  ;;  %v3029_v45 = vcombine.low %v4251_v41, %v4254_v42  ;;  %v3523_v47 = vld [vmem:[#allocation5 + $0x264] ss:$8 sps:$4 sm:$0xff]  }
  0xad   : > { %368 = vperm.xlu1 %3480, %v348_v11   ;;  %356 = vperm.xlu0 %3479, %v347_v14   ;;  %v3516_v43 = vld [vmem:[#allocation5 + $0xe0] ss:$8 sps:$4 sm:$0xff]   ;;  %v3028_v44 = vcombine.low %v4245_v39, %v4248_v40  ;;  %v3519_v46 = vld [vmem:[#allocation5 + $0x250] ss:$8 sps:$4 sm:$0xff]   ;;  %v3520_v51 = vld [vmem:[#allocation5 + $0xf4] ss:$8 sps:$4 sm:$0xff]  }
  0xae   : > { %1658 = vmatpush1.bf16.msra.mxu0 %v3501_v23  ;;  %v505_v50 = vshll.u32 %v3029_v45, 16  ;;  %v3522_v53 = vld [vmem:[#allocation5 + $0xf0] ss:$8 sps:$4 sm:$0xff]   ;;  %v3525_v54 = vld [vmem:[#allocation5 + $0x260] ss:$8 sps:$4 sm:$0xff]   ;;  %v509_v5 = vshrl.u32 %v3029_v45, 16 }
  0xaf   : > { %618 = vmatpush1.bf16.msra.mxu1 %v3498_v24  ;;  %1659 = vmatprep.subr.bf16.mxu0 %v3505_v25  ;;  %v498_v48 = vshrl.u32 %v3028_v44, 16  ;;  %v500_v49 = vshll.u32 %v3028_v44, 16  ;;  %v3531_v55 = vld [vmem:[#allocation5 + $0x274] ss:$8 sps:$4 sm:$0xff]   ;;  %v4261_v58 = vld [vmem:[%s4226_s27 + $0x10] sm:$0xf] }
  0xb0   : > { %619 = vmatprep.subr.bf16.mxu1 %v3502_v28  ;;  %v507_v57 = vrot.slane %v505_v50, 1  ;;  %v4264_v59 = vld [vmem:[%s4226_s27 + $0x14] sm:$0xf]  ;;  %vm496_vm0 = vsmask.f32 7424  ;;  %vm957_vm6 = vcmask 1044484  }
  0xb1   : > { %380 = vperm.xlu1 %3480, %v349_v18   ;;  %939 = vperm.xlu0 %3479, %v864_v20   ;;  %v502_v52 = vrot.slane %v500_v49, 1  ;;  %v3530_v60 = vld [vmem:[#allocation5 + $0x4] ss:$8 sps:$4 sm:$0xff]   ;;  %v3030_v61 = vcombine.low %v4261_v58, %v4264_v59  ;;  %v3528_v62 = vld [vmem:[#allocation5] ss:$8 sps:$4 sm:$0xff]   ;;  %vm4463_vm7 = vmor %vm956_vm5, %vm957_vm6  ;;  %vm2055_vm8 = vcmask 1042432  }
  0xb2   : > { %1660 = vmatpush1.bf16.msra.mxu0 %v3507_v29  ;;  %v3533_v63 = vld [vmem:[#allocation5 + $0x270] ss:$8 sps:$4 sm:$0xff]   ;;  %v4269_v1 = vld [vmem:[%s4226_s27 + $0x4] sm:$0xf]  ;;  %v4272_v2 = vld [vmem:[%s4226_s27 + $0x8] sm:$0xf]  ;;  %v511_v12 = vor.u32 %v509_v5, %v507_v57 }
  0xb3   : > { %620 = vmatpush1.bf16.msra.mxu1 %v3504_v31  ;;  %1661 = vmatprep.subr.bf16.mxu0 %v3511_v32  ;;  %v503_v56 = vor.u32 %v502_v52, %v498_v48  ;;  %v3539_v4 = vld [vmem:[#allocation5 + $0x284] ss:$8 sps:$4 sm:$0xff]   ;;  %v513_v6 = vshll.u32 %v3030_v61, 16  ;;  %v3536_v7 = vld [vmem:[#allocation5 + $0x14] ss:$8 sps:$4 sm:$0xff]   ;;  %v3108_v8 = vcombine.low %v4269_v1, %v4272_v2  ;;  %v517_v23 = vshrl.u32 %v3030_v61, 16 }
  0xb4   : > { %621 = vmatprep.subr.bf16.mxu1 %v3508_v34  ;;  %v3534_v9 = vld [vmem:[#allocation5 + $0x10] ss:$8 sps:$4 sm:$0xff]   ;;  %v3537_v10 = vld [vmem:[#allocation5 + $0x280] ss:$8 sps:$4 sm:$0xff]   ;;  %v3547_v14 = vld [vmem:[#allocation5 + $0x294] ss:$8 sps:$4 sm:$0xff]  }
  0xb5   : > { %404 = vperm.xlu1 %3480, %v351_v26   ;;  %392 = vperm.xlu0 %3479, %v350_v27   ;;  %v508_v3 = vsel %vm496_vm0, %v503_v56, %v507_v57  ;;  %v4278_v11 = vld [vmem:[%s4226_s27 + $0x18] sm:$0x1]  ;;  %v515_v13 = vrot.slane %v513_v6, 1  ;;  %v3544_v16 = vld [vmem:[#allocation5 + $0x24] ss:$8 sps:$4 sm:$0xff]   ;;  %vm2056_vm9 = vcmask 1046532  }
  0xb6   : > { %1662 = vmatpush1.bf16.msra.mxu0 %v3513_v36  ;;  %v4282_v15 = vcombine.low %v4278_v11, %v4278_v11  ;;  %v3542_v17 = vld [vmem:[#allocation5 + $0x20] ss:$8 sps:$4 sm:$0xff]   ;;  %v3545_v18 = vld [vmem:[#allocation5 + $0x290] ss:$8 sps:$4 sm:$0xff]   ;;  %v3553_v22 = vld [vmem:[#allocation5 + $0x2a4] ss:$8 sps:$4 sm:$0xff]  }
  0xb7   : > { %622 = vmatpush1.bf16.msra.mxu1 %v3510_v35  ;;  %1663 = vmatprep.subr.bf16.mxu0 %v3517_v38  ;;  %v4287_v19 = vld [vmem:[%s4226_s27 + $0xc] sm:$0xf]  ;;  %v4290_v20 = vld [vmem:[%s4226_s27 + $0x10] sm:$0xf]  ;;  %v516_v21 = vsel %vm496_vm0, %v511_v12, %v515_v13  ;;  %v3550_v25 = vld [vmem:[#allocation5 + $0x34] ss:$8 sps:$4 sm:$0xff]   ;;  %v519_v29 = vor.u32 %v517_v23, %v515_v13 }
  0xb8   : > { %623 = vmatprep.subr.bf16.mxu1 %v3514_v37  ;;  %v521_v24 = vshll.u32 %v4282_v15, 16  ;;  %v4296_v26 = vcombine.low %v4287_v19, %v4290_v20  ;;  %v3551_v27 = vld [vmem:[#allocation5 + $0x2a0] ss:$8 sps:$4 sm:$0xff]   ;;  %v3548_v28 = vld [vmem:[#allocation5 + $0x30] ss:$8 sps:$4 sm:$0xff]   ;;  %v525_v49 = vshrl.u32 %v4282_v15, 16  ;;  %vm4523_vm11 = vmor %vm2055_vm8, %vm2056_vm9 }
  0xb9   : > { %428 = vperm.xlu1 %3480, %v353_v30   ;;  %416 = vperm.xlu0 %3479, %v352_v33   ;;  %v3561_v31 = vld [vmem:[#allocation5 + $0x2b4] ss:$8 sps:$4 sm:$0xff]   ;;  %v3558_v32 = vld [vmem:[#allocation5 + $0x44] ss:$8 sps:$4 sm:$0xff]   ;;  %v3559_v33 = vld [vmem:[#allocation5 + $0x2b0] ss:$8 sps:$4 sm:$0xff]  }
  0xba   : > { %1664 = vmatpush1.bf16.msra.mxu0 %v3519_v46  ;;  %v523_v30 = vrot.slane %v521_v24, 1  ;;  %v4301_v34 = vld [vmem:[%s4226_s27 + $0x14] sm:$0xf]  ;;  %v4305_v35 = vld [vmem:[%s4226_s27 + $0x18] sm:$0xf]  ;;  %vm1027_vm10 = vcmask 1046528  }
  0xbb   : > { %624 = vmatpush1.bf16.msra.mxu1 %v3516_v43  ;;  %1665 = vmatprep.subr.bf16.mxu0 %v3523_v47  ;;  %v3556_v37 = vld [vmem:[#allocation5 + $0x40] ss:$8 sps:$4 sm:$0xff]   ;;  %v3567_v38 = vld [vmem:[#allocation5 + $0x2c4] ss:$8 sps:$4 sm:$0xff]   ;;  %v3564_v43 = vld [vmem:[#allocation5 + $0x54] ss:$8 sps:$4 sm:$0xff]   ;;  %v3110_v44 = vcombine.low %v4301_v34, %v4305_v35 }
  0xbc   : > { %625 = vmatprep.subr.bf16.mxu1 %v3520_v51  ;;  %v524_v36 = vsel %vm496_vm0, %v519_v29, %v523_v30  ;;  %v3565_v45 = vld [vmem:[#allocation5 + $0x2c0] ss:$8 sps:$4 sm:$0xff]   ;;  %v3562_v46 = vld [vmem:[#allocation5 + $0x50] ss:$8 sps:$4 sm:$0xff]   ;;  %v3574_v47 = vld [vmem:[#allocation5 + $0x2d4] ss:$8 sps:$4 sm:$0xff]  }
  0xbd   : > { %v3571_v48 = vld [vmem:[#allocation5 + $0x64] ss:$8 sps:$4 sm:$0xff]   ;;  %v3572_v50 = vld [vmem:[#allocation5 + $0x2d0] ss:$8 sps:$4 sm:$0xff]   ;;  %v3569_v52 = vld [vmem:[#allocation5 + $0x60] ss:$8 sps:$4 sm:$0xff]  }
  0xbe   : > { %1666 = vmatpush1.bf16.msra.mxu0 %v3525_v54  ;;  %v4314_v51 = vld [vmem:[%s4226_s27 + $0x1c] sm:$0x1]  ;;  %v3579_v56 = vld [vmem:[#allocation5 + $0x2e0] ss:$8 sps:$4 sm:$0xff]   ;;  %v3585_v61 = vld [vmem:[#allocation5 + $0x104] ss:$8 sps:$4 sm:$0xff]  }
  0xbf   : > { %626 = vmatpush1.bf16.msra.mxu1 %v3522_v53  ;;  %1667 = vmatprep.subr.bf16.mxu0 %v3531_v55  ;;  %v3581_v53 = vld [vmem:[#allocation5 + $0x2e4] ss:$8 sps:$4 sm:$0xff]   ;;  %v3578_v54 = vld [vmem:[#allocation5 + $0x74] ss:$8 sps:$4 sm:$0xff]   ;;  %v3111_v55 = vcombine.low %v4314_v51, %v4314_v51  ;;  %v3576_v57 = vld [vmem:[#allocation5 + $0x70] ss:$8 sps:$4 sm:$0xff]  }
  0xc0   : > { %784 = vmatprep.subr.bf16.mxu1 %v3530_v60  ;;  %v3588_v60 = vld [vmem:[#allocation5 + $0x2f4] ss:$8 sps:$4 sm:$0xff]   ;;  %v2344_v5 = vshrl.u32 %v3110_v44, 16  ;;  %v2347_v6 = vshll.u32 %v3110_v44, 16  ;;  %vm1322_vm1 = vsmask.f32 4352 }
  0xc1   : > { %v3957_v15 = vmov 839922192   ;;  %v2530_v29 = vld [vmem:[%s4226_s27 + $0x8] sm:$0xf]  ;;  %v2531_v30 = vld [vmem:[%s4226_s27 + $0xc] sm:$0xf] }
  0xc2   : > { %644 = vmatmul.mubr.bf16.vlgmr.msra.gmra.mrb[0].mxu1 %v508_v3  ;;  %1668 = vmatpush1.bf16.msra.mxu0 %v3533_v63  ;;  %v3594_v63 = vld [vmem:[#allocation5 + $0x304] ss:$8 sps:$4 sm:$0xff]   ;;  %v2335_v3 = vshrl.u32 %v4296_v26, 16  ;;  %vm1738_vm2 = vsmask.f32 256  ;;  %vm2126_vm14 = vcmask 1044480  }
  0xc3   : > { %785 = vmatpush1.bf16.msra.mxu1 %v3528_v62  ;;  %1961 = vmatprep.subr.bf16.mxu0 %v3539_v4  ;;  %v3586_v62 = vld [vmem:[#allocation5 + $0x2f0] ss:$8 sps:$4 sm:$0xff]   ;;  %v2338_v4 = vshll.u32 %v4296_v26, 16  ;;  %vm1739_vm3 = vsmask.f32 4368  ;;  %s3366_s26 = smul.u32 56, %s4222_s13 }
  0xc4   : > { %786 = vmatprep.subr.bf16.mxu1 %v3536_v7  ;;  %653 = vmatprep.mubr.bf16.mxu1 %v3956_v0  ;;  %v2337_v7 = vrot.slane %v2335_v3, 3  ;;  %v3583_v3 = vld [vmem:[#allocation5 + $0x100] ss:$8 sps:$4 sm:$0xff]   ;;  %vm4388_vm4 = vmor %vm1738_vm2, %vm1739_vm3  ;;  %vm1206_vm12 = vsmask.f32 3328  ;;  %s3367_s30 = smul.u32 896, %s3937_s21 }
  0xc5   : > { %1686 = vmatmul.mubr.bf16.vlgmr.msra.gmra.mrb[0].mxu0 %v3108_v8  ;;  %v2340_v8 = vrot.slane %v2338_v4, 4  ;;  %vm1207_vm13 = vsmask.f32 7440  ;;  %s4741_s28 = scalar_lea.vmem [#allocation11], %s3366_s26  ;;  %vm4761_vm3 = vmand %vm957_vm6, %vm1322_vm1  ;;  %s2871_s21 = scalar_lea.sflag [#allocation4], %s4222_s13 }
  0xc6   : > { %1962 = vmatpush1.bf16.msra.mxu0 %v3537_v10  ;;  %1695 = vmatprep.mubr.bf16.mxu0 %v3956_v0  ;;  %v2349_v10 = vrot.slane %v2347_v6, 4  ;;  %vm4611_vm15 = vmor %vm1206_vm12, %vm1207_vm13  ;;  %s2886_s10 = sshll.u32 %s4741_s28, 4  ;;  %s4796_s6 = scalar_lea.hbm %s4854_s5, %s3367_s30  ;;  %s4799_s10 = int_to_ptr.vmem [resolvable:$true] %s2886_s10 }
  0xc7   : > { %787 = vmatpush1.bf16.msra.mxu1 %v3534_v9  ;;  %1963 = vmatprep.subr.bf16.mxu0 %v3547_v14  ;;  %v2346_v9 = vrot.slane %v2344_v5, 3  ;;  %v4322_v12 = vor.u32 %v2340_v8, %v2337_v7  ;;  %v3591_v8 = vld [vmem:[#allocation5 + $0x114] ss:$8 sps:$4 sm:$0xff]   ;;  %s3855_s7 = scalar_lea.vmem %s4799_s10, 896  ;;  %s3958_s18 = smov [#allocation11]  }
  0xc8   : > { %788 = vmatprep.subr.bf16.mxu1 %v3544_v16  ;;  %v360_v16 = vunpack.c.l.s4 %v3957_v15  ;;  %p3856_p8 = scmp.ne.s32.totalorder %s4799_s10, %s3855_s7  ;;  %s3859_s14 = sshll.u32 %s3958_s18, 4  ;;  %s3860_s14 = int_to_ptr.vmem [resolvable:$false] %s3859_s14 }
  0xc9   : > { %v4324_v13 = vor.u32 %v2349_v10, %v2346_v9  ;;  %s3861_s12 = scalar_lea.vmem %s3860_s14, 1792  ;;  %p3862_p3 = scmp.lt.s32.totalorder %s4799_s10, %s3860_s14 }
  0xca   : > { %654 = vmatmul.mubr.bf16.gmra.mrb[4].mxu1 %v516_v21  ;;  %1964 = vmatpush1.bf16.msra.mxu0 %v3545_v18  ;;  %v361_v18 = vunpack.c.0.s8 %v360_v16  ;;  %p3857_p6 = pnand %p3856_p8, %p4166_p5  ;;  %p3863_p7 = scmp.lt.s32.totalorder %s3861_s12, %s3855_s7 }
  0xcb   : > { %789 = vmatpush1.bf16.msra.mxu1 %v3542_v17  ;;  %1965 = vmatprep.subr.bf16.mxu0 %v3553_v22  ;;  %v4329_v14 = vsel %vm1322_vm1, %v4322_v12, %v4324_v13  ;;  %v362_v17 = vlaneseq }
  0xcc   : > { %790 = vmatprep.subr.bf16.mxu1 %v3550_v25  ;;  %663 = vmatprep.mubr.bf16.mxu1 %v3956_v0  ;;  %p3858_p10 = pneg %p3857_p6  ;;  %p3864_p9 = por %p3863_p7, %p3862_p3 }
  0xcd   : > { %1696 = vmatmul.mubr.bf16.gmra.mrb[4].mxu0 %v4296_v26  ;;  %v4331_v21 = vshrl.u32 %v362_v17, 7  ;;  %v3589_v17 = vld [vmem:[#allocation5 + $0x110] ss:$8 sps:$4 sm:$0xff]  }
  0xce   : > { %1966 = vmatpush1.bf16.msra.mxu0 %v3551_v27  ;;  %1705 = vmatprep.mubr.bf16.mxu0 %v3956_v0  ;;  %p3865_p0 = pnand %p3864_p9, %p3858_p10 }
  0xcf   : > { %791 = vmatpush1.bf16.msra.mxu1 %v3548_v28  ;;  %1967 = vmatprep.subr.bf16.mxu0 %v3561_v31  ;;  %v4334_v24 = vsub.s32 %v361_v18, %v4331_v21 }
  0xd0   : > { %792 = vmatprep.subr.bf16.mxu1 %v3558_v32 }
  0xd2   : > { %664 = vmatmul.mubr.bf16.gmra.mrb[8].mxu1 %v524_v36  ;;  %1968 = vmatpush1.bf16.msra.mxu0 %v3559_v33 }
  0xd3   : > { %793 = vmatpush1.bf16.msra.mxu1 %v3556_v37  ;;  %1969 = vmatprep.subr.bf16.mxu0 %v3567_v38  ;;  %v2535_v37 = vld [vmem:[%s4226_s27 + $0x1c] sm:$0xf] }
  0xd4   : > { %794 = vmatprep.subr.bf16.mxu1 %v3564_v43  ;;  %673 = vmatprep.mubr.bf16.mxu1 %v3956_v0 }
  0xd5   : > { %1706 = vmatmul.mubr.bf16.gmra.mrb[8].mxu0 %v3110_v44 }
  0xd6   : > { %1970 = vmatpush1.bf16.msra.mxu0 %v3565_v45  ;;  %1715 = vmatprep.mubr.bf16.mxu0 %v3956_v0 }
  0xd7   : > { %795 = vmatpush1.bf16.msra.mxu1 %v3562_v46  ;;  %1971 = vmatprep.subr.bf16.mxu0 %v3574_v47  ;;  %v2534_v46 = vld [vmem:[%s4226_s27 + $0x18] sm:$0xf] }
  0xd8   : > { %796 = vmatprep.subr.bf16.mxu1 %v3571_v48 }
  0xda   : > { %674 = vmatmul.mubr.bf16.gmra.mrb[12].mxu1 %v525_v49  ;;  %1972 = vmatpush1.bf16.msra.mxu0 %v3572_v50 }
  0xdb   : > { %797 = vmatpush1.bf16.msra.mxu1 %v3569_v52  ;;  %1973 = vmatprep.subr.bf16.mxu0 %v3581_v53 }
  0xdc   : > { %798 = vmatprep.subr.bf16.mxu1 %v3578_v54  ;;  %816 = vmatprep.mubr.bf16.mxu1 %v3956_v0 }
  0xdd   : > { %1716 = vmatmul.mubr.bf16.gmra.mrb[12].mxu0 %v3111_v55 }
  0xde   : > { %1974 = vmatpush1.bf16.msra.mxu0 %v3579_v56  ;;  %1993 = vmatprep.mubr.bf16.mxu0 %v3956_v0 }
  0xdf   : > { %799 = vmatpush1.bf16.msra.mxu1 %v3576_v57  ;;  %1975 = vmatprep.subr.bf16.mxu0 %v3588_v60 }
  0xe0   : > { %1119 = vmatprep.subr.bf16.mxu1 %v3585_v61 }
  0xe2   : > { %1976 = vmatpush1.bf16.msra.mxu0 %v3586_v62 }
  0xe3   : > { %2218 = vmatprep.subr.bf16.mxu0 %v3594_v63 }
 0x120   : > { %v892_v22 = vpop.permute.xlu1 %891  ;;  %v868_v23 = vpop.permute.xlu0 %867 }
 0x121   : > { %v4337_v27 = vrot.slane %v868_v23, %v4334_v24  ;;  %v4362_v52 = vrot.slane %v892_v22, %v4334_v24 }
 0x123   : > { %v2537_v33 = vmul.bf16 %v2530_v29, %v4337_v27  ;;  %v1742_v60 = vshrl.u32 %v4337_v27, 16  ;;  %v1759_v62 = vshrl.u32 %v4362_v52, 16 }
 0x124   : > { %v904_v25 = vpop.permute.xlu1 %903  ;;  %v880_v26 = vpop.permute.xlu0 %879 }
 0x125   : > { %v4340_v28 = vrot.slane %v880_v26, %v4334_v24  ;;  %v4365_v53 = vrot.slane %v904_v25, %v4334_v24  ;;  %v1744_v9 = vrot.slane %v1742_v60, 7  ;;  %v1761_v15 = vrot.slane %v1759_v62, 7  ;;  %v3597_v25 = vld [vmem:[#allocation5 + $0x124] ss:$8 sps:$4 sm:$0xff]   ;;  %v3603_v60 = vld [vmem:[#allocation5 + $0x134] ss:$8 sps:$4 sm:$0xff]  }
 0x126   : > { %v3600_v26 = vld [vmem:[#allocation5 + $0x314] ss:$8 sps:$4 sm:$0xff]  }
 0x127   : > { %v2538_v36 = vmul.bf16 %v2531_v30, %v4340_v28  ;;  %v1750_v54 = vshrl.u32 %v4340_v28, 16  ;;  %v1768_v63 = vshrl.u32 %v4365_v53, 16  ;;  %v1753_v10 = vshll.u32 %v4340_v28, 16 }
 0x128   : > { %v928_v31 = vpop.permute.xlu1 %927  ;;  %v916_v32 = vpop.permute.xlu0 %915  ;;  %v1771_v29 = vshll.u32 %v4365_v53, 16  ;;  %v1766_v62 = vrot.slane %v1761_v15, 4 }
 0x129   : > { %v4348_v38 = vrot.slane %v928_v31, %v4334_v24  ;;  %v4350_v44 = vcombine.low %v2537_v33, %v2538_v36  ;;  %v4353_v45 = vrot.slane %v916_v32, %v4334_v24  ;;  %v1752_v4 = vrot.slane %v1750_v54, 7 }
 0x12a   : > { %v1770_v16 = vrot.slane %v1768_v63, 7  ;;  %v1748_v31 = vrot.slane %v1744_v9, 4 }
 0x12b   : > { %v2542_v47 = vmul.bf16 %v2535_v37, %v4348_v38  ;;  %v2541_v50 = vmul.bf16 %v2534_v46, %v4353_v45  ;;  %v1786_v5 = vshrl.u32 %v4348_v38, 16  ;;  %v1777_v6 = vshrl.u32 %v4353_v45, 16 }
 0x12c   : > { %v369_v43 = vpop.permute.xlu1 %368  ;;  %v357_v49 = vpop.permute.xlu0 %356  ;;  %v1755_v18 = vor.u32 %v1753_v10, %v1752_v4  ;;  %v1757_v32 = vrot.slane %v1752_v4, 4  ;;  %v1789_v33 = vshll.u32 %v4348_v38, 16  ;;  %v1780_v36 = vshll.u32 %v4353_v45, 16 }
 0x12d   : > { %v4358_v48 = vrot.slane %v369_v43, %v4334_v24  ;;  %v4368_v55 = vcombine.low %v2541_v50, %v2542_v47  ;;  %v4373_v57 = vrot.slane %v357_v49, %v4334_v24  ;;  %v4384_v22 = vrot.slane %v1786_v5, 7  ;;  %v3595_v47 = vld [vmem:[#allocation5 + $0x120] ss:$8 sps:$4 sm:$0xff]  }
 0x12e   : > { %v1779_v23 = vrot.slane %v1777_v6, 7  ;;  %v1745_v43 = vshll.u32 %v4337_v27, 16  ;;  %v1773_v46 = vor.u32 %v1771_v29, %v1770_v16  ;;  %v1756_v49 = vsel %vm4388_vm4, %v1748_v31, %v1755_v18 }
 0x12f   : > { %v439_v56 = vmul.bf16 %v4358_v48, %v4248_v40  ;;  %v438_v61 = vmul.bf16 %v4373_v57, %v4245_v39  ;;  %v1762_v39 = vshll.u32 %v4362_v52, 16  ;;  %v1791_v50 = vor.u32 %v1789_v33, %v4384_v22 }
 0x130   : > { %v940_v30 = vpop.permute.xlu0 %939  ;;  %v1782_v54 = vor.u32 %v1780_v36, %v1779_v23  ;;  %v1775_v63 = vrot.slane %v1770_v16, 4  ;;  %v1806_v4 = vmul.bf16 %v1756_v49, %v4272_v2  ;;  %v381_v5 = vpop.permute.xlu1 %380 }
 0x131   : > { %v3048_v7 = vcombine.low %v438_v61, %v439_v56  ;;  %v1764_v37 = vor.u32 %v1762_v39, %v1761_v15  ;;  %v1784_v56 = vrot.slane %v1779_v23, 4  ;;  %v1747_v61 = vor.u32 %v1745_v43, %v1744_v9  ;;  %v3609_v39 = vld [vmem:[#allocation5 + $0x144] ss:$8 sps:$4 sm:$0xff]  }
 0x132   : > { %v1783_v10 = vsel %vm4388_vm4, %v1775_v63, %v1782_v54  ;;  %v4409_v15 = vrot.slane %v940_v30, %v4334_v24  ;;  %v4414_v18 = vrot.slane %v381_v5, %v4334_v24  ;;  %v3592_v5 = vld [vmem:[#allocation5 + $0x300] ss:$8 sps:$4 sm:$0xff]  }
 0x133   : > { %817 = vmatmul.mubr.bf16.vlgmr.msra.gmra.mrb[0].mxu1 %v3048_v7  ;;  %v3601_v7 = vld [vmem:[#allocation5 + $0x130] ss:$8 sps:$4 sm:$0xff]   ;;  %v1792_v9 = vsel %vm4388_vm4, %v1784_v56, %v1791_v50  ;;  %v1805_v16 = vmul.bf16 %v1747_v61, %v4269_v1  ;;  %v3615_v1 = vld [vmem:[#allocation5 + $0x154] ss:$8 sps:$4 sm:$0xff]  }
 0x134   : > { %1120 = vmatpush1.bf16.msra.mxu1 %v3583_v3  ;;  %826 = vmatprep.mubr.bf16.mxu1 %v3956_v0  ;;  %v1765_v3 = vsel %vm4388_vm4, %v1757_v32, %v1764_v37  ;;  %v393_v6 = vpop.permute.xlu0 %392  ;;  %v1810_v29 = vmul.bf16 %v1792_v9, %v4305_v35  ;;  %v3607_v32 = vld [vmem:[#allocation5 + $0x140] ss:$8 sps:$4 sm:$0xff]   ;;  %v1795_v33 = vshll.u32 %v4409_v15, 16  ;;  %v405_v50 = vpop.permute.xlu1 %404 }
 0x135   : > { %1121 = vmatprep.subr.bf16.mxu1 %v3591_v8  ;;  %v1774_v8 = vsel %vm4388_vm4, %v1766_v62, %v1773_v46  ;;  %v4417_v23 = vrot.slane %v393_v6, %v4334_v24  ;;  %v3128_v30 = vcombine.low %v1805_v16, %v1806_v4  ;;  %v1793_v46 = vrot.slane %v4384_v22, 4  ;;  %v3613_v62 = vld [vmem:[#allocation5 + $0x150] ss:$8 sps:$4 sm:$0xff]   ;;  %v3621_v4 = vld [vmem:[#allocation5 + $0x164] ss:$8 sps:$4 sm:$0xff]  }
 0x136   : > { %v1808_v31 = vmul.bf16 %v1774_v8, %v4290_v20  ;;  %v964_v8 = vrot.slane %v4362_v52, 7  ;;  %v4441_v9 = vrot.slane %v405_v50, %v4334_v24 }
 0x137   : > { %v1850_v43 = vshll.u32 %v3128_v30, 16  ;;  %v441_v49 = vmul.bf16 %v4417_v23, %v4254_v42  ;;  %v1848_v54 = vshrl.u32 %v3128_v30, 16  ;;  %v1797_v63 = vsel %vm4388_vm4, %v1793_v46, %v1795_v33  ;;  %v3625_v46 = vld [vmem:[#allocation5 + $0x170] ss:$8 sps:$4 sm:$0xff]  }
 0x138   : > { %1122 = vmatpush1.bf16.msra.mxu1 %v3589_v17  ;;  %v1807_v17 = vmul.bf16 %v1765_v3, %v4287_v19  ;;  %v417_v36 = vpop.permute.xlu0 %416  ;;  %v429_v30 = vpop.permute.xlu1 %428  ;;  %v966_v33 = vrot.slane %v964_v8, 4 }
 0x139   : > { %1123 = vmatprep.subr.bf16.mxu1 %v3597_v25  ;;  %v1809_v25 = vmul.bf16 %v1783_v10, %v4301_v34  ;;  %v1852_v56 = vrot.slane %v1850_v43, 1  ;;  %v4436_v22 = vrot.slane %v417_v36, %v4334_v24  ;;  %v961_v10 = vrot.slane %v4340_v28, 7 }
 0x13a   : > { %v4423_v37 = vcombine.low %v1807_v17, %v1808_v31  ;;  %v855_v31 = vld [vmem:[%s4226_s27] sm:$0xe]  ;;  %v442_v43 = vmul.bf16 %v4441_v9, %v4261_v58 }
 0x13b   : > { %v4431_v61 = vcombine.low %v1809_v25, %v1810_v29  ;;  %v1853_v6 = vor.u32 %v1852_v56, %v1848_v54  ;;  %v3619_v25 = vld [vmem:[#allocation5 + $0x160] ss:$8 sps:$4 sm:$0xff]   ;;  %v443_v28 = vmul.bf16 %v4436_v22, %v4264_v59  ;;  %v3627_v29 = vld [vmem:[#allocation5 + $0x174] ss:$8 sps:$4 sm:$0xff]   ;;  %v963_v36 = vrot.slane %v961_v10, 4 }
 0x13c   : > { %1124 = vmatpush1.bf16.msra.mxu1 %v3595_v47  ;;  %v440_v47 = vmul.bf16 %v4414_v18, %v4251_v41  ;;  %v1859_v50 = vshrl.u32 %v4423_v37, 16  ;;  %v4459_v56 = vld [vmem:[%s4226_s27 + $0x10] sm:$0xf] }
 0x13d   : > { %1125 = vmatprep.subr.bf16.mxu1 %v3603_v60  ;;  %v1855_v60 = vshll.u32 %v4423_v37, 16  ;;  %v1863_v17 = vshll.u32 %v4431_v61, 16  ;;  %v970_v37 = vrot.slane %v4353_v45, 7  ;;  %v1249_v45 = vshll.u32 %v4441_v9, 16 }
 0x13e   : > { %v3049_v3 = vcombine.low %v440_v47, %v441_v49  ;;  %v967_v47 = vrot.slane %v4365_v53, 7 }
 0x13f   : > { %v1865_v54 = vrot.slane %v1863_v17, 1 }
 0x140   : > { %1126 = vmatpush1.bf16.msra.mxu1 %v3601_v7  ;;  %v1857_v7 = vrot.slane %v1855_v60, 1  ;;  %v973_v60 = vrot.slane %v4348_v38, 7  ;;  %v2069_v38 = vrot.slane %v4441_v9, 5 }
 0x141   : > { %1127 = vmatprep.subr.bf16.mxu1 %v3609_v39  ;;  %827 = vmatmul.mubr.bf16.gmra.mrb[4].mxu1 %v3049_v3  ;;  %v1811_v39 = vmul.bf16 %v1797_v63, %v4314_v51  ;;  %v3598_v51 = vld [vmem:[#allocation5 + $0x310] ss:$8 sps:$4 sm:$0xff]   ;;  %v3050_v63 = vcombine.low %v442_v43, %v443_v28  ;;  %v3633_v3 = vld [vmem:[#allocation5 + $0x184] ss:$8 sps:$4 sm:$0xff]   ;;  %v969_v28 = vrot.slane %v967_v47, 4  ;;  %v2058_v43 = vrot.slane %v4373_v57, 5 }
 0x142   : > { %v1858_v16 = vsel %vm496_vm0, %v1853_v6, %v1857_v7  ;;  %836 = vmatprep.mubr.bf16.mxu1 %v3956_v0  ;;  %v1861_v6 = vor.u32 %v1859_v50, %v1857_v7  ;;  %v3618_v50 = vld [vmem:[#allocation5 + $0x344] ss:$8 sps:$4 sm:$0xff]  }
 0x143   : > { %1994 = vmatmul.mubr.bf16.vlgmr.msra.gmra.mrb[0].mxu0 %v1858_v16  ;;  %v4455_v49 = vcombine.low %v1811_v39, %v1811_v39  ;;  %v3612_v16 = vld [vmem:[#allocation5 + $0x334] ss:$8 sps:$4 sm:$0xff]  }
 0x144   : > { %1128 = vmatpush1.bf16.msra.mxu1 %v3607_v32  ;;  %2219 = vmatpush1.bf16.msra.mxu0 %v3592_v5  ;;  %v3606_v32 = vld [vmem:[#allocation5 + $0x324] ss:$8 sps:$4 sm:$0xff]   ;;  %v3604_v5 = vld [vmem:[#allocation5 + $0x320] ss:$8 sps:$4 sm:$0xff]  }
 0x145   : > { %1129 = vmatprep.subr.bf16.mxu1 %v3615_v1  ;;  %2003 = vmatprep.mubr.bf16.mxu0 %v3956_v0  ;;  %v959_v1 = vrot.slane %v4337_v27, 7 }
 0x146   : > { %2220 = vmatprep.subr.bf16.mxu0 %v3600_v26 }
 0x147   : > { %v960_v26 = vrot.slane %v959_v1, 4  ;;  %v985_v39 = vmul.bf16 %v959_v1, %v855_v31  ;;  %v1223_v31 = vshrl.u32 %v4358_v48, 16  ;;  %v2060_v1 = vrot.slane %v4358_v48, 5 }
 0x148   : > { %1130 = vmatpush1.bf16.msra.mxu1 %v3613_v62  ;;  %v4469_v62 = vrot.slane %v429_v30, %v4334_v24  ;;  %2221 = vmatpush1.bf16.msra.mxu0 %v3598_v51  ;;  %v965_v24 = vsel %vm4463_vm7, %v963_v36, %v964_v8  ;;  %v1871_v30 = vshll.u32 %v4455_v49, 16  ;;  %v4486_v8 = vrot.slane %v973_v60, 4 }
 0x149   : > { %1131 = vmatprep.subr.bf16.mxu1 %v3621_v4  ;;  %v1219_v4 = vshll.u32 %v4358_v48, 16  ;;  %2222 = vmatprep.subr.bf16.mxu0 %v3606_v32  ;;  %v962_v7 = vsel %vm4463_vm7, %v960_v26, %v961_v10  ;;  %v972_v32 = vrot.slane %v970_v37, 4  ;;  %v3610_v10 = vld [vmem:[#allocation5 + $0x330] ss:$8 sps:$4 sm:$0xff]   ;;  %v987_v36 = vmul.bf16 %v965_v24, %v4251_v41 }
 0x14a   : > { %837 = vmatmul.mubr.bf16.gmra.mrb[8].mxu1 %v3050_v63  ;;  %v444_v51 = vmul.bf16 %v4469_v62, %v4278_v11  ;;  %v1233_v11 = vshrl.u32 %v4414_v18, 16  ;;  %v1867_v48 = vshrl.u32 %v4431_v61, 16  ;;  %v1873_v63 = vrot.slane %v1871_v30, 1  ;;  %v2533_v24 = vld [vmem:[%s4226_s27 + $0x14] sm:$0xf] }
 0x14b   : > { %846 = vmatprep.mubr.bf16.mxu1 %v3956_v0  ;;  %v4505_v41 = vrot.slane %v1223_v31, 4  ;;  %v3624_v30 = vld [vmem:[#allocation5 + $0x354] ss:$8 sps:$4 sm:$0xff]  }
 0x14c   : > { %1132 = vmatpush1.bf16.msra.mxu1 %v3619_v25  ;;  %v968_v25 = vsel %vm4463_vm7, %v966_v33, %v967_v47  ;;  %v4493_v33 = vrot.slane %v1219_v4, 5  ;;  %2223 = vmatpush1.bf16.msra.mxu0 %v3604_v5  ;;  %v2063_v47 = vrot.slane %v4414_v18, 5  ;;  %v1210_v5 = vshll.u32 %v4373_v57, 16 }
 0x14d   : > { %1133 = vmatprep.subr.bf16.mxu1 %v3627_v29  ;;  %v1866_v29 = vsel %vm496_vm0, %v1861_v6, %v1865_v54  ;;  %2224 = vmatprep.subr.bf16.mxu0 %v3612_v16  ;;  %v988_v4 = vmul.bf16 %v968_v25, %v4254_v42  ;;  %v2066_v6 = vrot.slane %v4417_v23, 5  ;;  %v3051_v26 = vcombine.low %v444_v51, %v444_v51  ;;  %v3616_v16 = vld [vmem:[#allocation5 + $0x340] ss:$8 sps:$4 sm:$0xff]  }
 0x14e   : > { %2004 = vmatmul.mubr.bf16.gmra.mrb[4].mxu0 %v1866_v29  ;;  %v2062_v29 = vrot.slane %v2060_v1, 4  ;;  %v1869_v17 = vor.u32 %v1867_v48, %v1865_v54  ;;  %v2065_v25 = vrot.slane %v2063_v47, 4  ;;  %v4527_v31 = vrot.slane %v1233_v11, 4  ;;  %v3709_v54 = vld [vmem:[%s4226_s27 + $0x8] sm:$0xf] }
 0x14f   : > { %2013 = vmatprep.mubr.bf16.mxu0 %v3956_v0  ;;  %v4511_v61 = vcombine.low %v987_v36, %v988_v4  ;;  %v2540_v36 = vmul.bf16 %v2533_v24, %v4365_v53  ;;  %v3622_v53 = vld [vmem:[#allocation5 + $0x350] ss:$8 sps:$4 sm:$0xff]   ;;  %v976_v48 = vrot.slane %v4409_v15, 7 }
 0x150   : > { %1134 = vmatpush1.bf16.msra.mxu1 %v3625_v46  ;;  %v1229_v46 = vshll.u32 %v4414_v18, 16  ;;  %v1213_v18 = vshrl.u32 %v4373_v57, 16  ;;  %2225 = vmatpush1.bf16.msra.mxu0 %v3610_v10  ;;  %v1874_v51 = vsel %vm496_vm0, %v1869_v17, %v1873_v63  ;;  %v3630_v63 = vld [vmem:[#allocation5 + $0x364] ss:$8 sps:$4 sm:$0xff]   ;;  %vm4751_vm0 = vmand %vm956_vm5, %vm1738_vm2 }
 0x151   : > { %1442 = vmatprep.subr.bf16.mxu1 %v3633_v3  ;;  %v986_v3 = vmul.bf16 %v962_v7, %v4248_v40  ;;  %v2059_v40 = vrot.slane %v2058_v43, 4  ;;  %2226 = vmatprep.subr.bf16.mxu0 %v3618_v50  ;;  %v974_v7 = vsel %vm4463_vm7, %v972_v32, %v973_v60  ;;  %v2067_v60 = vsel %vm4523_vm11, %v2065_v25, %v2066_v6 }
 0x152   : > { %v4515_v42 = vrot.slane %v1229_v46, 5  ;;  %847 = vmatmul.mubr.bf16.gmra.mrb[12].mxu1 %v3051_v26  ;;  %v4532_v46 = vrot.slane %v1210_v5, 5  ;;  %v971_v32 = vsel %vm4463_vm7, %v969_v28, %v970_v37  ;;  %v4541_v17 = vrot.slane %v1213_v18, 4  ;;  %v3631_v5 = vld [vmem:[#allocation5 + $0x180] ss:$8 sps:$4 sm:$0xff]  }
 0x153   : > { %1151 = vmatprep.mubr.bf16.mxu1 %v3956_v0  ;;  %v3068_v10 = vcombine.low %v985_v39, %v986_v3  ;;  %v2064_v39 = vsel %vm4523_vm11, %v2062_v29, %v2063_v47  ;;  %v1029_v11 = vrot.slane %v4511_v61, 1  ;;  %v990_v50 = vmul.bf16 %v974_v7, %v4264_v59  ;;  %v4558_v3 = vld [vmem:[%s4226_s27 + $0x4] sm:$0x8] }
 0x154   : > { %2227 = vmatpush1.bf16.msra.mxu0 %v3616_v16  ;;  %v2061_v37 = vsel %vm4523_vm11, %v2059_v40, %v2060_v1  ;;  %v4882_v28 = vmul.bf16 %v4459_v56, %v4362_v52  ;;  %v1236_v4 = vor.u32 %v4527_v31, %v4515_v42  ;;  %v2087_v26 = vmul.bf16 %v2067_v60, %v4290_v20  ;;  %v3639_v18 = vld [vmem:[#allocation5 + $0x194] ss:$8 sps:$4 sm:$0xff]   ;;  %v3628_v16 = vld [vmem:[#allocation5 + $0x360] ss:$8 sps:$4 sm:$0xff]  }
 0x155   : > { %2228 = vmatprep.subr.bf16.mxu0 %v3624_v30  ;;  %v1028_v59 = vrot.slane %v3068_v10, 1  ;;  %v989_v24 = vmul.bf16 %v971_v32, %v4261_v58  ;;  %v1253_v29 = vshrl.u32 %v4441_v9, 16  ;;  %v2071_v1 = vrot.slane %v2069_v38, 4  ;;  %v3636_v20 = vld [vmem:[#allocation5 + $0x374] ss:$8 sps:$4 sm:$0xff]  }
 0x156   : > { %2014 = vmatmul.mubr.bf16.gmra.mrb[8].mxu0 %v1874_v51  ;;  %v4555_v47 = vcombine.low %v4882_v28, %v2540_v36  ;;  %v1239_v52 = vshll.u32 %v4417_v23, 16  ;;  %v2072_v56 = vrot.slane %v4436_v22, 5  ;;  %v2085_v58 = vmul.bf16 %v2061_v37, %v4272_v2  ;;  %v856_v10 = vld [vmem:[%s4226_s27 + $0x18] sm:$0x3]  ;;  %v3643_v28 = vld [vmem:[#allocation5 + $0x1a0] ss:$8 sps:$4 sm:$0xff]  }
 0x157   : > { %2023 = vmatprep.mubr.bf16.mxu0 %v3956_v0  ;;  %v1030_v40 = vsel %vm1027_vm10, %v1028_v59, %v1029_v11  ;;  %v2086_v25 = vmul.bf16 %v2064_v39, %v4287_v19  ;;  %v4574_v30 = vcombine.low %v989_v24, %v990_v50  ;;  %v1243_v7 = vshrl.u32 %v4417_v23, 16  ;;  %v3637_v19 = vld [vmem:[#allocation5 + $0x190] ss:$8 sps:$4 sm:$0xff]   ;;  %v3651_v9 = vld [vmem:[#allocation5 + $0x1b4] ss:$8 sps:$4 sm:$0xff]  }
 0x158   : > { %2229 = vmatpush1.bf16.msra.mxu0 %v3622_v53  ;;  %v2068_v31 = vrot.slane %v2066_v6, 4  ;;  %v1875_v51 = vshrl.u32 %v4455_v49, 16  ;;  %v977_v36 = vsel %vm4463_vm7, %v4486_v8, %v976_v48  ;;  %v1226_v60 = vor.u32 %v4505_v41, %v4493_v33  ;;  %v3645_v8 = vld [vmem:[#allocation5 + $0x1a4] ss:$8 sps:$4 sm:$0xff]  }
 0x159   : > { %2230 = vmatprep.subr.bf16.mxu0 %v3630_v63  ;;  %v2084_v2 = vmul.bf16 %v2058_v43, %v4558_v3  ;;  %v4587_v23 = vcombine.low %v2086_v25, %v2087_v26  ;;  %v1216_v49 = vor.u32 %v4541_v17, %v4532_v46  ;;  %v4592_v6 = vrot.slane %v1249_v45, 5  ;;  %v3634_v43 = vld [vmem:[#allocation5 + $0x370] ss:$8 sps:$4 sm:$0xff]   ;;  %v3642_v48 = vld [vmem:[#allocation5 + $0x384] ss:$8 sps:$4 sm:$0xff]  }
 0x15a   : > { %1152 = vmatmul.mubr.bf16.vlgmr.msra.gmra.mrb[0].mxu1 %v1030_v40  ;;  %v4594_v27 = vrot.slane %v1253_v29, 4  ;;  %v2073_v57 = vsel %vm4523_vm11, %v2071_v1, %v2072_v56  ;;  %v1031_v32 = vrot.slane %v4574_v30, 1  ;;  %v991_v39 = vmul.bf16 %v977_v36, %v856_v10  ;;  %v3640_v29 = vld [vmem:[#allocation5 + $0x380] ss:$8 sps:$4 sm:$0xff]   ;;  %v1204_v10 = vld [vmem:[%s4226_s27] sm:$0x8] }
 0x15b   : > { %1443 = vmatpush1.bf16.msra.mxu1 %v3631_v5  ;;  %1161 = vmatprep.mubr.bf16.mxu1 %v3956_v0  ;;  %v3148_v41 = vcombine.low %v2084_v2, %v2085_v58  ;;  %v1237_v17 = vrot.slane %v1236_v4, 4  ;;  %v1241_v53 = vrot.slane %v1239_v52, 5  ;;  %v1245_v50 = vrot.slane %v1243_v7, 4  ;;  %v3648_v58 = vld [vmem:[#allocation5 + $0x394] ss:$8 sps:$4 sm:$0xff]  }
 0x15c   : > { %1444 = vmatprep.subr.bf16.mxu1 %v3639_v18  ;;  %2231 = vmatpush1.bf16.msra.mxu0 %v3628_v16  ;;  %v2070_v45 = vsel %vm4523_vm11, %v2068_v31, %v2069_v38  ;;  %v1227_v63 = vrot.slane %v1226_v60, 4  ;;  %v2128_v37 = vrot.slane %v4587_v23, 3  ;;  %v2089_v59 = vmul.bf16 %v2073_v57, %v4305_v35  ;;  %v3657_v7 = vld [vmem:[#allocation5 + $0x1c4] ss:$8 sps:$4 sm:$0xff]   ;;  %v4638_v31 = vld [vmem:[%s4226_s27 + $0x1c] sm:$0xf] }
 0x15d   : > { %2232 = vmatprep.subr.bf16.mxu0 %v3636_v20  ;;  %v1217_v5 = vrot.slane %v1216_v49, 4  ;;  %v1256_v4 = vor.u32 %v4594_v27, %v4592_v6  ;;  %v2075_v26 = vrot.slane %v4469_v62, 5  ;;  %v2074_v24 = vrot.slane %v2072_v56, 4  ;;  %v3707_v36 = vld [vmem:[%s4226_s27 + $0xc] sm:$0xf] }
 0x15e   : > { %2024 = vmatmul.mubr.bf16.gmra.mrb[12].mxu0 %v1875_v51  ;;  %v2127_v1 = vrot.slane %v3148_v41, 3  ;;  %v1032_v35 = vsel %vm1027_vm10, %v1029_v11, %v1031_v32  ;;  %v2088_v52 = vmul.bf16 %v2070_v45, %v4301_v34  ;;  %v3071_v56 = vcombine.low %v991_v39, %v991_v39  ;;  %v3649_v34 = vld [vmem:[#allocation5 + $0x1b0] ss:$8 sps:$4 sm:$0xff]   ;;  %v3708_v57 = vld [vmem:[%s4226_s27 + $0x4] sm:$0xf] }
 0x15f   : > { %2250 = vmatprep.mubr.bf16.mxu0 %v3956_v0  ;;  %1445 = vmatpush1.bf16.msra.mxu1 %v3637_v19  ;;  %v1242_v18 = vsel %vm4611_vm15, %v1237_v17, %v1241_v53  ;;  %v1246_v16 = vor.u32 %v1245_v50, %v1241_v53  ;;  %v1259_v40 = vshll.u32 %v4436_v22, 16  ;;  %v1263_v20 = vshrl.u32 %v4436_v22, 16  ;;  %v3646_v2 = vld [vmem:[#allocation5 + $0x390] ss:$8 sps:$4 sm:$0xff]   ;;  %v3655_v17 = vld [vmem:[#allocation5 + $0x1c0] ss:$8 sps:$4 sm:$0xff]  }
 0x160   : > { %1446 = vmatprep.subr.bf16.mxu1 %v3645_v8  ;;  %2233 = vmatpush1.bf16.msra.mxu0 %v3634_v43  ;;  %v2129_v61 = vsel %vm2126_vm14, %v2127_v1, %v2128_v37  ;;  %v4628_v11 = vcombine.low %v2088_v52, %v2089_v59  ;;  %v1222_v25 = vsel %vm4611_vm15, %v1217_v5, %v4493_v33  ;;  %v4645_v33 = vrot.slane %v3071_v56, 1  ;;  %v3654_v8 = vld [vmem:[#allocation5 + $0x3a4] ss:$8 sps:$4 sm:$0xff]   ;;  %v3663_v50 = vld [vmem:[#allocation5 + $0x1d4] ss:$8 sps:$4 sm:$0xff]  }
 0x161   : > { %2445 = vmatprep.subr.bf16.mxu0 %v3642_v48  ;;  %v1232_v22 = vsel %vm4611_vm15, %v1227_v63, %v4515_v42  ;;  %v2076_v51 = vsel %vm4523_vm11, %v2074_v24, %v2075_v26  ;;  %v1283_v60 = vmul.bf16 %v3707_v36, %v1242_v18  ;;  %v1257_v42 = vrot.slane %v1256_v4, 4  ;;  %v3652_v45 = vld [vmem:[#allocation5 + $0x3a0] ss:$8 sps:$4 sm:$0xff]   ;;  %v3660_v4 = vld [vmem:[#allocation5 + $0x3b4] ss:$8 sps:$4 sm:$0xff]  }
 0x162   : > { %1162 = vmatmul.mubr.bf16.gmra.mrb[4].mxu1 %v1032_v35  ;;  %v1247_v19 = vrot.slane %v1246_v16, 4  ;;  %v1261_v49 = vrot.slane %v1259_v40, 5  ;;  %v1265_v27 = vrot.slane %v1263_v20, 4  ;;  %v1281_v43 = vmul.bf16 %v3708_v57, %v1222_v25  ;;  %v3658_v1 = vld [vmem:[#allocation5 + $0x3b0] ss:$8 sps:$4 sm:$0xff]  }
 0x163   : > { %1447 = vmatpush1.bf16.msra.mxu1 %v3643_v28  ;;  %1171 = vmatprep.mubr.bf16.mxu1 %v3956_v0  ;;  %v1282_v41 = vmul.bf16 %v3709_v54, %v1232_v22  ;;  %v2130_v39 = vrot.slane %v4628_v11, 3  ;;  %v2090_v53 = vmul.bf16 %v2076_v51, %v4638_v31  ;;  %v1280_v48 = vmul.bf16 %v4532_v46, %v1204_v10  ;;  %v3710_v35 = vld [vmem:[%s4226_s27 + $0x10] sm:$0xf]  ;;  %v3711_v52 = vld [vmem:[%s4226_s27 + $0x14] sm:$0xf] }
 0x164   : > { %1448 = vmatprep.subr.bf16.mxu1 %v3651_v9  ;;  %v1034_v63 = vsel %vm1027_vm10, %v1031_v32, %v4645_v33  ;;  %v1262_v59 = vsel %vm4611_vm15, %v1257_v42, %v1261_v49  ;;  %v1266_v5 = vor.u32 %v1265_v27, %v1261_v49  ;;  %v1252_v26 = vsel %vm4611_vm15, %v1247_v19, %v4592_v6  ;;  %v3661_v32 = vld [vmem:[#allocation5 + $0x1d0] ss:$8 sps:$4 sm:$0xff]   ;;  %v3666_v16 = vld [vmem:[#allocation5 + $0x3c4] ss:$8 sps:$4 sm:$0xff]   ;;  %v3676_v25 = vld [vmem:[#allocation5 + $0x1f4] ss:$8 sps:$4 sm:$0xff]  }
 0x165   : > { %v3089_v28 = vcombine.low %v1282_v41, %v1283_v60  ;;  %v3088_v46 = vcombine.low %v1280_v48, %v1281_v43  ;;  %v2131_v30 = vsel %vm2126_vm14, %v2128_v37, %v2130_v39  ;;  %v3151_v24 = vcombine.low %v2090_v53, %v2090_v53  ;;  %v3664_v22 = vld [vmem:[#allocation5 + $0x3c0] ss:$8 sps:$4 sm:$0xff]   ;;  %v3673_v36 = vld [vmem:[#allocation5 + $0x3d4] ss:$8 sps:$4 sm:$0xff]   ;;  %v3682_v27 = vld [vmem:[#allocation5 + $0x404] ss:$8 sps:$4 sm:$0xff]  }
 0x166   : > { %2251 = vmatmul.mubr.bf16.vlgmr.msra.gmra.mrb[0].mxu0 %v2129_v61  ;;  %v1269_v9 = vshll.u32 %v4469_v62, 16  ;;  %v1284_v37 = vmul.bf16 %v3710_v35, %v1252_v26  ;;  %v1285_v56 = vmul.bf16 %v3711_v52, %v1262_v59  ;;  %v1267_v18 = vrot.slane %v1266_v5, 4  ;;  %v3668_v62 = vld [vmem:[#allocation5 + $0x1e0] ss:$8 sps:$4 sm:$0xff]   ;;  %v1205_v60 = vld [vmem:[%s4226_s27 + $0x18] sm:$0xf] }
 0x167   : > { %2446 = vmatpush1.bf16.msra.mxu0 %v3640_v29  ;;  %2260 = vmatprep.mubr.bf16.mxu0 %v3956_v0  ;;  %v3670_v29 = vld [vmem:[#allocation5 + $0x1e4] ss:$8 sps:$4 sm:$0xff]   ;;  %v1332_v6 = vshrl.u32 %v3089_v28, 16  ;;  %v1335_v23 = vshll.u32 %v3089_v28, 16  ;;  %v2132_v40 = vrot.slane %v3151_v24, 3  ;;  %v1324_v20 = vshrl.u32 %v3088_v46, 16 }
 0x168   : > { %2447 = vmatprep.subr.bf16.mxu0 %v3648_v58  ;;  %1449 = vmatpush1.bf16.msra.mxu1 %v3649_v34  ;;  %v1327_v58 = vshll.u32 %v3088_v46, 16  ;;  %v3712_v61 = vld [vmem:[%s4226_s27 + $0x8] sm:$0xf]  ;;  %v1271_v11 = vrot.slane %v1269_v9, 5  ;;  %v3090_v10 = vcombine.low %v1284_v37, %v1285_v56  ;;  %v3685_v26 = vld [vmem:[#allocation5 + $0x3f4] ss:$8 sps:$4 sm:$0xff]  }
 0x169   : > { %1450 = vmatprep.subr.bf16.mxu1 %v3657_v7  ;;  %v3168_v34 = vcombine.low %v4558_v3, %v3712_v61  ;;  %v1334_v7 = vrot.slane %v1332_v6, 3  ;;  %v1337_v51 = vrot.slane %v1335_v23, 4  ;;  %v2133_v42 = vsel %vm2126_vm14, %v2130_v39, %v2132_v40  ;;  %v3674_v3 = vld [vmem:[#allocation5 + $0x1f0] ss:$8 sps:$4 sm:$0xff]   ;;  %v3679_v39 = vld [vmem:[#allocation5 + $0x3e4] ss:$8 sps:$4 sm:$0xff]  }
 0x16a   : > { %1172 = vmatmul.mubr.bf16.gmra.mrb[8].mxu1 %v1034_v63  ;;  %v1326_v19 = vrot.slane %v1324_v20, 3  ;;  %v1329_v49 = vrot.slane %v1327_v58, 4  ;;  %v1341_v38 = vshrl.u32 %v3090_v10, 16  ;;  %v1344_v54 = vshll.u32 %v3090_v10, 16  ;;  %v3680_v53 = vld [vmem:[#allocation5 + $0x400] ss:$8 sps:$4 sm:$0xff]  }
 0x16b   : > { %2448 = vmatpush1.bf16.msra.mxu0 %v3646_v2  ;;  %1181 = vmatprep.mubr.bf16.mxu1 %v3956_v0  ;;  %v1272_v2 = vsel %vm4611_vm15, %v1267_v18, %v1271_v11  ;;  %v2330_v57 = vshll.u32 %v3168_v34, 16  ;;  %v1338_v43 = vor.u32 %v1337_v51, %v1334_v7  ;;  %v3677_v63 = vld [vmem:[#allocation5 + $0x3e0] ss:$8 sps:$4 sm:$0xff]   ;;  %v3686_v46 = vld [vmem:[#allocation5 + $0x410] ss:$8 sps:$4 sm:$0xff]   ;;  %v3169_v23 = vcombine.low %v4638_v31, %v4638_v31 }
 0x16c   : > { %2449 = vmatprep.subr.bf16.mxu0 %v3654_v8  ;;  %1451 = vmatpush1.bf16.msra.mxu1 %v3655_v17  ;;  %v2327_v8 = vshrl.u32 %v3168_v34, 16  ;;  %v1286_v41 = vmul.bf16 %v1272_v2, %v1205_v60  ;;  %v1330_v17 = vor.u32 %v1329_v49, %v1326_v19  ;;  %v1343_v59 = vrot.slane %v1341_v38, 3  ;;  %v3689_v6 = vld [vmem:[#allocation5 + $0x420] ss:$8 sps:$4 sm:$0xff]   ;;  %v3694_v35 = vld [vmem:[#allocation5 + $0x434] ss:$8 sps:$4 sm:$0xff]  }
 0x16d   : > { %1452 = vmatprep.subr.bf16.mxu1 %v3663_v50  ;;  %v3688_v50 = vld [vmem:[#allocation5 + $0x414] ss:$8 sps:$4 sm:$0xff]   ;;  %v1346_v5 = vrot.slane %v1344_v54, 4  ;;  %v2356_v20 = vshll.u32 %v3169_v23, 16  ;;  %v3701_v51 = vld [vmem:[#allocation5 + $0x460] ss:$8 sps:$4 sm:$0xff]  }
 0x16e   : > { %2261 = vmatmul.mubr.bf16.gmra.mrb[4].mxu0 %v2131_v30  ;;  %v2329_v48 = vrot.slane %v2327_v8, 3  ;;  %v1339_v28 = vsel %vm1322_vm1, %v1330_v17, %v1338_v43  ;;  %v3691_v30 = vld [vmem:[#allocation5 + $0x424] ss:$8 sps:$4 sm:$0xff]   ;;  %v3700_v58 = vld [vmem:[#allocation5 + $0x454] ss:$8 sps:$4 sm:$0xff]  }
 0x16f   : > { %2450 = vmatpush1.bf16.msra.mxu0 %v3652_v45  ;;  %2270 = vmatprep.mubr.bf16.mxu0 %v3956_v0  ;;  %v2332_v45 = vrot.slane %v2330_v57, 4  ;;  %v1347_v9 = vor.u32 %v1346_v5, %v1343_v59  ;;  %v2358_v11 = vrot.slane %v2356_v20, 4  ;;  %v3706_v10 = vld [vmem:[#allocation5 + $0x474] ss:$8 sps:$4 sm:$0xff]  }
 0x170   : > { %2451 = vmatprep.subr.bf16.mxu0 %v3660_v4  ;;  %1453 = vmatpush1.bf16.msra.mxu1 %v3661_v32  ;;  %v3091_v4 = vcombine.low %v1286_v41, %v1286_v41  ;;  %v3683_v32 = vld [vmem:[#allocation5 + $0x3f0] ss:$8 sps:$4 sm:$0xff]  }
 0x171   : > { %1454 = vmatprep.subr.bf16.mxu1 %v3670_v29  ;;  %v2333_v24 = vor.u32 %v2332_v45, %v2329_v48  ;;  %v1348_v52 = vsel %vm1322_vm1, %v1338_v43, %v1347_v9  ;;  %v2536_v60 = vld [vmem:[%s4226_s27 + $0x20] sm:$0x1]  ;;  %v2748_v45 = vld [vmem:[#allocation8] sm:$0x3] }
 0x172   : > { %1182 = vmatmul.mubr.bf16.gmra.mrb[12].mxu1 %v4645_v33  ;;  %v3671_v33 = vld [vmem:[#allocation5 + $0x3d0] ss:$8 sps:$4 sm:$0xff]   ;;  %v1350_v29 = vshrl.u32 %v3091_v4, 16 }
 0x173   : > { %2452 = vmatpush1.bf16.msra.mxu0 %v3658_v1  ;;  %1474 = vmatprep.mubr.bf16.mxu1 %v3956_v0  ;;  %v1353_v1 = vshll.u32 %v3091_v4, 16  ;;  %v2342_v37 = vsel %vm1322_vm1, %v2333_v24, %v4322_v12  ;;  %v3695_v12 = vld [vmem:[#allocation5 + $0x440] ss:$8 sps:$4 sm:$0xff]   ;;  %v2774_v4 = vld [vmem:[#allocation10] sm:$0x3] }
 0x174   : > { %2453 = vmatprep.subr.bf16.mxu0 %v3666_v16  ;;  %1455 = vmatpush1.bf16.msra.mxu1 %v3668_v62  ;;  %v1352_v56 = vrot.slane %v1350_v29, 3  ;;  %v3692_v16 = vld [vmem:[#allocation5 + $0x430] ss:$8 sps:$4 sm:$0xff]   ;;  %v2353_v62 = vshrl.u32 %v3169_v23, 16 }
 0x175   : > { %1456 = vmatprep.subr.bf16.mxu1 %v3676_v25  ;;  %v1355_v18 = vrot.slane %v1353_v1, 4  ;;  %v3698_v25 = vld [vmem:[#allocation5 + $0x450] ss:$8 sps:$4 sm:$0xff]  }
 0x176   : > { %2271 = vmatmul.mubr.bf16.gmra.mrb[8].mxu0 %v2133_v42  ;;  %v2355_v34 = vrot.slane %v2353_v62, 3 }
 0x177   : > { %2454 = vmatpush1.bf16.msra.mxu0 %v3664_v22  ;;  %2280 = vmatprep.mubr.bf16.mxu0 %v3956_v0  ;;  %v1356_v31 = vor.u32 %v1355_v18, %v1352_v56  ;;  %v3703_v22 = vld [vmem:[#allocation5 + $0x464] ss:$8 sps:$4 sm:$0xff]  }
 0x178   : > { %2455 = vmatprep.subr.bf16.mxu0 %v3673_v36  ;;  %1457 = vmatpush1.bf16.msra.mxu1 %v3674_v3  ;;  %v2359_v7 = vor.u32 %v2358_v11, %v2355_v34 }
 0x179   : > { %3223 = vmatprep.subr.bf16.mxu1 %v3682_v27  ;;  %v1357_v61 = vsel %vm1322_vm1, %v1347_v9, %v1356_v31 }
 0x17a   : > { %v2360_v36 = vsel %vm1322_vm1, %v4324_v13, %v2359_v7  ;;  %v2543_v13 = vmul.bf16 %v2536_v60, %v4409_v15  ;;  %vm2866_vm1 = vmor %vm4761_vm3, %vm4751_vm0 }
 0x17b   : > { %2456 = vmatpush1.bf16.msra.mxu0 %v3671_v33  ;;  %1475 = vmatmul.mubr.bf16.vlgmr.msra.gmra.mrb[0].mxu1 %v1339_v28 }
 0x17c   : > { %2457 = vmatprep.subr.bf16.mxu0 %v3679_v39  ;;  %3231 = vmatpush1.bf16.msra.mxu1 %v3680_v53  ;;  %v3189_v2 = vcombine.low %v2543_v13, %v2543_v13 }
 0x17d   : > { %1484 = vmatprep.mubr.bf16.mxu1 %v3956_v0  ;;  %3224 = vmatprep.subr.bf16.mxu1 %v3688_v50 }
 0x17e   : > { %2281 = vmatmul.mubr.bf16.gmra.mrb[12].mxu0 %v2132_v40  ;;  %v3697_v40 = vld [vmem:[#allocation5 + $0x444] ss:$8 sps:$4 sm:$0xff]  }
 0x17f   : > { %2458 = vmatpush1.bf16.msra.mxu0 %v3677_v63  ;;  %2477 = vmatprep.mubr.bf16.mxu0 %v3956_v0  ;;  %v2756_v63 = vsub.s32 1, %v4331_v21 }
 0x180   : > { %2459 = vmatprep.subr.bf16.mxu0 %v3685_v26  ;;  %3232 = vmatpush1.bf16.msra.mxu1 %v3686_v46 }
 0x181   : > { %3225 = vmatprep.subr.bf16.mxu1 %v3691_v30 }
 0x183   : > { %2460 = vmatpush1.bf16.msra.mxu0 %v3683_v32  ;;  %1485 = vmatmul.mubr.bf16.gmra.mrb[4].mxu1 %v1348_v52 }
 0x184   : > { %2663 = vmatprep.subr.bf16.mxu0 %v3682_v27  ;;  %3233 = vmatpush1.bf16.msra.mxu1 %v3689_v6 }
 0x185   : > { %1494 = vmatprep.mubr.bf16.mxu1 %v3956_v0  ;;  %3226 = vmatprep.subr.bf16.mxu1 %v3694_v35 }
 0x186   : > { %2478 = vmatmul.mubr.bf16.vlgmr.msra.gmra.mrb[0].mxu0 %v2342_v37 }
 0x187   : > { %2664 = vmatpush1.bf16.msra.mxu0 %v3680_v53  ;;  %2487 = vmatprep.mubr.bf16.mxu0 %v3956_v0  ;;  %v2752_v53 = vsub.s32 0, %v4331_v21 }
 0x188   : > { %2665 = vmatprep.subr.bf16.mxu0 %v3688_v50  ;;  %3234 = vmatpush1.bf16.msra.mxu1 %v3692_v16 }
 0x189   : > { %3227 = vmatprep.subr.bf16.mxu1 %v3697_v40  ;;  %v4722_v26 = vrot.slane %v2748_v45, %v2752_v53  ;;  %v4726_v24 = vrot.slane %v2774_v4, %v2752_v53 }
 0x18b   : > { %2666 = vmatpush1.bf16.msra.mxu0 %v3686_v46  ;;  %1495 = vmatmul.mubr.bf16.gmra.mrb[8].mxu1 %v1357_v61 }
 0x18c   : > { %2667 = vmatprep.subr.bf16.mxu0 %v3691_v30  ;;  %3235 = vmatpush1.bf16.msra.mxu1 %v3695_v12  ;;  %v4724_v30 = vrot.slane %v2748_v45, %v2756_v63 }
 0x18d   : > { %1504 = vmatprep.mubr.bf16.mxu1 %v3956_v0  ;;  %3228 = vmatprep.subr.bf16.mxu1 %v3700_v58 }
 0x18e   : > { %2488 = vmatmul.mubr.bf16.gmra.mrb[4].mxu0 %v4329_v14  ;;  %v3704_v14 = vld [vmem:[#allocation5 + $0x470] ss:$8 sps:$4 sm:$0xff]  }
 0x18f   : > { %2668 = vmatpush1.bf16.msra.mxu0 %v3689_v6  ;;  %2497 = vmatprep.mubr.bf16.mxu0 %v3956_v0  ;;  %v4728_v6 = vrot.slane %v2774_v4, %v2756_v63 }
 0x190   : > { %2669 = vmatprep.subr.bf16.mxu0 %v3694_v35  ;;  %3236 = vmatpush1.bf16.msra.mxu1 %v3698_v25 }
 0x191   : > { %3229 = vmatprep.subr.bf16.mxu1 %v3703_v22 }
 0x193   : > { %2670 = vmatpush1.bf16.msra.mxu0 %v3692_v16  ;;  %1505 = vmatmul.mubr.bf16.gmra.mrb[12].mxu1 %v1352_v56 }
 0x194   : > { %2671 = vmatprep.subr.bf16.mxu0 %v3697_v40  ;;  %3237 = vmatpush1.bf16.msra.mxu1 %v3701_v51 }
 0x195   : > { %2715 = vmatprep.mubr.bf16.mxu1 %v3956_v0  ;;  %3230 = vmatprep.subr.bf16.mxu1 %v3706_v10 }
 0x196   : > { %2498 = vmatmul.mubr.bf16.gmra.mrb[8].mxu0 %v2360_v36 }
 0x197   : > { %2672 = vmatpush1.bf16.msra.mxu0 %v3695_v12  ;;  %2507 = vmatprep.mubr.bf16.mxu0 %v3956_v0 }
 0x198   : > { %2673 = vmatprep.subr.bf16.mxu0 %v3700_v58  ;;  %3238 = vmatpush1.bf16.msra.mxu1 %v3704_v14 }
 0x19b   : > { %2674 = vmatpush1.bf16.msra.mxu0 %v3698_v25  ;;  %2716 = vmatmul.mubr.bf16.vlgmr.msra.gmra.mrb[16].mxu1 %v4368_v55 }
 0x19c   : > { %2675 = vmatprep.subr.bf16.mxu0 %v3703_v22  ;;  %2725 = vmatprep.mubr.bf16.mxu1 %v3956_v0 }
 0x19e   : > { %2508 = vmatmul.mubr.bf16.gmra.mrb[12].mxu0 %v2355_v34 }
 0x19f   : > { %2676 = vmatpush1.bf16.msra.mxu0 %v3701_v51  ;;  %2695 = vmatprep.mubr.bf16.mxu0 %v3956_v0 }
 0x1a0   : > { %2677 = vmatprep.subr.bf16.mxu0 %v3706_v10 }
 0x1a3   : > { %2678 = vmatpush1.bf16.msra.mxu0 %v3704_v14  ;;  %2726 = vmatmul.mubr.bf16.gmra.mrb[20].mxu1 %v3189_v2 }
 0x1a6   : > { %2696 = vmatmul.mubr.bf16.vlgmr.msra.gmra.mrb[0].mxu0 %v4350_v44 }
 0x1a7   : > { %2705 = vmatprep.mubr.bf16.mxu0 %v3956_v0 }
 0x1ae   : > { %2706 = vmatmul.mubr.bf16.gmra.mrb[4].mxu0 %v4555_v47 }
 0x24e   : > { %v4704_v42 = vpop.f32.mrb[0].mxu1 }
 0x24f   : > { %v4706_v55 = vpop.f32.mrb[1].mxu1 }
 0x250   : > { %v4708_v3 = vpop.f32.mrb[2].mxu1 }
 0x251   : > { %v4710_v15 = vpop.f32.mrb[3].mxu1 }
 0x256   : > { %v4712_v19 = vpop.f32.mrb[4].mxu1 }
 0x257   : > { %v4714_v49 = vpop.f32.mrb[5].mxu1 }
 0x258   : > { %v4716_v27 = vpop.f32.mrb[6].mxu1 }
 0x259   : > { %v4718_v8 = vpop.f32.mrb[7].mxu1 }
 0x25e   : > { %v1496_v44 = vpop.f32.mrb[8].mxu1 }
 0x25f   : > { %v1498_v0 = vpop.f32.mrb[9].mxu1 }
 0x260   : > { %v1500_v57 = vpop.f32.mrb[10].mxu1 }
 0x261   : > { %v1502_v47 = vpop.f32.mrb[11].mxu1 }
 0x266   : > { %v1506_v33 = vpop.f32.mrb[12].mxu1 }
 0x267   : > { %v1508_v43 = vpop.f32.mrb[13].mxu1 }
 0x268   : > { %v1510_v54 = vpop.f32.mrb[14].mxu1 }
 0x269   : > { %v2499_v38 = vpop.f32.mrb[8].mxu0  ;;  %v1511_v17 = vpop.f32.mrb[15].mxu1 }
 0x26a   : > { %v3247_v41 = vadd.f32 %v2499_v38, %v1496_v44  ;;  %v2501_v39 = vpop.f32.mrb[9].mxu0 }
 0x26b   : > { %v3249_v50 = vadd.f32 %v2501_v39, %v1498_v0  ;;  %v2503_v48 = vpop.f32.mrb[10].mxu0 }
 0x26c   : > { %v3251_v28 = vadd.f32 %v2503_v48, %v1500_v57  ;;  %v2505_v59 = vpop.f32.mrb[11].mxu0 }
 0x26d   : > { %v3253_v5 = vadd.f32 %v2505_v59, %v1502_v47 }
 0x26e   : > { %v2717_v46 = vpop.f32.mrb[16].mxu1 }
 0x26f   : > { %v3248_v32 = vadd.f32 %v3247_v41, %v2717_v46  ;;  %v2719_v9 = vpop.f32.mrb[17].mxu1 }
 0x270   : > { %v3250_v1 = vadd.f32 %v3249_v50, %v2719_v9  ;;  %v2721_v23 = vpop.f32.mrb[18].mxu1  ;;  %v2867_v9 = vld [vmem:[%s4741_s28 + $0x30] sm:$0x11] }
 0x271   : > { %v2509_v29 = vpop.f32.mrb[12].mxu0  ;;  %v2768_v37 = vmul.f32 %v3248_v32, %v4722_v26  ;;  %v3252_v52 = vadd.f32 %v3251_v28, %v2721_v23  ;;  %v2723_v56 = vpop.f32.mrb[19].mxu1 }
 0x272   : > { %v3255_v21 = vadd.f32 %v2509_v29, %v1506_v33  ;;  %v2511_v35 = vpop.f32.mrb[13].mxu0  ;;  %v2769_v40 = vmul.f32 %v3250_v1, %v4724_v30  ;;  %v3254_v31 = vadd.f32 %v3253_v5, %v2723_v56 }
 0x273   : > { %v3257_v18 = vadd.f32 %v2511_v35, %v1508_v43  ;;  %v2513_v16 = vpop.f32.mrb[14].mxu0  ;;  %v2794_v62 = vadd.f32 %v4726_v24, %v2768_v37  ;;  %v2770_v12 = vmul.f32 %v3252_v52, %v4722_v26 }
 0x274   : > { %v2514_v20 = vpop.f32.mrb[15].mxu0  ;;  %v2795_v58 = vadd.f32 %v4728_v6, %v2769_v40  ;;  %v2771_v61 = vmul.f32 %v3254_v31, %v4724_v30 }
 0x275   : > { %v2808_v34 = vmax.f32 %v2794_v62, 0.0  ;;  %v2796_v11 = vadd.f32 %v4726_v24, %v2770_v12 }
 0x276   : > { %v2809_v25 = vmax.f32 %v2795_v58, 0.0  ;;  %v2797_v22 = vadd.f32 %v4728_v6, %v2771_v61  ;;  %v2727_v7 = vpop.f32.mrb[20].mxu1 }
 0x277   : > { %v2810_v51 = vmax.f32 %v2796_v11, 0.0  ;;  %v3256_v10 = vadd.f32 %v3255_v21, %v2727_v7  ;;  %v2729_v36 = vpop.f32.mrb[21].mxu1 }
 0x278   : > { %v3220_v14 = vpack.c.bf16 %v2809_v25, %v2808_v34  ;;  %v2811_v60 = vmax.f32 %v2797_v22, 0.0  ;;  %v3258_v2 = vadd.f32 %v3257_v18, %v2729_v36  ;;  %v2731_v44 = vpop.f32.mrb[22].mxu1 }
 0x279   : > { %v2697_v13 = vpop.f32.mrb[0].mxu0  ;;  %v2772_v47 = vmul.f32 %v3256_v10, %v4722_v26  ;;  %v2732_v33 = vpop.f32.mrb[23].mxu1 }
 0x27a   : > { %v3239_v0 = vadd.f32 %v2697_v13, %v4704_v42  ;;  %v2699_v57 = vpop.f32.mrb[1].mxu0  ;;  %2862 = vst [vmem:[%s4741_s28 + $0x20] sm:$0xff] %v3220_v14  ;;  %v3221_v43 = vpack.c.bf16 %v2811_v60, %v2810_v51  ;;  %v2773_v41 = vmul.f32 %v3258_v2, %v4724_v30 }
 0x27b   : > { %v3240_v38 = vadd.f32 %v2699_v57, %v4706_v55  ;;  %v2701_v54 = vpop.f32.mrb[2].mxu0  ;;  %v2798_v42 = vadd.f32 %v4726_v24, %v2772_v47 }
 0x27c   : > { %v2760_v39 = vmul.f32 %v3239_v0, %v4722_v26  ;;  %v3241_v17 = vadd.f32 %v2701_v54, %v4708_v3  ;;  %v2703_v53 = vpop.f32.mrb[3].mxu0  ;;  %2863 = vst [vmem:[%s4741_s28 + $0x28] sm:$0xff] %v3221_v43  ;;  %v2799_v45 = vadd.f32 %v4728_v6, %v2773_v41 }
 0x27d   : > { %v2761_v55 = vmul.f32 %v3240_v38, %v4724_v30  ;;  %v3242_v48 = vadd.f32 %v2703_v53, %v4710_v15  ;;  %v2812_v59 = vmax.f32 %v2798_v42, 0.0 }
 0x27e   : > { %v2786_v63 = vadd.f32 %v4726_v24, %v2760_v39  ;;  %v2762_v28 = vmul.f32 %v3241_v17, %v4722_v26  ;;  %v2813_v46 = vmax.f32 %v2799_v45, 0.0 }
 0x27f   : > { %v2787_v5 = vadd.f32 %v4728_v6, %v2761_v55  ;;  %v2763_v4 = vmul.f32 %v3242_v48, %v4724_v30 }
 0x280   : > { %v2800_v32 = vmax.f32 %v2786_v63, 0.0  ;;  %v2788_v15 = vadd.f32 %v4726_v24, %v2762_v28  ;;  %v3222_v23 = vpack.c.bf16 %v2813_v46, %v2812_v59 }
 0x281   : > { %v2801_v29 = vmax.f32 %v2787_v5, 0.0  ;;  %v2789_v1 = vadd.f32 %v4728_v6, %v2763_v4  ;;  %v2707_v21 = vpop.f32.mrb[4].mxu0 }
 0x282   : > { %v2802_v35 = vmax.f32 %v2788_v15, 0.0  ;;  %v3243_v37 = vadd.f32 %v2707_v21, %v4712_v19  ;;  %v2709_v52 = vpop.f32.mrb[5].mxu0  ;;  %v2868_v16 = vsel %vm2866_vm1, %v3222_v23, %v2867_v9 }
 0x283   : > { %v3216_v56 = vpack.c.bf16 %v2801_v29, %v2800_v32  ;;  %v2803_v18 = vmax.f32 %v2789_v1, 0.0  ;;  %v3244_v40 = vadd.f32 %v2709_v52, %v4714_v49  ;;  %v2711_v31 = vpop.f32.mrb[6].mxu0  ;;  %2869 = vst [vmem:[%s4741_s28 + $0x30] sm:$0x11] %v2868_v16 }
 0x284   : > { %v2764_v62 = vmul.f32 %v3243_v37, %v4722_v26  ;;  %v3245_v20 = vadd.f32 %v2711_v31, %v4716_v27  ;;  %v2713_v12 = vpop.f32.mrb[7].mxu0 }
 0x285   : > { %2858 = vst [vmem:[%s4741_s28] sm:$0xff] %v3216_v56  ;;  %v3217_v58 = vpack.c.bf16 %v2803_v18, %v2802_v35  ;;  %v2765_v19 = vmul.f32 %v3244_v40, %v4724_v30  ;;  %v3246_v61 = vadd.f32 %v2713_v12, %v4718_v8 }
 0x286   : > { %v2790_v34 = vadd.f32 %v4726_v24, %v2764_v62  ;;  %v2766_v49 = vmul.f32 %v3245_v20, %v4722_v26 }
 0x287   : > { %2859 = vst [vmem:[%s4741_s28 + $0x8] sm:$0xff] %v3217_v58  ;;  %v2791_v11 = vadd.f32 %v4728_v6, %v2765_v19  ;;  %v2767_v27 = vmul.f32 %v3246_v61, %v4724_v30 }
 0x288   : > { %v2804_v25 = vmax.f32 %v2790_v34, 0.0  ;;  %v2792_v22 = vadd.f32 %v4726_v24, %v2766_v49 }
 0x289   : > { %v2805_v7 = vmax.f32 %v2791_v11, 0.0  ;;  %v2793_v8 = vadd.f32 %v4728_v6, %v2767_v27 }
 0x28a   : > { %v2806_v51 = vmax.f32 %v2792_v22, 0.0 }
 0x28b   : > { %v3218_v10 = vpack.c.bf16 %v2805_v7, %v2804_v25  ;;  %v2807_v36 = vmax.f32 %v2793_v8, 0.0 }
 0x28d   : > { %2860 = vst [vmem:[%s4741_s28 + $0x10] sm:$0xff] %v3218_v10  ;;  %v3219_v26 = vpack.c.bf16 %v2807_v36, %v2806_v51 }
 0x28f   : > { %2861 = vst [vmem:[%s4741_s28 + $0x18] sm:$0xff] %v3219_v26 }
 0x290   : > { %3868 = shalt.err (!%p3865_p0)
}
 0x291   : > { %s3869_s29 = scalar_lea.hbm %s4796_s6, 896  ;;  %s3873_s25 = scalar_lea.hbm %s4854_s5, 1792 }
 0x292   : > { %p3870_p4 = scmp.ne.s32.totalorder %s4796_s6, %s3869_s29  ;;  %p3874_p12 = scmp.lt.u32.totalorder %s4796_s6, %s4854_s5 }
 0x293   : > { %p3875_p1 = scmp.lt.u32.totalorder %s3873_s25, %s3869_s29  ;;  %p3877_p8 = scmp.lt.u32.totalorder %s3869_s29, %s4796_s6 }
 0x294   : > { %p3871_p13 = pnand %p3870_p4, %p4166_p5 }
 0x295   : > { %p3876_p11 = por %p3875_p1, %p3874_p12 }
 0x296   : > { %p3872_p2 = pneg %p3871_p13 }
 0x297   : > { %p3878_p6 = por %p3877_p8, %p3876_p11 }
 0x299   : > { %p3879_p10 = pnand %p3878_p6, %p3872_p2 }
 0x29b   : > { %3882 = shalt.err (!%p3879_p10)
}
 0x29c   : > { %s3959_s28 = smov 128   ;;  %s3960_s30 = smov 8  }
 0x29d   : > { %3386 = dma.vmem_to_hbm [thread:$0]  (%p4166_p5), %s4799_s10, 896, %s4796_s6, %s2871_s21, %s3959_s28, %s3959_s28, %s3960_s30  }
 0x29e PF: > { %s4889_s9 = sld [smem:[#allocation16_spill]]  ;;  %s4890_s15 = sld [smem:[#allocation17_spill]] }
 0x29f   : > { %p4892_p7 = scmp.ge.s32.totalorder %s3945_s23, 2 }
 0x2a4   : > { %s2901_s7 = sand.u32 1, %s4889_s9   ;;  %p4891_p3 = scmp.ne.s32.totalorder %s4890_s15, 0 }
 0x2a5   : > { %s2902_s18 = scalar_lea.sflag [#allocation4], %s2901_s7 }
 0x2a6   : > { %p3406_p9 = pnand %p4892_p7, %p4891_p3 }
 0x2a8   : > { %3920 = dma.done.wait (!%p3406_p9), %s2902_s18, 896  }
 0x2a9   : > { %3922 = vsyncadd (!%p3406_p9), %s2902_s18, 4294966400  ;;  %s23_s23 = sadd.s32 1, %s3945_s23   ;;  %s4893_s18 = smov %s3929_s19 }
 0x2aa   : > { %p20_p0 = scmp.ge.s32.totalorder %s23_s23, 4   ;;  %s4894_s19 = smov %s3933_s20 }
 0x2ab   : > { %s4895_s20 = smov %s4178_s16  ;;  %s4896_s21 = smov %s3941_s22 }
 0x2ac   : > { %s4897_s22 = smov %s4899_s24  ;;  %22 = sbr.rel (!%p20_p0) target bundleno = 8 (0x8), region = 113 }
 0x2b3   :  { %2907 = vsyncpa [#allocation3], 1 }
 0x2b4   :  { %2909 = vsyncpa [#allocation3 + $0x1], 1 }
 0x2b5   :  { %2910 = vsyncpa [#allocation6], 1 }
 0x2b6   :  { %2911 = vsyncpa [#allocation9], 1 }
 0x2b7   :  { %2912 = vsyncpa [#allocation4], 1 }
 0x2b8   :  { %2914 = vsyncpa [#allocation4 + $0x1], 1 }

// kernel: test_et_al_forward.4
= control target key start
LH: loop header
LB: loop body
LE: loop exit
PB: predicated region body
PF: predicated region fallthrough
CT: control target
= control target key end

     0   :  { %10 = vsyncpa [#allocation3], 0  ;;  %s11447_s0 = inlined_call_operand.hbm [shape: bf16[2,257,4], index: 0, kind: input, shape index: {}]   ;;  %s11448_s1 = inlined_call_operand.hbm [shape: bf16[9,4,128], index: 1, kind: input, shape index: {}]   ;;  %s11449_s2 = inlined_call_operand.hbm [shape: bf16[3,225,1], index: 2, kind: input, shape index: {}]   ;;  %s11450_s3 = inlined_call_operand.hbm [shape: f32[1,128], index: 3, kind: input, shape index: {}]   ;;  %s11451_s4 = inlined_call_operand.hbm [shape: f32[1,128], index: 4, kind: input, shape index: {}]   ;;  %s11452_s5 = inlined_call_operand.hbm [shape: bf16[2,225,128], index: 5, kind: output, shape index: {}]  }
   0x1   :  { %12 = vsyncpa [#allocation3 + $0x1], 0 }
   0x2   :  { %13 = vsyncpa [#allocation6], 0 }
   0x3   :  { %14 = vsyncpa [#allocation9], 0 }
   0x4   :  { %15 = vsyncpa [#allocation4], 0 }
   0x5   :  { %17 = vsyncpa [#allocation4 + $0x1], 0  ;;  %s8024_s18 = smov 0   ;;  %s8026_s19 = smov 0  }
   0x6   :  { %s8028_s20 = smov 0   ;;  %s8030_s21 = smov 0  }
   0x7   :  { %s8032_s22 = smov 0   ;;  %s8034_s23 = smov 0  }
   0x8 LB: > { %11645 = sst [smem:[#allocation16_spill]] %s7956_s18  ;;  %s5941_s24 = sadd.s32 4294967295, %s7976_s23   ;;  %s7976_s23 = sphi %s8034_s23, %s23_s23   ;;  %s7972_s22 = sphi %s8032_s22, %s12309_s22   ;;  %s7968_s21 = sphi %s8030_s21, %s12308_s21   ;;  %s7964_s20 = sphi %s8028_s20, %s12307_s20   ;;  %s7960_s19 = sphi %s8026_s19, %s12306_s19   ;;  %s7956_s18 = sphi %s8024_s18, %s12305_s18  }
   0x9   : > { %s5942_s25 = sadd.s32 4294967294, %s7976_s23   ;;  %p55_p0 = scmp.ne.s32.totalorder %s7960_s19, %s7956_s18 }
   0xa   : > { %p8058_p1 = scmp.eq.s32.totalorder %s5941_s24, 0  ;;  %p8062_p2 = scmp.eq.s32.totalorder %s5941_s24, 1 }
   0xb   : > { %p186_p3 = scmp.eq.s32.totalorder %s5942_s25, 1  ;;  %p5943_p5 = scmp.ge.s32.totalorder %s7976_s23, 1 }
   0xc   : > { %s11646_s26 = scalar_select %p8058_p1, 1, 0 }
   0xd   : > { %s11647_s27 = scalar_select %p8062_p2, 1, 0 }
   0xe   : > { %p8068_p4 = por %p8058_p1, %p55_p0  ;;  %p8073_p6 = por %p186_p3, %p55_p0 }
   0xf   : > { %p193_p7 = scmp.lt.s32.totalorder %s7976_s23, 3  ;;  %s7978_s6 = smov [#allocation5]  }
  0x10   : > { %s11648_s28 = scalar_select %p8068_p4, 1, 0 }
  0x11   : > { %s11649_s29 = scalar_select %p8073_p6, 1, 0 }
  0x12   : > { %p8078_p8 = pnand %p5943_p5, %p193_p7  ;;  %s207_s7 = sshll.u32 %s7978_s6, 4  ;;  %s8082_s7 = int_to_ptr.vmem [resolvable:$true] %s207_s7 }
  0x13   : > { %11650 = sst [smem:[#allocation17_spill]] %s11649_s29  ;;  %s7979_s9 = smov [#allocation8]  }
  0x14   : > { %s11651_s30 = scalar_select %p8078_p8, 1, 0 }
  0x15   : > { %p7549_p9 = pneg %p8078_p8  ;;  %s236_s10 = sshll.u32 %s7979_s9, 4  ;;  %s8093_s10 = int_to_ptr.vmem [resolvable:$true] %s236_s10 }
  0x16   : > { %s7980_s11 = smov [#allocation7]   ;;  %s7744_s15 = scalar_lea.hbm %s11448_s1, 288 }
  0x17   : > { %p8089_p11 = pnand %p7549_p9, %p8058_p1  ;;  %s8095_s12 = sshll.u32 %s7980_s11, 4  ;;  %s221_s12 = int_to_ptr.vmem [resolvable:$true] %s8095_s12 }
  0x18   : > { %p7745_p12 = scmp.ne.s32.totalorder %s11448_s1, %s7744_s15  ;;  %p7751_p5 = scmp.lt.u32.totalorder %s7744_s15, %s11448_s1 }
  0x19   : > { %p8105_p13 = pneg %p8089_p11 }
  0x1b   : > { %p7747_p0 = pnand %p8105_p13, %p7745_p12 }
  0x1d   : > { %p7748_p3 = pneg %p7747_p0 }
  0x1f   : > { %p7753_p7 = pnand %p7751_p5, %p7748_p3 }
  0x21   : > { %7756 = shalt.err (!%p7753_p7)
}
  0x22   : > { %s7757_s9 = scalar_lea.vmem %s8082_s7, 288  ;;  %p7765_p1 = scmp.lt.s32.totalorder %s8082_s7, %s8082_s7 }
  0x23   : > { %p7758_p9 = scmp.ne.s32.totalorder %s8082_s7, %s7757_s9  ;;  %p7766_p4 = scmp.lt.s32.totalorder %s7757_s9, %s7757_s9 }
  0x25   : > { %p7760_p10 = pnand %p7758_p9, %p8105_p13  ;;  %p7767_p12 = por %p7766_p4, %p7765_p1 }
  0x27   : > { %p7761_p6 = pneg %p7760_p10 }
  0x29   : > { %p7768_p0 = pnand %p7767_p12, %p7761_p6 }
  0x2b   : > { %7771 = shalt.err (!%p7768_p0)
}
  0x2c   : > { %s7981_s11 = smov 32   ;;  %s7982_s13 = smov 2  }
  0x2d   : > { %7552 = dma.hbm_to_vmem [thread:$0]  (!%p8089_p11), %s11448_s1, 288, %s8082_s7, [#allocation6], %s7981_s11, %s7981_s11, %s7982_s13  }
  0x2e   : > { %s7772_s25 = scalar_lea.hbm %s11450_s3, 16 }
  0x2f   : > { %p7773_p1 = scmp.ne.s32.totalorder %s11450_s3, %s7772_s25  ;;  %p7779_p10 = scmp.lt.u32.totalorder %s7772_s25, %s11450_s3 }
  0x31   : > { %p7775_p4 = pnand %p7773_p1, %p8105_p13 }
  0x33   : > { %p7776_p6 = pneg %p7775_p4 }
  0x35   : > { %p7781_p3 = pnand %p7779_p10, %p7776_p6 }
  0x37   : > { %7784 = shalt.err (!%p7781_p3)
}
  0x38   : > { %s7785_s7 = scalar_lea.vmem %s8093_s10, 16  ;;  %s7792_s29 = scalar_lea.vmem %s8093_s10, 32 }
  0x39   : > { %p7786_p5 = scmp.ne.s32.totalorder %s8093_s10, %s7785_s7  ;;  %p7793_p12 = scmp.lt.s32.totalorder %s8093_s10, %s8093_s10 }
  0x3a   : > { %p7794_p0 = scmp.lt.s32.totalorder %s7792_s29, %s7785_s7 }
  0x3b   : > { %p7788_p7 = pnand %p7786_p5, %p8105_p13 }
  0x3c   : > { %p7795_p1 = por %p7794_p0, %p7793_p12 }
  0x3d   : > { %p7789_p9 = pneg %p7788_p7 }
  0x3f   : > { %p7796_p4 = pnand %p7795_p1, %p7789_p9 }
  0x41   : > { %7799 = shalt.err (!%p7796_p4)
}
  0x42   : > { %7558 = dma.hbm_to_vmem [thread:$0]  (!%p8089_p11), %s11450_s3, 16, %s8093_s10, [#allocation9]  }
  0x43   : > { %s7800_s15 = scalar_lea.hbm %s11449_s2, 5568 }
  0x44   : > { %p7801_p6 = scmp.ne.s32.totalorder %s11449_s2, %s7800_s15  ;;  %p7807_p5 = scmp.lt.u32.totalorder %s7800_s15, %s11449_s2 }
  0x46   : > { %p7803_p10 = pnand %p7801_p6, %p8105_p13 }
  0x48   : > { %p7804_p3 = pneg %p7803_p10 }
  0x4a   : > { %p7809_p7 = pnand %p7807_p5, %p7804_p3 }
  0x4c   : > { %7812 = shalt.err (!%p7809_p7)
}
  0x4d   : > { %s7813_s9 = scalar_lea.vmem %s221_s12, 5568  ;;  %p7821_p1 = scmp.lt.s32.totalorder %s221_s12, %s221_s12 }
  0x4e   : > { %p7814_p9 = scmp.ne.s32.totalorder %s221_s12, %s7813_s9  ;;  %p7822_p4 = scmp.lt.s32.totalorder %s7813_s9, %s7813_s9 }
  0x50   : > { %p7816_p12 = pnand %p7814_p9, %p8105_p13  ;;  %p7823_p8 = por %p7822_p4, %p7821_p1 }
  0x52   : > { %p7817_p0 = pneg %p7816_p12 }
  0x54   : > { %p7824_p2 = pnand %p7823_p8, %p7817_p0 }
  0x56   : > { %7827 = shalt.err (!%p7824_p2)
}
  0x57   : > { %s7983_s10 = smov 64   ;;  %s7984_s7 = smov 4  }
  0x58   : > { %7555 = dma.hbm_to_vmem [thread:$0]  (!%p8089_p11), %s11449_s2, 5568, %s221_s12, [#allocation6], %s7983_s10, %s7983_s10, %s7984_s7  }
  0x59   : > { %s7985_s11 = smov [#allocation10]   ;;  %s7828_s16 = scalar_lea.hbm %s11451_s4, 16 }
  0x5a   : > { %s249_s13 = sshll.u32 %s7985_s11, 4  ;;  %p7829_p2 = scmp.ne.s32.totalorder %s11451_s4, %s7828_s16  ;;  %s250_s13 = int_to_ptr.vmem [resolvable:$true] %s249_s13 }
  0x5b   : > { %p7835_p10 = scmp.lt.u32.totalorder %s7828_s16, %s11451_s4 }
  0x5c   : > { %p7831_p8 = pnand %p7829_p2, %p8105_p13 }
  0x5e   : > { %p7832_p6 = pneg %p7831_p8 }
  0x60   : > { %p7837_p3 = pnand %p7835_p10, %p7832_p6 }
  0x62   : > { %7840 = shalt.err (!%p7837_p3)
}
  0x63   : > { %s7841_s12 = scalar_lea.vmem %s250_s13, 16  ;;  %s7848_s29 = scalar_lea.vmem %s250_s13, 32 }
  0x64   : > { %p7842_p5 = scmp.ne.s32.totalorder %s250_s13, %s7841_s12  ;;  %p7849_p12 = scmp.lt.s32.totalorder %s250_s13, %s250_s13 }
  0x65   : > { %p7850_p0 = scmp.lt.s32.totalorder %s7848_s29, %s7841_s12 }
  0x66   : > { %p7844_p7 = pnand %p7842_p5, %p8105_p13 }
  0x67   : > { %p7851_p1 = por %p7850_p0, %p7849_p12 }
  0x68   : > { %p7845_p9 = pneg %p7844_p7 }
  0x6a   : > { %p7852_p4 = pnand %p7851_p1, %p7845_p9 }
  0x6c   : > { %7855 = shalt.err (!%p7852_p4)
}
  0x6d   : > { %7561 = dma.hbm_to_vmem [thread:$0]  (!%p8089_p11), %s11451_s4, 16, %s250_s13, [#allocation9]  }
  0x6e   : > { %s32_s24 = sadd.s32 1, %s7972_s22  ;;  %s42_s14 = sadd.s32 1, %s7964_s20 }
  0x6f   : > { %p33_p13 = scmp.ge.s32.totalorder %s32_s24, 2  ;;  %p49_p2 = scmp.ne.s32.totalorder %s7964_s20, %s7960_s19 }
  0x70   : > { %p50_p8 = scmp.eq.s32.totalorder %s7976_s23, 0  ;;  %p7574_p6 = scmp.lt.s32.totalorder %s7976_s23, 2 }
  0x71   : > { %s12311_s24 = smov (%p33_p13, %s32_s24), 0  ;;  %p11654_p3 = scmp.ne.s32.totalorder %s11647_s27, 0 }
  0x72   : > { %p51_p10 = por %p50_p8, %p49_p2  ;;  %s39_s15 = ssub.s32 %s7972_s22, %s12311_s24 }
  0x73   : > { %p8200_p5 = por %p11654_p3, %p49_p2  ;;  %s260_s16 = sand.u32 1, %s7964_s20  }
  0x74   : > { %p40_p7 = scmp.eq.s32.totalorder %s39_s15, 0  ;;  %s7524_s13 = smul.u32 132, %s260_s16 }
  0x75   : > { %p8207_p11 = pnand %p7574_p6, %p51_p10  ;;  %s7525_s6 = smul.u32 2112, %s7972_s22 }
  0x76   : > { %s8212_s25 = scalar_select %p40_p7, %s7964_s20, %s42_s14  }
  0x77   : > { %s264_s9 = scalar_lea.vmem [#allocation2], %s7524_s13  ;;  %s8218_s18 = scalar_lea.hbm %s11447_s0, %s7525_s6 }
  0x78   : > { %s271_s12 = sshll.u32 %s264_s9, 4  ;;  %s8222_s11 = scalar_lea.sflag [#allocation3], %s260_s16  ;;  %s8220_s12 = int_to_ptr.vmem [resolvable:$true] %s271_s12 }
  0x79   : > { %s7856_s15 = scalar_lea.hbm %s8218_s18, 2112  ;;  %p7858_p12 = pneg %p8207_p11 }
  0x7a   : > { %p7857_p9 = scmp.ne.s32.totalorder %s8218_s18, %s7856_s15  ;;  %s7861_s6 = scalar_lea.hbm %s11447_s0, 4224 }
  0x7b   : > { %p7862_p4 = scmp.lt.u32.totalorder %s8218_s18, %s11447_s0  ;;  %p7863_p13 = scmp.lt.u32.totalorder %s7861_s6, %s7856_s15 }
  0x7c   : > { %p7859_p0 = pnand %p7858_p12, %p7857_p9  ;;  %p7865_p8 = scmp.lt.u32.totalorder %s7856_s15, %s8218_s18 }
  0x7d   : > { %p7864_p2 = por %p7863_p13, %p7862_p4 }
  0x7e   : > { %p7860_p1 = pneg %p7859_p0 }
  0x7f   : > { %p7866_p6 = por %p7865_p8, %p7864_p2 }
  0x81   : > { %p7867_p10 = pnand %p7866_p6, %p7860_p1 }
  0x83   : > { %7870 = shalt.err (!%p7867_p10)
}
  0x84   : > { %s7871_s16 = scalar_lea.vmem %s8220_s12, 2112  ;;  %s7986_s29 = smov [#allocation2]  }
  0x85   : > { %p7872_p3 = scmp.ne.s32.totalorder %s8220_s12, %s7871_s16  ;;  %s7876_s14 = sshll.u32 %s7986_s29, 4  ;;  %s7877_s14 = int_to_ptr.vmem [resolvable:$false] %s7876_s14 }
  0x86   : > { %s7878_s13 = scalar_lea.vmem %s7877_s14, 4224  ;;  %p7879_p0 = scmp.lt.s32.totalorder %s8220_s12, %s7877_s14 }
  0x87   : > { %p7874_p7 = pnand %p7872_p3, %p7858_p12  ;;  %p7880_p4 = scmp.lt.s32.totalorder %s7878_s13, %s7871_s16 }
  0x89   : > { %p7875_p9 = pneg %p7874_p7  ;;  %p7881_p13 = por %p7880_p4, %p7879_p0 }
  0x8b   : > { %p7882_p2 = pnand %p7881_p13, %p7875_p9 }
  0x8d   : > { %7885 = shalt.err (!%p7882_p2)
}
  0x8e   : > { %7565 = dma.hbm_to_vmem [thread:$0]  (!%p8207_p11), %s8218_s18, 2112, %s8220_s12, %s8222_s11, %s7983_s10, %s7983_s10, %s7984_s7  }
  0x8f   : > { %p11657_p12 = scmp.ne.s32.totalorder %s11651_s30, 0 }
  0x91   : > { %283 = sbr.rel (%p11657_p12) target bundleno = 1124 (0x464), region = 40 }
  0x98   : > { %s8256_s15 = sand.u32 1, %s7960_s19   ;;  %p11658_p1 = scmp.ne.s32.totalorder %s11648_s28, 0 }
  0x99   : > { %s7526_s6 = smul.u32 132, %s8256_s15  ;;  %s286_s9 = scalar_lea.sflag [#allocation3], %s8256_s15 }
  0x9b   : > { %s8260_s27 = scalar_lea.vmem [#allocation2], %s7526_s6 }
  0x9c   : > { %7939 = dma.done.wait (%p11658_p1), %s286_s9, 2112  }
  0x9d   : > { %7941 = vsyncadd (%p11658_p1), %s286_s9, 4294965184  ;;  %p11659_p11 = scmp.ne.s32.totalorder %s11646_s26, 0 }
  0x9f   : > { %7943 = dma.done.wait (%p11659_p11), [#allocation6], 5856  }
  0xa0   : > { %7945 = vsyncadd (%p11659_p11), [#allocation6], 4294961440 }
  0xa1   : > { %7947 = dma.done.wait (%p11659_p11), [#allocation9], 32  }
  0xa2   : > { %7949 = vsyncadd (%p11659_p11), [#allocation9], 4294967264  ;;  %v7987_v0 = vmov 0   ;;  %v11462_v1 = vmov 0.0   ;;  %vm7989_vm0 = vmmov 0   ;;  %vm1009_vm1 = vcmask 1041408  }
  0xa3   : > { %7643 = vset.pattern.permute.xlu1 %v7987_v0  ;;  %7642 = vset.pattern.permute.xlu0 %v7987_v0  ;;  %v1443_v2 = vld [vmem:[#allocation7 + $0xf0] sm:$0xf]  ;;  %v1441_v3 = vld [vmem:[#allocation7 + $0xe8] sm:$0xf]  ;;  %v1444_v4 = vld [vmem:[#allocation7 + $0xf4] sm:$0xf] }
  0xa4   : > { %6515 = vmatprep.subr.bf16.mxu1 %v11462_v1  ;;  %6517 = vmatprep.mubr.msk.bf16.mxu1 %vm7989_vm0, %v11462_v1  ;;  %v1442_v5 = vld [vmem:[#allocation7 + $0xec] sm:$0xf]  ;;  %v1446_v6 = vld [vmem:[#allocation7 + $0xfc] sm:$0xf]  ;;  %v1445_v7 = vld [vmem:[#allocation7 + $0xf8] sm:$0xf] }
  0xa5   : > { %6763 = vmatprep.subr.bf16.mxu0 %v11462_v1  ;;  %6765 = vmatprep.mubr.msk.bf16.mxu0 %vm7989_vm0, %v11462_v1  ;;  %v1448_v8 = vld [vmem:[#allocation7 + $0x104] sm:$0xf]  ;;  %v770_v9 = vld [vmem:[#allocation5 + $0x2] sm:$0x3]  ;;  %v1447_v10 = vld [vmem:[#allocation7 + $0x100] sm:$0xf] }
  0xa6   : > { %1496 = vperm.xlu1 %7643, %v1443_v2   ;;  %1472 = vperm.xlu0 %7642, %v1441_v3   ;;  %v1011_v11 = vsel %vm1009_vm1, %v770_v9, 0  ;;  %v333_v12 = vld [vmem:[%s8260_s27] sm:$0xf]  ;;  %v8283_v13 = vld [vmem:[%s8260_s27 + $0x4] sm:$0xf]  ;;  %vm963_vm3 = vcmask 31744  }
  0xa7   : > { %6516 = vmatpush3.bf16.msra.mxu1 %v1011_v11  ;;  %11660 = vst [vmem:[#allocation18_spill] sm:$0xff] %v8283_v13  ;;  %v335_v14 = vld [vmem:[%s8260_s27 + $0x8] sm:$0xf]  ;;  %v8287_v15 = vld [vmem:[%s8260_s27 + $0xc] sm:$0xf]  ;;  %v5955_v16 = vcombine.low %v333_v12, %v8283_v13  ;;  %vm1847_vm4 = vcmask 1040384  }
  0xa8   : > { %11661 = vst [vmem:[#allocation19_spill] sm:$0xff] %v8287_v15  ;;  %v5956_v17 = vcombine.low %v335_v14, %v8287_v15  ;;  %6577 = vmatprep.subr.bf16.mxu1 %v11462_v1  ;;  %v1450_v18 = vld [vmem:[#allocation7 + $0x10c] sm:$0xf]  ;;  %v337_v19 = vld [vmem:[%s8260_s27 + $0x10] sm:$0xf]  ;;  %vm1848_vm5 = vcmask 1044484  }
  0xa9   : > { %v338_v20 = vld [vmem:[%s8260_s27 + $0x14] sm:$0xf]  ;;  %v1449_v21 = vld [vmem:[#allocation7 + $0x108] sm:$0xf]  ;;  %v846_v22 = vshrl.u32 %v5955_v16, 16  ;;  %v848_v23 = vshll.u32 %v5955_v16, 16  ;;  %vm8458_vm6 = vmor %vm1847_vm4, %vm1848_vm5 }
  0xaa   : > { %1508 = vperm.xlu1 %7643, %v1444_v4   ;;  %1484 = vperm.xlu0 %7642, %v1442_v5   ;;  %v853_v24 = vshll.u32 %v5956_v17, 16  ;;  %v5957_v25 = vcombine.low %v337_v19, %v338_v20  ;;  %vm844_vm2 = vsmask.f32 7424  ;;  %v1452_v28 = vld [vmem:[#allocation7 + $0x114] sm:$0xf]  ;;  %v857_v31 = vshrl.u32 %v5956_v17, 16 }
  0xab   : > { %v850_v26 = vrot.slane %v848_v23, 1  ;;  %v1451_v29 = vld [vmem:[#allocation7 + $0x110] sm:$0xf]  ;;  %v339_v33 = vld [vmem:[%s8260_s27 + $0x18] sm:$0xf]  ;;  %vm4269_vm10 = vcmask 1042432  }
  0xac   : > { %v855_v27 = vrot.slane %v853_v24, 1  ;;  %v861_v32 = vshll.u32 %v5957_v25, 16  ;;  %v340_v34 = vld [vmem:[%s8260_s27 + $0x1c] sm:$0xf]  ;;  %v3170_v36 = vld [vmem:[#allocation5 + $0x8] sm:$0x3] }
  0xad   : > { %v851_v30 = vor.u32 %v850_v26, %v846_v22  ;;  %v1454_v37 = vld [vmem:[#allocation7 + $0x11c] sm:$0xf]  ;;  %v8298_v38 = vsel %vm1009_vm1, %v3170_v36, 0  ;;  %v8301_v39 = vld [vmem:[%s8260_s27 + $0x8] sm:$0xf]  ;;  %v5958_v41 = vcombine.low %v339_v33, %v340_v34  ;;  %v865_v50 = vshrl.u32 %v5957_v25, 16 }
  0xae   : > { %1532 = vperm.xlu1 %7643, %v1446_v6   ;;  %1520 = vperm.xlu0 %7642, %v1445_v7   ;;  %11662 = vst [vmem:[#allocation20_spill] sm:$0xff] %v8298_v38  ;;  %v1453_v40 = vld [vmem:[#allocation7 + $0x118] sm:$0xf]  ;;  %v859_v44 = vor.u32 %v857_v31, %v855_v27  ;;  %v863_v45 = vrot.slane %v861_v32, 1  ;;  %v1456_v48 = vld [vmem:[#allocation7 + $0x124] sm:$0xf] }
  0xaf   : > { %v856_v35 = vsel %vm844_vm2, %v851_v30, %v855_v27  ;;  %6764 = vmatpush3.bf16.msra.mxu0 %v8298_v38  ;;  %v8306_v42 = vld [vmem:[%s8260_s27 + $0xc] sm:$0xf]  ;;  %v1455_v49 = vld [vmem:[#allocation7 + $0x120] sm:$0xf]  ;;  %v869_v51 = vshll.u32 %v5958_v41, 16  ;;  %v873_v5 = vshrl.u32 %v5958_v41, 16 }
  0xb0   : > { %6518 = vmatmul.mubr.msk.bf16.vlgmr.msra.gmra.mrb[0].mxu1 %vm963_vm3, %v856_v35  ;;  %v3790_v43 = vld [vmem:[#allocation5 + $0xa] sm:$0x3]  ;;  %6825 = vmatprep.subr.bf16.mxu0 %v11462_v1  ;;  %v6075_v46 = vcombine.low %v8301_v39, %v8306_v42  ;;  %v864_v52 = vsel %vm844_vm2, %v859_v44, %v863_v45  ;;  %v8322_v54 = vld [vmem:[%s8260_s27 + $0x14] sm:$0xf]  ;;  %v768_v55 = vld [vmem:[#allocation5] sm:$0x3]  ;;  %v867_v62 = vor.u32 %v865_v50, %v863_v45 }
  0xb1   : > { %6521 = vmatprep.mubr.msk.bf16.mxu1 %vm7989_vm0, %v11462_v1  ;;  %v4028_v47 = vsel %vm1009_vm1, %v3790_v43, 0  ;;  %v8319_v53 = vld [vmem:[%s8260_s27 + $0x10] sm:$0xf]  ;;  %v341_v56 = vld [vmem:[%s8260_s27 + $0x20] sm:$0xf]  ;;  %v1284_v58 = vsel %vm1009_vm1, %v768_v55, 0 }
  0xb2   : > { %1556 = vperm.xlu1 %7643, %v1448_v8   ;;  %1544 = vperm.xlu0 %7642, %v1447_v10   ;;  %v342_v57 = vld [vmem:[%s8260_s27 + $0x24] sm:$0xf]  ;;  %v6076_v61 = vcombine.low %v8319_v53, %v8322_v54  ;;  %v871_v63 = vrot.slane %v869_v51, 1  ;;  %v1460_v2 = vld [vmem:[#allocation7 + $0x134] sm:$0xf]  ;;  %vm4270_vm11 = vcmask 1046532  }
  0xb3   : > { %6766 = vmatmul.mubr.msk.bf16.vlgmr.msra.gmra.mrb[0].mxu0 %vm963_vm3, %v6075_v46  ;;  %v1458_v59 = vld [vmem:[#allocation7 + $0x12c] sm:$0xf]  ;;  %v1457_v60 = vld [vmem:[#allocation7 + $0x128] sm:$0xf]  ;;  %v5959_v0 = vcombine.low %v341_v56, %v342_v57  ;;  %6578 = vmatpush3.bf16.msra.mxu1 %v1284_v58  ;;  %v1459_v3 = vld [vmem:[#allocation7 + $0x130] sm:$0xf] }
  0xb4   : > { %6826 = vmatpush3.bf16.msra.mxu0 %v4028_v47  ;;  %6769 = vmatprep.mubr.msk.bf16.mxu0 %vm7989_vm0, %v11462_v1  ;;  %v872_v4 = vsel %vm844_vm2, %v867_v62, %v871_v63  ;;  %v8339_v7 = vld [vmem:[%s8260_s27 + $0x18] sm:$0xf]  ;;  %v8342_v8 = vld [vmem:[%s8260_s27 + $0x1c] sm:$0xf]  ;;  %v343_v9 = vld [vmem:[%s8260_s27 + $0x28] sm:$0xf]  ;;  %v875_v16 = vor.u32 %v873_v5, %v871_v63 }
  0xb5   : > { %6887 = vmatprep.subr.bf16.mxu0 %v11462_v1  ;;  %6639 = vmatprep.subr.bf16.mxu1 %v11462_v1  ;;  %v877_v6 = vshll.u32 %v5959_v0, 16  ;;  %v344_v10 = vld [vmem:[%s8260_s27 + $0x2c] sm:$0xf]  ;;  %v1462_v11 = vld [vmem:[#allocation7 + $0x13c] sm:$0xf]  ;;  %v6077_v14 = vcombine.low %v8339_v7, %v8342_v8  ;;  %v881_v22 = vshrl.u32 %v5959_v0, 16  ;;  %vm8951_vm14 = vmor %vm4269_vm10, %vm4270_vm11 }
  0xb6   : > { %1580 = vperm.xlu1 %7643, %v1450_v18   ;;  %1568 = vperm.xlu0 %7642, %v1449_v21   ;;  %v1461_v12 = vld [vmem:[#allocation7 + $0x138] sm:$0xf]  ;;  %v5960_v18 = vcombine.low %v343_v9, %v344_v10  ;;  %v363_v19 = vld [vmem:[#allocation7 + $0x4] sm:$0xf]  ;;  %v362_v20 = vld [vmem:[#allocation7] sm:$0xf] }
  0xb7   : > { %v879_v17 = vrot.slane %v877_v6, 1  ;;  %v8356_v24 = vld [vmem:[%s8260_s27 + $0x20] sm:$0xf]  ;;  %v8359_v25 = vld [vmem:[%s8260_s27 + $0x24] sm:$0xf]  ;;  %vm4490_vm5 = vcmask 1044480  }
  0xb8   : > { %6522 = vmatmul.mubr.msk.bf16.gmra.mrb[4].mxu1 %vm963_vm3, %v864_v52  ;;  %v885_v23 = vshll.u32 %v5960_v18, 16  ;;  %v345_v26 = vld [vmem:[%s8260_s27 + $0x30] sm:$0xf]  ;;  %v346_v27 = vld [vmem:[%s8260_s27 + $0x34] sm:$0xf]  ;;  %v6078_v30 = vcombine.low %v8356_v24, %v8359_v25  ;;  %s7527_s26 = smul.u32 116, %s8256_s15 }
  0xb9   : > { %6525 = vmatprep.mubr.msk.bf16.mxu1 %vm7989_vm0, %v11462_v1  ;;  %v880_v21 = vsel %vm844_vm2, %v875_v16, %v879_v17  ;;  %v883_v31 = vor.u32 %v881_v22, %v879_v17  ;;  %v5961_v33 = vcombine.low %v345_v26, %v346_v27  ;;  %v365_v34 = vld [vmem:[#allocation7 + $0xc] sm:$0xf]  ;;  %v364_v35 = vld [vmem:[#allocation7 + $0x8] sm:$0xf]  ;;  %v3149_v43 = vld [vmem:[%s8260_s27 + $0x2c] sm:$0xf] }
  0xba   : > { %1604 = vperm.xlu1 %7643, %v1452_v28   ;;  %1592 = vperm.xlu0 %7642, %v1451_v29   ;;  %v1464_v28 = vld [vmem:[#allocation7 + $0x144] sm:$0xf]  ;;  %v1463_v29 = vld [vmem:[#allocation7 + $0x140] sm:$0xf]  ;;  %v887_v32 = vrot.slane %v885_v23, 1  ;;  %s11269_s28 = scalar_lea.vmem [#allocation11], %s7527_s26 }
  0xbb   : > { %6770 = vmatmul.mubr.msk.bf16.gmra.mrb[4].mxu0 %vm963_vm3, %v6076_v61  ;;  %v3148_v41 = vld [vmem:[%s8260_s27 + $0x28] sm:$0xf]  ;;  %v347_v44 = vld [vmem:[%s8260_s27 + $0x38] sm:$0xf]  ;;  %v348_v45 = vld [vmem:[%s8260_s27 + $0x3c] sm:$0xf] }
  0xbc   : > { %6773 = vmatprep.mubr.msk.bf16.mxu0 %vm7989_vm0, %v11462_v1  ;;  %v888_v36 = vsel %vm844_vm2, %v883_v31, %v887_v32  ;;  %v1466_v46 = vld [vmem:[#allocation7 + $0x14c] sm:$0xf]  ;;  %v1465_v47 = vld [vmem:[#allocation7 + $0x148] sm:$0xf]  ;;  %v5962_v51 = vcombine.low %v347_v44, %v348_v45  ;;  %v367_v52 = vld [vmem:[#allocation7 + $0x14] sm:$0xf] }
  0xbd   : > { %v366_v55 = vld [vmem:[#allocation7 + $0x10] sm:$0xf]  ;;  %v897_v57 = vshrl.u32 %v5961_v33, 16  ;;  %v349_v61 = vld [vmem:[%s8260_s27 + $0x40] sm:$0xf]  ;;  %s7528_s30 = smul.u32 1856, %s7968_s21 }
  0xbe   : > { %1628 = vperm.xlu1 %7643, %v1454_v37   ;;  %1616 = vperm.xlu0 %7642, %v1453_v40   ;;  %v889_v37 = vshrl.u32 %v5960_v18, 16  ;;  %v893_v40 = vshll.u32 %v5961_v33, 16  ;;  %v901_v58 = vshll.u32 %v5962_v51, 16  ;;  %v350_v62 = vld [vmem:[%s8260_s27 + $0x44] sm:$0xf]  ;;  %s5814_s10 = sshll.u32 %s11269_s28, 4  ;;  %s11397_s10 = int_to_ptr.vmem [resolvable:$true] %s5814_s10 }
  0xbf   : > { %v1468_v63 = vld [vmem:[#allocation7 + $0x154] sm:$0xf]  ;;  %v1467_v0 = vld [vmem:[#allocation7 + $0x150] sm:$0xf]  ;;  %v5963_v5 = vcombine.low %v349_v61, %v350_v62  ;;  %v369_v6 = vld [vmem:[#allocation7 + $0x1c] sm:$0xf]  ;;  %s11395_s12 = scalar_lea.hbm %s11452_s5, %s7528_s30 }
  0xc0   : > { %6526 = vmatmul.mubr.msk.bf16.gmra.mrb[8].mxu1 %vm963_vm3, %v872_v4  ;;  %v895_v50 = vrot.slane %v893_v40, 1  ;;  %v903_v4 = vrot.slane %v901_v58, 1  ;;  %v368_v9 = vld [vmem:[#allocation7 + $0x18] sm:$0xf]  ;;  %v3153_v16 = vld [vmem:[%s8260_s27 + $0x3c] sm:$0xf] }
  0xc1   : > { %6529 = vmatprep.mubr.msk.bf16.mxu1 %vm7989_vm0, %v11462_v1  ;;  %v351_v17 = vld [vmem:[%s8260_s27 + $0x48] sm:$0xf]  ;;  %v352_v18 = vld [vmem:[%s8260_s27 + $0x4c] sm:$0xf]  ;;  %v372_v27 = vld [vmem:[#allocation7 + $0x28] sm:$0xf] }
  0xc2   : > { %1652 = vperm.xlu1 %7643, %v1456_v48   ;;  %1640 = vperm.xlu0 %7642, %v1455_v49   ;;  %v6079_v48 = vcombine.low %v3148_v41, %v3149_v43  ;;  %v891_v49 = vor.u32 %v889_v37, %v887_v32  ;;  %v5964_v26 = vcombine.low %v351_v17, %v352_v18  ;;  %v3154_v32 = vld [vmem:[%s8260_s27 + $0x40] sm:$0xf]  ;;  %v3155_v33 = vld [vmem:[%s8260_s27 + $0x44] sm:$0xf]  ;;  %v376_v45 = vld [vmem:[#allocation7 + $0x38] sm:$0xf] }
  0xc3   : > { %6774 = vmatmul.mubr.msk.bf16.gmra.mrb[8].mxu0 %vm963_vm3, %v6077_v14  ;;  %v3152_v14 = vld [vmem:[%s8260_s27 + $0x38] sm:$0xf]  ;;  %v373_v37 = vld [vmem:[#allocation7 + $0x2c] sm:$0xf]  ;;  %v6082_v40 = vcombine.low %v3154_v32, %v3155_v33  ;;  %v360_v18 = vld [vmem:[%s8260_s27 + $0x6c] sm:$0xf] }
  0xc4   : > { %6777 = vmatprep.mubr.msk.bf16.mxu0 %vm7989_vm0, %v11462_v1  ;;  %v896_v56 = vsel %vm844_vm2, %v891_v49, %v895_v50  ;;  %v917_v31 = vshll.u32 %v5964_v26, 16  ;;  %v359_v17 = vld [vmem:[%s8260_s27 + $0x68] sm:$0xf]  ;;  %vm3473_vm7 = vsmask.f32 256  ;;  %s5800_s21 = scalar_lea.sflag [#allocation4], %s8256_s15 }
  0xc5   : > { %v390_v32 = vld [vmem:[#allocation7 + $0x70] sm:$0x1]  ;;  %v389_v33 = vld [vmem:[#allocation7 + $0x6c] sm:$0xf]  ;;  %vm3474_vm8 = vsmask.f32 4368 }
  0xc6   : > { %1676 = vperm.xlu1 %7643, %v1458_v59   ;;  %1664 = vperm.xlu0 %7642, %v1457_v60   ;;  %v3150_v59 = vld [vmem:[%s8260_s27 + $0x30] sm:$0xf]  ;;  %v3151_v60 = vld [vmem:[%s8260_s27 + $0x34] sm:$0xf]  ;;  %v919_v43 = vrot.slane %v917_v31, 1  ;;  %vm8505_vm9 = vmor %vm3473_vm7, %vm3474_vm8  ;;  %vm2068_vm8 = vcmask 1046528  }
  0xc7   : > { %v361_v31 = vld [vmem:[%s8260_s27 + $0x70] sm:$0x1]  ;;  %vm2356_vm12 = vsmask.f32 3328  ;;  %vm2357_vm13 = vsmask.f32 7440 }
  0xc8   : > { %6530 = vmatmul.mubr.msk.bf16.gmra.mrb[12].mxu1 %vm963_vm3, %v880_v21  ;;  %v6081_v21 = vcombine.low %v3152_v14, %v3153_v16  ;;  %vm8977_vm15 = vmor %vm2356_vm12, %vm2357_vm13  ;;  %v7693_v13 = vld [vmem:[%s8260_s27 + $0xc] sm:$0xf]  ;;  %s7886_s18 = scalar_lea.vmem %s11397_s10, 1856  ;;  %s7991_s11 = smov [#allocation11]  }
  0xc9   : > { %6533 = vmatprep.mubr.msk.bf16.mxu1 %vm7989_vm0, %v11462_v1  ;;  %p7887_p8 = scmp.ne.s32.totalorder %s11397_s10, %s7886_s18  ;;  %s7890_s16 = sshll.u32 %s7991_s11, 4  ;;  %s7891_s16 = int_to_ptr.vmem [resolvable:$false] %s7890_s16 }
  0xca   : > { %1700 = vperm.xlu1 %7643, %v1460_v2   ;;  %1688 = vperm.xlu0 %7642, %v1459_v3   ;;  %v6080_v2 = vcombine.low %v3150_v59, %v3151_v60  ;;  %v899_v3 = vor.u32 %v897_v57, %v895_v50  ;;  %v355_v50 = vld [vmem:[%s8260_s27 + $0x58] sm:$0xf]  ;;  %v380_v59 = vld [vmem:[#allocation7 + $0x48] sm:$0xf]  ;;  %s7892_s29 = scalar_lea.vmem %s7891_s16, 3712  ;;  %p7893_p3 = scmp.lt.s32.totalorder %s11397_s10, %s7891_s16 }
  0xcb   : > { %6778 = vmatmul.mubr.msk.bf16.gmra.mrb[12].mxu0 %vm963_vm3, %v6078_v30  ;;  %v913_v30 = vshrl.u32 %v5963_v5, 16  ;;  %v379_v60 = vld [vmem:[#allocation7 + $0x44] sm:$0xf]  ;;  %p7888_p6 = pnand %p7887_p8, %p8200_p5  ;;  %p7894_p7 = scmp.lt.s32.totalorder %s7892_s29, %s7886_s18 }
  0xcc   : > { %6781 = vmatprep.mubr.msk.bf16.mxu0 %vm7989_vm0, %v11462_v1  ;;  %v904_v10 = vsel %vm844_vm2, %v899_v3, %v903_v4  ;;  %v382_v3 = vld [vmem:[#allocation7 + $0x50] sm:$0xf] }
  0xcd   : > { %p7889_p10 = pneg %p7888_p6  ;;  %p7895_p9 = por %p7894_p7, %p7893_p3 }
  0xce   : > { %1724 = vperm.xlu1 %7643, %v1462_v11   ;;  %1712 = vperm.xlu0 %7642, %v1461_v12   ;;  %v905_v11 = vshrl.u32 %v5962_v51, 16  ;;  %v909_v12 = vshll.u32 %v5963_v5, 16  ;;  %v356_v51 = vld [vmem:[%s8260_s27 + $0x5c] sm:$0xf] }
  0xcf   : > { %v5966_v58 = vcombine.low %v355_v50, %v356_v51  ;;  %p7896_p0 = pnand %p7895_p9, %p7889_p10 }
  0xd0   : > { %6534 = vmatmul.mubr.msk.bf16.gmra.mrb[16].mxu1 %vm963_vm3, %v888_v36  ;;  %v907_v22 = vor.u32 %v905_v11, %v903_v4  ;;  %v911_v23 = vrot.slane %v909_v12, 1  ;;  %v374_v36 = vld [vmem:[#allocation7 + $0x30] sm:$0xf]  ;;  %v381_v4 = vld [vmem:[#allocation7 + $0x4c] sm:$0xf] }
  0xd1   : > { %6537 = vmatprep.mubr.msk.bf16.mxu1 %vm7989_vm0, %v11462_v1  ;;  %v383_v11 = vld [vmem:[#allocation7 + $0x54] sm:$0xf]  ;;  %v937_v14 = vshrl.u32 %v5966_v58, 16 }
  0xd2   : > { %405 = vperm.xlu1 %7643, %v363_v19   ;;  %393 = vperm.xlu0 %7642, %v362_v20   ;;  %v371_v19 = vld [vmem:[#allocation7 + $0x24] sm:$0xf]  ;;  %v370_v20 = vld [vmem:[#allocation7 + $0x20] sm:$0xf]  ;;  %v915_v41 = vor.u32 %v913_v30, %v911_v23 }
  0xd3   : > { %6782 = vmatmul.mubr.msk.bf16.gmra.mrb[16].mxu0 %vm963_vm3, %v6079_v48  ;;  %v921_v48 = vshrl.u32 %v5964_v26, 16  ;;  %v388_v26 = vld [vmem:[#allocation7 + $0x68] sm:$0xf] }
  0xd4   : > { %6785 = vmatprep.mubr.msk.bf16.mxu0 %vm7989_vm0, %v11462_v1 }
  0xd6   : > { %1748 = vperm.xlu1 %7643, %v1464_v28   ;;  %1736 = vperm.xlu0 %7642, %v1463_v29   ;;  %v1469_v28 = vld [vmem:[#allocation7 + $0x158] sm:$0x1]  ;;  %v912_v29 = vsel %vm844_vm2, %v907_v22, %v911_v23  ;;  %v5968_v23 = vcombine.low %v359_v17, %v360_v18  ;;  %v5188_v17 = vld [vmem:[%s8260_s27 + $0x14] sm:$0xf] }
  0xd8   : > { %6538 = vmatmul.mubr.msk.bf16.gmra.mrb[20].mxu1 %vm963_vm3, %v896_v56  ;;  %v923_v56 = vor.u32 %v921_v48, %v919_v43  ;;  %v949_v30 = vshll.u32 %v5968_v23, 16 }
  0xd9   : > { %6541 = vmatprep.mubr.msk.bf16.mxu1 %vm7989_vm0, %v11462_v1 }
  0xda   : > { %429 = vperm.xlu1 %7643, %v365_v34   ;;  %417 = vperm.xlu0 %7642, %v364_v35   ;;  %v353_v34 = vld [vmem:[%s8260_s27 + $0x50] sm:$0xf]  ;;  %v354_v35 = vld [vmem:[%s8260_s27 + $0x54] sm:$0xf] }
  0xdb   : > { %6786 = vmatmul.mubr.msk.bf16.gmra.mrb[20].mxu0 %vm963_vm3, %v6080_v2  ;;  %v5965_v44 = vcombine.low %v353_v34, %v354_v35  ;;  %v358_v2 = vld [vmem:[%s8260_s27 + $0x64] sm:$0xf]  ;;  %v951_v35 = vrot.slane %v949_v30, 1 }
  0xdc   : > { %6789 = vmatprep.mubr.msk.bf16.mxu0 %vm7989_vm0, %v11462_v1 }
  0xdd   : > { %v925_v49 = vshll.u32 %v5965_v44, 16  ;;  %v929_v62 = vshrl.u32 %v5965_v44, 16 }
  0xde   : > { %1772 = vperm.xlu1 %7643, %v1466_v46   ;;  %1760 = vperm.xlu0 %7642, %v1465_v47   ;;  %v375_v46 = vld [vmem:[#allocation7 + $0x34] sm:$0xf]  ;;  %v920_v47 = vsel %vm844_vm2, %v915_v41, %v919_v43  ;;  %v7990_v43 = vmov 839922192  }
  0xdf   : > { %v927_v57 = vrot.slane %v925_v49, 1  ;;  %v397_v44 = vunpack.c.l.s4 %v7990_v43 }
  0xe0   : > { %6542 = vmatmul.mubr.msk.bf16.gmra.mrb[24].mxu1 %vm963_vm3, %v904_v10  ;;  %v384_v10 = vld [vmem:[#allocation7 + $0x58] sm:$0xf] }
  0xe1   : > { %6545 = vmatprep.mubr.msk.bf16.mxu1 %vm7989_vm0, %v11462_v1  ;;  %v928_v61 = vsel %vm844_vm2, %v923_v56, %v927_v57  ;;  %v931_v5 = vor.u32 %v929_v62, %v927_v57  ;;  %v398_v48 = vunpack.c.0.s8 %v397_v44 }
  0xe2   : > { %453 = vperm.xlu1 %7643, %v367_v52   ;;  %441 = vperm.xlu0 %7642, %v366_v55   ;;  %v378_v52 = vld [vmem:[#allocation7 + $0x40] sm:$0xf]  ;;  %v377_v55 = vld [vmem:[#allocation7 + $0x3c] sm:$0xf] }
  0xe3   : > { %6790 = vmatmul.mubr.msk.bf16.gmra.mrb[24].mxu0 %vm963_vm3, %v6081_v21 }
  0xe4   : > { %6793 = vmatprep.mubr.msk.bf16.mxu0 %vm7989_vm0, %v11462_v1 }
  0xe6   : > { %1796 = vperm.xlu1 %7643, %v1468_v63   ;;  %1784 = vperm.xlu0 %7642, %v1467_v0   ;;  %v933_v63 = vshll.u32 %v5966_v58, 16  ;;  %v357_v0 = vld [vmem:[%s8260_s27 + $0x60] sm:$0xf] }
  0xe8   : > { %6546 = vmatmul.mubr.msk.bf16.gmra.mrb[28].mxu1 %vm963_vm3, %v912_v29 }
  0xe9   : > { %6549 = vmatprep.mubr.msk.bf16.mxu1 %vm7989_vm0, %v11462_v1 }
  0xea   : > { %477 = vperm.xlu1 %7643, %v369_v6   ;;  %465 = vperm.xlu0 %7642, %v368_v9   ;;  %v935_v6 = vrot.slane %v933_v63, 1  ;;  %v5967_v9 = vcombine.low %v357_v0, %v358_v2 }
  0xeb   : > { %6794 = vmatmul.mubr.msk.bf16.gmra.mrb[28].mxu0 %vm963_vm3, %v6082_v40  ;;  %v953_v40 = vshrl.u32 %v5968_v23, 16 }
  0xec   : > { %6827 = vmatprep.mubr.msk.bf16.mxu0 %vm7989_vm0, %v11462_v1  ;;  %v936_v12 = vsel %vm844_vm2, %v931_v5, %v935_v6  ;;  %v941_v16 = vshll.u32 %v5967_v9, 16  ;;  %v939_v21 = vor.u32 %v937_v14, %v935_v6  ;;  %v945_v29 = vshrl.u32 %v5967_v9, 16  ;;  %v5187_v9 = vld [vmem:[%s8260_s27 + $0x10] sm:$0xf] }
  0xee   : > { %501 = vperm.xlu1 %7643, %v371_v19   ;;  %489 = vperm.xlu0 %7642, %v370_v20   ;;  %v386_v19 = vld [vmem:[#allocation7 + $0x60] sm:$0xf]  ;;  %v385_v20 = vld [vmem:[#allocation7 + $0x5c] sm:$0xf]  ;;  %v943_v22 = vrot.slane %v941_v16, 1 }
  0xf0   : > { %6550 = vmatmul.mubr.msk.bf16.gmra.mrb[32].mxu1 %vm963_vm3, %v920_v47  ;;  %v947_v34 = vor.u32 %v945_v29, %v943_v22 }
  0xf1   : > { %6553 = vmatprep.mubr.msk.bf16.mxu1 %vm7989_vm0, %v11462_v1 }
  0xf2   : > { %513 = vperm.xlu1 %7643, %v372_v27   ;;  %1808 = vperm.xlu0 %7642, %v1469_v28   ;;  %v387_v27 = vld [vmem:[#allocation7 + $0x64] sm:$0xf]  ;;  %v944_v28 = vsel %vm844_vm2, %v939_v21, %v943_v22 }
  0xf6   : > { %537 = vperm.xlu1 %7643, %v374_v36   ;;  %525 = vperm.xlu0 %7642, %v373_v37   ;;  %v5969_v36 = vcombine.low %v361_v31, %v361_v31  ;;  %v952_v37 = vsel %vm844_vm2, %v947_v34, %v951_v35  ;;  %v4416_v34 = vld [vmem:[#allocation5 + $0xc] sm:$0x3] }
  0xf8   : > { %6554 = vmatmul.mubr.msk.bf16.gmra.mrb[36].mxu1 %vm963_vm3, %v928_v61  ;;  %v957_v41 = vshll.u32 %v5969_v36, 16  ;;  %v961_v58 = vshrl.u32 %v5969_v36, 16  ;;  %v1438_v36 = vld [vmem:[%s8260_s27] sm:$0xe] }
  0xf9   : > { %6557 = vmatprep.mubr.msk.bf16.mxu1 %vm7989_vm0, %v11462_v1 }
  0xfa   : > { %561 = vperm.xlu1 %7643, %v376_v45   ;;  %549 = vperm.xlu0 %7642, %v375_v46   ;;  %v399_v45 = vlaneseq  ;;  %v955_v46 = vor.u32 %v953_v40, %v951_v35  ;;  %v959_v47 = vrot.slane %v957_v41, 1 }
  0xfc   : > { %v400_v49 = vshrl.u32 %v399_v45, 7  ;;  %v960_v50 = vsel %vm844_vm2, %v955_v46, %v959_v47  ;;  %v8605_v47 = vld [vmem:[%s8260_s27 + $0x28] sm:$0xf] }
  0xfd   : > { %11689 = vst [vmem:[#allocation43_spill] sm:$0xff] %v8605_v47 }
  0xfe   : > { %585 = vperm.xlu1 %7643, %v378_v52   ;;  %573 = vperm.xlu0 %7642, %v377_v55   ;;  %v8443_v51 = vsub.s32 %v398_v48, %v400_v49 }
 0x100   : > { %6558 = vmatmul.mubr.msk.bf16.gmra.mrb[40].mxu1 %vm963_vm3, %v936_v12 }
 0x101   : > { %6561 = vmatprep.mubr.msk.bf16.mxu1 %vm7989_vm0, %v11462_v1 }
 0x102   : > { %609 = vperm.xlu1 %7643, %v380_v59   ;;  %597 = vperm.xlu0 %7642, %v379_v60  }
 0x106   : > { %633 = vperm.xlu1 %7643, %v382_v3   ;;  %621 = vperm.xlu0 %7642, %v381_v4   ;;  %v11665_v3 = vmov 0 }
 0x107   : > { %v11666_v3 = vsel %vm8458_vm6, 4294967295, %v11665_v3 }
 0x108   : > { %6562 = vmatmul.mubr.msk.bf16.gmra.mrb[44].mxu1 %vm963_vm3, %v944_v28  ;;  %11667 = vst [vmem:[#allocation23_spill] sm:$0xff] %v11666_v3 }
 0x109   : > { %6565 = vmatprep.mubr.msk.bf16.mxu1 %vm7989_vm0, %v11462_v1 }
 0x10a   : > { %657 = vperm.xlu1 %7643, %v384_v10   ;;  %645 = vperm.xlu0 %7642, %v383_v11  }
 0x10e   : > { %681 = vperm.xlu1 %7643, %v386_v19   ;;  %669 = vperm.xlu0 %7642, %v385_v20  }
 0x110   : > { %6566 = vmatmul.mubr.msk.bf16.gmra.mrb[48].mxu1 %vm963_vm3, %v952_v37 }
 0x111   : > { %6569 = vmatprep.mubr.msk.bf16.mxu1 %vm7989_vm0, %v11462_v1 }
 0x112   : > { %705 = vperm.xlu1 %7643, %v388_v26   ;;  %693 = vperm.xlu0 %7642, %v387_v27   ;;  %v8482_v27 = vld [vmem:[%s8260_s27 + $0x18] sm:$0xf] }
 0x113   : > { %11670 = vst [vmem:[#allocation26_spill] sm:$0xff] %v8482_v27 }
 0x116   : > { %729 = vperm.xlu1 %7643, %v390_v32   ;;  %717 = vperm.xlu0 %7642, %v389_v33  }
 0x118   : > { %6570 = vmatmul.mubr.msk.bf16.gmra.mrb[52].mxu1 %vm963_vm3, %v960_v50  ;;  %v8510_v50 = vld [vmem:[%s8260_s27 + $0x1c] sm:$0xf] }
 0x119   : > { %6573 = vmatprep.mubr.msk.bf16.mxu1 %vm7989_vm0, %v11462_v1  ;;  %11677 = vst [vmem:[#allocation31_spill] sm:$0xff] %v8510_v50 }
 0x120   : > { %6574 = vmatmul.mubr.msk.bf16.gmra.mrb[56].mxu1 %vm963_vm3, %v961_v58 }
 0x121   : > { %6579 = vmatprep.mubr.msk.bf16.mxu1 %vm7989_vm0, %v11462_v1  ;;  %v8645_v1 = vld [vmem:[%s8260_s27 + $0x30] sm:$0xf] }
 0x122   : > { %11696 = vst [vmem:[#allocation50_spill] sm:$0xff] %v8645_v1 }
 0x125   : > { %v1497_v52 = vpop.permute.xlu1 %1496  ;;  %v1473_v55 = vpop.permute.xlu0 %1472 }
 0x126   : > { %v8449_v56 = vrot.slane %v1497_v52, %v8443_v51  ;;  %v1481_v57 = vrot.slane %v1473_v55, %v8443_v51  ;;  %v8513_v52 = vsel %vm1009_vm1, %v4416_v34, 0 }
 0x128   : > { %11663 = vst [vmem:[#allocation21_spill] sm:$0xff] %v8449_v56  ;;  %v1855_v59 = vrot.slane %v8449_v56, 7  ;;  %v1850_v63 = vrot.slane %v1481_v57, 7  ;;  %v3477_v4 = vshrl.u32 %v1481_v57, 16  ;;  %v3494_v12 = vshrl.u32 %v8449_v56, 16 }
 0x129   : > { %v1509_v60 = vpop.permute.xlu1 %1508  ;;  %v1485_v61 = vpop.permute.xlu0 %1484  ;;  %v3497_v21 = vshll.u32 %v8449_v56, 16  ;;  %v5216_v28 = vmul.bf16 %v5187_v9, %v1481_v57  ;;  %v3480_v37 = vshll.u32 %v1481_v57, 16 }
 0x12a   : > { %v1857_v62 = vrot.slane %v1855_v59, 4  ;;  %v8454_v0 = vrot.slane %v1509_v60, %v8443_v51  ;;  %v1493_v2 = vrot.slane %v1485_v61, %v8443_v51  ;;  %v1851_v14 = vrot.slane %v1850_v63, 4 }
 0x12b   : > { %v3479_v22 = vrot.slane %v3477_v4, 7  ;;  %v3496_v35 = vrot.slane %v3494_v12, 7  ;;  %v8515_v57 = vmul.bf16 %v1850_v63, %v1438_v36 }
 0x12c   : > { %11664 = vst [vmem:[#allocation22_spill] sm:$0xff] %v8454_v0  ;;  %v1858_v5 = vrot.slane %v8454_v0, 7  ;;  %v3503_v6 = vshrl.u32 %v8454_v0, 16  ;;  %v1852_v18 = vrot.slane %v1493_v2, 7  ;;  %v3485_v20 = vshrl.u32 %v1493_v2, 16 }
 0x12d   : > { %v1533_v10 = vpop.permute.xlu1 %1532  ;;  %v1521_v11 = vpop.permute.xlu0 %1520  ;;  %v3506_v29 = vshll.u32 %v8454_v0, 16  ;;  %v5217_v31 = vmul.bf16 %v5188_v17, %v1493_v2  ;;  %v3488_v44 = vshll.u32 %v1493_v2, 16  ;;  %v8501_v48 = vor.u32 %v3480_v37, %v3479_v22  ;;  %11678 = vst [vmem:[#allocation32_spill] sm:$0xff] %v8515_v57  ;;  %v8705_v0 = vld [vmem:[%s8260_s27 + $0x44] sm:$0xf] }
 0x12e   : > { %v8471_v16 = vsel %vm8458_vm6, %v1857_v62, %v1858_v5  ;;  %v8474_v19 = vrot.slane %v3503_v6, 7  ;;  %v8479_v23 = vsel %vm8458_vm6, %v1851_v14, %v1852_v18  ;;  %v1854_v26 = vrot.slane %v1852_v18, 4  ;;  %11705 = vst [vmem:[#allocation57_spill] sm:$0xff] %v8705_v0 }
 0x12f   : > { %11668 = vst [vmem:[#allocation24_spill] sm:$0xff] %v8471_v16  ;;  %11669 = vst [vmem:[#allocation25_spill] sm:$0xff] %v8479_v23  ;;  %v3487_v30 = vrot.slane %v3485_v20, 7  ;;  %v8491_v41 = vrot.slane %v1533_v10, %v8443_v51  ;;  %v8494_v45 = vcombine.low %v5216_v28, %v5217_v31  ;;  %v8497_v46 = vrot.slane %v1521_v11, %v8443_v51 }
 0x130   : > { %v8488_v40 = vsel %vm8458_vm6, %v1854_v26, %v1855_v59  ;;  %v3508_v43 = vor.u32 %v3506_v29, %v8474_v19  ;;  %v3501_v55 = vrot.slane %v3496_v35, 4  ;;  %v3499_v61 = vor.u32 %v3497_v21, %v3496_v35  ;;  %v8560_v35 = vld [vmem:[%s8260_s27 + $0x20] sm:$0xf] }
 0x131   : > { %v1557_v32 = vpop.permute.xlu1 %1556  ;;  %v1545_v33 = vpop.permute.xlu0 %1544  ;;  %11671 = vst [vmem:[#allocation27_spill] sm:$0xff] %v8488_v40  ;;  %11672 = vst [vmem:[#allocation28_spill] sm:$0xff] %v8491_v41  ;;  %v3490_v58 = vor.u32 %v3488_v44, %v3487_v30  ;;  %v3492_v59 = vrot.slane %v3487_v30, 4  ;;  %v3483_v62 = vrot.slane %v3479_v22, 4  ;;  %v3521_v2 = vshrl.u32 %v8491_v41, 16 }
 0x132   : > { %11673 = vst [vmem:[#allocation29_spill] sm:$0xff] %v8494_v45  ;;  %11674 = vst [vmem:[#allocation30_spill] sm:$0xff] %v8497_v46  ;;  %v8519_v4 = vrot.slane %v1557_v32, %v8443_v51  ;;  %v8521_v9 = vrot.slane %v1858_v5, 4  ;;  %v8525_v10 = vsel %vm8505_vm9, %v3501_v55, %v3508_v43  ;;  %v3512_v11 = vshrl.u32 %v8497_v46, 16  ;;  %v8536_v5 = vld [vmem:[%s8260_s27 + $0x24] sm:$0xf] }
 0x133   : > { %v3760_v12 = vmul.bf16 %v8501_v48, %v8301_v39  ;;  %11681 = vst [vmem:[#allocation35_spill] sm:$0xff] %v8536_v5  ;;  %v11459_v18 = vrot.slane %v8491_v41, 7  ;;  %v3491_v21 = vsel %vm8505_vm9, %v3483_v62, %v3490_v58  ;;  %v8545_v22 = vsel %vm8505_vm9, %v3492_v59, %v3499_v61  ;;  %11683 = vst [vmem:[#allocation37_spill] sm:$0xff] %v8560_v35  ;;  %v8583_v59 = vld [vmem:[%s8260_s27 + $0x2c] sm:$0xf] }
 0x134   : > { %11679 = vst [vmem:[#allocation33_spill] sm:$0xff] %v8519_v4  ;;  %11680 = vst [vmem:[#allocation34_spill] sm:$0xff] %v8521_v9  ;;  %v11460_v39 = vrot.slane %v8497_v46, 7  ;;  %v3763_v28 = vmul.bf16 %v8525_v10, %v8322_v54  ;;  %v8550_v29 = vrot.slane %v3521_v2, 7  ;;  %v3539_v30 = vshrl.u32 %v8519_v4, 16 }
 0x135   : > { %v1581_v60 = vpop.permute.xlu1 %1580  ;;  %v1569_v6 = vpop.permute.xlu0 %1568  ;;  %v8554_v31 = vrot.slane %v1545_v33, %v8443_v51  ;;  %v3524_v32 = vshll.u32 %v8491_v41, 16  ;;  %v8562_v36 = vrot.slane %v3512_v11, 7  ;;  %v3761_v54 = vmul.bf16 %v3491_v21, %v8306_v42  ;;  %11688 = vst [vmem:[#allocation42_spill] sm:$0xff] %v8583_v59 }
 0x136   : > { %v8565_v37 = vrot.slane %v1581_v60, %v8443_v51  ;;  %v3762_v43 = vmul.bf16 %v8545_v22, %v8319_v53  ;;  %v8572_v33 = vrot.slane %v11459_v18, 4  ;;  %v8575_v44 = vrot.slane %v1569_v6, %v8443_v51  ;;  %v8616_v18 = vld [vmem:[%s8260_s27 + $0x34] sm:$0xf] }
 0x137   : > { %11682 = vst [vmem:[#allocation36_spill] sm:$0xff] %v8554_v31  ;;  %v8579_v55 = vrot.slane %v11460_v39, 4  ;;  %v3515_v58 = vshll.u32 %v8497_v46, 16  ;;  %v11461_v42 = vrot.slane %v8519_v4, 7  ;;  %v3530_v53 = vshrl.u32 %v8554_v31, 16  ;;  %11691 = vst [vmem:[#allocation45_spill] sm:$0xff] %v8616_v18 }
 0x138   : > { %11684 = vst [vmem:[#allocation38_spill] sm:$0xff] %v8565_v37  ;;  %11685 = vst [vmem:[#allocation39_spill] sm:$0xff] %v8572_v33  ;;  %v8588_v60 = vor.u32 %v3524_v32, %v8550_v29  ;;  %v8593_v2 = vrot.slane %v3539_v30, 7  ;;  %v11464_v11 = vrot.slane %v8554_v31, 7  ;;  %v3557_v21 = vshrl.u32 %v8565_v37, 16 }
 0x139   : > { %v1605_v26 = vpop.permute.xlu1 %1604  ;;  %11686 = vst [vmem:[#allocation40_spill] sm:$0xff] %v8575_v44  ;;  %v1593_v48 = vpop.permute.xlu0 %1592  ;;  %11687 = vst [vmem:[#allocation41_spill] sm:$0xff] %v8579_v55  ;;  %v8596_v6 = vor.u32 %v3515_v58, %v8562_v36  ;;  %v3542_v32 = vshll.u32 %v8519_v4, 16  ;;  %v11465_v30 = vrot.slane %v8565_v37, 7  ;;  %v3548_v62 = vshrl.u32 %v8575_v44, 16 }
 0x13a   : > { %v8611_v58 = vrot.slane %v11461_v42, 4  ;;  %v8613_v63 = vrot.slane %v3530_v53, 7  ;;  %v8619_v39 = vrot.slane %v1605_v26, %v8443_v51  ;;  %v8622_v34 = vrot.slane %v1593_v48, %v8443_v51  ;;  %v8655_v26 = vld [vmem:[%s8260_s27 + $0x3c] sm:$0xf] }
 0x13b   : > { %v8625_v14 = vor.u32 %v3542_v32, %v8593_v2  ;;  %v3533_v42 = vshll.u32 %v8554_v31, 16  ;;  %v6105_v10 = vcombine.low %v3760_v12, %v3761_v54  ;;  %v8631_v53 = vrot.slane %v11464_v11, 4  ;;  %11697 = vst [vmem:[#allocation51_spill] sm:$0xff] %v8655_v26  ;;  %v4211_v31 = vld [vmem:[%s8260_s27 + $0xc] sm:$0x8] }
 0x13c   : > { %11690 = vst [vmem:[#allocation44_spill] sm:$0xff] %v8611_v58  ;;  %11692 = vst [vmem:[#allocation46_spill] sm:$0xff] %v8619_v39  ;;  %v8635_v17 = vrot.slane %v3557_v21, 7  ;;  %v3560_v48 = vshll.u32 %v8565_v37, 16  ;;  %v8640_v32 = vrot.slane %v11465_v30, 4  ;;  %v8648_v54 = vrot.slane %v3548_v62, 7 }
 0x13d   : > { %v1629_v22 = vpop.permute.xlu1 %1628  ;;  %11693 = vst [vmem:[#allocation47_spill] sm:$0xff] %v8622_v34  ;;  %v1617_v61 = vpop.permute.xlu0 %1616  ;;  %11694 = vst [vmem:[#allocation48_spill] sm:$0xff] %v8631_v53  ;;  %v8651_v11 = vor.u32 %v3533_v42, %v8613_v63  ;;  %v3575_v30 = vshrl.u32 %v8619_v39, 16  ;;  %v3566_v45 = vshrl.u32 %v8622_v34, 16  ;;  %v3551_v20 = vshll.u32 %v8575_v44, 16 }
 0x13e   : > { %11695 = vst [vmem:[#allocation49_spill] sm:$0xff] %v8640_v32  ;;  %v8662_v62 = vrot.slane %v1629_v22, %v8443_v51  ;;  %v8664_v12 = vcombine.low %v3762_v43, %v3763_v28  ;;  %v8667_v42 = vor.u32 %v3560_v48, %v8635_v17  ;;  %v8673_v59 = vrot.slane %v1617_v61, %v8443_v51  ;;  %v8686_v48 = vld [vmem:[%s8260_s27 + $0x38] sm:$0xf] }
 0x13f   : > { %v11700_v35 = vrot.slane %v8575_v44, 7  ;;  %v8680_v22 = vor.u32 %v3551_v20, %v8648_v54  ;;  %v3578_v28 = vshll.u32 %v8619_v39, 16  ;;  %11702 = vst [vmem:[#allocation55_spill] sm:$0xff] %v8686_v48  ;;  %v8689_v61 = vrot.slane %v3575_v30, 7 }
 0x140   : > { %11698 = vst [vmem:[#allocation52_spill] sm:$0xff] %v8662_v62  ;;  %11699 = vst [vmem:[#allocation53_spill] sm:$0xff] %v8673_v59  ;;  %v11703_v20 = vrot.slane %v8619_v39, 7  ;;  %v3593_v56 = vshrl.u32 %v8662_v62, 16  ;;  %v3867_v27 = vshll.u32 %v6105_v10, 16  ;;  %v3872_v43 = vshll.u32 %v8664_v12, 16 }
 0x141   : > { %v1653_v38 = vpop.permute.xlu1 %1652  ;;  %v8677_v5 = vrot.slane %v11700_v35, 4  ;;  %v1641_v21 = vpop.permute.xlu0 %1640  ;;  %v8692_v35 = vrot.slane %v3566_v45, 7  ;;  %v3569_v26 = vshll.u32 %v8622_v34, 16  ;;  %v3584_v47 = vshrl.u32 %v8673_v59, 16 }
 0x142   : > { %v8696_v1 = vrot.slane %v11703_v20, 4  ;;  %v3865_v18 = vshrl.u32 %v6105_v10, 16  ;;  %v3869_v50 = vrot.slane %v3867_v27, 1  ;;  %v8712_v39 = vrot.slane %v1641_v21, %v8443_v51  ;;  %v8728_v27 = vld [vmem:[%s8260_s27 + $0x40] sm:$0xf] }
 0x143   : > { %11701 = vst [vmem:[#allocation54_spill] sm:$0xff] %v8677_v5  ;;  %v8715_v32 = vor.u32 %v3578_v28, %v8689_v61  ;;  %v11708_v48 = vrot.slane %v8622_v34, 7  ;;  %v8723_v5 = vor.u32 %v3569_v26, %v8692_v35  ;;  %v8725_v20 = vrot.slane %v3593_v56, 7  ;;  %11710 = vst [vmem:[#allocation61_spill] sm:$0xff] %v8728_v27  ;;  %v8782_v27 = vld [vmem:[%s8260_s27 + $0x48] sm:$0xf] }
 0x144   : > { %11704 = vst [vmem:[#allocation56_spill] sm:$0xff] %v8696_v1  ;;  %v8709_v1 = vrot.slane %v1653_v38, %v8443_v51  ;;  %11707 = vst [vmem:[#allocation59_spill] sm:$0xff] %v8712_v39  ;;  %v3870_v21 = vor.u32 %v3869_v50, %v3865_v18  ;;  %v8731_v37 = vrot.slane %v3872_v43, 1  ;;  %v3596_v30 = vshll.u32 %v8662_v62, 16  ;;  %v8765_v38 = vld [vmem:[%s8260_s27 + $0x4c] sm:$0xf] }
 0x145   : > { %v1677_v45 = vpop.permute.xlu1 %1676  ;;  %v8720_v10 = vrot.slane %v11708_v48, 4  ;;  %v1665_v28 = vpop.permute.xlu0 %1664  ;;  %v8737_v26 = vrot.slane %v3584_v47, 7  ;;  %v11711_v56 = vrot.slane %v8662_v62, 7  ;;  %v3602_v43 = vshrl.u32 %v8712_v39, 16  ;;  %11716 = vst [vmem:[#allocation65_spill] sm:$0xff] %v8765_v38  ;;  %11719 = vst [vmem:[#allocation67_spill] sm:$0xff] %v8782_v27 }
 0x146   : > { %11706 = vst [vmem:[#allocation58_spill] sm:$0xff] %v8709_v1  ;;  %v3875_v50 = vsel %vm844_vm2, %v3870_v21, %v8731_v37  ;;  %v3611_v18 = vshrl.u32 %v8709_v1, 16  ;;  %v3587_v58 = vshll.u32 %v8673_v59, 16  ;;  %v8756_v21 = vor.u32 %v3596_v30, %v8725_v20  ;;  %v8837_v38 = vld [vmem:[%s8260_s27 + $0x50] sm:$0xf] }
 0x147   : > { %11709 = vst [vmem:[#allocation60_spill] sm:$0xff] %v8720_v10  ;;  %v8741_v10 = vrot.slane %v11711_v56, 4  ;;  %6828 = vmatmul.mubr.msk.bf16.vlgmr.msra.gmra.mrb[0].mxu0 %vm963_vm3, %v3875_v50  ;;  %v8753_v56 = vrot.slane %v1677_v45, %v8443_v51  ;;  %v11717_v50 = vmov 0.0   ;;  %v8770_v45 = vrot.slane %v1665_v28, %v8443_v51  ;;  %11729 = vst [vmem:[#allocation73_spill] sm:$0xff] %v8837_v38 }
 0x148   : > { %6888 = vmatpush3.bf16.msra.mxu0 %v8513_v52  ;;  %6831 = vmatprep.mubr.msk.bf16.mxu0 %vm7989_vm0, %v11717_v50  ;;  %v8773_v47 = vor.u32 %v3587_v58, %v8737_v26  ;;  %v3614_v0 = vshll.u32 %v8709_v1, 16  ;;  %v8779_v52 = vrot.slane %v3611_v18, 7  ;;  %v11720_v28 = vrot.slane %v8474_v19, 4 }
 0x149   : > { %11712 = vst [vmem:[#allocation62_spill] sm:$0xff] %v8741_v10  ;;  %11713 = vst [vmem:[#allocation63_spill] sm:$0xff] %v8753_v56  ;;  %v1701_v48 = vpop.permute.xlu1 %1700  ;;  %v11714_v10 = vrot.slane %v8673_v59, 7  ;;  %6949 = vmatprep.subr.bf16.mxu0 %v11717_v50  ;;  %v11721_v30 = vrot.slane %v8562_v36, 4  ;;  %v1689_v59 = vpop.permute.xlu0 %1688  ;;  %v11722_v18 = vrot.slane %v8709_v1, 7  ;;  %v3605_v19 = vshll.u32 %v8712_v39, 16 }
 0x14a   : > { %11718 = vst [vmem:[#allocation66_spill] sm:$0xff] %v8770_v45  ;;  %v3518_v58 = vsel %vm8505_vm9, %v11720_v28, %v8596_v6  ;;  %v3629_v44 = vshrl.u32 %v8753_v56, 16  ;;  %v3620_v6 = vshrl.u32 %v8770_v45, 16  ;;  %v11725_v28 = vrot.slane %v8712_v39, 7 }
 0x14b   : > { %v8761_v62 = vrot.slane %v11714_v10, 4  ;;  %v3527_v10 = vsel %vm8505_vm9, %v11721_v30, %v8588_v60  ;;  %v8798_v34 = vrot.slane %v11722_v18, 4  ;;  %v3764_v36 = vmul.bf16 %v3518_v58, %v8339_v7 }
 0x14c   : > { %v3765_v60 = vmul.bf16 %v3527_v10, %v8342_v8  ;;  %v8808_v30 = vrot.slane %v1701_v48, %v8443_v51  ;;  %v8812_v18 = vrot.slane %v11725_v28, 4  ;;  %v8821_v7 = vor.u32 %v3614_v0, %v8779_v52  ;;  %v8828_v10 = vld [vmem:[%s8260_s27 + $0x54] sm:$0xf] }
 0x14d   : > { %11715 = vst [vmem:[#allocation64_spill] sm:$0xff] %v8761_v62  ;;  %v8784_v62 = vrot.slane %v3602_v43, 7  ;;  %11723 = vst [vmem:[#allocation68_spill] sm:$0xff] %v8798_v34  ;;  %v8818_v34 = vrot.slane %v1689_v59, %v8443_v51  ;;  %v1725_v1 = vpop.permute.xlu1 %1724  ;;  %v8833_v43 = vrot.slane %v3629_v44, 7  ;;  %v3632_v59 = vshll.u32 %v8753_v56, 16 }
 0x14e   : > { %11724 = vst [vmem:[#allocation69_spill] sm:$0xff] %v8808_v30  ;;  %11726 = vst [vmem:[#allocation70_spill] sm:$0xff] %v8812_v18  ;;  %v8830_v58 = vcombine.low %v3764_v36, %v3765_v60  ;;  %v8840_v27 = vrot.slane %v3620_v6, 7  ;;  %v3876_v8 = vshrl.u32 %v8664_v12, 16  ;;  %v3647_v36 = vshrl.u32 %v8808_v30, 16  ;;  %v1713_v6 = vpop.permute.xlu0 %1712 }
 0x14f   : > { %11727 = vst [vmem:[#allocation71_spill] sm:$0xff] %v8818_v34  ;;  %v8825_v48 = vor.u32 %v3605_v19, %v8784_v62  ;;  %11728 = vst [vmem:[#allocation72_spill] sm:$0xff] %v8828_v10  ;;  %v11730_v60 = vrot.slane %v8753_v56, 7  ;;  %v3623_v18 = vshll.u32 %v8770_v45, 16  ;;  %v3638_v0 = vshrl.u32 %v8818_v34, 16 }
 0x150   : > { %v3880_v19 = vshll.u32 %v8830_v58, 16  ;;  %v3878_v39 = vor.u32 %v3876_v8, %v8731_v37  ;;  %v11732_v10 = vrot.slane %v8770_v45, 7  ;;  %v8866_v56 = vld [vmem:[%s8260_s27 + $0x5c] sm:$0xf]  ;;  %v8873_v4 = vrot.slane %v3647_v36, 7 }
 0x151   : > { %v8847_v28 = vrot.slane %v11730_v60, 4  ;;  %v8858_v60 = vor.u32 %v3632_v59, %v8833_v43  ;;  %11734 = vst [vmem:[#allocation76_spill] sm:$0xff] %v8866_v56  ;;  %v406_v37 = vpop.permute.xlu1 %405  ;;  %v8870_v8 = vor.u32 %v3623_v18, %v8840_v27  ;;  %v8876_v59 = vrot.slane %v1725_v1, %v8443_v51 }
 0x152   : > { %v3882_v53 = vrot.slane %v3880_v19, 1  ;;  %v8883_v38 = vrot.slane %v3638_v0, 7  ;;  %v11737_v12 = vrot.slane %v8550_v29, 4  ;;  %v11739_v36 = vrot.slane %v8808_v30, 7 }
 0x153   : > { %11731 = vst [vmem:[#allocation74_spill] sm:$0xff] %v8847_v28  ;;  %v8863_v28 = vrot.slane %v11732_v10, 4  ;;  %11735 = vst [vmem:[#allocation77_spill] sm:$0xff] %v8876_v59  ;;  %v8881_v10 = vld [vmem:[%s8260_s27 + $0x58] sm:$0xf]  ;;  %v8905_v29 = vrot.slane %v406_v37, %v8443_v51  ;;  %v11745_v55 = vmov 0 }
 0x154   : > { %v3883_v19 = vsel %vm844_vm2, %v3878_v39, %v3882_v53  ;;  %11736 = vst [vmem:[#allocation78_spill] sm:$0xff] %v8881_v10  ;;  %v3536_v18 = vsel %vm8505_vm9, %v11737_v12, %v8651_v11  ;;  %v11738_v39 = vrot.slane %v8613_v63, 4  ;;  %v8897_v44 = vrot.slane %v11739_v36, 4  ;;  %v394_v36 = vpop.permute.xlu0 %393  ;;  %v7689_v37 = vld [vmem:[%s8260_s27 + $0x4] sm:$0xf] }
 0x155   : > { %11733 = vst [vmem:[#allocation75_spill] sm:$0xff] %v8863_v28  ;;  %6832 = vmatmul.mubr.msk.bf16.gmra.mrb[4].mxu0 %vm963_vm3, %v3883_v19  ;;  %v3650_v19 = vshll.u32 %v8808_v30, 16  ;;  %v11741_v63 = vrot.slane %v8818_v34, 7  ;;  %v3641_v11 = vshll.u32 %v8818_v34, 16  ;;  %v3766_v12 = vmul.bf16 %v3536_v18, %v8356_v24 }
 0x156   : > { %v3545_v1 = vsel %vm8505_vm9, %v11738_v39, %v8625_v14  ;;  %11740 = vst [vmem:[#allocation79_spill] sm:$0xff] %v8897_v44  ;;  %6835 = vmatprep.mubr.msk.bf16.mxu0 %vm7989_vm0, %v11717_v50  ;;  %v740_v56 = vmul.bf16 %v7689_v37, %v8905_v29  ;;  %v402_v10 = vrot.slane %v394_v36, %v8443_v51  ;;  %v2369_v24 = vshll.u32 %v8905_v29, 16  ;;  %v1749_v37 = vpop.permute.xlu1 %1748 }
 0x157   : > { %v8909_v14 = vrot.slane %v11741_v63, 4  ;;  %v3767_v39 = vmul.bf16 %v3545_v1, %v8359_v25  ;;  %v8915_v0 = vor.u32 %v3650_v19, %v8873_v4  ;;  %v8922_v44 = vor.u32 %v3641_v11, %v8883_v38 }
 0x158   : > { %v3665_v25 = vshrl.u32 %v8876_v59, 16  ;;  %v3668_v1 = vshll.u32 %v8876_v59, 16  ;;  %v8930_v19 = vrot.slane %v1713_v6, %v8443_v51  ;;  %v3884_v11 = vshrl.u32 %v8830_v58, 16  ;;  %v1737_v41 = vpop.permute.xlu0 %1736 }
 0x159   : > { %11742 = vst [vmem:[#allocation80_spill] sm:$0xff] %v8909_v14  ;;  %v8926_v18 = vcombine.low %v3766_v12, %v3767_v39  ;;  %v2373_v12 = vshrl.u32 %v8905_v29, 16  ;;  %v8940_v39 = vld [vmem:[%s8260_s27 + $0x64] sm:$0xf]  ;;  %v7690_v14 = vld [vmem:[%s8260_s27] sm:$0xf] }
 0x15a   : > { %11743 = vst [vmem:[#allocation81_spill] sm:$0xff] %v8930_v19  ;;  %11744 = vst [vmem:[#allocation82_spill] sm:$0xff] %v8940_v39  ;;  %v739_v6 = vmul.bf16 %v7690_v14, %v402_v10  ;;  %v2360_v30 = vshll.u32 %v402_v10, 16  ;;  %v2363_v34 = vshrl.u32 %v402_v10, 16  ;;  %v4272_v28 = vrot.slane %v402_v10, 5 }
 0x15b   : > { %v3888_v63 = vshll.u32 %v8926_v18, 16  ;;  %v8943_v45 = vrot.slane %v3665_v25, 7  ;;  %v3886_v36 = vor.u32 %v3884_v11, %v3882_v53  ;;  %v4274_v58 = vrot.slane %v8905_v29, 5  ;;  %v4212_v14 = vld [vmem:[%s8260_s27 + $0x10] sm:$0xf] }
 0x15c   : > { %v11746_v55 = vsel %vm8951_vm14, 4294967295, %v11745_v55  ;;  %v5985_v9 = vcombine.low %v739_v6, %v740_v56  ;;  %v2362_v46 = vrot.slane %v2360_v30, 5  ;;  %v2365_v10 = vrot.slane %v2363_v34, 4 }
 0x15d   : > { %v8945_v33 = vrot.slane %v3888_v63, 1  ;;  %11747 = vst [vmem:[#allocation83_spill] sm:$0xff] %v11746_v55  ;;  %v4273_v15 = vrot.slane %v4272_v28, 4  ;;  %v3656_v63 = vshrl.u32 %v8930_v19, 16  ;;  %v8962_v25 = vrot.slane %v1749_v37, %v8443_v51  ;;  %v9121_v55 = vld [vmem:[%s8260_s27 + $0x14] sm:$0xf] }
 0x15e   : > { %v2371_v11 = vrot.slane %v2369_v24, 5  ;;  %v2375_v56 = vrot.slane %v2373_v12, 4  ;;  %v2366_v30 = vor.u32 %v2365_v10, %v2362_v46  ;;  %6580 = vmatmul.mubr.msk.bf16.vlgmr.msra.gmra.mrb[0].mxu1 %vm963_vm3, %v5985_v9  ;;  %v11749_v6 = vrot.slane %v8876_v59, 7  ;;  %v2327_v9 = vld [vmem:[%s8260_s27 + $0x4] sm:$0x8]  ;;  %11770 = vst [vmem:[#allocation97_spill] sm:$0xff] %v9121_v55 }
 0x15f   : > { %v3891_v29 = vsel %vm844_vm2, %v3886_v36, %v8945_v33  ;;  %11748 = vst [vmem:[#allocation84_spill] sm:$0xff] %v8962_v25  ;;  %v4275_v34 = vsel %vm8951_vm14, %v4273_v15, %v4274_v58  ;;  %v8973_v36 = vor.u32 %v3668_v1, %v8943_v45  ;;  %v11751_v37 = vmov 0  ;;  %6583 = vmatprep.mubr.msk.bf16.mxu1 %vm7989_vm0, %v11717_v50  ;;  %v2328_v1 = vld [vmem:[%s8260_s27 + $0x8] sm:$0xf] }
 0x160   : > { %6836 = vmatmul.mubr.msk.bf16.gmra.mrb[8].mxu0 %vm963_vm3, %v3891_v29  ;;  %v8970_v53 = vrot.slane %v11749_v6, 4  ;;  %v11752_v37 = vsel %vm8977_vm15, 4294967295, %v11751_v37  ;;  %v4386_v24 = vmul.bf16 %v4272_v28, %v4211_v31  ;;  %v4387_v12 = vmul.bf16 %v4275_v34, %v4212_v14  ;;  %v8999_v14 = vld [vmem:[%s8260_s27 + $0x60] sm:$0xf] }
 0x161   : > { %11753 = vst [vmem:[#allocation86_spill] sm:$0xff] %v11752_v37  ;;  %6839 = vmatprep.mubr.msk.bf16.mxu0 %vm7989_vm0, %v11717_v50  ;;  %v2367_v10 = vrot.slane %v2366_v30, 4  ;;  %v11754_v29 = vrot.slane %v8593_v2, 4  ;;  %v11755_v31 = vrot.slane %v8648_v54, 4  ;;  %11756 = vst [vmem:[#allocation87_spill] sm:$0xff] %v8999_v14  ;;  %v9002_v15 = vrot.slane %v3656_v63, 7  ;;  %v430_v2 = vpop.permute.xlu1 %429 }
 0x162   : > { %11750 = vst [vmem:[#allocation85_spill] sm:$0xff] %v8970_v53  ;;  %v3659_v30 = vshll.u32 %v8930_v19, 16  ;;  %v9005_v39 = vcombine.low %v4386_v24, %v4387_v12  ;;  %v418_v53 = vpop.permute.xlu0 %417  ;;  %v2672_v59 = vmul.bf16 %v2362_v46, %v2327_v9  ;;  %v11524_v34 = vrot.slane %v8962_v25, 7  ;;  %v7692_v63 = vld [vmem:[%s8260_s27 + $0x2c] sm:$0xf] }
 0x163   : > { %v3554_v6 = vsel %vm8505_vm9, %v11754_v29, %v8680_v22  ;;  %v3563_v28 = vsel %vm8505_vm9, %v11755_v31, %v8667_v42  ;;  %v2376_v22 = vor.u32 %v2375_v56, %v2371_v11  ;;  %v2372_v54 = vsel %vm8977_vm15, %v2367_v10, %v2371_v11  ;;  %v7691_v42 = vld [vmem:[%s8260_s27 + $0x28] sm:$0xf] }
 0x164   : > { %11757 = vst [vmem:[#allocation88_spill] sm:$0xff] %v9005_v39  ;;  %v3683_v29 = vshrl.u32 %v8962_v25, 16  ;;  %v3768_v31 = vmul.bf16 %v7691_v42, %v3554_v6  ;;  %v2673_v16 = vmul.bf16 %v2372_v54, %v2328_v1  ;;  %v3769_v57 = vmul.bf16 %v7692_v63, %v3563_v28  ;;  %v9040_v42 = vld [vmem:[%s8260_s27 + $0x6c] sm:$0xf] }
 0x165   : > { %v9016_v12 = vrot.slane %v1737_v41, %v8443_v51  ;;  %v9019_v56 = vrot.slane %v430_v2, %v8443_v51  ;;  %v9022_v11 = vrot.slane %v418_v53, %v8443_v51  ;;  %v11759_v46 = vrot.slane %v8930_v19, 7  ;;  %11762 = vst [vmem:[#allocation92_spill] sm:$0xff] %v9040_v42  ;;  %v7694_v42 = vld [vmem:[%s8260_s27 + $0x8] sm:$0xf] }
 0x166   : > { %v9029_v1 = vor.u32 %v3659_v30, %v9002_v15  ;;  %v9031_v10 = vcombine.low %v2672_v59, %v2673_v16  ;;  %v9033_v6 = vcombine.low %v3768_v31, %v3769_v57  ;;  %v4276_v28 = vrot.slane %v4274_v58, 4  ;;  %v1773_v57 = vpop.permute.xlu1 %1772 }
 0x167   : > { %11758 = vst [vmem:[#allocation89_spill] sm:$0xff] %v9016_v12  ;;  %v9026_v9 = vrot.slane %v11759_v46, 4  ;;  %v9036_v54 = vrot.slane %v3683_v29, 7  ;;  %v3892_v2 = vshrl.u32 %v8926_v18, 16  ;;  %v2377_v53 = vrot.slane %v2376_v22, 4 }
 0x168   : > { %11761 = vst [vmem:[#allocation91_spill] sm:$0xff] %v9031_v10  ;;  %v9044_v63 = vrot.slane %v11524_v34, 4  ;;  %v3686_v30 = vshll.u32 %v8962_v25, 16  ;;  %v3896_v16 = vshll.u32 %v9033_v6, 16  ;;  %v3674_v59 = vshrl.u32 %v9016_v12, 16  ;;  %v1761_v34 = vpop.permute.xlu0 %1760 }
 0x169   : > { %11760 = vst [vmem:[#allocation90_spill] sm:$0xff] %v9026_v9  ;;  %v3894_v58 = vor.u32 %v3892_v2, %v8945_v33  ;;  %v2389_v29 = vshll.u32 %v9019_v56, 16  ;;  %v2379_v18 = vshll.u32 %v9022_v11, 16  ;;  %v2393_v31 = vshrl.u32 %v9019_v56, 16 }
 0x16a   : > { %11763 = vst [vmem:[#allocation93_spill] sm:$0xff] %v9044_v63  ;;  %v9052_v22 = vrot.slane %v3896_v16, 1  ;;  %v2383_v46 = vshrl.u32 %v9022_v11, 16  ;;  %v4277_v24 = vrot.slane %v9022_v11, 5  ;;  %v4280_v33 = vrot.slane %v9019_v56, 5 }
 0x16b   : > { %v2381_v2 = vrot.slane %v2379_v18, 5  ;;  %v9068_v41 = vrot.slane %v3674_v59, 7  ;;  %v2395_v14 = vrot.slane %v2393_v31, 4  ;;  %v3677_v59 = vshll.u32 %v9016_v12, 16 }
 0x16c   : > { %v3899_v63 = vsel %vm844_vm2, %v3894_v58, %v9052_v22  ;;  %v2385_v16 = vrot.slane %v2383_v46, 4  ;;  %v9065_v9 = vsel %vm8951_vm14, %v4276_v28, %v4277_v24  ;;  %v4279_v19 = vrot.slane %v4277_v24, 4 }
 0x16d   : > { %6840 = vmatmul.mubr.msk.bf16.gmra.mrb[12].mxu0 %vm963_vm3, %v3899_v63  ;;  %v2382_v18 = vsel %vm8977_vm15, %v2377_v53, %v2381_v2  ;;  %v9074_v58 = vrot.slane %v1773_v57, %v8443_v51  ;;  %v2391_v46 = vrot.slane %v2389_v29, 5  ;;  %v454_v63 = vpop.permute.xlu1 %453  ;;  %v742_v53 = vmul.bf16 %v7693_v13, %v9019_v56  ;;  %v7695_v56 = vld [vmem:[%s8260_s27 + $0x30] sm:$0xf] }
 0x16e   : > { %v2386_v28 = vor.u32 %v2385_v16, %v2381_v2  ;;  %v9078_v24 = vsel %vm8951_vm14, %v4279_v19, %v4280_v33  ;;  %6843 = vmatprep.mubr.msk.bf16.mxu0 %vm7989_vm0, %v11717_v50  ;;  %v741_v57 = vmul.bf16 %v7694_v42, %v9022_v11  ;;  %v11765_v29 = vrot.slane %v8635_v17, 4  ;;  %v2329_v2 = vld [vmem:[%s8260_s27 + $0xc] sm:$0xf]  ;;  %v2330_v16 = vld [vmem:[%s8260_s27 + $0x10] sm:$0xf]  ;;  %v442_v17 = vpop.permute.xlu0 %441 }
 0x16f   : > { %11764 = vst [vmem:[#allocation94_spill] sm:$0xff] %v9074_v58  ;;  %v9093_v19 = vor.u32 %v3686_v30, %v9036_v54  ;;  %v11766_v23 = vrot.slane %v8692_v35, 4  ;;  %v11767_v42 = vrot.slane %v9016_v12, 7  ;;  %v9108_v30 = vor.u32 %v3677_v59, %v9068_v41 }
 0x170   : > { %v3572_v31 = vsel %vm8505_vm9, %v11765_v29, %v8723_v5  ;;  %v2387_v25 = vrot.slane %v2386_v28, 4  ;;  %v3701_v28 = vshrl.u32 %v9074_v58, 16  ;;  %v2396_v40 = vor.u32 %v2395_v14, %v2391_v46 }
 0x171   : > { %v3581_v13 = vsel %vm8505_vm9, %v11766_v23, %v8715_v32  ;;  %v3770_v11 = vmul.bf16 %v7695_v56, %v3572_v31  ;;  %v9105_v5 = vrot.slane %v11767_v42, 4  ;;  %v9115_v23 = vrot.slane %v1761_v34, %v8443_v51  ;;  %v7696_v32 = vld [vmem:[%s8260_s27 + $0x34] sm:$0xf]  ;;  %v1797_v34 = vpop.permute.xlu1 %1796 }
 0x172   : > { %v2392_v35 = vsel %vm8977_vm15, %v2387_v25, %v2391_v46  ;;  %v3771_v31 = vmul.bf16 %v7696_v32, %v3581_v13  ;;  %v2674_v56 = vmul.bf16 %v2382_v18, %v2329_v2  ;;  %v11537_v42 = vrot.slane %v9074_v58, 7 }
 0x173   : > { %11768 = vst [vmem:[#allocation95_spill] sm:$0xff] %v9105_v5  ;;  %11769 = vst [vmem:[#allocation96_spill] sm:$0xff] %v9115_v23  ;;  %v2675_v12 = vmul.bf16 %v2392_v35, %v2330_v16  ;;  %v5986_v5 = vcombine.low %v741_v57, %v742_v53  ;;  %v9126_v14 = vrot.slane %v454_v63, %v8443_v51  ;;  %v9134_v2 = vrot.slane %v3701_v28, 7 }
 0x174   : > { %v9123_v29 = vcombine.low %v3770_v11, %v3771_v31  ;;  %v9129_v25 = vrot.slane %v442_v17, %v8443_v51  ;;  %v3900_v53 = vshrl.u32 %v9033_v6, 16  ;;  %v9138_v57 = vrot.slane %v2396_v40, 4  ;;  %v1785_v11 = vpop.permute.xlu0 %1784 }
 0x175   : > { %11771 = vst [vmem:[#allocation98_spill] sm:$0xff] %v9126_v14  ;;  %v9132_v18 = vcombine.low %v2674_v56, %v2675_v12  ;;  %6584 = vmatmul.mubr.msk.bf16.gmra.mrb[4].mxu1 %vm963_vm3, %v5986_v5  ;;  %v9140_v16 = vrot.slane %v4280_v33, 4  ;;  %v3692_v63 = vshrl.u32 %v9115_v23, 16  ;;  %v9150_v6 = vrot.slane %v11537_v42, 4  ;;  %v478_v42 = vpop.permute.xlu1 %477  ;;  %v9171_v12 = vld [vmem:[%s8260_s27 + $0x14] sm:$0xf] }
 0x176   : > { %11772 = vst [vmem:[#allocation99_spill] sm:$0xff] %v9129_v25  ;;  %11774 = vst [vmem:[#allocation101_spill] sm:$0xff] %v9138_v57  ;;  %v3904_v13 = vshll.u32 %v9123_v29, 16  ;;  %6587 = vmatprep.mubr.msk.bf16.mxu1 %vm7989_vm0, %v11717_v50  ;;  %v3902_v40 = vor.u32 %v3900_v53, %v9052_v22  ;;  %v2399_v33 = vshll.u32 %v9129_v25, 16  ;;  %v2409_v5 = vshll.u32 %v9126_v14, 16 }
 0x177   : > { %11773 = vst [vmem:[#allocation100_spill] sm:$0xff] %v9132_v18  ;;  %11775 = vst [vmem:[#allocation102_spill] sm:$0xff] %v9140_v16  ;;  %v2413_v28 = vshrl.u32 %v9126_v14, 16  ;;  %v2403_v35 = vshrl.u32 %v9129_v25, 16  ;;  %v3704_v32 = vshll.u32 %v9074_v58, 16  ;;  %v9162_v46 = vrot.slane %v1797_v34, %v8443_v51 }
 0x178   : > { %11776 = vst [vmem:[#allocation103_spill] sm:$0xff] %v9150_v6  ;;  %v3906_v17 = vrot.slane %v3904_v13, 1  ;;  %v9159_v56 = vrot.slane %v2399_v33, 5  ;;  %v9165_v53 = vrot.slane %v3692_v63, 7  ;;  %v3695_v13 = vshll.u32 %v9115_v23, 16  ;;  %11779 = vst [vmem:[#allocation106_spill] sm:$0xff] %v9171_v12  ;;  %v466_v31 = vpop.permute.xlu0 %465 }
 0x179   : > { %11778 = vst [vmem:[#allocation105_spill] sm:$0xff] %v9162_v46  ;;  %v744_v33 = vmul.bf16 %v9171_v12, %v9126_v14  ;;  %v9177_v34 = vld [vmem:[%s8260_s27 + $0x10] sm:$0xf]  ;;  %v9185_v22 = vrot.slane %v2409_v5, 5  ;;  %v2405_v18 = vrot.slane %v2403_v35, 4  ;;  %v9191_v6 = vor.u32 %v3704_v32, %v9134_v2  ;;  %v502_v16 = vpop.permute.xlu1 %501 }
 0x17a   : > { %11777 = vst [vmem:[#allocation104_spill] sm:$0xff] %v9159_v56  ;;  %v3907_v59 = vsel %vm844_vm2, %v3902_v40, %v3906_v17  ;;  %11780 = vst [vmem:[#allocation107_spill] sm:$0xff] %v9177_v34  ;;  %v743_v63 = vmul.bf16 %v9177_v34, %v9129_v25  ;;  %v11782_v40 = vrot.slane %v8689_v61, 4  ;;  %v11784_v10 = vrot.slane %v9115_v23, 7  ;;  %v7699_v12 = vld [vmem:[%s8260_s27 + $0x38] sm:$0xf] }
 0x17b   : > { %6844 = vmatmul.mubr.msk.bf16.gmra.mrb[16].mxu0 %vm963_vm3, %v3907_v59  ;;  %11781 = vst [vmem:[#allocation108_spill] sm:$0xff] %v9185_v22  ;;  %v2415_v59 = vrot.slane %v2413_v28, 4  ;;  %v11783_v28 = vrot.slane %v8737_v26, 4  ;;  %v9209_v32 = vor.u32 %v3695_v13, %v9165_v53  ;;  %v3719_v58 = vshrl.u32 %v9162_v46, 16 }
 0x17c   : > { %6847 = vmatprep.mubr.msk.bf16.mxu0 %vm7989_vm0, %v11717_v50  ;;  %v3590_v5 = vsel %vm8505_vm9, %v11782_v40, %v8773_v47  ;;  %v9206_v57 = vrot.slane %v11784_v10, 4  ;;  %v9213_v61 = vrot.slane %v1785_v11, %v8443_v51  ;;  %v11787_v40 = vrot.slane %v9126_v14, 5 }
 0x17d   : > { %v3599_v35 = vsel %vm8505_vm9, %v11783_v28, %v8756_v21  ;;  %v3772_v21 = vmul.bf16 %v7699_v12, %v3590_v5  ;;  %v7700_v28 = vld [vmem:[%s8260_s27 + $0x3c] sm:$0xf]  ;;  %v2416_v10 = vor.u32 %v2415_v59, %v9185_v22  ;;  %v2406_v13 = vor.u32 %v2405_v18, %v9159_v56 }
 0x17e   : > { %11785 = vst [vmem:[#allocation109_spill] sm:$0xff] %v9206_v57  ;;  %11786 = vst [vmem:[#allocation110_spill] sm:$0xff] %v9213_v61  ;;  %v9218_v26 = vrot.slane %v11787_v40, 4  ;;  %v3773_v23 = vmul.bf16 %v7700_v28, %v3599_v35  ;;  %v11789_v57 = vrot.slane %v9129_v25, 5  ;;  %v5987_v11 = vcombine.low %v743_v63, %v744_v33  ;;  %v490_v63 = vpop.permute.xlu0 %489 }
 0x17f   : > { %v11791_v47 = vrot.slane %v9162_v46, 7  ;;  %v9235_v12 = vrot.slane %v478_v42, %v8443_v51  ;;  %v9238_v5 = vrot.slane %v466_v31, %v8443_v51  ;;  %v9240_v59 = vrot.slane %v3719_v58, 7 }
 0x180   : > { %11788 = vst [vmem:[#allocation111_spill] sm:$0xff] %v9218_v26  ;;  %v9226_v34 = vrot.slane %v11789_v57, 4  ;;  %v9232_v40 = vcombine.low %v3772_v21, %v3773_v23  ;;  %v3722_v18 = vshll.u32 %v9162_v46, 16  ;;  %v3710_v57 = vshrl.u32 %v9213_v61, 16  ;;  %6588 = vmatmul.mubr.msk.bf16.gmra.mrb[8].mxu1 %vm963_vm3, %v5987_v11 }
 0x181   : > { %v9230_v39 = vrot.slane %v11791_v47, 4  ;;  %v3908_v33 = vshrl.u32 %v9123_v29, 16  ;;  %v2429_v35 = vshll.u32 %v9235_v12, 16  ;;  %v2433_v42 = vshrl.u32 %v9235_v12, 16  ;;  %6591 = vmatprep.mubr.msk.bf16.mxu1 %vm7989_vm0, %v11717_v50 }
 0x182   : > { %11790 = vst [vmem:[#allocation112_spill] sm:$0xff] %v9226_v34  ;;  %v3912_v23 = vshll.u32 %v9232_v40, 16  ;;  %v9250_v31 = vrot.slane %v502_v16, %v8443_v51  ;;  %v9254_v58 = vrot.slane %v2416_v10, 4  ;;  %v9256_v47 = vrot.slane %v2406_v13, 4  ;;  %v7703_v34 = vld [vmem:[%s8260_s27 + $0x40] sm:$0xf] }
 0x183   : > { %v3910_v29 = vor.u32 %v3908_v33, %v3906_v17  ;;  %v2419_v21 = vshll.u32 %v9238_v5, 16  ;;  %v9261_v11 = vrot.slane %v2429_v35, 5  ;;  %v2435_v56 = vrot.slane %v2433_v42, 4  ;;  %v514_v42 = vpop.permute.xlu1 %513 }
 0x184   : > { %11792 = vst [vmem:[#allocation113_spill] sm:$0xff] %v9250_v31  ;;  %11793 = vst [vmem:[#allocation114_spill] sm:$0xff] %v9254_v58  ;;  %v9259_v28 = vrot.slane %v3912_v23, 1  ;;  %v9264_v22 = vrot.slane %v490_v63, %v8443_v51  ;;  %v9267_v16 = vor.u32 %v3722_v18, %v9240_v59  ;;  %v9270_v13 = vrot.slane %v3710_v57, 7  ;;  %v9281_v18 = vld [vmem:[%s8260_s27 + $0x1c] sm:$0xf] }
 0x185   : > { %11794 = vst [vmem:[#allocation115_spill] sm:$0xff] %v9256_v47  ;;  %11795 = vst [vmem:[#allocation116_spill] sm:$0xff] %v9261_v11  ;;  %v9272_v17 = vrot.slane %v2419_v21, 5  ;;  %v2436_v23 = vor.u32 %v2435_v56, %v9261_v11  ;;  %v2423_v35 = vshrl.u32 %v9238_v5, 16  ;;  %v2449_v63 = vshll.u32 %v9250_v31, 16 }
 0x186   : > { %11796 = vst [vmem:[#allocation117_spill] sm:$0xff] %v9264_v22  ;;  %v3915_v33 = vsel %vm844_vm2, %v3910_v29, %v9259_v28  ;;  %11798 = vst [vmem:[#allocation119_spill] sm:$0xff] %v9281_v18  ;;  %v746_v57 = vmul.bf16 %v9281_v18, %v9235_v12  ;;  %v2453_v29 = vshrl.u32 %v9250_v31, 16  ;;  %v11799_v56 = vrot.slane %v8725_v20, 4  ;;  %v9298_v11 = vld [vmem:[%s8260_s27 + $0x18] sm:$0xf]  ;;  %v1809_v20 = vpop.permute.xlu0 %1808 }
 0x187   : > { %11797 = vst [vmem:[#allocation118_spill] sm:$0xff] %v9272_v17  ;;  %6848 = vmatmul.mubr.msk.bf16.gmra.mrb[20].mxu0 %vm963_vm3, %v3915_v33  ;;  %v9295_v33 = vrot.slane %v2436_v23, 4  ;;  %11801 = vst [vmem:[#allocation121_spill] sm:$0xff] %v9298_v11  ;;  %v745_v47 = vmul.bf16 %v9298_v11, %v9238_v5  ;;  %v9304_v21 = vrot.slane %v2449_v63, 5  ;;  %v2439_v58 = vshll.u32 %v9264_v22, 16 }
 0x188   : > { %v3608_v10 = vsel %vm8505_vm9, %v11799_v56, %v8825_v48  ;;  %6851 = vmatprep.mubr.msk.bf16.mxu0 %vm7989_vm0, %v11717_v50  ;;  %v3713_v48 = vshll.u32 %v9213_v61, 16  ;;  %v11559_v23 = vrot.slane %v9235_v12, 5  ;;  %v2455_v56 = vrot.slane %v2453_v29, 4 }
 0x189   : > { %11800 = vst [vmem:[#allocation120_spill] sm:$0xff] %v9295_v33  ;;  %11802 = vst [vmem:[#allocation122_spill] sm:$0xff] %v9304_v21  ;;  %v2425_v18 = vrot.slane %v2423_v35, 4  ;;  %v9310_v26 = vrot.slane %v2439_v58, 5  ;;  %v11804_v11 = vrot.slane %v8784_v62, 4  ;;  %v3774_v14 = vmul.bf16 %v7703_v34, %v3608_v10 }
 0x18a   : > { %v11805_v25 = vrot.slane %v9213_v61, 7  ;;  %v9323_v46 = vor.u32 %v3713_v48, %v9270_v13  ;;  %v2456_v29 = vor.u32 %v2455_v56, %v9304_v21  ;;  %v7704_v35 = vld [vmem:[%s8260_s27 + $0x44] sm:$0xf]  ;;  %v9333_v34 = vrot.slane %v514_v42, %v8443_v51 }
 0x18b   : > { %11803 = vst [vmem:[#allocation123_spill] sm:$0xff] %v9310_v26  ;;  %v3617_v63 = vsel %vm8505_vm9, %v11804_v11, %v8821_v7  ;;  %v2443_v7 = vshrl.u32 %v9264_v22, 16  ;;  %v5988_v11 = vcombine.low %v745_v47, %v746_v57  ;;  %v9338_v48 = vrot.slane %v11559_v23, 4  ;;  %v526_v57 = vpop.permute.xlu0 %525 }
 0x18c   : > { %v9320_v55 = vrot.slane %v11805_v25, 4  ;;  %v3775_v58 = vmul.bf16 %v7704_v35, %v3617_v63  ;;  %11807 = vst [vmem:[#allocation125_spill] sm:$0xff] %v9333_v34  ;;  %v538_v25 = vpop.permute.xlu1 %537  ;;  %v2426_v35 = vor.u32 %v2425_v18, %v9272_v17  ;;  %v9344_v62 = vrot.slane %v2456_v29, 4 }
 0x18d   : > { %11808 = vst [vmem:[#allocation126_spill] sm:$0xff] %v9338_v48  ;;  %6592 = vmatmul.mubr.msk.bf16.gmra.mrb[12].mxu1 %vm963_vm3, %v5988_v11  ;;  %v2459_v47 = vshll.u32 %v9333_v34, 16  ;;  %v2463_v42 = vshrl.u32 %v9333_v34, 16  ;;  %v3916_v10 = vshrl.u32 %v9232_v40, 16  ;;  %v9352_v56 = vrot.slane %v1809_v20, %v8443_v51 }
 0x18e   : > { %11806 = vst [vmem:[#allocation124_spill] sm:$0xff] %v9320_v55  ;;  %v9341_v63 = vcombine.low %v3774_v14, %v3775_v58  ;;  %11809 = vst [vmem:[#allocation127_spill] sm:$0xff] %v9344_v62  ;;  %v9355_v14 = vrot.slane %v538_v25, %v8443_v51  ;;  %6595 = vmatprep.mubr.msk.bf16.mxu1 %vm7989_vm0, %v11717_v50  ;;  %v2445_v29 = vrot.slane %v2443_v7, 4  ;;  %v9370_v25 = vld [vmem:[%s8260_s27 + $0x24] sm:$0xf] }
 0x18f   : > { %11810 = vst [vmem:[#allocation128_spill] sm:$0xff] %v9352_v56  ;;  %v9360_v58 = vrot.slane %v2459_v47, 5  ;;  %v2465_v11 = vrot.slane %v2463_v42, 4  ;;  %v3918_v40 = vor.u32 %v3916_v10, %v9259_v28  ;;  %v1933_v20 = vrot.slane %v9352_v56, 7  ;;  %11814 = vst [vmem:[#allocation132_spill] sm:$0xff] %v9370_v25 }
 0x190   : > { %v3920_v23 = vshll.u32 %v9341_v63, 16  ;;  %11811 = vst [vmem:[#allocation129_spill] sm:$0xff] %v9355_v14  ;;  %v9367_v21 = vrot.slane %v526_v57, %v8443_v51  ;;  %v748_v17 = vmul.bf16 %v9370_v25, %v9250_v31  ;;  %v11815_v10 = vrot.slane %v9238_v5, 5  ;;  %v9385_v42 = vld [vmem:[%s8260_s27 + $0x20] sm:$0xf]  ;;  %v562_v61 = vpop.permute.xlu1 %561 }
 0x191   : > { %11812 = vst [vmem:[#allocation130_spill] sm:$0xff] %v9360_v58  ;;  %v2466_v28 = vor.u32 %v2465_v11, %v9360_v58  ;;  %11816 = vst [vmem:[#allocation133_spill] sm:$0xff] %v9385_v42  ;;  %v747_v57 = vmul.bf16 %v9385_v42, %v9264_v22  ;;  %v9394_v7 = vsel %vm8458_vm6, %v9230_v39, %v1933_v20  ;;  %v9396_v11 = vrot.slane %v2426_v35, 4  ;;  %v3156_v55 = vld [vmem:[%s8260_s27 + $0x48] sm:$0xf] }
 0x192   : > { %v9363_v33 = vrot.slane %v3920_v23, 1  ;;  %11813 = vst [vmem:[#allocation131_spill] sm:$0xff] %v9367_v21  ;;  %v2479_v23 = vshll.u32 %v9355_v14, 16  ;;  %v9382_v47 = vrot.slane %v11815_v10, 4  ;;  %11817 = vst [vmem:[#allocation134_spill] sm:$0xff] %v9394_v7  ;;  %v2483_v62 = vshrl.u32 %v9355_v14, 16 }
 0x193   : > { %11818 = vst [vmem:[#allocation135_spill] sm:$0xff] %v9396_v11  ;;  %v11820_v25 = vrot.slane %v9250_v31, 5  ;;  %v2446_v39 = vor.u32 %v2445_v29, %v9310_v26  ;;  %v9409_v20 = vrot.slane %v2466_v28, 4  ;;  %v2469_v35 = vshll.u32 %v9367_v21, 16  ;;  %v550_v26 = vpop.permute.xlu0 %549 }
 0x194   : > { %v3923_v18 = vsel %vm844_vm2, %v3918_v40, %v9363_v33  ;;  %v9400_v10 = vrot.slane %v2479_v23, 5  ;;  %v2485_v58 = vrot.slane %v2483_v62, 4  ;;  %v11823_v11 = vrot.slane %v8779_v52, 4 }
 0x195   : > { %6852 = vmatmul.mubr.msk.bf16.gmra.mrb[24].mxu0 %vm963_vm3, %v3923_v18  ;;  %v9406_v40 = vrot.slane %v11820_v25, 4  ;;  %11822 = vst [vmem:[#allocation138_spill] sm:$0xff] %v9409_v20  ;;  %v3157_v18 = vld [vmem:[%s8260_s27 + $0x4c] sm:$0xf]  ;;  %v11824_v29 = vrot.slane %v8840_v27, 4  ;;  %v3728_v7 = vshll.u32 %v9352_v56, 16 }
 0x196   : > { %11819 = vst [vmem:[#allocation136_spill] sm:$0xff] %v9400_v10  ;;  %6855 = vmatprep.mubr.msk.bf16.mxu0 %vm7989_vm0, %v11717_v50  ;;  %v3626_v25 = vsel %vm8505_vm9, %v11823_v11, %v8870_v8  ;;  %v9427_v42 = vrot.slane %v2469_v35, 5  ;;  %v2473_v62 = vshrl.u32 %v9367_v21, 16  ;;  %v11826_v52 = vrot.slane %v9264_v22, 5  ;;  %v9435_v8 = vld [vmem:[%s8260_s27 + $0x28] sm:$0xf] }
 0x197   : > { %11821 = vst [vmem:[#allocation137_spill] sm:$0xff] %v9406_v40  ;;  %v3635_v28 = vsel %vm8505_vm9, %v11824_v29, %v8858_v60  ;;  %v3776_v23 = vmul.bf16 %v3626_v25, %v3156_v55  ;;  %11828 = vst [vmem:[#allocation141_spill] sm:$0xff] %v9435_v8  ;;  %v2486_v60 = vor.u32 %v2485_v58, %v9400_v10  ;;  %v9440_v29 = vrot.slane %v2446_v39, 4  ;;  %v9454_v40 = vld [vmem:[%s8260_s27 + $0x30] sm:$0xf]  ;;  %v574_v58 = vpop.permute.xlu0 %573 }
 0x198   : > { %11825 = vst [vmem:[#allocation139_spill] sm:$0xff] %v9427_v42  ;;  %v9432_v3 = vrot.slane %v11826_v52, 4  ;;  %v3777_v11 = vmul.bf16 %v3635_v28, %v3157_v18  ;;  %v5989_v55 = vcombine.low %v747_v57, %v748_v17  ;;  %v9447_v25 = vrot.slane %v562_v61, %v8443_v51  ;;  %11832 = vst [vmem:[#allocation144_spill] sm:$0xff] %v9454_v40  ;;  %v586_v28 = vpop.permute.xlu1 %585 }
 0x199   : > { %11829 = vst [vmem:[#allocation142_spill] sm:$0xff] %v9440_v29  ;;  %v11830_v52 = vrot.slane %v9333_v34, 5  ;;  %v9461_v18 = vrot.slane %v550_v26, %v8443_v51  ;;  %v11834_v17 = vrot.slane %v9240_v59, 4  ;;  %v2475_v57 = vrot.slane %v2473_v62, 4  ;;  %v3168_v59 = vld [vmem:[%s8260_s27 + $0x78] sm:$0x1] }
 0x19a   : > { %11827 = vst [vmem:[#allocation140_spill] sm:$0xff] %v9432_v3  ;;  %v9458_v39 = vcombine.low %v3776_v23, %v3777_v11  ;;  %6596 = vmatmul.mubr.msk.bf16.gmra.mrb[16].mxu1 %vm963_vm3, %v5989_v55  ;;  %v2503_v35 = vshrl.u32 %v9447_v25, 16  ;;  %v9470_v27 = vrot.slane %v2486_v60, 4  ;;  %v3924_v23 = vshrl.u32 %v9341_v63, 16 }
 0x19b   : > { %v9451_v56 = vrot.slane %v11830_v52, 4  ;;  %11833 = vst [vmem:[#allocation145_spill] sm:$0xff] %v9461_v18  ;;  %v3730_v61 = vsel %vm8505_vm9, %v11834_v17, %v3728_v7  ;;  %v2499_v52 = vshll.u32 %v9447_v25, 16  ;;  %v2489_v11 = vshll.u32 %v9461_v18, 16  ;;  %6599 = vmatprep.mubr.msk.bf16.mxu1 %vm7989_vm0, %v11717_v50  ;;  %v598_v31 = vpop.permute.xlu0 %597 }
 0x19c   : > { %11835 = vst [vmem:[#allocation146_spill] sm:$0xff] %v9470_v27  ;;  %v3928_v26 = vshll.u32 %v9458_v39, 16  ;;  %v2505_v60 = vrot.slane %v2503_v35, 4  ;;  %v3926_v17 = vor.u32 %v3924_v23, %v9363_v33  ;;  %v9488_v20 = vrot.slane %v586_v28, %v8443_v51 }
 0x19d   : > { %11831 = vst [vmem:[#allocation143_spill] sm:$0xff] %v9451_v56  ;;  %v9480_v55 = vrot.slane %v2499_v52, 5  ;;  %v9485_v10 = vrot.slane %v2489_v11, 5  ;;  %v2476_v29 = vor.u32 %v2475_v57, %v9427_v42  ;;  %v2493_v7 = vshrl.u32 %v9461_v18, 16  ;;  %v610_v57 = vpop.permute.xlu1 %609 }
 0x19e   : > { %v9483_v63 = vrot.slane %v3928_v26, 1  ;;  %v9494_v52 = vrot.slane %v574_v58, %v8443_v51  ;;  %v9496_v62 = vmul.bf16 %v3730_v61, %v3168_v59  ;;  %v2519_v28 = vshll.u32 %v9488_v20, 16  ;;  %v9510_v58 = vld [vmem:[%s8260_s27 + $0x2c] sm:$0xf] }
 0x19f   : > { %11836 = vst [vmem:[#allocation147_spill] sm:$0xff] %v9480_v55  ;;  %11837 = vst [vmem:[#allocation148_spill] sm:$0xff] %v9485_v10  ;;  %v2506_v56 = vor.u32 %v2505_v60, %v9480_v55  ;;  %v11838_v23 = vrot.slane %v9355_v14, 5  ;;  %v750_v61 = vmul.bf16 %v9510_v58, %v9367_v21  ;;  %v11841_v11 = vrot.slane %v9367_v21, 5 }
 0x1a0   : > { %v3931_v33 = vsel %vm844_vm2, %v3926_v17, %v9483_v63  ;;  %11840 = vst [vmem:[#allocation150_spill] sm:$0xff] %v9510_v58  ;;  %v2523_v60 = vshrl.u32 %v9488_v20, 16  ;;  %v1994_v17 = vld [vmem:[#allocation5 + $0x4] sm:$0x3]  ;;  %v9525_v55 = vrot.slane %v2519_v28, 5  ;;  %v2509_v27 = vshll.u32 %v9494_v52, 16 }
 0x1a1   : > { %v9507_v26 = vrot.slane %v11838_v23, 4  ;;  %v9516_v59 = vrot.slane %v11841_v11, 4  ;;  %6856 = vmatmul.mubr.msk.bf16.gmra.mrb[28].mxu0 %vm963_vm3, %v3931_v33  ;;  %v9520_v35 = vrot.slane %v2506_v56, 4  ;;  %v3158_v11 = vld [vmem:[%s8260_s27 + $0x50] sm:$0xf]  ;;  %v9529_v42 = vrot.slane %v2476_v29, 4 }
 0x1a2   : > { %6859 = vmatprep.mubr.msk.bf16.mxu0 %vm7989_vm0, %v11717_v50  ;;  %11844 = vst [vmem:[#allocation153_spill] sm:$0xff] %v9525_v55  ;;  %v2495_v33 = vrot.slane %v2493_v7, 4  ;;  %v3159_v56 = vld [vmem:[%s8260_s27 + $0x54] sm:$0xf]  ;;  %v2513_v23 = vshrl.u32 %v9494_v52, 16  ;;  %v2144_v21 = vsel %vm1009_vm1, %v1994_v17, 0 }
 0x1a3   : > { %11839 = vst [vmem:[#allocation149_spill] sm:$0xff] %v9507_v26  ;;  %11842 = vst [vmem:[#allocation151_spill] sm:$0xff] %v9516_v59  ;;  %v2525_v26 = vrot.slane %v2523_v60, 4  ;;  %v9533_v59 = vrot.slane %v2509_v27, 5  ;;  %v11847_v28 = vrot.slane %v8833_v43, 4  ;;  %6640 = vmatpush3.bf16.msra.mxu1 %v2144_v21  ;;  %v11849_v17 = vrot.slane %v8883_v38, 4  ;;  %v634_v21 = vpop.permute.xlu1 %633 }
 0x1a4   : > { %11843 = vst [vmem:[#allocation152_spill] sm:$0xff] %v9520_v35  ;;  %11845 = vst [vmem:[#allocation154_spill] sm:$0xff] %v9529_v42  ;;  %v9543_v29 = vld [vmem:[%s8260_s27 + $0x38] sm:$0xf]  ;;  %v9548_v60 = vld [vmem:[%s8260_s27 + $0x34] sm:$0xf]  ;;  %6701 = vmatprep.subr.bf16.mxu1 %v11717_v50 }
 0x1a5   : > { %11846 = vst [vmem:[#allocation155_spill] sm:$0xff] %v9533_v59  ;;  %v3644_v3 = vsel %vm8505_vm9, %v11847_v28, %v8922_v44  ;;  %11848 = vst [vmem:[#allocation156_spill] sm:$0xff] %v9548_v60  ;;  %v3653_v43 = vsel %vm8505_vm9, %v11849_v17, %v8915_v0  ;;  %v11850_v28 = vrot.slane %v9447_v25, 5  ;;  %v2526_v7 = vor.u32 %v2525_v26, %v9525_v55  ;;  %v9582_v17 = vld [vmem:[%s8260_s27 + $0x40] sm:$0xf] }
 0x1a6   : > { %v3778_v44 = vmul.bf16 %v3644_v3, %v3158_v11  ;;  %v3779_v27 = vmul.bf16 %v3653_v43, %v3159_v56  ;;  %v11852_v38 = vrot.slane %v9461_v18, 5  ;;  %v11854_v3 = vmul.bf16 %v9435_v8, %v9333_v34 }
 0x1a7   : > { %v9559_v58 = vrot.slane %v11850_v28, 4  ;;  %v9575_v11 = vrot.slane %v610_v57, %v8443_v51  ;;  %v9578_v26 = vrot.slane %v598_v31, %v8443_v51  ;;  %v2496_v56 = vor.u32 %v2495_v33, %v9485_v10  ;;  %v622_v10 = vpop.permute.xlu0 %621 }
 0x1a8   : > { %v9569_v48 = vrot.slane %v11852_v38, 4  ;;  %v5990_v0 = vcombine.low %v11854_v3, %v750_v61  ;;  %v2515_v28 = vrot.slane %v2513_v23, 4  ;;  %v9586_v38 = vcombine.low %v3778_v44, %v3779_v27  ;;  %v9603_v27 = vld [vmem:[%s8260_s27 + $0x3c] sm:$0xf] }
 0x1a9   : > { %11851 = vst [vmem:[#allocation157_spill] sm:$0xff] %v9559_v58  ;;  %v2539_v57 = vshll.u32 %v9575_v11, 16  ;;  %v2543_v31 = vshrl.u32 %v9575_v11, 16  ;;  %v9593_v61 = vrot.slane %v634_v21, %v8443_v51  ;;  %v9595_v33 = vrot.slane %v2526_v7, 4 }
 0x1aa   : > { %11853 = vst [vmem:[#allocation158_spill] sm:$0xff] %v9569_v48  ;;  %6600 = vmatmul.mubr.msk.bf16.gmra.mrb[20].mxu1 %vm963_vm3, %v5990_v0  ;;  %v3932_v3 = vshrl.u32 %v9458_v39, 16  ;;  %v3936_v43 = vshll.u32 %v9586_v38, 16  ;;  %v2529_v23 = vshll.u32 %v9578_v26, 16  ;;  %v2516_v39 = vor.u32 %v2515_v28, %v9533_v59  ;;  %v658_v0 = vpop.permute.xlu1 %657  ;;  %v3160_v28 = vld [vmem:[%s8260_s27 + $0x58] sm:$0xf] }
 0x1ab   : > { %11855 = vst [vmem:[#allocation159_spill] sm:$0xff] %v9595_v33  ;;  %6603 = vmatprep.mubr.msk.bf16.mxu1 %vm7989_vm0, %v11717_v50  ;;  %v9608_v21 = vrot.slane %v2539_v57, 5  ;;  %v2545_v7 = vrot.slane %v2543_v31, 4  ;;  %v9614_v8 = vrot.slane %v2496_v56, 4  ;;  %v2559_v44 = vshll.u32 %v9593_v61, 16 }
 0x1ac   : > { %v3934_v42 = vor.u32 %v3932_v3, %v9483_v63  ;;  %v3938_v55 = vrot.slane %v3936_v43, 1  ;;  %v9612_v35 = vrot.slane %v2529_v23, 5  ;;  %v2563_v57 = vshrl.u32 %v9593_v61, 16  ;;  %v3161_v43 = vld [vmem:[%s8260_s27 + $0x5c] sm:$0xf] }
 0x1ad   : > { %11856 = vst [vmem:[#allocation160_spill] sm:$0xff] %v9608_v21  ;;  %11858 = vst [vmem:[#allocation162_spill] sm:$0xff] %v9614_v8  ;;  %v2546_v58 = vor.u32 %v2545_v7, %v9608_v21  ;;  %v11859_v31 = vrot.slane %v9488_v20, 5  ;;  %v11861_v3 = vrot.slane %v9494_v52, 5  ;;  %v9635_v7 = vrot.slane %v2559_v44, 5  ;;  %v646_v8 = vpop.permute.xlu0 %645 }
 0x1ae   : > { %11857 = vst [vmem:[#allocation161_spill] sm:$0xff] %v9612_v35  ;;  %v3939_v63 = vsel %vm844_vm2, %v3934_v42, %v3938_v55  ;;  %v9638_v42 = vrot.slane %v622_v10, %v8443_v51  ;;  %v9641_v21 = vrot.slane %v2516_v39, 4  ;;  %v2533_v59 = vshrl.u32 %v9578_v26, 16  ;;  %v9664_v33 = vld [vmem:[%s8260_s27 + $0x44] sm:$0xf] }
 0x1af   : > { %v9621_v48 = vrot.slane %v11859_v31, 4  ;;  %v9632_v23 = vrot.slane %v11861_v3, 4  ;;  %6860 = vmatmul.mubr.msk.bf16.gmra.mrb[32].mxu0 %vm963_vm3, %v3939_v63  ;;  %11863 = vst [vmem:[#allocation165_spill] sm:$0xff] %v9635_v7  ;;  %v2565_v31 = vrot.slane %v2563_v57, 4  ;;  %v11865_v3 = vrot.slane %v8873_v4, 4 }
 0x1b0   : > { %11864 = vst [vmem:[#allocation166_spill] sm:$0xff] %v9641_v21  ;;  %6863 = vmatprep.mubr.msk.bf16.mxu0 %vm7989_vm0, %v11717_v50  ;;  %v11866_v44 = vrot.slane %v9002_v15, 4  ;;  %v9657_v57 = vld [vmem:[%s8260_s27 + $0x48] sm:$0xf]  ;;  %v9661_v56 = vrot.slane %v2546_v58, 4  ;;  %v11868_v15 = vrot.slane %v9575_v11, 5  ;;  %v11871_v4 = vmul.bf16 %v9548_v60, %v9461_v18 }
 0x1b1   : > { %11860 = vst [vmem:[#allocation163_spill] sm:$0xff] %v9621_v48  ;;  %11862 = vst [vmem:[#allocation164_spill] sm:$0xff] %v9632_v23  ;;  %v3662_v63 = vsel %vm8505_vm9, %v11865_v3, %v9029_v1  ;;  %v2549_v1 = vshll.u32 %v9638_v42, 16  ;;  %v2566_v39 = vor.u32 %v2565_v31, %v9635_v7  ;;  %v2553_v48 = vshrl.u32 %v9638_v42, 16 }
 0x1b2   : > { %v3671_v10 = vsel %vm8505_vm9, %v11866_v44, %v8973_v36  ;;  %11867 = vst [vmem:[#allocation167_spill] sm:$0xff] %v9661_v56  ;;  %v9671_v3 = vrot.slane %v11868_v15, 4  ;;  %v3780_v44 = vmul.bf16 %v3662_v63, %v3160_v28  ;;  %v11872_v23 = vmul.bf16 %v9454_v40, %v9355_v14  ;;  %v682_v15 = vpop.permute.xlu1 %681  ;;  %v9687_v36 = vld [vmem:[%s8260_s27 + $0x50] sm:$0xf]  ;;  %v670_v56 = vpop.permute.xlu0 %669 }
 0x1b3   : > { %v3781_v21 = vmul.bf16 %v3671_v10, %v3161_v43  ;;  %v9675_v58 = vrot.slane %v2549_v1, 5  ;;  %v9694_v31 = vrot.slane %v658_v0, %v8443_v51  ;;  %v9704_v10 = vrot.slane %v646_v8, %v8443_v51 }
 0x1b4   : > { %11869 = vst [vmem:[#allocation168_spill] sm:$0xff] %v9671_v3  ;;  %v5991_v34 = vcombine.low %v11872_v23, %v11871_v4  ;;  %v9684_v3 = vrot.slane %v2533_v59, 4  ;;  %v3940_v59 = vshrl.u32 %v9586_v38, 16  ;;  %v9710_v1 = vrot.slane %v682_v15, %v8443_v51 }
 0x1b5   : > { %11870 = vst [vmem:[#allocation169_spill] sm:$0xff] %v9675_v58  ;;  %v9691_v28 = vcombine.low %v3780_v44, %v3781_v21  ;;  %v2579_v4 = vshll.u32 %v9694_v31, 16  ;;  %v2583_v0 = vshrl.u32 %v9694_v31, 16  ;;  %v9714_v44 = vrot.slane %v2566_v39, 4 }
 0x1b6   : > { %11873 = vst [vmem:[#allocation170_spill] sm:$0xff] %v9684_v3  ;;  %6604 = vmatmul.mubr.msk.bf16.gmra.mrb[24].mxu1 %vm963_vm3, %v5991_v34  ;;  %v9716_v38 = vrot.slane %v2553_v48, 4  ;;  %v2569_v8 = vshll.u32 %v9704_v10, 16  ;;  %v3942_v23 = vor.u32 %v3940_v59, %v3938_v55  ;;  %v11877_v60 = vrot.slane %v9578_v26, 5  ;;  %v9735_v55 = vld [vmem:[%s8260_s27 + $0x4c] sm:$0xf] }
 0x1b7   : > { %v3944_v21 = vshll.u32 %v9691_v28, 16  ;;  %6607 = vmatprep.mubr.msk.bf16.mxu1 %vm7989_vm0, %v11717_v50  ;;  %11874 = vst [vmem:[#allocation171_spill] sm:$0xff] %v9714_v44  ;;  %v9720_v63 = vrot.slane %v2579_v4, 5  ;;  %v2585_v7 = vrot.slane %v2583_v0, 4  ;;  %v11879_v48 = vrot.slane %v9593_v61, 5 }
 0x1b8   : > { %11875 = vst [vmem:[#allocation172_spill] sm:$0xff] %v9716_v38  ;;  %v9726_v40 = vrot.slane %v11877_v60, 4  ;;  %v9732_v34 = vrot.slane %v2569_v8, 5  ;;  %v2599_v60 = vshll.u32 %v9710_v1, 16  ;;  %v11882_v0 = vrot.slane %v9638_v42, 5 }
 0x1b9   : > { %v3946_v43 = vrot.slane %v3944_v21, 1  ;;  %11876 = vst [vmem:[#allocation173_spill] sm:$0xff] %v9720_v63  ;;  %v9730_v39 = vrot.slane %v11879_v48, 4  ;;  %v2586_v4 = vor.u32 %v2585_v7, %v9720_v63  ;;  %v2573_v59 = vshrl.u32 %v9704_v10, 16  ;;  %v3162_v8 = vld [vmem:[%s8260_s27 + $0x60] sm:$0xf]  ;;  %v694_v48 = vpop.permute.xlu0 %693 }
 0x1ba   : > { %11878 = vst [vmem:[#allocation174_spill] sm:$0xff] %v9726_v40  ;;  %11881 = vst [vmem:[#allocation176_spill] sm:$0xff] %v9732_v34  ;;  %v9744_v15 = vrot.slane %v11882_v0, 4  ;;  %v9758_v0 = vrot.slane %v2599_v60, 5  ;;  %v3163_v63 = vld [vmem:[%s8260_s27 + $0x64] sm:$0xf]  ;;  %v11893_v18 = vmul.bf16 %v9603_v27, %v9494_v52  ;;  %v11923_v49 = vmul.bf16 %v9657_v57, %v9575_v11 }
 0x1bb   : > { %11880 = vst [vmem:[#allocation175_spill] sm:$0xff] %v9730_v39  ;;  %v3947_v21 = vsel %vm844_vm2, %v3942_v23, %v3946_v43  ;;  %v2603_v23 = vshrl.u32 %v9710_v1, 16  ;;  %v11885_v35 = vrot.slane %v8943_v45, 4  ;;  %v11886_v58 = vrot.slane %v9068_v41, 4  ;;  %v9887_v34 = vld [vmem:[%s8260_s27 + $0x64] sm:$0xf] }
 0x1bc   : > { %11883 = vst [vmem:[#allocation177_spill] sm:$0xff] %v9744_v15  ;;  %6864 = vmatmul.mubr.msk.bf16.gmra.mrb[36].mxu0 %vm963_vm3, %v3947_v21  ;;  %11884 = vst [vmem:[#allocation178_spill] sm:$0xff] %v9758_v0  ;;  %v9761_v21 = vrot.slane %v670_v56, %v8443_v51  ;;  %v9777_v56 = vld [vmem:[%s8260_s27 + $0x58] sm:$0xf]  ;;  %v9781_v3 = vrot.slane %v2586_v4, 4  ;;  %v11889_v41 = vrot.slane %v9694_v31, 5 }
 0x1bd   : > { %6867 = vmatprep.mubr.msk.bf16.mxu0 %vm7989_vm0, %v11717_v50  ;;  %v2605_v44 = vrot.slane %v2603_v23, 4  ;;  %v3680_v7 = vsel %vm8505_vm9, %v11885_v35, %v9108_v30  ;;  %v3689_v60 = vsel %vm8505_vm9, %v11886_v58, %v9093_v19  ;;  %11887 = vst [vmem:[#allocation179_spill] sm:$0xff] %v9777_v56  ;;  %v9784_v23 = vld [vmem:[%s8260_s27 + $0x54] sm:$0xf]  ;;  %v706_v35 = vpop.permute.xlu1 %705  ;;  %v9794_v19 = vld [vmem:[%s8260_s27 + $0x60] sm:$0xf] }
 0x1be   : > { %11888 = vst [vmem:[#allocation180_spill] sm:$0xff] %v9781_v3  ;;  %v2589_v30 = vshll.u32 %v9761_v21, 16  ;;  %v9791_v39 = vrot.slane %v11889_v41, 4  ;;  %11891 = vst [vmem:[#allocation182_spill] sm:$0xff] %v9794_v19  ;;  %v3782_v4 = vmul.bf16 %v3680_v7, %v3162_v8  ;;  %v3783_v38 = vmul.bf16 %v3689_v60, %v3163_v63 }
 0x1bf   : > { %v2606_v15 = vor.u32 %v2605_v44, %v9758_v0  ;;  %v2593_v45 = vshrl.u32 %v9761_v21, 16  ;;  %v11894_v41 = vmul.bf16 %v9543_v29, %v9447_v25  ;;  %v9808_v14 = vrot.slane %v2573_v59, 4  ;;  %v9862_v0 = vld [vmem:[%s8260_s27 + $0x5c] sm:$0xf]  ;;  %11907 = vst [vmem:[#allocation192_spill] sm:$0xff] %v9887_v34 }
 0x1c0   : > { %11890 = vst [vmem:[#allocation181_spill] sm:$0xff] %v9791_v39  ;;  %v9799_v40 = vrot.slane %v2589_v30, 5  ;;  %v11896_v22 = vrot.slane %v9704_v10, 5  ;;  %v9814_v63 = vcombine.low %v3782_v4, %v3783_v38  ;;  %v9817_v44 = vrot.slane %v706_v35, %v8443_v51  ;;  %11903 = vst [vmem:[#allocation190_spill] sm:$0xff] %v9862_v0 }
 0x1c1   : > { %v5992_v39 = vcombine.low %v11894_v41, %v11893_v18  ;;  %11895 = vst [vmem:[#allocation184_spill] sm:$0xff] %v9808_v14  ;;  %v3948_v18 = vshrl.u32 %v9691_v28, 16  ;;  %v9827_v59 = vrot.slane %v694_v48, %v8443_v51  ;;  %v9835_v35 = vrot.slane %v2606_v15, 4  ;;  %v730_v48 = vpop.permute.xlu1 %729  ;;  %v718_v41 = vpop.permute.xlu0 %717  ;;  %v3167_v14 = vld [vmem:[%s8260_s27 + $0x74] sm:$0xf] }
 0x1c2   : > { %11892 = vst [vmem:[#allocation183_spill] sm:$0xff] %v9799_v40  ;;  %v9812_v58 = vrot.slane %v11896_v22, 4  ;;  %v3952_v38 = vshll.u32 %v9814_v63, 16  ;;  %v2619_v60 = vshll.u32 %v9817_v44, 16  ;;  %v2623_v30 = vshrl.u32 %v9817_v44, 16 }
 0x1c3   : > { %6608 = vmatmul.mubr.msk.bf16.gmra.mrb[28].mxu1 %vm963_vm3, %v5992_v39  ;;  %11897 = vst [vmem:[#allocation185_spill] sm:$0xff] %v9835_v35  ;;  %v9837_v4 = vrot.slane %v2593_v45, 4  ;;  %v3950_v28 = vor.u32 %v3948_v18, %v3946_v43  ;;  %v2609_v39 = vshll.u32 %v9827_v59, 16  ;;  %v2613_v45 = vshrl.u32 %v9827_v59, 16 }
 0x1c4   : > { %6611 = vmatprep.mubr.msk.bf16.mxu1 %vm7989_vm0, %v11717_v50  ;;  %v3954_v7 = vrot.slane %v3952_v38, 1  ;;  %v9840_v22 = vrot.slane %v2619_v60, 5  ;;  %v2625_v8 = vrot.slane %v2623_v30, 4  ;;  %v9852_v60 = vrot.slane %v730_v48, %v8443_v51  ;;  %v3165_v48 = vld [vmem:[%s8260_s27 + $0x6c] sm:$0xf] }
 0x1c5   : > { %11898 = vst [vmem:[#allocation186_spill] sm:$0xff] %v9837_v4  ;;  %v9845_v15 = vrot.slane %v2609_v39, 5  ;;  %v9855_v30 = vrot.slane %v718_v41, %v8443_v51  ;;  %v11901_v39 = vrot.slane %v9710_v1, 5  ;;  %v762_v43 = vmul.bf16 %v9862_v0, %v9761_v21  ;;  %v9878_v41 = vld [vmem:[%s8260_s27 + $0x68] sm:$0xf] }
 0x1c6   : > { %11899 = vst [vmem:[#allocation187_spill] sm:$0xff] %v9840_v22  ;;  %v3955_v18 = vsel %vm844_vm2, %v3950_v28, %v3954_v7  ;;  %v2626_v38 = vor.u32 %v2625_v8, %v9840_v22  ;;  %v11904_v28 = vrot.slane %v9761_v21, 5  ;;  %v11905_v22 = vrot.slane %v9817_v44, 5  ;;  %v3164_v51 = vld [vmem:[%s8260_s27 + $0x68] sm:$0xf] }
 0x1c7   : > { %11900 = vst [vmem:[#allocation188_spill] sm:$0xff] %v9845_v15  ;;  %v9859_v3 = vrot.slane %v11901_v39, 4  ;;  %6868 = vmatmul.mubr.msk.bf16.gmra.mrb[40].mxu0 %vm963_vm3, %v3955_v18  ;;  %v9897_v39 = vrot.slane %v2613_v45, 4  ;;  %v2629_v4 = vshll.u32 %v9855_v30, 16  ;;  %v7724_v15 = vld [vmem:[%s8260_s27 + $0x70] sm:$0x1] }
 0x1c8   : > { %v9868_v8 = vrot.slane %v11904_v28, 4  ;;  %v9884_v28 = vrot.slane %v11905_v22, 4  ;;  %6871 = vmatprep.mubr.msk.bf16.mxu0 %vm7989_vm0, %v11717_v50  ;;  %v9895_v35 = vrot.slane %v2626_v38, 4  ;;  %v11910_v22 = vrot.slane %v9827_v59, 5 }
 0x1c9   : > { %11902 = vst [vmem:[#allocation189_spill] sm:$0xff] %v9859_v3  ;;  %11909 = vst [vmem:[#allocation194_spill] sm:$0xff] %v9897_v39  ;;  %v9906_v18 = vmul.bf16 %v7724_v15, %v9852_v60  ;;  %v11913_v38 = vrot.slane %v9036_v54, 4  ;;  %v11914_v39 = vrot.slane %v9165_v53, 4  ;;  %v9926_v54 = vld [vmem:[%s8260_s27 + $0x6c] sm:$0xf]  ;;  %v11916_v53 = vmul.bf16 %v9664_v33, %v9578_v26 }
 0x1ca   : > { %11906 = vst [vmem:[#allocation191_spill] sm:$0xff] %v9884_v28  ;;  %11908 = vst [vmem:[#allocation193_spill] sm:$0xff] %v9895_v35  ;;  %v9901_v40 = vrot.slane %v11910_v22, 4  ;;  %v9920_v28 = vrot.slane %v2629_v4, 5  ;;  %v11918_v4 = vrot.slane %v9134_v2, 4  ;;  %v11919_v0 = vrot.slane %v9270_v13, 4 }
 0x1cb   : > { %11912 = vst [vmem:[#allocation196_spill] sm:$0xff] %v9906_v18  ;;  %v3698_v45 = vsel %vm8505_vm9, %v11913_v38, %v9209_v32  ;;  %v3707_v22 = vsel %vm8505_vm9, %v11914_v39, %v9191_v6  ;;  %v11917_v6 = vmul.bf16 %v9582_v17, %v9488_v20  ;;  %v11922_v13 = vmul.bf16 %v9735_v55, %v9638_v42  ;;  %v11930_v2 = vld [vmem:[#allocation88_spill] sm:$0xff]  ;;  %v11943_v35 = vld [vmem:[#allocation111_spill] sm:$0xff] }
 0x1cc   : > { %11911 = vst [vmem:[#allocation195_spill] sm:$0xff] %v9901_v40  ;;  %11915 = vst [vmem:[#allocation197_spill] sm:$0xff] %v9920_v28  ;;  %v3784_v15 = vmul.bf16 %v3698_v45, %v3164_v51  ;;  %v3785_v18 = vmul.bf16 %v3707_v22, %v3165_v48  ;;  %v3166_v40 = vld [vmem:[%s8260_s27 + $0x70] sm:$0xf]  ;;  %v3716_v51 = vsel %vm8505_vm9, %v11918_v4, %v9323_v46  ;;  %v4214_v48 = vld [vmem:[%s8260_s27 + $0x18] sm:$0xf] }
 0x1cd   : > { %v5993_v39 = vcombine.low %v11917_v6, %v11916_v53  ;;  %v3956_v22 = vshrl.u32 %v9814_v63, 16  ;;  %v3725_v53 = vsel %vm8505_vm9, %v11919_v0, %v9267_v16  ;;  %v11920_v6 = vrot.slane %v9855_v30, 5  ;;  %v10034_v28 = vld [vmem:[%s8260_s27 + $0x2c] sm:$0xf] }
 0x1ce   : > { %v6117_v45 = vcombine.low %v3784_v15, %v3785_v18  ;;  %v3786_v4 = vmul.bf16 %v3716_v51, %v3166_v40  ;;  %v3787_v3 = vmul.bf16 %v3725_v53, %v3167_v14  ;;  %v5994_v16 = vcombine.low %v11923_v49, %v11922_v13  ;;  %v11927_v13 = vld [vmem:[#allocation97_spill] sm:$0xff] }
 0x1cf   : > { %v9955_v46 = vrot.slane %v11920_v6, 4  ;;  %6612 = vmatmul.mubr.msk.bf16.gmra.mrb[32].mxu1 %vm963_vm3, %v5993_v39  ;;  %v3958_v38 = vor.u32 %v3956_v22, %v3954_v7  ;;  %v9968_v0 = vcombine.low %v9496_v62, %v9496_v62  ;;  %v11924_v14 = vmul.bf16 %v9784_v23, %v9704_v10 }
 0x1d0   : > { %v3960_v18 = vshll.u32 %v6117_v45, 16  ;;  %6615 = vmatprep.mubr.msk.bf16.mxu1 %vm7989_vm0, %v11717_v50  ;;  %v6118_v63 = vcombine.low %v3786_v4, %v3787_v3  ;;  %v3964_v40 = vshrl.u32 %v6117_v45, 16  ;;  %v11925_v7 = vmul.bf16 %v9687_v36, %v9593_v61  ;;  %v4750_v45 = vld [vmem:[#allocation5 + $0xe] sm:$0x3] }
 0x1d1   : > { %11921 = vst [vmem:[#allocation198_spill] sm:$0xff] %v9955_v46  ;;  %v4389_v39 = vmul.bf16 %v9078_v24, %v4214_v48  ;;  %v3976_v22 = vshll.u32 %v9968_v0, 16  ;;  %v11926_v62 = vmul.bf16 %v9777_v56, %v9694_v31  ;;  %v11928_v49 = vmul.bf16 %v9065_v9, %v11927_v13  ;;  %v9990_v24 = vld [vmem:[%s8260_s27 + $0x1c] sm:$0xf]  ;;  %v11958_v56 = vld [vmem:[#allocation32_spill] sm:$0xff] }
 0x1d2   : > { %v9976_v15 = vcombine.low %v11925_v7, %v11924_v14  ;;  %v3962_v51 = vrot.slane %v3960_v18, 1  ;;  %v3968_v6 = vshll.u32 %v6118_v63, 16  ;;  %v3972_v4 = vshrl.u32 %v6118_v63, 16  ;;  %11929 = vst [vmem:[#allocation97_spill] sm:$0xff] %v9990_v24 }
 0x1d3   : > { %v9984_v3 = vcombine.low %v11926_v62, %v762_v43  ;;  %v6136_v14 = vcombine.low %v11928_v49, %v4389_v39  ;;  %v3978_v7 = vrot.slane %v3976_v22, 1  ;;  %v4491_v43 = vrot.slane %v11930_v2, 3  ;;  %v9995_v62 = vld [vmem:[%s8260_s27 + $0x20] sm:$0xf]  ;;  %v11932_v39 = vld [vmem:[#allocation99_spill] sm:$0xff] }
 0x1d4   : > { %v3963_v48 = vsel %vm844_vm2, %v3958_v38, %v3962_v51  ;;  %v3966_v18 = vor.u32 %v3964_v40, %v3962_v51  ;;  %11931 = vst [vmem:[#allocation88_spill] sm:$0xff] %v9995_v62  ;;  %v3970_v63 = vrot.slane %v3968_v6, 1  ;;  %v9999_v9 = vsel %vm1009_vm1, %v4750_v45, 0  ;;  %v11934_v49 = vld [vmem:[#allocation102_spill] sm:$0xff] }
 0x1d5   : > { %6872 = vmatmul.mubr.msk.bf16.gmra.mrb[44].mxu0 %vm963_vm3, %v3963_v48  ;;  %v4492_v53 = vrot.slane %v6136_v14, 3  ;;  %v11933_v13 = vrot.slane %v11932_v39, 5  ;;  %v10007_v40 = vld [vmem:[%s8260_s27 + $0x24] sm:$0xf]  ;;  %v11937_v2 = vmul.bf16 %v9887_v34, %v9827_v59  ;;  %v11938_v51 = vmul.bf16 %v9794_v19, %v9710_v1  ;;  %v11941_v14 = vld [vmem:[#allocation112_spill] sm:$0xff]  ;;  %11944 = vst [vmem:[#allocation102_spill] sm:$0xff] %v10034_v28 }
 0x1d6   : > { %11936 = vst [vmem:[#allocation99_spill] sm:$0xff] %v10007_v40  ;;  %6875 = vmatprep.mubr.msk.bf16.mxu0 %vm7989_vm0, %v11717_v50  ;;  %v11939_v45 = vld [vmem:[#allocation98_spill] sm:$0xff] }
 0x1d7   : > { %v4284_v38 = vsel %vm8951_vm14, %v11934_v49, %v11933_v13  ;;  %v10017_v22 = vcombine.low %v11938_v51, %v11937_v2  ;;  %v11940_v6 = vrot.slane %v11939_v45, 5  ;;  %v10026_v13 = vld [vmem:[%s8260_s27 + $0x28] sm:$0xf]  ;;  %v11942_v49 = vrot.slane %v9238_v5, 5  ;;  %6616 = vmatmul.mubr.msk.bf16.gmra.mrb[36].mxu1 %vm963_vm3, %v5994_v16 }
 0x1d8   : > { %v4390_v39 = vmul.bf16 %v4284_v38, %v9990_v24  ;;  %v3971_v2 = vsel %vm844_vm2, %v3966_v18, %v3970_v63  ;;  %v3974_v51 = vor.u32 %v3972_v4, %v3970_v63  ;;  %v10039_v45 = vsel %vm4490_vm5, %v4491_v43, %v4492_v53  ;;  %6619 = vmatprep.mubr.msk.bf16.mxu1 %vm7989_vm0, %v11717_v50  ;;  %v11947_v4 = vld [vmem:[#allocation117_spill] sm:$0xff]  ;;  %v11949_v43 = vld [vmem:[#allocation126_spill] sm:$0xff] }
 0x1d9   : > { %v4287_v48 = vsel %vm8951_vm14, %v11941_v14, %v11940_v6  ;;  %v4290_v37 = vsel %vm8951_vm14, %v11943_v35, %v11942_v49  ;;  %v10043_v6 = vld [vmem:[%s8260_s27 + $0x30] sm:$0xf]  ;;  %v11946_v5 = vrot.slane %v9235_v12, 5  ;;  %v11948_v18 = vrot.slane %v11947_v4, 5  ;;  %v11950_v14 = vld [vmem:[#allocation113_spill] sm:$0xff] }
 0x1da   : > { %v4391_v38 = vmul.bf16 %v4287_v48, %v9995_v62  ;;  %11945 = vst [vmem:[#allocation83_spill] sm:$0xff] %v10043_v6  ;;  %v4392_v16 = vmul.bf16 %v4290_v37, %v10007_v40  ;;  %v11951_v48 = vrot.slane %v11950_v14, 5  ;;  %v11952_v49 = vld [vmem:[#allocation140_spill] sm:$0xff]  ;;  %v3979_v12 = vsel %vm844_vm2, %v3974_v51, %v3978_v7  ;;  %v7726_v4 = vld [vmem:[%s8260_s27 + $0x8] sm:$0xf] }
 0x1db   : > { %v4293_v35 = vsel %vm8951_vm14, %v9382_v47, %v11946_v5  ;;  %v4296_v63 = vsel %vm8951_vm14, %v11949_v43, %v11948_v18  ;;  %v10067_v37 = vld [vmem:[%s8260_s27 + $0x34] sm:$0xf]  ;;  %v11954_v40 = vld [vmem:[#allocation27_spill] sm:$0xff]  ;;  %v11956_v14 = vld [vmem:[#allocation18_spill] sm:$0xff]  ;;  %vm2776_vm2 = vsmask.f32 4352 }
 0x1dc   : > { %v4299_v24 = vsel %vm8951_vm14, %v11952_v49, %v11951_v48  ;;  %v6137_v62 = vcombine.low %v4390_v39, %v4391_v38  ;;  %v4393_v34 = vmul.bf16 %v4293_v35, %v10026_v13  ;;  %v4394_v47 = vmul.bf16 %v4296_v63, %v10034_v28  ;;  %11953 = vst [vmem:[#allocation98_spill] sm:$0xff] %v10067_v37  ;;  %v11955_v43 = vld [vmem:[#allocation25_spill] sm:$0xff]  ;;  %v11963_v48 = vld [vmem:[#allocation131_spill] sm:$0xff] }
 0x1dd   : > { %v4395_v5 = vmul.bf16 %v4299_v24, %v10043_v6  ;;  %v1966_v18 = vmul.bf16 %v7726_v4, %v11954_v40  ;;  %v11957_v19 = vmul.bf16 %v11955_v43, %v11956_v14  ;;  %v10077_v7 = vld [vmem:[%s8260_s27 + $0x38] sm:$0xf]  ;;  %v11964_v49 = vrot.slane %v11963_v48, 5  ;;  %v11965_v40 = vld [vmem:[#allocation143_spill] sm:$0xff]  ;;  %6876 = vmatmul.mubr.msk.bf16.gmra.mrb[48].mxu0 %vm963_vm3, %v3971_v2 }
 0x1de   : > { %11959 = vst [vmem:[#allocation112_spill] sm:$0xff] %v10077_v7  ;;  %v4494_v39 = vrot.slane %v6137_v62, 3  ;;  %v6138_v51 = vcombine.low %v4392_v16, %v4393_v34  ;;  %v11960_v38 = vld [vmem:[#allocation125_spill] sm:$0xff]  ;;  %v11967_v43 = vld [vmem:[#allocation19_spill] sm:$0xff]  ;;  %6879 = vmatprep.mubr.msk.bf16.mxu0 %vm7989_vm0, %v11717_v50  ;;  %v11974_v2 = vld [vmem:[#allocation28_spill] sm:$0xff] }
 0x1df   : > { %v6015_v46 = vcombine.low %v11958_v56, %v11957_v19  ;;  %v11961_v35 = vrot.slane %v11960_v38, 5  ;;  %v11962_v63 = vld [vmem:[#allocation137_spill] sm:$0xff]  ;;  %v4305_v4 = vsel %vm8951_vm14, %v11965_v40, %v11964_v49  ;;  %v6139_v56 = vcombine.low %v4394_v47, %v4395_v5  ;;  %v11966_v19 = vld [vmem:[#allocation24_spill] sm:$0xff]  ;;  %v11971_v49 = vld [vmem:[#allocation34_spill] sm:$0xff]  ;;  %6620 = vmatmul.mubr.msk.bf16.gmra.mrb[40].mxu1 %vm963_vm3, %v9976_v15 }
 0x1e0   : > { %v11968_v14 = vmul.bf16 %v11966_v19, %v11967_v43  ;;  %v10095_v16 = vsel %vm4490_vm5, %v4492_v53, %v4494_v39  ;;  %v4496_v38 = vrot.slane %v6138_v51, 3  ;;  %v10104_v5 = vld [vmem:[%s8260_s27 + $0x3c] sm:$0xf]  ;;  %v10115_v43 = vld [vmem:[%s8260_s27 + $0x40] sm:$0xf]  ;;  %6623 = vmatprep.mubr.msk.bf16.mxu1 %vm7989_vm0, %v11717_v50 }
 0x1e1   : > { %v4302_v24 = vsel %vm8951_vm14, %v11962_v63, %v11961_v35  ;;  %v2069_v62 = vrot.slane %v6015_v46, 1  ;;  %v4397_v35 = vmul.bf16 %v4305_v4, %v10077_v7  ;;  %v11969_v63 = vld [vmem:[#allocation30_spill] sm:$0xff]  ;;  %11973 = vst [vmem:[#allocation111_spill] sm:$0xff] %v10104_v5  ;;  %v4498_v46 = vrot.slane %v6139_v56, 3  ;;  %v11976_v53 = vld [vmem:[#allocation41_spill] sm:$0xff]  ;;  %v11977_v4 = vld [vmem:[#allocation107_spill] sm:$0xff] }
 0x1e2   : > { %v6016_v28 = vcombine.low %v1966_v18, %v11968_v14  ;;  %v4396_v34 = vmul.bf16 %v4302_v24, %v10067_v37  ;;  %v11970_v48 = vrot.slane %v11969_v63, 7  ;;  %v11975_v24 = vrot.slane %v11974_v2, 7  ;;  %11978 = vst [vmem:[#allocation117_spill] sm:$0xff] %v10115_v43  ;;  %v11982_v2 = vld [vmem:[#allocation151_spill] sm:$0xff]  ;;  %v11991_v7 = vld [vmem:[#allocation33_spill] sm:$0xff] }
 0x1e3   : > { %v10120_v14 = vsel %vm4490_vm5, %v4494_v39, %v4496_v38  ;;  %v11985_v39 = vld [vmem:[#allocation145_spill] sm:$0xff]  ;;  %v11990_v37 = vld [vmem:[#allocation39_spill] sm:$0xff] }
 0x1e4   : > { %v1862_v47 = vsel %vm8458_vm6, %v11971_v49, %v11970_v48  ;;  %v2070_v18 = vrot.slane %v6016_v28, 1  ;;  %v1865_v51 = vsel %vm8458_vm6, %v11976_v53, %v11975_v24  ;;  %v6140_v56 = vcombine.low %v4396_v34, %v4397_v35  ;;  %v11979_v28 = vld [vmem:[#allocation106_spill] sm:$0xff]  ;;  %v11980_v49 = vld [vmem:[#allocation129_spill] sm:$0xff] }
 0x1e5   : > { %v1968_v19 = vmul.bf16 %v11977_v4, %v1862_v47  ;;  %v1969_v48 = vmul.bf16 %v11979_v28, %v1865_v51  ;;  %v11981_v63 = vrot.slane %v11980_v49, 5  ;;  %v10131_v47 = vsel %vm4490_vm5, %v4496_v38, %v4498_v46  ;;  %v11987_v34 = vld [vmem:[#allocation149_spill] sm:$0xff]  ;;  %v10149_v38 = vld [vmem:[%s8260_s27 + $0x44] sm:$0xf]  ;;  %6880 = vmatmul.mubr.msk.bf16.gmra.mrb[52].mxu0 %vm963_vm3, %v3979_v12 }
 0x1e6   : > { %11983 = vst [vmem:[#allocation126_spill] sm:$0xff] %v10131_v47  ;;  %v10134_v15 = vsel %vm2068_vm8, %v2069_v62, %v2070_v18  ;;  %v11986_v53 = vrot.slane %v11985_v39, 5  ;;  %v4500_v4 = vrot.slane %v6140_v56, 3  ;;  %v10152_v39 = vld [vmem:[%s8260_s27 + $0x48] sm:$0xf]  ;;  %v11994_v56 = vld [vmem:[#allocation121_spill] sm:$0xff]  ;;  %6883 = vmatprep.mubr.msk.bf16.mxu0 %vm7989_vm0, %v11717_v50 }
 0x1e7   : > { %v4308_v24 = vsel %vm8951_vm14, %v11982_v2, %v11981_v63  ;;  %11984 = vst [vmem:[#allocation113_spill] sm:$0xff] %v10134_v15  ;;  %v6017_v28 = vcombine.low %v1968_v19, %v1969_v48  ;;  %v11988_v2 = vld [vmem:[#allocation36_spill] sm:$0xff]  ;;  %6624 = vmatmul.mubr.msk.bf16.gmra.mrb[44].mxu1 %vm963_vm3, %v9984_v3  ;;  %v12015_v3 = vld [vmem:[#allocation46_spill] sm:$0xff] }
 0x1e8   : > { %v4311_v35 = vsel %vm8951_vm14, %v11987_v34, %v11986_v53  ;;  %v4398_v51 = vmul.bf16 %v4308_v24, %v10104_v5  ;;  %v11989_v49 = vrot.slane %v11988_v2, 7  ;;  %v11992_v53 = vrot.slane %v11991_v7, 7  ;;  %v11993_v34 = vld [vmem:[#allocation48_spill] sm:$0xff]  ;;  %6627 = vmatprep.mubr.msk.bf16.mxu1 %vm7989_vm0, %v11717_v50 }
 0x1e9   : > { %v4399_v63 = vmul.bf16 %v4311_v35, %v10115_v43  ;;  %v11995_v24 = vrot.slane %v9447_v25, 5  ;;  %v11996_v35 = vld [vmem:[#allocation158_spill] sm:$0xff]  ;;  %v10171_v7 = vsel %vm4490_vm5, %v4498_v46, %v4500_v4  ;;  %v2072_v43 = vrot.slane %v6017_v28, 1  ;;  %v10187_v28 = vld [vmem:[%s8260_s27 + $0x4c] sm:$0xf] }
 0x1ea   : > { %v1868_v62 = vsel %vm8458_vm6, %v11990_v37, %v11989_v49  ;;  %v1871_v19 = vsel %vm8458_vm6, %v11993_v34, %v11992_v53  ;;  %v11997_v37 = vrot.slane %v9494_v52, 5  ;;  %v11998_v49 = vld [vmem:[#allocation157_spill] sm:$0xff]  ;;  %v11999_v53 = vld [vmem:[#allocation119_spill] sm:$0xff] }
 0x1eb   : > { %v1970_v48 = vmul.bf16 %v11994_v56, %v1868_v62  ;;  %v4314_v2 = vsel %vm8951_vm14, %v11996_v35, %v11995_v24  ;;  %v6141_v47 = vcombine.low %v4398_v51, %v4399_v63  ;;  %v1971_v34 = vmul.bf16 %v11999_v53, %v1871_v19  ;;  %v12000_v56 = vld [vmem:[#allocation40_spill] sm:$0xff]  ;;  %v12003_v35 = vld [vmem:[#allocation38_spill] sm:$0xff]  ;;  %v12006_v19 = vld [vmem:[#allocation133_spill] sm:$0xff] }
 0x1ec   : > { %v4317_v5 = vsel %vm8951_vm14, %v11998_v49, %v11997_v37  ;;  %v4400_v62 = vmul.bf16 %v4314_v2, %v10149_v38  ;;  %v12001_v6 = vrot.slane %v12000_v56, 7  ;;  %v12002_v24 = vld [vmem:[#allocation44_spill] sm:$0xff]  ;;  %v12004_v15 = vrot.slane %v12003_v35, 7  ;;  %v12005_v37 = vld [vmem:[#allocation54_spill] sm:$0xff]  ;;  %v12011_v56 = vld [vmem:[#allocation163_spill] sm:$0xff] }
 0x1ed   : > { %v4401_v25 = vmul.bf16 %v4317_v5, %v10152_v39  ;;  %v10190_v51 = vld [vmem:[%s8260_s27 + $0x50] sm:$0xf]  ;;  %v10194_v5 = vsel %vm2068_vm8, %v2070_v18, %v2072_v43  ;;  %v4502_v63 = vrot.slane %v6141_v47, 3  ;;  %v6018_v2 = vcombine.low %v1970_v48, %v1971_v34 }
 0x1ee   : > { %v1874_v52 = vsel %vm8458_vm6, %v12002_v24, %v12001_v6  ;;  %v1877_v46 = vsel %vm8458_vm6, %v12005_v37, %v12004_v15  ;;  %v12007_v53 = vld [vmem:[#allocation132_spill] sm:$0xff]  ;;  %v12008_v24 = vrot.slane %v9488_v20, 5  ;;  %v12010_v18 = vrot.slane %v9578_v26, 5 }
 0x1ef   : > { %v1972_v49 = vmul.bf16 %v12006_v19, %v1874_v52  ;;  %v6142_v6 = vcombine.low %v4400_v62, %v4401_v25  ;;  %v1973_v15 = vmul.bf16 %v12007_v53, %v1877_v46  ;;  %v12009_v37 = vld [vmem:[#allocation164_spill] sm:$0xff]  ;;  %v10213_v48 = vsel %vm4490_vm5, %v4500_v4, %v4502_v63  ;;  %v12012_v52 = vld [vmem:[#allocation47_spill] sm:$0xff]  ;;  %6628 = vmatmul.mubr.msk.bf16.gmra.mrb[48].mxu1 %vm963_vm3, %v10017_v22  ;;  %v12047_v22 = vld [vmem:[#allocation70_spill] sm:$0xff] }
 0x1f0   : > { %v4320_v12 = vsel %vm8951_vm14, %v12009_v37, %v12008_v24  ;;  %v4323_v47 = vsel %vm8951_vm14, %v12011_v56, %v12010_v18  ;;  %v2074_v34 = vrot.slane %v6018_v2, 1  ;;  %v12013_v46 = vrot.slane %v12012_v52, 7  ;;  %v12014_v56 = vld [vmem:[#allocation49_spill] sm:$0xff]  ;;  %v12017_v4 = vld [vmem:[#allocation60_spill] sm:$0xff]  ;;  %6631 = vmatprep.mubr.msk.bf16.mxu1 %vm7989_vm0, %v11717_v50 }
 0x1f1   : > { %v4402_v20 = vmul.bf16 %v4320_v12, %v10187_v28  ;;  %v4403_v62 = vmul.bf16 %v4323_v47, %v10190_v51  ;;  %v4504_v26 = vrot.slane %v6142_v6, 3  ;;  %v6019_v25 = vcombine.low %v1972_v49, %v1973_v15  ;;  %v10230_v24 = vld [vmem:[%s8260_s27 + $0x54] sm:$0xf]  ;;  %v12020_v15 = vld [vmem:[#allocation150_spill] sm:$0xff]  ;;  %v10238_v47 = vld [vmem:[%s8260_s27 + $0x58] sm:$0xf] }
 0x1f2   : > { %v1880_v19 = vsel %vm8458_vm6, %v12014_v56, %v12013_v46  ;;  %v12016_v53 = vrot.slane %v12015_v3, 7  ;;  %12018 = vst [vmem:[#allocation140_spill] sm:$0xff] %v10230_v24  ;;  %v10233_v37 = vsel %vm2068_vm8, %v2072_v43, %v2074_v34  ;;  %v12019_v6 = vld [vmem:[#allocation141_spill] sm:$0xff]  ;;  %v12021_v46 = vmul.bf16 %v9926_v54, %v9855_v30  ;;  %v12026_v52 = vld [vmem:[#allocation168_spill] sm:$0xff] }
 0x1f3   : > { %v6143_v12 = vcombine.low %v4402_v20, %v4403_v62  ;;  %v1974_v49 = vmul.bf16 %v12019_v6, %v1880_v19  ;;  %v12022_v56 = vmul.bf16 %v9878_v41, %v9817_v44  ;;  %v10249_v43 = vsel %vm4490_vm5, %v4502_v63, %v4504_v26  ;;  %v12024_v19 = vld [vmem:[#allocation174_spill] sm:$0xff]  ;;  %v12029_v35 = vld [vmem:[#allocation56_spill] sm:$0xff] }
 0x1f4   : > { %v1883_v2 = vsel %vm8458_vm6, %v12017_v4, %v12016_v53  ;;  %v2076_v20 = vrot.slane %v6019_v25, 1  ;;  %v12023_v62 = vrot.slane %v9575_v11, 5  ;;  %v12027_v11 = vld [vmem:[#allocation53_spill] sm:$0xff] }
 0x1f5   : > { %v1975_v18 = vmul.bf16 %v12020_v15, %v1883_v2  ;;  %v10246_v53 = vcombine.low %v12022_v56, %v12021_v46  ;;  %v4506_v2 = vrot.slane %v6143_v12, 3  ;;  %v12025_v15 = vrot.slane %v9638_v42, 5  ;;  %v12032_v42 = vld [vmem:[#allocation64_spill] sm:$0xff] }
 0x1f6   : > { %v4326_v4 = vsel %vm8951_vm14, %v12024_v19, %v12023_v62  ;;  %v10263_v63 = vsel %vm2068_vm8, %v2074_v34, %v2076_v20  ;;  %v12028_v56 = vrot.slane %v12027_v11, 7  ;;  %v10280_v19 = vld [vmem:[%s8260_s27 + $0x60] sm:$0xf]  ;;  %v12033_v34 = vshrl.u32 %v9968_v0, 16 }
 0x1f7   : > { %v6020_v6 = vcombine.low %v1974_v49, %v1975_v18  ;;  %v4329_v3 = vsel %vm8951_vm14, %v12026_v52, %v12025_v15  ;;  %v4404_v46 = vmul.bf16 %v4326_v4, %v10230_v24  ;;  %v12030_v49 = vld [vmem:[#allocation52_spill] sm:$0xff]  ;;  %v10277_v52 = vld [vmem:[%s8260_s27 + $0x5c] sm:$0xf]  ;;  %v12039_v24 = vld [vmem:[#allocation175_spill] sm:$0xff]  ;;  %6632 = vmatmul.mubr.msk.bf16.gmra.mrb[52].mxu1 %vm963_vm3, %v10246_v53 }
 0x1f8   : > { %v4405_v25 = vmul.bf16 %v4329_v3, %v10238_v47  ;;  %v1886_v12 = vsel %vm8458_vm6, %v12029_v35, %v12028_v56  ;;  %v12031_v18 = vrot.slane %v12030_v49, 7  ;;  %6884 = vmatmul.mubr.msk.bf16.gmra.mrb[56].mxu0 %vm963_vm3, %v12033_v34  ;;  %v10286_v3 = vsel %vm4490_vm5, %v4504_v26, %v4506_v2  ;;  %v12034_v4 = vld [vmem:[#allocation144_spill] sm:$0xff]  ;;  %v12037_v49 = vld [vmem:[#allocation177_spill] sm:$0xff]  ;;  %6635 = vmatprep.mubr.msk.bf16.mxu1 %vm7989_vm0, %v11717_v50 }
 0x1f9   : > { %v2078_v35 = vrot.slane %v6020_v6, 1  ;;  %v1976_v15 = vmul.bf16 %v12034_v4, %v1886_v12  ;;  %v12035_v56 = vld [vmem:[#allocation156_spill] sm:$0xff]  ;;  %6889 = vmatprep.mubr.msk.bf16.mxu0 %vm7989_vm0, %v11717_v50  ;;  %v12038_v34 = vrot.slane %v9704_v10, 5  ;;  %v12040_v6 = vld [vmem:[#allocation59_spill] sm:$0xff]  ;;  %v12042_v4 = vld [vmem:[#allocation62_spill] sm:$0xff] }
 0x1fa   : > { %v1889_v62 = vsel %vm8458_vm6, %v12032_v42, %v12031_v18  ;;  %v6144_v18 = vcombine.low %v4404_v46, %v4405_v25  ;;  %v12036_v42 = vrot.slane %v9593_v61, 5  ;;  %v12041_v12 = vrot.slane %v12040_v6, 7  ;;  %v12050_v6 = vld [vmem:[#allocation181_spill] sm:$0xff] }
 0x1fb   : > { %v1977_v11 = vmul.bf16 %v12035_v56, %v1889_v62  ;;  %v4335_v26 = vsel %vm8951_vm14, %v12039_v24, %v12038_v34  ;;  %v10310_v61 = vsel %vm2068_vm8, %v2076_v20, %v2078_v35  ;;  %v10318_v24 = vld [vmem:[%s8260_s27 + $0x68] sm:$0xf] }
 0x1fc   : > { %v4332_v0 = vsel %vm8951_vm14, %v12037_v49, %v12036_v42  ;;  %v1892_v62 = vsel %vm8458_vm6, %v12042_v4, %v12041_v12  ;;  %v4407_v10 = vmul.bf16 %v4335_v26, %v10280_v19  ;;  %v10315_v49 = vld [vmem:[%s8260_s27 + $0x64] sm:$0xf]  ;;  %12044 = vst [vmem:[#allocation25_spill] sm:$0xff] %v10318_v24  ;;  %v4508_v56 = vrot.slane %v6144_v18, 3 }
 0x1fd   : > { %v6021_v46 = vcombine.low %v1976_v15, %v1977_v11  ;;  %v4406_v25 = vmul.bf16 %v4332_v0, %v10277_v52  ;;  %12043 = vst [vmem:[#allocation27_spill] sm:$0xff] %v10315_v49  ;;  %v12045_v42 = vld [vmem:[#allocation58_spill] sm:$0xff]  ;;  %v1978_v11 = vmul.bf16 %v9543_v29, %v1892_v62  ;;  %v12048_v15 = vrot.slane %v9694_v31, 5 }
 0x1fe   : > { %v12046_v34 = vrot.slane %v12045_v42, 7  ;;  %v12049_v18 = vrot.slane %v9761_v21, 5  ;;  %v12051_v62 = vld [vmem:[#allocation66_spill] sm:$0xff] }
 0x1ff   : > { %v4338_v0 = vsel %vm8951_vm14, %v9812_v58, %v12048_v15  ;;  %v2080_v26 = vrot.slane %v6021_v46, 1  ;;  %v6145_v12 = vcombine.low %v4406_v25, %v4407_v10  ;;  %v12053_v58 = vld [vmem:[#allocation68_spill] sm:$0xff]  ;;  %v12055_v10 = vld [vmem:[#allocation63_spill] sm:$0xff] }
 0x200   : > { %v1895_v20 = vsel %vm8458_vm6, %v12047_v22, %v12046_v34  ;;  %v4341_v42 = vsel %vm8951_vm14, %v12050_v6, %v12049_v18  ;;  %v10340_v34 = vsel %vm4490_vm5, %v4506_v2, %v4508_v56  ;;  %v4408_v29 = vmul.bf16 %v4338_v0, %v10315_v49  ;;  %6890 = vmatmul.mubr.msk.bf16.vlgmr.msra.gmra.mrb[0].mxu0 %vm963_vm3, %v10039_v45  ;;  %v12111_v49 = vld [vmem:[#allocation172_spill] sm:$0xff] }
 0x201   : > { %v1979_v4 = vmul.bf16 %v9603_v27, %v1895_v20  ;;  %v4409_v31 = vmul.bf16 %v4341_v42, %v10318_v24  ;;  %v12052_v22 = vrot.slane %v12051_v62, 7  ;;  %v10350_v27 = vld [vmem:[%s8260_s27 + $0x6c] sm:$0xf]  ;;  %v10353_v21 = vsel %vm2068_vm8, %v2078_v35, %v2080_v26  ;;  %v10361_v42 = vld [vmem:[%s8260_s27 + $0x70] sm:$0xf]  ;;  %6950 = vmatpush3.bf16.msra.mxu0 %v9999_v9  ;;  %6893 = vmatprep.mubr.msk.bf16.mxu0 %vm7989_vm0, %v11717_v50 }
 0x202   : > { %12054 = vst [vmem:[#allocation18_spill] sm:$0xff] %v10350_v27  ;;  %v4510_v25 = vrot.slane %v6145_v12, 3  ;;  %v12056_v2 = vrot.slane %v12055_v10, 7  ;;  %v12057_v20 = vld [vmem:[#allocation75_spill] sm:$0xff]  ;;  %12058 = vst [vmem:[#allocation32_spill] sm:$0xff] %v10361_v42  ;;  %7011 = vmatprep.subr.bf16.mxu0 %v11717_v50 }
 0x203   : > { %v1898_v46 = vsel %vm8458_vm6, %v12053_v58, %v12052_v22  ;;  %v6022_v6 = vcombine.low %v1978_v11, %v1979_v4  ;;  %v6146_v0 = vcombine.low %v4408_v29, %v4409_v31  ;;  %v12059_v58 = vrot.slane %v9710_v1, 5  ;;  %v12062_v29 = vld [vmem:[#allocation189_spill] sm:$0xff]  ;;  %v12163_v62 = vld [vmem:[#allocation135_spill] sm:$0xff] }
 0x204   : > { %v1901_v15 = vsel %vm8458_vm6, %v12057_v20, %v12056_v2  ;;  %v1980_v18 = vmul.bf16 %v9582_v17, %v1898_v46  ;;  %v10373_v11 = vsel %vm4490_vm5, %v4508_v56, %v4510_v25  ;;  %v12061_v4 = vrot.slane %v9827_v59, 5  ;;  %v12063_v56 = vld [vmem:[#allocation71_spill] sm:$0xff]  ;;  %v12065_v46 = vld [vmem:[#allocation74_spill] sm:$0xff]  ;;  %v12067_v2 = vld [vmem:[#allocation69_spill] sm:$0xff] }
 0x205   : > { %v1981_v22 = vmul.bf16 %v9664_v33, %v1901_v15  ;;  %v4344_v35 = vsel %vm8951_vm14, %v9868_v8, %v12059_v58  ;;  %12060 = vst [vmem:[#allocation125_spill] sm:$0xff] %v10373_v11  ;;  %v2082_v12 = vrot.slane %v6022_v6, 1  ;;  %v4512_v1 = vrot.slane %v6146_v0, 3  ;;  %v10391_v6 = vld [vmem:[%s8260_s27 + $0x74] sm:$0xf] }
 0x206   : > { %v4347_v17 = vsel %vm8951_vm14, %v12062_v29, %v12061_v4  ;;  %v4410_v33 = vmul.bf16 %v4344_v35, %v10350_v27  ;;  %v12064_v31 = vrot.slane %v12063_v56, 7  ;;  %12066 = vst [vmem:[#allocation137_spill] sm:$0xff] %v10391_v6  ;;  %v12068_v20 = vrot.slane %v12067_v2, 7  ;;  %v12069_v15 = vld [vmem:[#allocation80_spill] sm:$0xff]  ;;  %v12072_v35 = vld [vmem:[#allocation195_spill] sm:$0xff] }
 0x207   : > { %v6023_v8 = vcombine.low %v1980_v18, %v1981_v22  ;;  %v4411_v45 = vmul.bf16 %v4347_v17, %v10361_v42  ;;  %v10396_v9 = vsel %vm2068_vm8, %v2080_v26, %v2082_v12  ;;  %v10405_v22 = vld [vmem:[%s8260_s27 + $0x78] sm:$0xf]  ;;  %v12071_v58 = vrot.slane %v9817_v44, 5  ;;  %v12086_v42 = vld [vmem:[#allocation198_spill] sm:$0xff]  ;;  %v1439_v11 = vld [vmem:[%s8260_s27 + $0x70] sm:$0x3] }
 0x208   : > { %v1904_v59 = vsel %vm8458_vm6, %v12065_v46, %v12064_v31  ;;  %v1907_v0 = vsel %vm8458_vm6, %v12069_v15, %v12068_v20  ;;  %12070 = vst [vmem:[#allocation131_spill] sm:$0xff] %v10405_v22  ;;  %v10415_v26 = vsel %vm4490_vm5, %v4510_v25, %v4512_v1  ;;  %v12075_v31 = vld [vmem:[#allocation191_spill] sm:$0xff]  ;;  %v12085_v27 = vrot.slane %v9852_v60, 5  ;;  %6894 = vmatmul.mubr.msk.bf16.gmra.mrb[4].mxu0 %vm963_vm3, %v10095_v16  ;;  %v12162_v2 = vld [vmem:[#allocation116_spill] sm:$0xff] }
 0x209   : > { %v1982_v18 = vmul.bf16 %v9657_v57, %v1904_v59  ;;  %v4350_v53 = vsel %vm8951_vm14, %v12072_v35, %v12071_v58  ;;  %12073 = vst [vmem:[#allocation143_spill] sm:$0xff] %v10415_v26  ;;  %v2084_v4 = vrot.slane %v6023_v8, 1  ;;  %v6147_v29 = vcombine.low %v4410_v33, %v4411_v45  ;;  %v12076_v59 = vld [vmem:[#allocation81_spill] sm:$0xff]  ;;  %v12078_v15 = vld [vmem:[#allocation79_spill] sm:$0xff]  ;;  %v12081_v45 = vld [vmem:[#allocation90_spill] sm:$0xff]  ;;  %6897 = vmatprep.mubr.msk.bf16.mxu0 %vm7989_vm0, %v11717_v50 }
 0x20a   : > { %v1983_v17 = vmul.bf16 %v9735_v55, %v1907_v0  ;;  %v12074_v57 = vrot.slane %v9855_v30, 5  ;;  %v4412_v46 = vmul.bf16 %v4350_v53, %v10391_v6  ;;  %v12077_v20 = vrot.slane %v12076_v59, 7  ;;  %v12079_v8 = vld [vmem:[#allocation77_spill] sm:$0xff]  ;;  %v12122_v26 = vld [vmem:[#allocation183_spill] sm:$0xff] }
 0x20b   : > { %v12080_v33 = vrot.slane %v12079_v8, 7  ;;  %v10436_v0 = vld [vmem:[%s8260_s27 + $0x7c] sm:$0xf]  ;;  %v10439_v58 = vsel %vm2068_vm8, %v2082_v12, %v2084_v4  ;;  %v4514_v35 = vrot.slane %v6147_v29, 3  ;;  %v12097_v16 = vshrl.u32 %v9855_v30, 16 }
 0x20c   : > { %v4353_v44 = vsel %vm8951_vm14, %v12075_v31, %v12074_v57  ;;  %v1910_v25 = vsel %vm8458_vm6, %v12078_v15, %v12077_v20  ;;  %12082 = vst [vmem:[#allocation24_spill] sm:$0xff] %v10436_v0  ;;  %12083 = vst [vmem:[#allocation19_spill] sm:$0xff] %v10439_v58  ;;  %v6024_v57 = vcombine.low %v1982_v18, %v1983_v17  ;;  %v12084_v31 = vld [vmem:[#allocation196_spill] sm:$0xff]  ;;  %v2333_v8 = vld [vmem:[%s8260_s27 + $0x1c] sm:$0xf] }
 0x20d   : > { %v1913_v55 = vsel %vm8458_vm6, %v12081_v45, %v12080_v33  ;;  %v4413_v53 = vmul.bf16 %v4353_v44, %v10405_v22  ;;  %v5999_v6 = vcombine.low %v12084_v31, %v12084_v31  ;;  %v1984_v20 = vmul.bf16 %v9687_v36, %v1910_v25  ;;  %v12088_v36 = vld [vmem:[#allocation89_spill] sm:$0xff]  ;;  %v12101_v22 = vld [vmem:[#allocation94_spill] sm:$0xff] }
 0x20e   : > { %v1985_v15 = vmul.bf16 %v9784_v23, %v1913_v55  ;;  %v4356_v33 = vsel %vm8951_vm14, %v12086_v42, %v12085_v27  ;;  %v10452_v12 = vsel %vm4490_vm5, %v4512_v1, %v4514_v35  ;;  %v2086_v29 = vrot.slane %v6024_v57, 1  ;;  %v12090_v23 = vld [vmem:[#allocation85_spill] sm:$0xff]  ;;  %v12091_v55 = vld [vmem:[#allocation84_spill] sm:$0xff]  ;;  %v12093_v27 = vld [vmem:[#allocation95_spill] sm:$0xff] }
 0x20f   : > { %12087 = vst [vmem:[#allocation34_spill] sm:$0xff] %v10452_v12  ;;  %v6148_v18 = vcombine.low %v4412_v46, %v4413_v53  ;;  %v4414_v17 = vmul.bf16 %v4356_v33, %v10436_v0  ;;  %v12089_v25 = vrot.slane %v12088_v36, 7  ;;  %v12092_v32 = vrot.slane %v12091_v55, 7  ;;  %v12094_v1 = vld [vmem:[#allocation96_spill] sm:$0xff]  ;;  %v12096_v57 = vld [vmem:[#allocation93_spill] sm:$0xff]  ;;  %6636 = vmatmul.mubr.msk.bf16.gmra.mrb[56].mxu1 %vm963_vm3, %v5999_v6  ;;  %v12106_v6 = vld [vmem:[#allocation182_spill] sm:$0xff] }
 0x210   : > { %v6025_v44 = vcombine.low %v1984_v20, %v1985_v15  ;;  %v12095_v46 = vrot.slane %v12094_v1, 7  ;;  %v2635_v31 = vrot.slane %v12097_v16, 4  ;;  %v10477_v20 = vsel %vm2068_vm8, %v2084_v4, %v2086_v29  ;;  %6641 = vmatprep.mubr.msk.bf16.mxu1 %vm7989_vm0, %v11717_v50  ;;  %v12109_v16 = vld [vmem:[#allocation161_spill] sm:$0xff]  ;;  %v2702_v12 = vld [vmem:[#allocation5 + $0x6] sm:$0x3]  ;;  %6898 = vmatmul.mubr.msk.bf16.gmra.mrb[8].mxu0 %vm963_vm3, %v10120_v14 }
 0x211   : > { %v1916_v45 = vsel %vm8458_vm6, %v12090_v23, %v12089_v25  ;;  %v1919_v42 = vsel %vm8458_vm6, %v12093_v27, %v12092_v32  ;;  %12098 = vst [vmem:[#allocation23_spill] sm:$0xff] %v10477_v20  ;;  %v4516_v15 = vrot.slane %v6148_v18, 3  ;;  %v6149_v33 = vcombine.low %v4414_v17, %v4414_v17  ;;  %v12099_v23 = vld [vmem:[#allocation179_spill] sm:$0xff]  ;;  %v12100_v27 = vld [vmem:[#allocation190_spill] sm:$0xff]  ;;  %v12116_v20 = vld [vmem:[#allocation176_spill] sm:$0xff]  ;;  %6901 = vmatprep.mubr.msk.bf16.mxu0 %vm7989_vm0, %v11717_v50 }
 0x212   : > { %v1922_v53 = vsel %vm8458_vm6, %v12096_v57, %v12095_v46  ;;  %v2088_v25 = vrot.slane %v6025_v44, 1  ;;  %v1986_v32 = vmul.bf16 %v12099_v23, %v1916_v45  ;;  %v1987_v0 = vmul.bf16 %v12100_v27, %v1919_v42  ;;  %v12103_v57 = vld [vmem:[#allocation109_spill] sm:$0xff]  ;;  %v12107_v44 = vld [vmem:[#allocation192_spill] sm:$0xff]  ;;  %v12108_v42 = vld [vmem:[#allocation170_spill] sm:$0xff] }
 0x213   : > { %v12102_v46 = vrot.slane %v12101_v22, 7  ;;  %v10490_v4 = vsel %vm4490_vm5, %v4514_v35, %v4516_v15  ;;  %v10492_v18 = vrot.slane %v6149_v33, 3  ;;  %v1988_v17 = vmul.bf16 %v12106_v6, %v1922_v53  ;;  %v2331_v59 = vld [vmem:[%s8260_s27 + $0x14] sm:$0xf] }
 0x214   : > { %12104 = vst [vmem:[#allocation41_spill] sm:$0xff] %v10490_v4  ;;  %v12110_v23 = vor.u32 %v12108_v42, %v12109_v16  ;;  %v10507_v35 = vsel %vm2068_vm8, %v2086_v29, %v2088_v25  ;;  %v6026_v33 = vcombine.low %v1986_v32, %v1987_v0  ;;  %v12115_v4 = vld [vmem:[#allocation184_spill] sm:$0xff]  ;;  %v12124_v0 = vshll.u32 %v9852_v60, 16 }
 0x215   : > { %v1925_v30 = vsel %vm8458_vm6, %v12103_v57, %v12102_v46  ;;  %12105 = vst [vmem:[#allocation107_spill] sm:$0xff] %v10492_v18  ;;  %v12112_v46 = vld [vmem:[#allocation169_spill] sm:$0xff]  ;;  %12114 = vst [vmem:[#allocation106_spill] sm:$0xff] %v10507_v35  ;;  %v12117_v53 = vor.u32 %v12115_v4, %v12116_v20  ;;  %v12125_v4 = vld [vmem:[#allocation110_spill] sm:$0xff] }
 0x216   : > { %v1989_v45 = vmul.bf16 %v12107_v44, %v1925_v30  ;;  %v10499_v27 = vrot.slane %v12110_v23, 4  ;;  %v12113_v57 = vor.u32 %v12111_v49, %v12112_v46  ;;  %v12118_v30 = vld [vmem:[#allocation188_spill] sm:$0xff]  ;;  %v12119_v44 = vld [vmem:[#allocation194_spill] sm:$0xff]  ;;  %v10518_v23 = vsel %vm4490_vm5, %v4516_v15, %v10492_v18  ;;  %v12127_v35 = vld [vmem:[#allocation103_spill] sm:$0xff] }
 0x217   : > { %v10512_v6 = vrot.slane %v12117_v53, 4  ;;  %v2616_v42 = vor.u32 %v12119_v44, %v12118_v30  ;;  %12120 = vst [vmem:[#allocation129_spill] sm:$0xff] %v10518_v23  ;;  %v10527_v29 = vrot.slane %v12124_v0, 5  ;;  %v2090_v32 = vrot.slane %v6026_v33, 1  ;;  %v12128_v15 = vld [vmem:[#allocation197_spill] sm:$0xff]  ;;  %v12131_v23 = vld [vmem:[#allocation124_spill] sm:$0xff] }
 0x218   : > { %v10504_v24 = vrot.slane %v12113_v57, 4  ;;  %v6027_v49 = vcombine.low %v1988_v17, %v1989_v45  ;;  %v12121_v57 = vld [vmem:[#allocation186_spill] sm:$0xff]  ;;  %v12126_v53 = vrot.slane %v12125_v4, 7  ;;  %v2636_v18 = vor.u32 %v2635_v31, %v12128_v15  ;;  %v12133_v31 = vld [vmem:[#allocation88_spill] sm:$0xff] }
 0x219   : > { %v12123_v58 = vor.u32 %v12121_v57, %v12122_v26  ;;  %v2957_v17 = vsel %vm1009_vm1, %v2702_v12, 0  ;;  %v12129_v57 = vld [vmem:[#allocation105_spill] sm:$0xff]  ;;  %v10545_v33 = vsel %vm2068_vm8, %v2088_v25, %v2090_v32  ;;  %v12137_v25 = vld [vmem:[#allocation99_spill] sm:$0xff] }
 0x21a   : > { %v1928_v44 = vsel %vm8458_vm6, %v12127_v35, %v12126_v53  ;;  %v2092_v45 = vrot.slane %v6027_v49, 1  ;;  %12132 = vst [vmem:[#allocation151_spill] sm:$0xff] %v10545_v33  ;;  %v12134_v53 = vld [vmem:[#allocation97_spill] sm:$0xff]  ;;  %v10551_v49 = vrot.slane %v2616_v42, 4  ;;  %v12140_v42 = vld [vmem:[#allocation102_spill] sm:$0xff] }
 0x21b   : > { %v10523_v55 = vrot.slane %v12123_v58, 4  ;;  %v12130_v58 = vrot.slane %v12129_v57, 7  ;;  %v1990_v35 = vmul.bf16 %v9878_v41, %v1928_v44  ;;  %v6167_v12 = vcombine.low %v12134_v53, %v12133_v31  ;;  %v12138_v33 = vld [vmem:[#allocation113_spill] sm:$0xff] }
 0x21c   : > { %v10556_v40 = vsel %vm2068_vm8, %v2090_v32, %v2092_v45  ;;  %6642 = vmatmul.mubr.msk.bf16.vlgmr.msra.gmra.mrb[0].mxu1 %vm963_vm3, %v12138_v33  ;;  %v10565_v53 = vrot.slane %v2636_v18, 4 }
 0x21d   : > { %v1931_v60 = vsel %vm8458_vm6, %v12131_v23, %v12130_v58  ;;  %12135 = vst [vmem:[#allocation145_spill] sm:$0xff] %v10556_v40  ;;  %v12136_v23 = vld [vmem:[#allocation134_spill] sm:$0xff]  ;;  %v6168_v58 = vcombine.low %v12137_v25, %v10026_v13  ;;  %v4845_v44 = vshll.u32 %v6167_v12, 16  ;;  %6645 = vmatprep.mubr.msk.bf16.mxu1 %vm7989_vm0, %v11717_v50  ;;  %6702 = vmatpush3.bf16.msra.mxu1 %v2957_v17 }
 0x21e   : > { %v1991_v0 = vmul.bf16 %v9926_v54, %v1931_v60  ;;  %v1992_v14 = vmul.bf16 %v12136_v23, %v1439_v11  ;;  %v4842_v54 = vshrl.u32 %v6167_v12, 16  ;;  %v12139_v60 = vld [vmem:[#allocation83_spill] sm:$0xff]  ;;  %7073 = vmatprep.subr.bf16.mxu1 %v11717_v50 }
 0x21f   : > { %v6169_v31 = vcombine.low %v12140_v42, %v12139_v60  ;;  %v4851_v11 = vshrl.u32 %v6168_v58, 16  ;;  %v4854_v23 = vshll.u32 %v6168_v58, 16  ;;  %v4847_v25 = vrot.slane %v4845_v44, 4  ;;  %v12144_v58 = vld [vmem:[#allocation91_spill] sm:$0xff] }
 0x220   : > { %v6028_v41 = vcombine.low %v1990_v35, %v1991_v0  ;;  %v6029_v32 = vcombine.low %v1992_v14, %v1992_v14  ;;  %v4844_v13 = vrot.slane %v4842_v54, 3 }
 0x221   : > { %v4860_v33 = vshrl.u32 %v6169_v31, 16  ;;  %v4853_v0 = vrot.slane %v4851_v11, 3  ;;  %v4856_v12 = vrot.slane %v4854_v23, 4  ;;  %v4863_v18 = vshll.u32 %v6169_v31, 16  ;;  %v12148_v31 = vld [vmem:[#allocation126_spill] sm:$0xff] }
 0x222   : > { %v2094_v40 = vrot.slane %v6028_v41, 1  ;;  %v10570_v35 = vrot.slane %v6029_v32, 1  ;;  %v10575_v17 = vor.u32 %v4847_v25, %v4844_v13  ;;  %v12145_v41 = vshrl.u32 %v12144_v58, 16  ;;  %6902 = vmatmul.mubr.msk.bf16.gmra.mrb[12].mxu0 %vm963_vm3, %v12148_v31 }
 0x223   : > { %v4862_v14 = vrot.slane %v4860_v33, 3  ;;  %v4857_v42 = vor.u32 %v4856_v12, %v4853_v0  ;;  %v4865_v32 = vrot.slane %v4863_v18, 4  ;;  %v12147_v11 = vshll.u32 %v12144_v58, 16  ;;  %v12150_v33 = vld [vmem:[#allocation112_spill] sm:$0xff]  ;;  %6905 = vmatprep.mubr.msk.bf16.mxu0 %vm7989_vm0, %v11717_v50 }
 0x224   : > { %12141 = vst [vmem:[#allocation149_spill] sm:$0xff] %v10570_v35  ;;  %v10573_v60 = vsel %vm2068_vm8, %v2092_v45, %v2094_v40  ;;  %12143 = vst [vmem:[#allocation48_spill] sm:$0xff] %v10575_v17  ;;  %v2780_v54 = vrot.slane %v12145_v41, 3  ;;  %v10581_v44 = vsel %vm2068_vm8, %v2094_v40, %v10570_v35  ;;  %v12149_v45 = vld [vmem:[#allocation100_spill] sm:$0xff]  ;;  %v12151_v41 = vld [vmem:[#allocation98_spill] sm:$0xff]  ;;  %6646 = vmatmul.mubr.msk.bf16.gmra.mrb[4].mxu1 %vm963_vm3, %v10194_v5 }
 0x225   : > { %12142 = vst [vmem:[#allocation39_spill] sm:$0xff] %v10573_v60  ;;  %12146 = vst [vmem:[#allocation121_spill] sm:$0xff] %v10581_v44  ;;  %v2783_v23 = vrot.slane %v12147_v11, 4  ;;  %v2786_v13 = vshrl.u32 %v12149_v45, 16  ;;  %v2789_v25 = vshll.u32 %v12149_v45, 16  ;;  %v6170_v60 = vcombine.low %v12151_v41, %v12150_v33  ;;  %v12153_v58 = vld [vmem:[#allocation108_spill] sm:$0xff]  ;;  %6649 = vmatprep.mubr.msk.bf16.mxu1 %vm7989_vm0, %v11717_v50 }
 0x226   : > { %v2332_v40 = vld [vmem:[%s8260_s27 + $0x18] sm:$0xf]  ;;  %v10597_v0 = vsel %vm2776_vm2, %v10575_v17, %v4857_v42  ;;  %v4866_v12 = vor.u32 %v4865_v32, %v4862_v14  ;;  %v12154_v11 = vld [vmem:[#allocation115_spill] sm:$0xff] }
 0x227   : > { %12152 = vst [vmem:[#allocation158_spill] sm:$0xff] %v10597_v0  ;;  %v2784_v18 = vor.u32 %v2783_v23, %v2780_v54  ;;  %v2412_v35 = vsel %vm8977_vm15, %v12154_v11, %v12153_v58  ;;  %v2788_v45 = vrot.slane %v2786_v13, 3  ;;  %v2791_v33 = vrot.slane %v2789_v25, 4  ;;  %v12157_v54 = vld [vmem:[#allocation101_spill] sm:$0xff]  ;;  %v12158_v32 = vld [vmem:[#allocation104_spill] sm:$0xff]  ;;  %v12161_v25 = vld [vmem:[#allocation111_spill] sm:$0xff] }
 0x228   : > { %v4869_v41 = vshrl.u32 %v6170_v60, 16  ;;  %v4872_v44 = vshll.u32 %v6170_v60, 16  ;;  %v10609_v14 = vsel %vm2776_vm2, %v4857_v42, %v4866_v12  ;;  %v12159_v23 = vsel %vm8977_vm15, %v12157_v54, %v12158_v32  ;;  %v12160_v13 = vld [vmem:[#allocation117_spill] sm:$0xff]  ;;  %v2335_v32 = vld [vmem:[%s8260_s27 + $0x24] sm:$0xf] }
 0x229   : > { %12156 = vst [vmem:[#allocation157_spill] sm:$0xff] %v10609_v14  ;;  %v2676_v58 = vmul.bf16 %v12159_v23, %v2331_v59  ;;  %v2677_v5 = vmul.bf16 %v2412_v35, %v2332_v40  ;;  %v6171_v11 = vcombine.low %v12161_v25, %v12160_v13  ;;  %v2334_v60 = vld [vmem:[%s8260_s27 + $0x20] sm:$0xf]  ;;  %v2792_v0 = vor.u32 %v2791_v33, %v2788_v45  ;;  %v2336_v23 = vld [vmem:[%s8260_s27 + $0x28] sm:$0xf] }
 0x22a   : > { %v4871_v17 = vrot.slane %v4869_v41, 3  ;;  %v4874_v56 = vrot.slane %v4872_v44, 4  ;;  %v2432_v42 = vsel %vm8977_vm15, %v12163_v62, %v12162_v2  ;;  %v12164_v59 = vld [vmem:[#allocation114_spill] sm:$0xff]  ;;  %6906 = vmatmul.mubr.msk.bf16.gmra.mrb[16].mxu0 %vm963_vm3, %v10171_v7  ;;  %v6172_v7 = vcombine.low %v10149_v38, %v10152_v39 }
 0x22b   : > { %v6047_v14 = vcombine.low %v2676_v58, %v2677_v5  ;;  %v4878_v10 = vshrl.u32 %v6171_v11, 16  ;;  %v4881_v4 = vshll.u32 %v6171_v11, 16  ;;  %v12165_v35 = vld [vmem:[#allocation118_spill] sm:$0xff]  ;;  %v10631_v45 = vsel %vm2776_vm2, %v2784_v18, %v2792_v0  ;;  %v2337_v11 = vld [vmem:[%s8260_s27 + $0x2c] sm:$0xf]  ;;  %6909 = vmatprep.mubr.msk.bf16.mxu0 %vm7989_vm0, %v11717_v50 }
 0x22c   : > { %v12166_v40 = vsel %vm8977_vm15, %v12164_v59, %v12165_v35  ;;  %v4875_v44 = vor.u32 %v4874_v56, %v4871_v17  ;;  %v2679_v33 = vmul.bf16 %v2432_v42, %v2334_v60  ;;  %v12167_v41 = vld [vmem:[#allocation122_spill] sm:$0xff]  ;;  %v12169_v56 = vld [vmem:[#allocation120_spill] sm:$0xff]  ;;  %v12170_v17 = vld [vmem:[#allocation123_spill] sm:$0xff]  ;;  %6650 = vmatmul.mubr.msk.bf16.gmra.mrb[8].mxu1 %vm963_vm3, %v10233_v37  ;;  %v4887_v39 = vshrl.u32 %v6172_v7, 16 }
 0x22d   : > { %v2678_v54 = vmul.bf16 %v12166_v40, %v2333_v8  ;;  %v12168_v13 = vld [vmem:[#allocation142_spill] sm:$0xff]  ;;  %v2795_v2 = vshrl.u32 %v6047_v14, 16  ;;  %v2798_v58 = vshll.u32 %v6047_v14, 16  ;;  %v4880_v5 = vrot.slane %v4878_v10, 3  ;;  %6653 = vmatprep.mubr.msk.bf16.mxu1 %vm7989_vm0, %v11717_v50 }
 0x22e   : > { %v2452_v62 = vsel %vm8977_vm15, %v12168_v13, %v12167_v41  ;;  %v4883_v25 = vrot.slane %v4881_v4, 4  ;;  %v10641_v8 = vsel %vm2776_vm2, %v4866_v12, %v4875_v44  ;;  %v12171_v60 = vsel %vm8977_vm15, %v12169_v56, %v12170_v17 }
 0x22f   : > { %v6048_v18 = vcombine.low %v2678_v54, %v2679_v33  ;;  %v2680_v42 = vmul.bf16 %v12171_v60, %v2335_v32  ;;  %v2681_v59 = vmul.bf16 %v2452_v62, %v2336_v23  ;;  %v2797_v10 = vrot.slane %v2795_v2, 3  ;;  %v2338_v54 = vld [vmem:[%s8260_s27 + $0x30] sm:$0xf]  ;;  %v12173_v23 = vld [vmem:[#allocation130_spill] sm:$0xff]  ;;  %v2339_v62 = vld [vmem:[%s8260_s27 + $0x34] sm:$0xf] }
 0x230   : > { %v2800_v4 = vrot.slane %v2798_v58, 4  ;;  %v4884_v14 = vor.u32 %v4883_v25, %v4880_v5  ;;  %v12172_v32 = vld [vmem:[#allocation127_spill] sm:$0xff]  ;;  %v4890_v37 = vshll.u32 %v6172_v7, 16  ;;  %v12176_v60 = vld [vmem:[#allocation138_spill] sm:$0xff] }
 0x231   : > { %v2804_v12 = vshrl.u32 %v6048_v18, 16  ;;  %v2807_v35 = vshll.u32 %v6048_v18, 16  ;;  %v6049_v40 = vcombine.low %v2680_v42, %v2681_v59  ;;  %v12174_v33 = vsel %vm8977_vm15, %v12172_v32, %v12173_v23  ;;  %v2340_v18 = vld [vmem:[%s8260_s27 + $0x38] sm:$0xf]  ;;  %v12177_v42 = vld [vmem:[#allocation139_spill] sm:$0xff]  ;;  %v12180_v32 = vld [vmem:[#allocation154_spill] sm:$0xff] }
 0x232   : > { %v2682_v41 = vmul.bf16 %v12174_v33, %v2337_v11  ;;  %v2801_v13 = vor.u32 %v2800_v4, %v2797_v10  ;;  %v10663_v38 = vsel %vm2776_vm2, %v4875_v44, %v4884_v14  ;;  %v4889_v11 = vrot.slane %v4887_v39, 3  ;;  %v2342_v10 = vld [vmem:[%s8260_s27 + $0x40] sm:$0xf]  ;;  %6910 = vmatmul.mubr.msk.bf16.gmra.mrb[20].mxu0 %vm963_vm3, %v10213_v48 }
 0x233   : > { %12175 = vst [vmem:[#allocation119_spill] sm:$0xff] %v10663_v38  ;;  %v2806_v2 = vrot.slane %v2804_v12, 3  ;;  %v2809_v58 = vrot.slane %v2807_v35, 4  ;;  %v2813_v5 = vshrl.u32 %v6049_v40, 16  ;;  %v2816_v25 = vshll.u32 %v6049_v40, 16  ;;  %v12179_v35 = vld [vmem:[#allocation136_spill] sm:$0xff]  ;;  %6913 = vmatprep.mubr.msk.bf16.mxu0 %vm7989_vm0, %v11717_v50 }
 0x234   : > { %v10668_v56 = vsel %vm2776_vm2, %v2792_v0, %v2801_v13  ;;  %v4892_v17 = vrot.slane %v4890_v37, 4  ;;  %v12178_v44 = vsel %vm8977_vm15, %v12176_v60, %v12177_v42  ;;  %v2482_v40 = vsel %vm8977_vm15, %v12180_v32, %v12179_v35  ;;  %v12181_v39 = vld [vmem:[#allocation146_spill] sm:$0xff]  ;;  %v12182_v37 = vld [vmem:[#allocation148_spill] sm:$0xff]  ;;  %6654 = vmatmul.mubr.msk.bf16.gmra.mrb[12].mxu1 %vm963_vm3, %v10263_v63  ;;  %v12189_v35 = vld [vmem:[#allocation153_spill] sm:$0xff] }
 0x235   : > { %v2683_v59 = vmul.bf16 %v12178_v44, %v2338_v54  ;;  %v2810_v4 = vor.u32 %v2809_v58, %v2806_v2  ;;  %v2815_v7 = vrot.slane %v2813_v5, 3  ;;  %v2818_v12 = vrot.slane %v2816_v25, 4  ;;  %v2341_v54 = vld [vmem:[%s8260_s27 + $0x3c] sm:$0xf]  ;;  %v12184_v5 = vld [vmem:[#allocation147_spill] sm:$0xff]  ;;  %6657 = vmatprep.mubr.msk.bf16.mxu1 %vm7989_vm0, %v11717_v50 }
 0x236   : > { %v4893_v0 = vor.u32 %v4892_v17, %v4889_v11  ;;  %v2684_v33 = vmul.bf16 %v2482_v40, %v2339_v62  ;;  %v12183_v38 = vsel %vm8977_vm15, %v12181_v39, %v12182_v37  ;;  %v12185_v25 = vld [vmem:[#allocation162_spill] sm:$0xff]  ;;  %v12186_v62 = vld [vmem:[#allocation152_spill] sm:$0xff]  ;;  %v12187_v11 = vld [vmem:[#allocation155_spill] sm:$0xff] }
 0x237   : > { %v6050_v23 = vcombine.low %v2682_v41, %v2683_v59  ;;  %v2685_v60 = vmul.bf16 %v12183_v38, %v2340_v18  ;;  %v10689_v2 = vsel %vm2776_vm2, %v2801_v13, %v2810_v4  ;;  %v2819_v58 = vor.u32 %v2818_v12, %v2815_v7  ;;  %v2343_v44 = vld [vmem:[%s8260_s27 + $0x44] sm:$0xf]  ;;  %v2344_v12 = vld [vmem:[%s8260_s27 + $0x48] sm:$0xf] }
 0x238   : > { %v2502_v41 = vsel %vm8977_vm15, %v12185_v25, %v12184_v5  ;;  %v12188_v17 = vsel %vm8977_vm15, %v12186_v62, %v12187_v11  ;;  %v10703_v48 = vsel %vm2776_vm2, %v4884_v14, %v4893_v0  ;;  %v6173_v13 = vcombine.low %v10187_v28, %v10190_v51  ;;  %v12190_v32 = vld [vmem:[#allocation166_spill] sm:$0xff]  ;;  %v12191_v5 = vld [vmem:[#allocation159_spill] sm:$0xff] }
 0x239   : > { %v2687_v38 = vmul.bf16 %v12188_v17, %v2342_v10  ;;  %v2822_v18 = vshrl.u32 %v6050_v23, 16  ;;  %v2825_v42 = vshll.u32 %v6050_v23, 16  ;;  %v10711_v59 = vsel %vm2776_vm2, %v2810_v4, %v2819_v58  ;;  %v2345_v62 = vld [vmem:[%s8260_s27 + $0x4c] sm:$0xf] }
 0x23a   : > { %v6051_v7 = vcombine.low %v2684_v33, %v2685_v60  ;;  %v2686_v10 = vmul.bf16 %v2502_v41, %v2341_v54  ;;  %v2522_v14 = vsel %vm8977_vm15, %v12190_v32, %v12189_v35  ;;  %v4896_v28 = vshrl.u32 %v6173_v13, 16  ;;  %6914 = vmatmul.mubr.msk.bf16.gmra.mrb[24].mxu0 %vm963_vm3, %v10249_v43 }
 0x23b   : > { %v4899_v51 = vshll.u32 %v6173_v13, 16  ;;  %v2824_v40 = vrot.slane %v2822_v18, 3  ;;  %v2827_v23 = vrot.slane %v2825_v42, 4  ;;  %v2688_v33 = vmul.bf16 %v2522_v14, %v2343_v44  ;;  %6917 = vmatprep.mubr.msk.bf16.mxu0 %vm7989_vm0, %v11717_v50 }
 0x23c   : > { %v2831_v63 = vshrl.u32 %v6051_v7, 16  ;;  %v2834_v4 = vshll.u32 %v6051_v7, 16  ;;  %v6052_v39 = vcombine.low %v2686_v10, %v2687_v38  ;;  %v4898_v37 = vrot.slane %v4896_v28, 3  ;;  %v2346_v7 = vld [vmem:[%s8260_s27 + $0x50] sm:$0xf]  ;;  %6658 = vmatmul.mubr.msk.bf16.gmra.mrb[16].mxu1 %vm963_vm3, %v10310_v61 }
 0x23d   : > { %v4901_v60 = vrot.slane %v4899_v51, 4  ;;  %v2828_v54 = vor.u32 %v2827_v23, %v2824_v40  ;;  %v12192_v25 = vsel %vm8977_vm15, %v12191_v5, %v12109_v16  ;;  %v12193_v10 = vld [vmem:[#allocation160_spill] sm:$0xff]  ;;  %6661 = vmatprep.mubr.msk.bf16.mxu1 %vm7989_vm0, %v11717_v50 }
 0x23e   : > { %v2689_v41 = vmul.bf16 %v12192_v25, %v2344_v12  ;;  %v2833_v11 = vrot.slane %v2831_v63, 3  ;;  %v2836_v17 = vrot.slane %v2834_v4, 4  ;;  %v2840_v13 = vshrl.u32 %v6052_v39, 16  ;;  %v12194_v28 = vld [vmem:[#allocation140_spill] sm:$0xff]  ;;  %v2349_v25 = vld [vmem:[%s8260_s27 + $0x5c] sm:$0xf] }
 0x23f   : > { %v2843_v18 = vshll.u32 %v6052_v39, 16  ;;  %v4902_v42 = vor.u32 %v4901_v60, %v4898_v37  ;;  %v10727_v38 = vsel %vm2776_vm2, %v2819_v58, %v2828_v54  ;;  %v2542_v35 = vsel %vm8977_vm15, %v10499_v27, %v12193_v10  ;;  %v2347_v27 = vld [vmem:[%s8260_s27 + $0x54] sm:$0xf]  ;;  %v2348_v63 = vld [vmem:[%s8260_s27 + $0x58] sm:$0xf] }
 0x240   : > { %v6053_v44 = vcombine.low %v2688_v33, %v2689_v41  ;;  %v2837_v16 = vor.u32 %v2836_v17, %v2833_v11  ;;  %v2842_v12 = vrot.slane %v2840_v13, 3  ;;  %v2690_v14 = vmul.bf16 %v2542_v35, %v2345_v62  ;;  %v12197_v37 = vld [vmem:[#allocation165_spill] sm:$0xff]  ;;  %v12198_v11 = vld [vmem:[#allocation171_spill] sm:$0xff] }
 0x241   : > { %v2845_v32 = vrot.slane %v2843_v18, 4  ;;  %v10739_v58 = vsel %vm2776_vm2, %v4893_v0, %v4902_v42  ;;  %v6174_v51 = vcombine.low %v12194_v28, %v10238_v47  ;;  %v12195_v0 = vld [vmem:[#allocation167_spill] sm:$0xff]  ;;  %v2562_v47 = vsel %vm8977_vm15, %v10504_v24, %v12197_v37  ;;  %v2350_v13 = vld [vmem:[%s8260_s27 + $0x60] sm:$0xf] }
 0x242   : > { %v2849_v40 = vshrl.u32 %v6053_v44, 16  ;;  %v2852_v23 = vshll.u32 %v6053_v44, 16  ;;  %v10748_v43 = vsel %vm2776_vm2, %v2828_v54, %v2837_v16  ;;  %v12196_v39 = vsel %vm8977_vm15, %v12195_v0, %v12112_v46  ;;  %v12200_v10 = vld [vmem:[#allocation173_spill] sm:$0xff]  ;;  %v2351_v28 = vld [vmem:[%s8260_s27 + $0x64] sm:$0xf]  ;;  %6918 = vmatmul.mubr.msk.bf16.gmra.mrb[28].mxu0 %vm963_vm3, %v10286_v3 }
 0x243   : > { %v2846_v4 = vor.u32 %v2845_v32, %v2842_v12  ;;  %v2691_v33 = vmul.bf16 %v12196_v39, %v2346_v7  ;;  %v4905_v60 = vshrl.u32 %v6174_v51, 16  ;;  %v4908_v61 = vshll.u32 %v6174_v51, 16  ;;  %v12203_v0 = vld [vmem:[#allocation178_spill] sm:$0xff]  ;;  %6921 = vmatprep.mubr.msk.bf16.mxu0 %vm7989_vm0, %v11717_v50 }
 0x244   : > { %v2851_v5 = vrot.slane %v2849_v40, 3  ;;  %v2854_v54 = vrot.slane %v2852_v23, 4  ;;  %v2692_v46 = vmul.bf16 %v2562_v47, %v2347_v27  ;;  %v12199_v24 = vsel %vm8977_vm15, %v12198_v11, %v12116_v20  ;;  %v12201_v20 = vld [vmem:[#allocation180_spill] sm:$0xff]  ;;  %6662 = vmatmul.mubr.msk.bf16.gmra.mrb[20].mxu1 %vm963_vm3, %v10353_v21 }
 0x245   : > { %v10763_v41 = vsel %vm2776_vm2, %v2837_v16, %v2846_v4  ;;  %v6054_v62 = vcombine.low %v2690_v14, %v2691_v33  ;;  %v2693_v17 = vmul.bf16 %v12199_v24, %v2348_v63  ;;  %v4907_v18 = vrot.slane %v4905_v60, 3  ;;  %v2352_v63 = vld [vmem:[%s8260_s27 + $0x68] sm:$0xf]  ;;  %6665 = vmatprep.mubr.msk.bf16.mxu1 %vm7989_vm0, %v11717_v50  ;;  %v2353_v11 = vld [vmem:[%s8260_s27 + $0x6c] sm:$0xf] }
 0x246   : > { %v4910_v44 = vrot.slane %v4908_v61, 4  ;;  %v2855_v7 = vor.u32 %v2854_v54, %v2851_v5  ;;  %v2582_v35 = vsel %vm8977_vm15, %v10512_v6, %v12200_v10  ;;  %v12202_v23 = vsel %vm8977_vm15, %v12201_v20, %v12122_v26  ;;  %v12204_v54 = vld [vmem:[#allocation185_spill] sm:$0xff] }
 0x247   : > { %v2858_v16 = vshrl.u32 %v6054_v62, 16  ;;  %v2861_v12 = vshll.u32 %v6054_v62, 16  ;;  %v6055_v32 = vcombine.low %v2692_v46, %v2693_v17  ;;  %v2694_v14 = vmul.bf16 %v2582_v35, %v2349_v25 }
 0x248   : > { %v4911_v51 = vor.u32 %v4910_v44, %v4907_v18  ;;  %v10777_v40 = vsel %vm2776_vm2, %v2846_v4, %v2855_v7  ;;  %v2695_v27 = vmul.bf16 %v12202_v23, %v2350_v13  ;;  %v2602_v6 = vsel %vm8977_vm15, %v10523_v55, %v12203_v0  ;;  %v2354_v13 = vld [vmem:[%s8260_s27 + $0x70] sm:$0xf] }
 0x249   : > { %v2860_v39 = vrot.slane %v2858_v16, 3  ;;  %v2863_v33 = vrot.slane %v2861_v12, 4  ;;  %v2867_v37 = vshrl.u32 %v6055_v32, 16  ;;  %v2870_v4 = vshll.u32 %v6055_v32, 16  ;;  %v12206_v18 = vld [vmem:[#allocation187_spill] sm:$0xff] }
 0x24a   : > { %v10794_v26 = vsel %vm2776_vm2, %v4902_v42, %v4911_v51  ;;  %v6175_v47 = vcombine.low %v10277_v52, %v10280_v19  ;;  %v6056_v60 = vcombine.low %v2694_v14, %v2695_v27  ;;  %v2696_v55 = vmul.bf16 %v2602_v6, %v2351_v28  ;;  %v5209_v12 = vld [vmem:[%s8260_s27 + $0x68] sm:$0xf]  ;;  %v12207_v27 = vld [vmem:[#allocation193_spill] sm:$0xff]  ;;  %6922 = vmatmul.mubr.msk.bf16.gmra.mrb[32].mxu0 %vm963_vm3, %v10340_v34 }
 0x24b   : > { %v2864_v3 = vor.u32 %v2863_v33, %v2860_v39  ;;  %v2869_v61 = vrot.slane %v2867_v37, 3  ;;  %v2872_v5 = vrot.slane %v2870_v4, 4  ;;  %v12205_v25 = vsel %vm8977_vm15, %v12204_v54, %v12118_v30  ;;  %v12209_v0 = vld [vmem:[#allocation31_spill] sm:$0xff]  ;;  %v12210_v6 = vld [vmem:[#allocation22_spill] sm:$0xff]  ;;  %v12213_v37 = vld [vmem:[#allocation21_spill] sm:$0xff]  ;;  %6925 = vmatprep.mubr.msk.bf16.mxu0 %vm7989_vm0, %v11717_v50 }
 0x24c   : > { %v2697_v62 = vmul.bf16 %v12205_v25, %v2352_v63  ;;  %v4914_v52 = vshrl.u32 %v6175_v47, 16  ;;  %v4917_v19 = vshll.u32 %v6175_v47, 16  ;;  %v2876_v42 = vshrl.u32 %v6056_v60, 16  ;;  %v12212_v33 = vld [vmem:[#allocation26_spill] sm:$0xff]  ;;  %v12215_v54 = vld [vmem:[#allocation35_spill] sm:$0xff]  ;;  %v12216_v25 = vld [vmem:[#allocation28_spill] sm:$0xff]  ;;  %6666 = vmatmul.mubr.msk.bf16.gmra.mrb[24].mxu1 %vm963_vm3, %v10396_v9 }
 0x24d   : > { %v2879_v46 = vshll.u32 %v6056_v60, 16  ;;  %v10809_v21 = vsel %vm2776_vm2, %v2855_v7, %v2864_v3  ;;  %v2873_v24 = vor.u32 %v2872_v5, %v2869_v61  ;;  %v2622_v30 = vsel %vm8977_vm15, %v10551_v49, %v12206_v18  ;;  %v2355_v60 = vld [vmem:[%s8260_s27 + $0x74] sm:$0xf]  ;;  %6669 = vmatprep.mubr.msk.bf16.mxu1 %vm7989_vm0, %v11717_v50 }
 0x24e   : > { %v6057_v17 = vcombine.low %v2696_v55, %v2697_v62  ;;  %v4916_v44 = vrot.slane %v4914_v52, 3  ;;  %v4919_v10 = vrot.slane %v4917_v19, 4  ;;  %v2878_v35 = vrot.slane %v2876_v42, 3  ;;  %v5212_v55 = vld [vmem:[%s8260_s27 + $0x74] sm:$0xf]  ;;  %v12219_v19 = vld [vmem:[#allocation30_spill] sm:$0xff] }
 0x24f   : > { %v2881_v16 = vrot.slane %v2879_v46, 4  ;;  %v10818_v32 = vsel %vm2776_vm2, %v2864_v3, %v2873_v24  ;;  %v2698_v28 = vmul.bf16 %v2622_v30, %v2353_v11  ;;  %v12208_v49 = vsel %vm8977_vm15, %v12207_v27, %v12128_v15  ;;  %v5211_v3 = vld [vmem:[%s8260_s27 + $0x70] sm:$0xf]  ;;  %v12218_v52 = vld [vmem:[#allocation37_spill] sm:$0xff]  ;;  %v12221_v30 = vld [vmem:[#allocation42_spill] sm:$0xff] }
 0x250   : > { %v2885_v7 = vshrl.u32 %v6057_v17, 16  ;;  %v2888_v14 = vshll.u32 %v6057_v17, 16  ;;  %v10820_v20 = vor.u32 %v4919_v10, %v4916_v44  ;;  %v2699_v63 = vmul.bf16 %v12208_v49, %v2354_v13  ;;  %v5213_v17 = vld [vmem:[%s8260_s27 + $0x78] sm:$0xf]  ;;  %v12224_v10 = vld [vmem:[#allocation43_spill] sm:$0xff] }
 0x251   : > { %v2882_v23 = vor.u32 %v2881_v16, %v2878_v35  ;;  %v12211_v39 = vmul.bf16 %v12209_v0, %v12210_v6  ;;  %v12214_v4 = vmul.bf16 %v12212_v33, %v12213_v37  ;;  %v2642_v15 = vsel %vm8977_vm15, %v10565_v53, %v10527_v29  ;;  %v5214_v53 = vld [vmem:[%s8260_s27 + $0x7c] sm:$0xf]  ;;  %v12225_v35 = vld [vmem:[#allocation36_spill] sm:$0xff]  ;;  %v12233_v37 = vld [vmem:[#allocation51_spill] sm:$0xff] }
 0x252   : > { %v2887_v61 = vrot.slane %v2885_v7, 3  ;;  %v2890_v5 = vrot.slane %v2888_v14, 4  ;;  %v12217_v62 = vmul.bf16 %v12215_v54, %v12216_v25  ;;  %v12220_v42 = vmul.bf16 %v12218_v52, %v12219_v19  ;;  %v12228_v7 = vld [vmem:[#allocation38_spill] sm:$0xff]  ;;  %v12243_v25 = vld [vmem:[#allocation53_spill] sm:$0xff] }
 0x253   : > { %v10833_v47 = vcombine.low %v12214_v4, %v12211_v39  ;;  %v5238_v11 = vmul.bf16 %v5209_v12, %v12088_v36  ;;  %v10857_v34 = vsel %vm2776_vm2, %v4911_v51, %v10820_v20  ;;  %v10860_v31 = vsel %vm2776_vm2, %v2873_v24, %v2882_v23  ;;  %v12222_v36 = vld [vmem:[#allocation33_spill] sm:$0xff]  ;;  %v12230_v14 = vld [vmem:[#allocation50_spill] sm:$0xff] }
 0x254   : > { %v10850_v46 = vcombine.low %v12220_v42, %v12217_v62  ;;  %v6058_v29 = vcombine.low %v2698_v28, %v2699_v63  ;;  %v2891_v13 = vor.u32 %v2890_v5, %v2887_v61  ;;  %v2700_v18 = vmul.bf16 %v2642_v15, %v2355_v60  ;;  %v12227_v51 = vld [vmem:[#allocation45_spill] sm:$0xff]  ;;  %v12231_v28 = vld [vmem:[#allocation40_spill] sm:$0xff]  ;;  %v12234_v4 = vld [vmem:[#allocation46_spill] sm:$0xff] }
 0x255   : > { %v12223_v44 = vmul.bf16 %v12221_v30, %v12222_v36  ;;  %v12226_v16 = vmul.bf16 %v12224_v10, %v12225_v35  ;;  %v12229_v24 = vmul.bf16 %v12227_v51, %v12228_v7  ;;  %v12232_v27 = vmul.bf16 %v12230_v14, %v12231_v28  ;;  %v12236_v61 = vld [vmem:[#allocation55_spill] sm:$0xff]  ;;  %v12245_v19 = vld [vmem:[#allocation110_spill] sm:$0xff]  ;;  %v12252_v14 = vld [vmem:[#allocation72_spill] sm:$0xff] }
 0x256   : > { %v5241_v9 = vmul.bf16 %v5212_v55, %v12101_v22  ;;  %v5240_v63 = vmul.bf16 %v5211_v3, %v12094_v1  ;;  %v2894_v0 = vshrl.u32 %v6058_v29, 16  ;;  %v2897_v6 = vshll.u32 %v6058_v29, 16  ;;  %v12237_v5 = vld [vmem:[#allocation47_spill] sm:$0xff]  ;;  %v12239_v22 = vld [vmem:[#allocation57_spill] sm:$0xff]  ;;  %v12240_v55 = vld [vmem:[#allocation52_spill] sm:$0xff] }
 0x257   : > { %v10872_v12 = vcombine.low %v12226_v16, %v12223_v44  ;;  %v10880_v49 = vcombine.low %v12232_v27, %v12229_v24  ;;  %v10887_v39 = vsel %vm2776_vm2, %v2882_v23, %v2891_v13  ;;  %v6059_v33 = vcombine.low %v2700_v18, %v2700_v18  ;;  %v12242_v3 = vld [vmem:[#allocation61_spill] sm:$0xff]  ;;  %v12247_v10 = vld [vmem:[#allocation58_spill] sm:$0xff]  ;;  %v12249_v16 = vld [vmem:[#allocation67_spill] sm:$0xff] }
 0x258   : > { %v12235_v60 = vmul.bf16 %v12233_v37, %v12234_v4  ;;  %v12238_v15 = vmul.bf16 %v12236_v61, %v12237_v5  ;;  %v12241_v1 = vmul.bf16 %v12239_v22, %v12240_v55  ;;  %v12244_v62 = vmul.bf16 %v12242_v3, %v12243_v25  ;;  %v12246_v44 = vld [vmem:[#allocation65_spill] sm:$0xff]  ;;  %v12250_v51 = vld [vmem:[#allocation59_spill] sm:$0xff]  ;;  %v12256_v4 = vld [vmem:[#allocation66_spill] sm:$0xff] }
 0x259   : > { %v5243_v23 = vmul.bf16 %v5214_v53, %v12129_v57  ;;  %v5242_v42 = vmul.bf16 %v5213_v17, %v12245_v19  ;;  %v2896_v29 = vrot.slane %v2894_v0, 3  ;;  %v2899_v18 = vrot.slane %v2897_v6, 4  ;;  %v12253_v28 = vld [vmem:[#allocation63_spill] sm:$0xff]  ;;  %v12255_v37 = vld [vmem:[#allocation73_spill] sm:$0xff]  ;;  %v12258_v0 = vld [vmem:[#allocation76_spill] sm:$0xff] }
 0x25a   : > { %v10895_v54 = vcombine.low %v12238_v15, %v12235_v60  ;;  %v10903_v52 = vcombine.low %v12244_v62, %v12241_v1  ;;  %v2903_v30 = vshrl.u32 %v6059_v33, 16  ;;  %v2906_v36 = vshll.u32 %v6059_v33, 16  ;;  %v12259_v6 = vld [vmem:[#allocation69_spill] sm:$0xff]  ;;  %v12261_v60 = vld [vmem:[#allocation78_spill] sm:$0xff]  ;;  %v12262_v61 = vld [vmem:[#allocation71_spill] sm:$0xff] }
 0x25b   : > { %v12248_v35 = vmul.bf16 %v12246_v44, %v12247_v10  ;;  %v12251_v7 = vmul.bf16 %v12249_v16, %v12250_v51  ;;  %v12254_v27 = vmul.bf16 %v12252_v14, %v12253_v28  ;;  %v12257_v57 = vmul.bf16 %v12255_v37, %v12256_v4  ;;  %v12264_v22 = vld [vmem:[#allocation82_spill] sm:$0xff]  ;;  %v12265_v55 = vld [vmem:[#allocation77_spill] sm:$0xff]  ;;  %v12267_v3 = vld [vmem:[#allocation87_spill] sm:$0xff] }
 0x25c   : > { %v2900_v17 = vor.u32 %v2899_v18, %v2896_v29  ;;  %v12260_v33 = vmul.bf16 %v12258_v0, %v12259_v6  ;;  %v12263_v5 = vmul.bf16 %v12261_v60, %v12262_v61  ;;  %v12266_v1 = vmul.bf16 %v12264_v22, %v12265_v55  ;;  %v12268_v25 = vld [vmem:[#allocation81_spill] sm:$0xff]  ;;  %v12271_v10 = vld [vmem:[#allocation92_spill] sm:$0xff] }
 0x25d   : > { %v10913_v24 = vcombine.low %v12251_v7, %v12248_v35  ;;  %v10921_v53 = vcombine.low %v12257_v57, %v12254_v27  ;;  %v12269_v62 = vmul.bf16 %v12267_v3, %v12268_v25  ;;  %v12270_v44 = vld [vmem:[#allocation125_spill] sm:$0xff]  ;;  %v10941_v29 = vrot.slane %v2903_v30, 3  ;;  %v12272_v35 = vld [vmem:[#allocation84_spill] sm:$0xff]  ;;  %v12274_v27 = vld [vmem:[#allocation19_spill] sm:$0xff] }
 0x25e   : > { %v10929_v15 = vcombine.low %v12263_v5, %v12260_v33  ;;  %6926 = vmatmul.mubr.msk.bf16.gmra.mrb[36].mxu0 %vm963_vm3, %v12270_v44  ;;  %v2908_v18 = vrot.slane %v2906_v36, 4  ;;  %v12273_v16 = vmul.bf16 %v12271_v10, %v12272_v35  ;;  %v10948_v7 = vcombine.low %v5240_v63, %v5241_v9  ;;  %6670 = vmatmul.mubr.msk.bf16.gmra.mrb[28].mxu1 %vm963_vm3, %v12274_v27  ;;  %v12275_v9 = vld [vmem:[#allocation143_spill] sm:$0xff]  ;;  %v12277_v63 = vld [vmem:[#allocation34_spill] sm:$0xff]  ;;  %v7730_v0 = vld [vmem:[%s8260_s27 + $0x18] sm:$0xf] }
 0x25f   : > { %v10937_v19 = vcombine.low %v12269_v62, %v12266_v1  ;;  %6929 = vmatprep.mubr.msk.bf16.mxu0 %vm7989_vm0, %v11717_v50  ;;  %v10953_v14 = vsel %vm2776_vm2, %v2891_v13, %v2900_v17  ;;  %v10955_v28 = vcombine.low %v5242_v42, %v5243_v23  ;;  %6673 = vmatprep.mubr.msk.bf16.mxu1 %vm7989_vm0, %v11717_v50  ;;  %v12276_v13 = vld [vmem:[#allocation23_spill] sm:$0xff]  ;;  %v12278_v23 = vld [vmem:[#allocation106_spill] sm:$0xff]  ;;  %v12279_v42 = vld [vmem:[#allocation41_spill] sm:$0xff] }
 0x260   : > { %v10946_v51 = vcombine.low %v5238_v11, %v12273_v16  ;;  %v2909_v30 = vor.u32 %v2908_v18, %v10941_v29  ;;  %v12280_v36 = vld [vmem:[#allocation151_spill] sm:$0xff]  ;;  %v12281_v33 = vld [vmem:[#allocation129_spill] sm:$0xff]  ;;  %v5246_v16 = vld [vmem:[#allocation5 + $0x10] sm:$0x3] }
 0x261   : > { %v7727_v37 = vld [vmem:[%s8260_s27 + $0xc] sm:$0x8]  ;;  %v7728_v4 = vld [vmem:[%s8260_s27 + $0x10] sm:$0xf]  ;;  %v12282_v55 = vld [vmem:[#allocation145_spill] sm:$0xff] }
 0x262   : > { %v10963_v11 = vsel %vm2776_vm2, %v2900_v17, %v2909_v30  ;;  %v6165_v57 = vcombine.low %v7727_v37, %v7728_v4  ;;  %v7729_v17 = vld [vmem:[%s8260_s27 + $0x14] sm:$0xf]  ;;  %v12283_v44 = vld [vmem:[#allocation107_spill] sm:$0xff]  ;;  %v5366_v30 = vsel %vm1009_vm1, %v5246_v16, 0  ;;  %v12295_v4 = vld [vmem:[#allocation18_spill] sm:$0xff] }
 0x263   : > { %v6166_v6 = vcombine.low %v7729_v17, %v7730_v0  ;;  %v12284_v35 = vld [vmem:[#allocation39_spill] sm:$0xff]  ;;  %v12290_v37 = vld [vmem:[#allocation157_spill] sm:$0xff] }
 0x264   : > { %v4825_v60 = vshrl.u32 %v6165_v57, 16  ;;  %v4828_v61 = vshll.u32 %v6165_v57, 16 }
 0x265   : > { %v4833_v5 = vshrl.u32 %v6166_v6, 16  ;;  %v4836_v22 = vshll.u32 %v6166_v6, 16 }
 0x266   : > { %6930 = vmatmul.mubr.msk.bf16.gmra.mrb[40].mxu0 %vm963_vm3, %v12275_v9  ;;  %6674 = vmatmul.mubr.msk.bf16.gmra.mrb[32].mxu1 %vm963_vm3, %v12276_v13  ;;  %v4827_v1 = vrot.slane %v4825_v60, 3  ;;  %v4830_v3 = vrot.slane %v4828_v61, 4  ;;  %v12285_v9 = vld [vmem:[#allocation121_spill] sm:$0xff]  ;;  %v12286_v13 = vld [vmem:[#allocation48_spill] sm:$0xff]  ;;  %v12296_v60 = vld [vmem:[#allocation131_spill] sm:$0xff] }
 0x267   : > { %6933 = vmatprep.mubr.msk.bf16.mxu0 %vm7989_vm0, %v11717_v50  ;;  %6677 = vmatprep.mubr.msk.bf16.mxu1 %vm7989_vm0, %v11717_v50  ;;  %v4835_v25 = vrot.slane %v4833_v5, 3  ;;  %v4838_v62 = vrot.slane %v4836_v22, 4  ;;  %v12297_v61 = vld [vmem:[#allocation137_spill] sm:$0xff] }
 0x268   : > { %v4831_v18 = vor.u32 %v4830_v3, %v4827_v1 }
 0x269   : > { %v4839_v10 = vor.u32 %v4838_v62, %v4835_v25 }
 0x26b   : > { %v4840_v27 = vsel %vm2776_vm2, %v4831_v18, %v4839_v10 }
 0x26e   : > { %6934 = vmatmul.mubr.msk.bf16.gmra.mrb[44].mxu0 %vm963_vm3, %v12277_v63  ;;  %6678 = vmatmul.mubr.msk.bf16.gmra.mrb[36].mxu1 %vm963_vm3, %v12278_v23  ;;  %v4849_v63 = vsel %vm2776_vm2, %v4839_v10, %v12286_v13  ;;  %v12287_v23 = vld [vmem:[#allocation149_spill] sm:$0xff]  ;;  %v7738_v13 = vld [vmem:[%s8260_s27 + $0x64] sm:$0xf] }
 0x26f   : > { %6937 = vmatprep.mubr.msk.bf16.mxu0 %vm7989_vm0, %v11717_v50  ;;  %6681 = vmatprep.mubr.msk.bf16.mxu1 %vm7989_vm0, %v11717_v50 }
 0x276   : > { %6938 = vmatmul.mubr.msk.bf16.gmra.mrb[48].mxu0 %vm963_vm3, %v12279_v42  ;;  %6682 = vmatmul.mubr.msk.bf16.gmra.mrb[40].mxu1 %vm963_vm3, %v12280_v36  ;;  %v12288_v42 = vld [vmem:[#allocation158_spill] sm:$0xff]  ;;  %v12289_v36 = vld [vmem:[#allocation20_spill] sm:$0xff] }
 0x277   : > { %6941 = vmatprep.mubr.msk.bf16.mxu0 %vm7989_vm0, %v11717_v50  ;;  %6685 = vmatprep.mubr.msk.bf16.mxu1 %vm7989_vm0, %v11717_v50 }
 0x27e   : > { %6942 = vmatmul.mubr.msk.bf16.gmra.mrb[52].mxu0 %vm963_vm3, %v12281_v33  ;;  %6686 = vmatmul.mubr.msk.bf16.gmra.mrb[44].mxu1 %vm963_vm3, %v12282_v55 }
 0x27f   : > { %6945 = vmatprep.mubr.msk.bf16.mxu0 %vm7989_vm0, %v11717_v50  ;;  %6689 = vmatprep.mubr.msk.bf16.mxu1 %vm7989_vm0, %v11717_v50 }
 0x286   : > { %6946 = vmatmul.mubr.msk.bf16.gmra.mrb[56].mxu0 %vm963_vm3, %v12283_v44  ;;  %6690 = vmatmul.mubr.msk.bf16.gmra.mrb[48].mxu1 %vm963_vm3, %v12284_v35 }
 0x287   : > { %6951 = vmatprep.mubr.msk.bf16.mxu0 %vm7989_vm0, %v11717_v50  ;;  %6693 = vmatprep.mubr.msk.bf16.mxu1 %vm7989_vm0, %v11717_v50 }
 0x28e   : > { %6952 = vmatmul.mubr.msk.bf16.vlgmr.msra.gmra.mrb[0].mxu0 %vm963_vm3, %v4840_v27  ;;  %6694 = vmatmul.mubr.msk.bf16.gmra.mrb[52].mxu1 %vm963_vm3, %v12285_v9 }
 0x28f   : > { %7012 = vmatpush3.bf16.msra.mxu0 %v5366_v30  ;;  %6955 = vmatprep.mubr.msk.bf16.mxu0 %vm7989_vm0, %v11717_v50  ;;  %v7736_v30 = vld [vmem:[%s8260_s27 + $0x5c] sm:$0xf] }
 0x290   : > { %6697 = vmatprep.mubr.msk.bf16.mxu1 %vm7989_vm0, %v11717_v50 }
 0x296   : > { %6956 = vmatmul.mubr.msk.bf16.gmra.mrb[4].mxu0 %vm963_vm3, %v4849_v63  ;;  %6698 = vmatmul.mubr.msk.bf16.gmra.mrb[56].mxu1 %vm963_vm3, %v12287_v23  ;;  %v7740_v23 = vld [vmem:[%s8260_s27 + $0x6c] sm:$0xf] }
 0x297   : > { %6959 = vmatprep.mubr.msk.bf16.mxu0 %vm7989_vm0, %v11717_v50  ;;  %6703 = vmatprep.mubr.msk.bf16.mxu1 %vm7989_vm0, %v11717_v50 }
 0x29e   : > { %6960 = vmatmul.mubr.msk.bf16.gmra.mrb[8].mxu0 %vm963_vm3, %v12288_v42  ;;  %6704 = vmatmul.mubr.msk.bf16.vlgmr.msra.gmra.mrb[0].mxu1 %vm963_vm3, %v10631_v45  ;;  %v12291_v45 = vld [vmem:[#allocation119_spill] sm:$0xff] }
 0x29f   : > { %6963 = vmatprep.mubr.msk.bf16.mxu0 %vm7989_vm0, %v11717_v50  ;;  %6707 = vmatprep.mubr.msk.bf16.mxu1 %vm7989_vm0, %v11717_v50 }
 0x2a0   : > { %7074 = vmatpush3.bf16.msra.mxu1 %v12289_v36  ;;  %v7742_v36 = vld [vmem:[%s8260_s27 + $0x74] sm:$0xf] }
 0x2a6   : > { %6964 = vmatmul.mubr.msk.bf16.gmra.mrb[12].mxu0 %vm963_vm3, %v12290_v37  ;;  %6708 = vmatmul.mubr.msk.bf16.gmra.mrb[4].mxu1 %vm963_vm3, %v10668_v56  ;;  %v12293_v56 = vld [vmem:[#allocation27_spill] sm:$0xff] }
 0x2a7   : > { %6967 = vmatprep.mubr.msk.bf16.mxu0 %vm7989_vm0, %v11717_v50  ;;  %6711 = vmatprep.mubr.msk.bf16.mxu1 %vm7989_vm0, %v11717_v50 }
 0x2ae   : > { %6968 = vmatmul.mubr.msk.bf16.gmra.mrb[16].mxu0 %vm963_vm3, %v10641_v8  ;;  %6712 = vmatmul.mubr.msk.bf16.gmra.mrb[8].mxu1 %vm963_vm3, %v10689_v2  ;;  %v12292_v8 = vld [vmem:[#allocation25_spill] sm:$0xff] }
 0x2af   : > { %6971 = vmatprep.mubr.msk.bf16.mxu0 %vm7989_vm0, %v11717_v50  ;;  %6715 = vmatprep.mubr.msk.bf16.mxu1 %vm7989_vm0, %v11717_v50  ;;  %v6176_v2 = vcombine.low %v12293_v56, %v12292_v8 }
 0x2b6   : > { %6972 = vmatmul.mubr.msk.bf16.gmra.mrb[20].mxu0 %vm963_vm3, %v12291_v45  ;;  %6716 = vmatmul.mubr.msk.bf16.gmra.mrb[12].mxu1 %vm963_vm3, %v10711_v59  ;;  %v4926_v59 = vshll.u32 %v6176_v2, 16 }
 0x2b7   : > { %6975 = vmatprep.mubr.msk.bf16.mxu0 %vm7989_vm0, %v11717_v50  ;;  %6719 = vmatprep.mubr.msk.bf16.mxu1 %vm7989_vm0, %v11717_v50 }
 0x2be   : > { %6976 = vmatmul.mubr.msk.bf16.gmra.mrb[24].mxu0 %vm963_vm3, %v10703_v48  ;;  %6720 = vmatmul.mubr.msk.bf16.gmra.mrb[16].mxu1 %vm963_vm3, %v10727_v38  ;;  %v4923_v48 = vshrl.u32 %v6176_v2, 16 }
 0x2bf   : > { %6979 = vmatprep.mubr.msk.bf16.mxu0 %vm7989_vm0, %v11717_v50  ;;  %6723 = vmatprep.mubr.msk.bf16.mxu1 %vm7989_vm0, %v11717_v50 }
 0x2c0   : > { %v4925_v38 = vrot.slane %v4923_v48, 3 }
 0x2c6   : > { %6980 = vmatmul.mubr.msk.bf16.gmra.mrb[28].mxu0 %vm963_vm3, %v10739_v58  ;;  %6724 = vmatmul.mubr.msk.bf16.gmra.mrb[20].mxu1 %vm963_vm3, %v10748_v43  ;;  %v4928_v58 = vrot.slane %v4926_v59, 4  ;;  %v12294_v43 = vld [vmem:[#allocation32_spill] sm:$0xff] }
 0x2c7   : > { %6983 = vmatprep.mubr.msk.bf16.mxu0 %vm7989_vm0, %v11717_v50  ;;  %6727 = vmatprep.mubr.msk.bf16.mxu1 %vm7989_vm0, %v11717_v50  ;;  %v6177_v57 = vcombine.low %v12295_v4, %v12294_v43 }
 0x2c9   : > { %v4932_v17 = vshrl.u32 %v6177_v57, 16  ;;  %v4935_v0 = vshll.u32 %v6177_v57, 16 }
 0x2cb   : > { %v4934_v6 = vrot.slane %v4932_v17, 3  ;;  %v4937_v33 = vrot.slane %v4935_v0, 4 }
 0x2cd   : > { %v4938_v5 = vor.u32 %v4937_v33, %v4934_v6 }
 0x2ce   : > { %6984 = vmatmul.mubr.msk.bf16.gmra.mrb[32].mxu0 %vm963_vm3, %v10794_v26  ;;  %6728 = vmatmul.mubr.msk.bf16.gmra.mrb[24].mxu1 %vm963_vm3, %v10763_v41  ;;  %v4929_v26 = vor.u32 %v4928_v58, %v4925_v38 }
 0x2cf   : > { %6987 = vmatprep.mubr.msk.bf16.mxu0 %vm7989_vm0, %v11717_v50  ;;  %6731 = vmatprep.mubr.msk.bf16.mxu1 %vm7989_vm0, %v11717_v50 }
 0x2d0   : > { %v4930_v41 = vsel %vm2776_vm2, %v10820_v20, %v4929_v26  ;;  %v4939_v1 = vsel %vm2776_vm2, %v4929_v26, %v4938_v5 }
 0x2d6   : > { %6988 = vmatmul.mubr.msk.bf16.gmra.mrb[36].mxu0 %vm963_vm3, %v10857_v34  ;;  %6732 = vmatmul.mubr.msk.bf16.gmra.mrb[28].mxu1 %vm963_vm3, %v10777_v40  ;;  %v6178_v34 = vcombine.low %v12297_v61, %v12296_v60  ;;  %v12298_v40 = vld [vmem:[#allocation24_spill] sm:$0xff] }
 0x2d7   : > { %6991 = vmatprep.mubr.msk.bf16.mxu0 %vm7989_vm0, %v11717_v50  ;;  %6735 = vmatprep.mubr.msk.bf16.mxu1 %vm7989_vm0, %v11717_v50  ;;  %v6179_v20 = vcombine.low %v12298_v40, %v12298_v40 }
 0x2d8   : > { %v4941_v22 = vshrl.u32 %v6178_v34, 16  ;;  %v4944_v55 = vshll.u32 %v6178_v34, 16 }
 0x2d9   : > { %v4950_v44 = vshrl.u32 %v6179_v20, 16  ;;  %v4953_v18 = vshll.u32 %v6179_v20, 16 }
 0x2da   : > { %v4943_v3 = vrot.slane %v4941_v22, 3  ;;  %v4946_v25 = vrot.slane %v4944_v55, 4 }
 0x2db   : > { %v4952_v10 = vrot.slane %v4950_v44, 3  ;;  %v4955_v35 = vrot.slane %v4953_v18, 4  ;;  %v11259_v18 = vld [vmem:[#allocation8] ss:$0 sm:$0xff] }
 0x2dc   : > { %v4947_v62 = vor.u32 %v4946_v25, %v4943_v3 }
 0x2dd   : > { %v4956_v16 = vor.u32 %v4955_v35, %v4952_v10  ;;  %v11261_v35 = vld [vmem:[#allocation10] ss:$0 sm:$0xff] }
 0x2de   : > { %6992 = vmatmul.mubr.msk.bf16.gmra.mrb[40].mxu0 %vm963_vm3, %v4930_v41  ;;  %6736 = vmatmul.mubr.msk.bf16.gmra.mrb[32].mxu1 %vm963_vm3, %v10809_v21  ;;  %v4948_v21 = vsel %vm2776_vm2, %v4938_v5, %v4947_v62 }
 0x2df   : > { %6995 = vmatprep.mubr.msk.bf16.mxu0 %vm7989_vm0, %v11717_v50  ;;  %6739 = vmatprep.mubr.msk.bf16.mxu1 %vm7989_vm0, %v11717_v50 }
 0x2e6   : > { %6996 = vmatmul.mubr.msk.bf16.gmra.mrb[44].mxu0 %vm963_vm3, %v4939_v1  ;;  %6740 = vmatmul.mubr.msk.bf16.gmra.mrb[36].mxu1 %vm963_vm3, %v10818_v32  ;;  %v4957_v32 = vsel %vm2776_vm2, %v4947_v62, %v4956_v16 }
 0x2e7   : > { %6999 = vmatprep.mubr.msk.bf16.mxu0 %vm7989_vm0, %v11717_v50  ;;  %6743 = vmatprep.mubr.msk.bf16.mxu1 %vm7989_vm0, %v11717_v50 }
 0x2ee   : > { %7000 = vmatmul.mubr.msk.bf16.gmra.mrb[48].mxu0 %vm963_vm3, %v4948_v21  ;;  %6744 = vmatmul.mubr.msk.bf16.gmra.mrb[40].mxu1 %vm963_vm3, %v10860_v31  ;;  %v12299_v31 = vld [vmem:[#allocation29_spill] sm:$0xff] }
 0x2ef   : > { %7003 = vmatprep.mubr.msk.bf16.mxu0 %vm7989_vm0, %v11717_v50  ;;  %6747 = vmatprep.mubr.msk.bf16.mxu1 %vm7989_vm0, %v11717_v50 }
 0x2f6   : > { %7004 = vmatmul.mubr.msk.bf16.gmra.mrb[52].mxu0 %vm963_vm3, %v4957_v32  ;;  %6748 = vmatmul.mubr.msk.bf16.gmra.mrb[44].mxu1 %vm963_vm3, %v10887_v39  ;;  %v7731_v39 = vld [vmem:[%s8260_s27 + $0x48] sm:$0xf] }
 0x2f7   : > { %7007 = vmatprep.mubr.msk.bf16.mxu0 %vm7989_vm0, %v11717_v50  ;;  %6751 = vmatprep.mubr.msk.bf16.mxu1 %vm7989_vm0, %v11717_v50 }
 0x2fe   : > { %7008 = vmatmul.mubr.msk.bf16.gmra.mrb[56].mxu0 %vm963_vm3, %v4952_v10  ;;  %6752 = vmatmul.mubr.msk.bf16.gmra.mrb[48].mxu1 %vm963_vm3, %v10953_v14  ;;  %v7732_v14 = vld [vmem:[%s8260_s27 + $0x4c] sm:$0xf] }
 0x2ff   : > { %7013 = vmatprep.mubr.msk.bf16.mxu0 %vm7989_vm0, %v11717_v50  ;;  %6755 = vmatprep.mubr.msk.bf16.mxu1 %vm7989_vm0, %v11717_v50 }
 0x306   : > { %7014 = vmatmul.mubr.msk.bf16.vlgmr.msra.gmra.mrb[0].mxu0 %vm963_vm3, %v12299_v31  ;;  %6756 = vmatmul.mubr.msk.bf16.gmra.mrb[52].mxu1 %vm963_vm3, %v10963_v11  ;;  %v6083_v11 = vcombine.low %v7731_v39, %v7732_v14 }
 0x307   : > { %7017 = vmatprep.mubr.msk.bf16.mxu0 %vm7989_vm0, %v11717_v50  ;;  %6759 = vmatprep.mubr.msk.bf16.mxu1 %vm7989_vm0, %v11717_v50 }
 0x30e   : > { %7018 = vmatmul.mubr.msk.bf16.gmra.mrb[4].mxu0 %vm963_vm3, %v10833_v47  ;;  %6760 = vmatmul.mubr.msk.bf16.gmra.mrb[56].mxu1 %vm963_vm3, %v10941_v29  ;;  %v7733_v47 = vld [vmem:[%s8260_s27 + $0x50] sm:$0xf]  ;;  %v7734_v29 = vld [vmem:[%s8260_s27 + $0x54] sm:$0xf] }
 0x30f   : > { %7021 = vmatprep.mubr.msk.bf16.mxu0 %vm7989_vm0, %v11717_v50  ;;  %6797 = vmatprep.mubr.msk.bf16.mxu1 %vm7989_vm0, %v11717_v50  ;;  %v6084_v27 = vcombine.low %v7733_v47, %v7734_v29 }
 0x316   : > { %7022 = vmatmul.mubr.msk.bf16.gmra.mrb[8].mxu0 %vm963_vm3, %v10850_v46  ;;  %6798 = vmatmul.mubr.msk.bf16.vlgmr.msra.gmra.mrb[32].mxu1 %vm963_vm3, %v6083_v11  ;;  %v7735_v46 = vld [vmem:[%s8260_s27 + $0x58] sm:$0xf] }
 0x317   : > { %7025 = vmatprep.mubr.msk.bf16.mxu0 %vm7989_vm0, %v11717_v50  ;;  %6801 = vmatprep.mubr.msk.bf16.mxu1 %vm7989_vm0, %v11717_v50  ;;  %v6085_v9 = vcombine.low %v7735_v46, %v7736_v30 }
 0x31e   : > { %7026 = vmatmul.mubr.msk.bf16.gmra.mrb[12].mxu0 %vm963_vm3, %v10872_v12  ;;  %6802 = vmatmul.mubr.msk.bf16.gmra.mrb[36].mxu1 %vm963_vm3, %v6084_v27  ;;  %v7737_v12 = vld [vmem:[%s8260_s27 + $0x60] sm:$0xf] }
 0x31f   : > { %7029 = vmatprep.mubr.msk.bf16.mxu0 %vm7989_vm0, %v11717_v50  ;;  %6805 = vmatprep.mubr.msk.bf16.mxu1 %vm7989_vm0, %v11717_v50  ;;  %v6086_v63 = vcombine.low %v7737_v12, %v7738_v13 }
 0x326   : > { %7030 = vmatmul.mubr.msk.bf16.gmra.mrb[16].mxu0 %vm963_vm3, %v10880_v49  ;;  %6806 = vmatmul.mubr.msk.bf16.gmra.mrb[40].mxu1 %vm963_vm3, %v6085_v9  ;;  %v7739_v49 = vld [vmem:[%s8260_s27 + $0x68] sm:$0xf] }
 0x327   : > { %7033 = vmatprep.mubr.msk.bf16.mxu0 %vm7989_vm0, %v11717_v50  ;;  %6809 = vmatprep.mubr.msk.bf16.mxu1 %vm7989_vm0, %v11717_v50  ;;  %v6087_v42 = vcombine.low %v7739_v49, %v7740_v23 }
 0x32e   : > { %7034 = vmatmul.mubr.msk.bf16.gmra.mrb[20].mxu0 %vm963_vm3, %v10895_v54  ;;  %6810 = vmatmul.mubr.msk.bf16.gmra.mrb[44].mxu1 %vm963_vm3, %v6086_v63  ;;  %v7741_v54 = vld [vmem:[%s8260_s27 + $0x70] sm:$0xf] }
 0x32f   : > { %7037 = vmatprep.mubr.msk.bf16.mxu0 %vm7989_vm0, %v11717_v50  ;;  %6813 = vmatprep.mubr.msk.bf16.mxu1 %vm7989_vm0, %v11717_v50  ;;  %v6088_v37 = vcombine.low %v7741_v54, %v7742_v36 }
 0x336   : > { %7038 = vmatmul.mubr.msk.bf16.gmra.mrb[24].mxu0 %vm963_vm3, %v10903_v52  ;;  %6814 = vmatmul.mubr.msk.bf16.gmra.mrb[48].mxu1 %vm963_vm3, %v6087_v42  ;;  %v7743_v52 = vld [vmem:[%s8260_s27 + $0x78] sm:$0x1] }
 0x337   : > { %7041 = vmatprep.mubr.msk.bf16.mxu0 %vm7989_vm0, %v11717_v50  ;;  %6817 = vmatprep.mubr.msk.bf16.mxu1 %vm7989_vm0, %v11717_v50  ;;  %v6089_v45 = vcombine.low %v7743_v52, %v7743_v52 }
 0x33e   : > { %7042 = vmatmul.mubr.msk.bf16.gmra.mrb[28].mxu0 %vm963_vm3, %v10913_v24  ;;  %6818 = vmatmul.mubr.msk.bf16.gmra.mrb[52].mxu1 %vm963_vm3, %v6088_v37  ;;  %v5215_v24 = vld [vmem:[%s8260_s27 + $0x80] sm:$0x1] }
 0x33f   : > { %7045 = vmatprep.mubr.msk.bf16.mxu0 %vm7989_vm0, %v11717_v50  ;;  %6821 = vmatprep.mubr.msk.bf16.mxu1 %vm7989_vm0, %v11717_v50 }
 0x346   : > { %7046 = vmatmul.mubr.msk.bf16.gmra.mrb[32].mxu0 %vm963_vm3, %v10921_v53  ;;  %6822 = vmatmul.mubr.msk.bf16.gmra.mrb[56].mxu1 %vm963_vm3, %v6089_v45  ;;  %v12300_v53 = vld [vmem:[#allocation128_spill] sm:$0xff] }
 0x347   : > { %7049 = vmatprep.mubr.msk.bf16.mxu0 %vm7989_vm0, %v11717_v50 }
 0x34e   : > { %7050 = vmatmul.mubr.msk.bf16.gmra.mrb[36].mxu0 %vm963_vm3, %v10929_v15  ;;  %v5244_v15 = vmul.bf16 %v5215_v24, %v12300_v53 }
 0x34f   : > { %7053 = vmatprep.mubr.msk.bf16.mxu0 %vm7989_vm0, %v11717_v50 }
 0x356   : > { %7054 = vmatmul.mubr.msk.bf16.gmra.mrb[40].mxu0 %vm963_vm3, %v10937_v19 }
 0x357   : > { %7057 = vmatprep.mubr.msk.bf16.mxu0 %vm7989_vm0, %v11717_v50 }
 0x35e   : > { %7058 = vmatmul.mubr.msk.bf16.gmra.mrb[44].mxu0 %vm963_vm3, %v10946_v51  ;;  %v6209_v51 = vcombine.low %v5244_v15, %v5244_v15 }
 0x35f   : > { %7061 = vmatprep.mubr.msk.bf16.mxu0 %vm7989_vm0, %v11717_v50 }
 0x366   : > { %7062 = vmatmul.mubr.msk.bf16.gmra.mrb[48].mxu0 %vm963_vm3, %v10948_v7 }
 0x367   : > { %7065 = vmatprep.mubr.msk.bf16.mxu0 %vm7989_vm0, %v11717_v50 }
 0x36e   : > { %7066 = vmatmul.mubr.msk.bf16.gmra.mrb[52].mxu0 %vm963_vm3, %v10955_v28 }
 0x36f   : > { %7069 = vmatprep.mubr.msk.bf16.mxu0 %vm7989_vm0, %v11717_v50  ;;  %vm5795_vm0 = vmand %vm1847_vm4, %vm3473_vm7 }
 0x371   : > { %v2993_v19 = vpop.f32.mrb[0].mxu1 }
 0x372   : > { %v6705_v8 = vpop.f32.mrb[1].mxu1 }
 0x373   : > { %v2996_v56 = vpop.f32.mrb[2].mxu1 }
 0x374   : > { %v6706_v2 = vpop.f32.mrb[3].mxu1 }
 0x376   : > { %7070 = vmatmul.mubr.msk.bf16.gmra.mrb[56].mxu0 %vm963_vm3, %v6209_v51 }
 0x379   : > { %v3001_v7 = vpop.f32.mrb[4].mxu1 }
 0x37a   : > { %v6709_v48 = vpop.f32.mrb[5].mxu1 }
 0x37b   : > { %v3004_v59 = vpop.f32.mrb[6].mxu1 }
 0x37c   : > { %v6710_v38 = vpop.f32.mrb[7].mxu1 }
 0x381   : > { %v3009_v58 = vpop.f32.mrb[8].mxu1 }
 0x382   : > { %v6713_v43 = vpop.f32.mrb[9].mxu1 }
 0x383   : > { %v3012_v4 = vpop.f32.mrb[10].mxu1 }
 0x384   : > { %v6714_v28 = vpop.f32.mrb[11].mxu1 }
 0x389   : > { %v11239_v57 = vpop.f32.mrb[12].mxu1 }
 0x38a   : > { %v6717_v50 = vpop.f32.mrb[13].mxu1 }
 0x38b   : > { %v11241_v26 = vpop.f32.mrb[14].mxu1 }
 0x38c   : > { %v6718_v17 = vpop.f32.mrb[15].mxu1 }
 0x391   : > { %v11243_v0 = vpop.f32.mrb[16].mxu1 }
 0x392   : > { %v6721_v41 = vpop.f32.mrb[17].mxu1 }
 0x393   : > { %v11245_v6 = vpop.f32.mrb[18].mxu1 }
 0x394   : > { %v6722_v33 = vpop.f32.mrb[19].mxu1 }
 0x399   : > { %v11247_v60 = vpop.f32.mrb[20].mxu1 }
 0x39a   : > { %v6725_v61 = vpop.f32.mrb[21].mxu1 }
 0x39b   : > { %v11249_v34 = vpop.f32.mrb[22].mxu1 }
 0x39c   : > { %v6726_v5 = vpop.f32.mrb[23].mxu1 }
 0x3a1   : > { %v11251_v22 = vpop.f32.mrb[24].mxu1 }
 0x3a2   : > { %v6729_v55 = vpop.f32.mrb[25].mxu1 }
 0x3a3   : > { %v11253_v40 = vpop.f32.mrb[26].mxu1 }
 0x3a4   : > { %v6730_v20 = vpop.f32.mrb[27].mxu1 }
 0x3a9   : > { %v11255_v1 = vpop.f32.mrb[28].mxu1 }
 0x3aa   : > { %v6733_v3 = vpop.f32.mrb[29].mxu1 }
 0x3ab   : > { %v11257_v25 = vpop.f32.mrb[30].mxu1 }
 0x3ac   : > { %v6734_v62 = vpop.f32.mrb[31].mxu1 }
 0x3d9   : > { %v5402_v44 = vpop.f32.mrb[0].mxu0 }
 0x3da   : > { %v7075_v21 = vadd.f32 %v5402_v44, %v2993_v19  ;;  %v7015_v10 = vpop.f32.mrb[1].mxu0 }
 0x3db   : > { %v5405_v16 = vpop.f32.mrb[2].mxu0 }
 0x3dc   : > { %v5556_v32 = vmul.f32 %v7075_v21, %v11259_v18  ;;  %v7076_v31 = vadd.f32 %v5405_v16, %v2996_v56  ;;  %v7016_v39 = vpop.f32.mrb[3].mxu0 }
 0x3de   : > { %v5592_v14 = vadd.f32 %v11261_v35, %v5556_v32  ;;  %v5557_v11 = vmul.f32 %v7076_v31, %v11259_v18 }
 0x3e0   : > { %v5593_v47 = vadd.f32 %v11261_v35, %v5557_v11  ;;  %v5621_v27 = vmax.f32 %v5592_v14, 0.0 }
 0x3e1   : > { %v5410_v29 = vpop.f32.mrb[4].mxu0 }
 0x3e2   : > { %v5622_v46 = vmax.f32 %v5593_v47, 0.0  ;;  %v7077_v30 = vadd.f32 %v5410_v29, %v3001_v7  ;;  %v7019_v9 = vpop.f32.mrb[5].mxu0 }
 0x3e3   : > { %v5413_v12 = vpop.f32.mrb[6].mxu0 }
 0x3e4   : > { %v6291_v13 = vpack.c.bf16 %v5622_v46, %v5621_v27  ;;  %v5558_v63 = vmul.f32 %v7077_v30, %v11259_v18  ;;  %v7078_v49 = vadd.f32 %v5413_v12, %v3004_v59  ;;  %v7020_v23 = vpop.f32.mrb[7].mxu0 }
 0x3e6   : > { %6292 = vst [vmem:[%s11269_s28] sm:$0xff] %v6291_v13   ;;  %v5594_v42 = vadd.f32 %v11261_v35, %v5558_v63  ;;  %v5559_v54 = vmul.f32 %v7078_v49, %v11259_v18 }
 0x3e8   : > { %v5595_v36 = vadd.f32 %v11261_v35, %v5559_v54  ;;  %v5623_v52 = vmax.f32 %v5594_v42, 0.0 }
 0x3e9   : > { %v5418_v37 = vpop.f32.mrb[8].mxu0  ;;  %v11275_v19 = vpop.f32.mrb[32].mxu1 }
 0x3ea   : > { %v5624_v45 = vmax.f32 %v5595_v36, 0.0  ;;  %v7079_v24 = vadd.f32 %v5418_v37, %v3009_v58  ;;  %v7023_v53 = vpop.f32.mrb[9].mxu0  ;;  %v6799_v7 = vpop.f32.mrb[33].mxu1 }
 0x3eb   : > { %v5421_v15 = vpop.f32.mrb[10].mxu0  ;;  %v11278_v48 = vpop.f32.mrb[34].mxu1 }
 0x3ec   : > { %v6296_v51 = vpack.c.bf16 %v5624_v45, %v5623_v52  ;;  %v5560_v8 = vmul.f32 %v7079_v24, %v11259_v18  ;;  %v7080_v56 = vadd.f32 %v5421_v15, %v3012_v4  ;;  %v7024_v2 = vpop.f32.mrb[11].mxu0  ;;  %v6800_v43 = vpop.f32.mrb[35].mxu1 }
 0x3ee   : > { %6358 = vst [vmem:[%s11269_s28 + $0x8] sm:$0xff] %v6296_v51   ;;  %v5596_v59 = vadd.f32 %v11261_v35, %v5560_v8  ;;  %v5561_v38 = vmul.f32 %v7080_v56, %v11259_v18 }
 0x3f0   : > { %v5597_v58 = vadd.f32 %v11261_v35, %v5561_v38  ;;  %v5625_v50 = vmax.f32 %v5596_v59, 0.0 }
 0x3f1   : > { %v5426_v28 = vpop.f32.mrb[12].mxu0  ;;  %v11285_v61 = vpop.f32.mrb[36].mxu1 }
 0x3f2   : > { %v5626_v17 = vmax.f32 %v5597_v58, 0.0  ;;  %v7081_v41 = vadd.f32 %v5426_v28, %v11239_v57  ;;  %v7027_v33 = vpop.f32.mrb[13].mxu0  ;;  %v6803_v62 = vpop.f32.mrb[37].mxu1 }
 0x3f3   : > { %v5429_v4 = vpop.f32.mrb[14].mxu0  ;;  %v11289_v44 = vpop.f32.mrb[38].mxu1 }
 0x3f4   : > { %v6301_v5 = vpack.c.bf16 %v5626_v17, %v5625_v50  ;;  %v5562_v55 = vmul.f32 %v7081_v41, %v11259_v18  ;;  %v7082_v20 = vadd.f32 %v5429_v4, %v11241_v26  ;;  %v7028_v3 = vpop.f32.mrb[15].mxu0  ;;  %v6804_v57 = vpop.f32.mrb[39].mxu1 }
 0x3f6   : > { %6359 = vst [vmem:[%s11269_s28 + $0x10] sm:$0xff] %v6301_v5   ;;  %v5598_v21 = vadd.f32 %v11261_v35, %v5562_v55  ;;  %v5563_v10 = vmul.f32 %v7082_v20, %v11259_v18 }
 0x3f8   : > { %v5599_v16 = vadd.f32 %v11261_v35, %v5563_v10  ;;  %v5627_v31 = vmax.f32 %v5598_v21, 0.0 }
 0x3f9   : > { %v5434_v32 = vpop.f32.mrb[16].mxu0  ;;  %v11296_v47 = vpop.f32.mrb[40].mxu1 }
 0x3fa   : > { %v5628_v39 = vmax.f32 %v5599_v16, 0.0  ;;  %v7083_v14 = vadd.f32 %v5434_v32, %v11243_v0  ;;  %v7031_v11 = vpop.f32.mrb[17].mxu0  ;;  %v6807_v9 = vpop.f32.mrb[41].mxu1 }
 0x3fb   : > { %v5437_v26 = vpop.f32.mrb[18].mxu0  ;;  %v11300_v12 = vpop.f32.mrb[42].mxu1 }
 0x3fc   : > { %v6306_v29 = vpack.c.bf16 %v5628_v39, %v5627_v31  ;;  %v5564_v27 = vmul.f32 %v7083_v14, %v11259_v18  ;;  %v7084_v46 = vadd.f32 %v5437_v26, %v11245_v6  ;;  %v7032_v30 = vpop.f32.mrb[19].mxu0  ;;  %v6808_v0 = vpop.f32.mrb[43].mxu1 }
 0x3fe   : > { %6360 = vst [vmem:[%s11269_s28 + $0x18] sm:$0xff] %v6306_v29   ;;  %v5600_v13 = vadd.f32 %v11261_v35, %v5564_v27  ;;  %v5565_v63 = vmul.f32 %v7084_v46, %v11259_v18 }
 0x400   : > { %v5601_v49 = vadd.f32 %v11261_v35, %v5565_v63  ;;  %v5629_v42 = vmax.f32 %v5600_v13, 0.0 }
 0x401   : > { %v5442_v23 = vpop.f32.mrb[20].mxu0  ;;  %v11307_v52 = vpop.f32.mrb[44].mxu1 }
 0x402   : > { %v5630_v54 = vmax.f32 %v5601_v49, 0.0  ;;  %v7085_v36 = vadd.f32 %v5442_v23, %v11247_v60  ;;  %v7035_v37 = vpop.f32.mrb[21].mxu0  ;;  %v6811_v51 = vpop.f32.mrb[45].mxu1 }
 0x403   : > { %v5445_v6 = vpop.f32.mrb[22].mxu0  ;;  %v11311_v8 = vpop.f32.mrb[46].mxu1 }
 0x404   : > { %v6311_v45 = vpack.c.bf16 %v5630_v54, %v5629_v42  ;;  %v5566_v24 = vmul.f32 %v7085_v36, %v11259_v18  ;;  %v7086_v53 = vadd.f32 %v5445_v6, %v11249_v34  ;;  %v7036_v15 = vpop.f32.mrb[23].mxu0  ;;  %v6812_v60 = vpop.f32.mrb[47].mxu1 }
 0x406   : > { %6361 = vst [vmem:[%s11269_s28 + $0x20] sm:$0xff] %v6311_v45   ;;  %v5602_v56 = vadd.f32 %v11261_v35, %v5566_v24  ;;  %v5567_v2 = vmul.f32 %v7086_v53, %v11259_v18 }
 0x408   : > { %v5603_v7 = vadd.f32 %v11261_v35, %v5567_v2  ;;  %v5631_v38 = vmax.f32 %v5602_v56, 0.0 }
 0x409   : > { %v5450_v59 = vpop.f32.mrb[24].mxu0  ;;  %v11318_v50 = vpop.f32.mrb[48].mxu1 }
 0x40a   : > { %v5632_v43 = vmax.f32 %v5603_v7, 0.0  ;;  %v7087_v58 = vadd.f32 %v5450_v59, %v11251_v22  ;;  %v7039_v28 = vpop.f32.mrb[25].mxu0  ;;  %v6815_v5 = vpop.f32.mrb[49].mxu1 }
 0x40b   : > { %v5453_v34 = vpop.f32.mrb[26].mxu0  ;;  %v11322_v55 = vpop.f32.mrb[50].mxu1 }
 0x40c   : > { %v6316_v17 = vpack.c.bf16 %v5632_v43, %v5631_v38  ;;  %v5568_v41 = vmul.f32 %v7087_v58, %v11259_v18  ;;  %v7088_v33 = vadd.f32 %v5453_v34, %v11253_v40  ;;  %v7040_v4 = vpop.f32.mrb[27].mxu0  ;;  %v6816_v22 = vpop.f32.mrb[51].mxu1 }
 0x40e   : > { %6362 = vst [vmem:[%s11269_s28 + $0x28] sm:$0xff] %v6316_v17   ;;  %v5604_v20 = vadd.f32 %v11261_v35, %v5568_v41  ;;  %v5569_v3 = vmul.f32 %v7088_v33, %v11259_v18 }
 0x410   : > { %v5605_v62 = vadd.f32 %v11261_v35, %v5569_v3  ;;  %v5633_v10 = vmax.f32 %v5604_v20, 0.0 }
 0x411   : > { %v5458_v21 = vpop.f32.mrb[28].mxu0  ;;  %v11329_v31 = vpop.f32.mrb[52].mxu1 }
 0x412   : > { %v5634_v57 = vmax.f32 %v5605_v62, 0.0  ;;  %v7089_v16 = vadd.f32 %v5458_v21, %v11255_v1  ;;  %v7043_v32 = vpop.f32.mrb[29].mxu0  ;;  %v6819_v29 = vpop.f32.mrb[53].mxu1 }
 0x413   : > { %v5461_v40 = vpop.f32.mrb[30].mxu0  ;;  %v11333_v27 = vpop.f32.mrb[54].mxu1 }
 0x414   : > { %v6321_v39 = vpack.c.bf16 %v5634_v57, %v5633_v10  ;;  %v5570_v14 = vmul.f32 %v7089_v16, %v11259_v18  ;;  %v7090_v11 = vadd.f32 %v5461_v40, %v11257_v25  ;;  %v7044_v26 = vpop.f32.mrb[31].mxu0  ;;  %v6820_v1 = vpop.f32.mrb[55].mxu1 }
 0x416   : > { %6363 = vst [vmem:[%s11269_s28 + $0x30] sm:$0xff] %v6321_v39   ;;  %v5606_v46 = vadd.f32 %v11261_v35, %v5570_v14  ;;  %v5571_v30 = vmul.f32 %v7090_v11, %v11259_v18 }
 0x418   : > { %v5607_v9 = vadd.f32 %v11261_v35, %v5571_v30  ;;  %v5635_v63 = vmax.f32 %v5606_v46, 0.0 }
 0x419   : > { %v5466_v13 = vpop.f32.mrb[32].mxu0  ;;  %v11340_v42 = vpop.f32.mrb[56].mxu1 }
 0x41a   : > { %v5636_v0 = vmax.f32 %v5607_v9, 0.0  ;;  %v7091_v49 = vadd.f32 %v5466_v13, %v11275_v19  ;;  %v7047_v23 = vpop.f32.mrb[33].mxu0  ;;  %v6823_v45 = vpop.f32.mrb[57].mxu1 }
 0x41b   : > { %v5469_v25 = vpop.f32.mrb[34].mxu0  ;;  %v3441_v24 = vpop.f32.mrb[58].mxu1 }
 0x41c   : > { %v6326_v54 = vpack.c.bf16 %v5636_v0, %v5635_v63  ;;  %v5572_v36 = vmul.f32 %v7091_v49, %v11259_v18  ;;  %v7092_v37 = vadd.f32 %v5469_v25, %v11278_v48  ;;  %v7048_v6 = vpop.f32.mrb[35].mxu0  ;;  %v6824_v51 = vpop.f32.mrb[59].mxu1 }
 0x41e   : > { %6364 = vst [vmem:[%s11269_s28 + $0x38] sm:$0xff] %v6326_v54   ;;  %v5608_v53 = vadd.f32 %v11261_v35, %v5572_v36  ;;  %v5573_v15 = vmul.f32 %v7092_v37, %v11259_v18 }
 0x420   : > { %v5609_v19 = vadd.f32 %v11261_v35, %v5573_v15  ;;  %v5637_v2 = vmax.f32 %v5608_v53, 0.0 }
 0x421   : > { %v5474_v56 = vpop.f32.mrb[36].mxu0 }
 0x422   : > { %v5638_v60 = vmax.f32 %v5609_v19, 0.0  ;;  %v7093_v7 = vadd.f32 %v5474_v56, %v11285_v61  ;;  %v7051_v59 = vpop.f32.mrb[37].mxu0 }
 0x423   : > { %v5477_v38 = vpop.f32.mrb[38].mxu0 }
 0x424   : > { %v6331_v48 = vpack.c.bf16 %v5638_v60, %v5637_v2  ;;  %v5574_v43 = vmul.f32 %v7093_v7, %v11259_v18  ;;  %v7094_v58 = vadd.f32 %v5477_v38, %v11289_v44  ;;  %v7052_v28 = vpop.f32.mrb[39].mxu0 }
 0x426   : > { %6365 = vst [vmem:[%s11269_s28 + $0x40] sm:$0xff] %v6331_v48   ;;  %v5610_v34 = vadd.f32 %v11261_v35, %v5574_v43  ;;  %v5575_v17 = vmul.f32 %v7094_v58, %v11259_v18 }
 0x428   : > { %v5611_v41 = vadd.f32 %v11261_v35, %v5575_v17  ;;  %v5639_v4 = vmax.f32 %v5610_v34, 0.0 }
 0x429   : > { %v5482_v33 = vpop.f32.mrb[40].mxu0 }
 0x42a   : > { %v5640_v5 = vmax.f32 %v5611_v41, 0.0  ;;  %v7095_v61 = vadd.f32 %v5482_v33, %v11296_v47  ;;  %v7055_v20 = vpop.f32.mrb[41].mxu0 }
 0x42b   : > { %v5485_v3 = vpop.f32.mrb[42].mxu0 }
 0x42c   : > { %v6336_v22 = vpack.c.bf16 %v5640_v5, %v5639_v4  ;;  %v5576_v62 = vmul.f32 %v7095_v61, %v11259_v18  ;;  %v7096_v44 = vadd.f32 %v5485_v3, %v11300_v12  ;;  %v7056_v21 = vpop.f32.mrb[43].mxu0  ;;  %v5796_v5 = vld [vmem:[%s11269_s28 + $0x70] sm:$0x1] }
 0x42e   : > { %6366 = vst [vmem:[%s11269_s28 + $0x48] sm:$0xff] %v6336_v22   ;;  %v5612_v10 = vadd.f32 %v11261_v35, %v5576_v62  ;;  %v5577_v57 = vmul.f32 %v7096_v44, %v11259_v18 }
 0x430   : > { %v5613_v16 = vadd.f32 %v11261_v35, %v5577_v57  ;;  %v5641_v40 = vmax.f32 %v5612_v10, 0.0 }
 0x431   : > { %v5490_v32 = vpop.f32.mrb[44].mxu0 }
 0x432   : > { %v5642_v39 = vmax.f32 %v5613_v16, 0.0  ;;  %v7097_v47 = vadd.f32 %v5490_v32, %v11307_v52  ;;  %v7059_v14 = vpop.f32.mrb[45].mxu0 }
 0x433   : > { %v5493_v11 = vpop.f32.mrb[46].mxu0 }
 0x434   : > { %v6341_v26 = vpack.c.bf16 %v5642_v39, %v5641_v40  ;;  %v5578_v29 = vmul.f32 %v7097_v47, %v11259_v18  ;;  %v7098_v12 = vadd.f32 %v5493_v11, %v11311_v8  ;;  %v7060_v46 = vpop.f32.mrb[47].mxu0 }
 0x436   : > { %6367 = vst [vmem:[%s11269_s28 + $0x50] sm:$0xff] %v6341_v26   ;;  %v5614_v30 = vadd.f32 %v11261_v35, %v5578_v29  ;;  %v5579_v1 = vmul.f32 %v7098_v12, %v11259_v18 }
 0x438   : > { %v5615_v9 = vadd.f32 %v11261_v35, %v5579_v1  ;;  %v5643_v63 = vmax.f32 %v5614_v30, 0.0 }
 0x439   : > { %v5498_v13 = vpop.f32.mrb[48].mxu0 }
 0x43a   : > { %v5644_v0 = vmax.f32 %v5615_v9, 0.0  ;;  %v7099_v52 = vadd.f32 %v5498_v13, %v11318_v50  ;;  %v7063_v49 = vpop.f32.mrb[49].mxu0 }
 0x43b   : > { %v5501_v23 = vpop.f32.mrb[50].mxu0 }
 0x43c   : > { %v6346_v25 = vpack.c.bf16 %v5644_v0, %v5643_v63  ;;  %v5580_v54 = vmul.f32 %v7099_v52, %v11259_v18  ;;  %v7100_v8 = vadd.f32 %v5501_v23, %v11322_v55  ;;  %v7064_v36 = vpop.f32.mrb[51].mxu0 }
 0x43e   : > { %6368 = vst [vmem:[%s11269_s28 + $0x58] sm:$0xff] %v6346_v25   ;;  %v5616_v37 = vadd.f32 %v11261_v35, %v5580_v54  ;;  %v5581_v6 = vmul.f32 %v7100_v8, %v11259_v18 }
 0x440   : > { %v5617_v45 = vadd.f32 %v11261_v35, %v5581_v6  ;;  %v5645_v53 = vmax.f32 %v5616_v37, 0.0 }
 0x441   : > { %v5506_v24 = vpop.f32.mrb[52].mxu0 }
 0x442   : > { %v5646_v15 = vmax.f32 %v5617_v45, 0.0  ;;  %v7101_v50 = vadd.f32 %v5506_v24, %v11329_v31  ;;  %v7067_v51 = vpop.f32.mrb[53].mxu0 }
 0x443   : > { %v5509_v19 = vpop.f32.mrb[54].mxu0 }
 0x444   : > { %v6351_v56 = vpack.c.bf16 %v5646_v15, %v5645_v53  ;;  %v5582_v2 = vmul.f32 %v7101_v50, %v11259_v18  ;;  %v7102_v55 = vadd.f32 %v5509_v19, %v11333_v27  ;;  %v7068_v60 = vpop.f32.mrb[55].mxu0 }
 0x446   : > { %6369 = vst [vmem:[%s11269_s28 + $0x60] sm:$0xff] %v6351_v56   ;;  %v5618_v7 = vadd.f32 %v11261_v35, %v5582_v2  ;;  %v5583_v59 = vmul.f32 %v7102_v55, %v11259_v18 }
 0x448   : > { %v5619_v38 = vadd.f32 %v11261_v35, %v5583_v59  ;;  %v5647_v48 = vmax.f32 %v5618_v7, 0.0 }
 0x449   : > { %v5514_v31 = vpop.f32.mrb[56].mxu0 }
 0x44a   : > { %v5648_v43 = vmax.f32 %v5619_v38, 0.0  ;;  %v7103_v58 = vadd.f32 %v5514_v31, %v11340_v42  ;;  %v7071_v28 = vpop.f32.mrb[57].mxu0 }
 0x44b   : > { %v5517_v34 = vpop.f32.mrb[58].mxu0 }
 0x44c   : > { %v6356_v27 = vpack.c.bf16 %v5648_v43, %v5647_v48  ;;  %v5584_v17 = vmul.f32 %v7103_v58, %v11259_v18  ;;  %v7072_v41 = vpop.f32.mrb[59].mxu0 }
 0x44e   : > { %6370 = vst [vmem:[%s11269_s28 + $0x68] sm:$0xff] %v6356_v27   ;;  %v5620_v33 = vadd.f32 %v11261_v35, %v5584_v17 }
 0x450   : > { %v5649_v4 = vmax.f32 %v5620_v33, 0.0 }
 0x452   : > { %v6287_v42 = vpack.c.bf16 %v5649_v4, %v5649_v4 }
 0x454   : > { %v5797_v18 = vsel %vm5795_vm0, %v6287_v42, %v5796_v5 }
 0x455   : > { %5798 = vst [vmem:[%s11269_s28 + $0x70] sm:$0x1] %v5797_v18 }
 0x456   : > { %7899 = shalt.err (!%p7896_p0)
}
 0x457   : > { %s7900_s14 = scalar_lea.hbm %s11395_s12, 1856  ;;  %s7904_s9 = scalar_lea.hbm %s11452_s5, 3712 }
 0x458   : > { %p7901_p4 = scmp.ne.s32.totalorder %s11395_s12, %s7900_s14  ;;  %p7905_p12 = scmp.lt.u32.totalorder %s11395_s12, %s11452_s5 }
 0x459   : > { %p7906_p1 = scmp.lt.u32.totalorder %s7904_s9, %s7900_s14  ;;  %p7908_p8 = scmp.lt.u32.totalorder %s7900_s14, %s11395_s12 }
 0x45a   : > { %p7902_p13 = pnand %p7901_p4, %p8200_p5 }
 0x45b   : > { %p7907_p11 = por %p7906_p1, %p7905_p12 }
 0x45c   : > { %p7903_p2 = pneg %p7902_p13 }
 0x45d   : > { %p7909_p6 = por %p7908_p8, %p7907_p11 }
 0x45f   : > { %p7910_p10 = pnand %p7909_p6, %p7903_p2 }
 0x461   : > { %7913 = shalt.err (!%p7910_p10)
}
 0x462   : > { %s7992_s28 = smov 64   ;;  %s7993_s30 = smov 4  }
 0x463   : > { %7547 = dma.vmem_to_hbm [thread:$0]  (%p8200_p5), %s11397_s10, 1856, %s11395_s12, %s5800_s21, %s7992_s28, %s7992_s28, %s7993_s30  }
 0x464 PF: > { %s12301_s7 = sld [smem:[#allocation16_spill]]  ;;  %s12302_s17 = sld [smem:[#allocation17_spill]] }
 0x465   : > { %p12304_p7 = scmp.ge.s32.totalorder %s7976_s23, 2 }
 0x46a   : > { %s5829_s18 = sand.u32 1, %s12301_s7   ;;  %p12303_p3 = scmp.ne.s32.totalorder %s12302_s17, 0 }
 0x46b   : > { %s5830_s11 = scalar_lea.sflag [#allocation4], %s5829_s18 }
 0x46c   : > { %p7567_p9 = pnand %p12304_p7, %p12303_p3 }
 0x46e   : > { %7951 = dma.done.wait (!%p7567_p9), %s5830_s11, 1856  }
 0x46f   : > { %7953 = vsyncadd (!%p7567_p9), %s5830_s11, 4294965440  ;;  %s23_s23 = sadd.s32 1, %s7976_s23   ;;  %s12305_s18 = smov %s7960_s19 }
 0x470   : > { %p20_p0 = scmp.ge.s32.totalorder %s23_s23, 4   ;;  %s12306_s19 = smov %s7964_s20 }
 0x471   : > { %s12307_s20 = smov %s8212_s25  ;;  %s12308_s21 = smov %s7972_s22 }
 0x472   : > { %s12309_s22 = smov %s12311_s24  ;;  %22 = sbr.rel (!%p20_p0) target bundleno = 8 (0x8), region = 113 }
 0x479   :  { %5835 = vsyncpa [#allocation3], 1 }
 0x47a   :  { %5837 = vsyncpa [#allocation3 + $0x1], 1 }
 0x47b   :  { %5838 = vsyncpa [#allocation6], 1 }
 0x47c   :  { %5839 = vsyncpa [#allocation9], 1 }
 0x47d   :  { %5840 = vsyncpa [#allocation4], 1 }
 0x47e   :  { %5842 = vsyncpa [#allocation4 + $0x1], 1 }

// kernel: test_et_al_forward.6
= control target key start
LH: loop header
LB: loop body
LE: loop exit
PB: predicated region body
PF: predicated region fallthrough
CT: control target
= control target key end

     0   :  { %s5530_s0 = inlined_call_operand.hbm [shape: bf16[2,17,256], index: 0, kind: input, shape index: {}]   ;;  %s5531_s1 = inlined_call_operand.hbm [shape: bf16[9,256,512], index: 1, kind: input, shape index: {}]   ;;  %s5532_s2 = inlined_call_operand.hbm [shape: bf16[3,9,1], index: 2, kind: input, shape index: {}]   ;;  %s5533_s3 = inlined_call_operand.hbm [shape: f32[1,512], index: 3, kind: input, shape index: {}]   ;;  %s5534_s4 = inlined_call_operand.hbm [shape: f32[1,512], index: 4, kind: input, shape index: {}]   ;;  %s5535_s5 = inlined_call_operand.hbm [shape: bf16[2,9,512], index: 5, kind: output, shape index: {}]  }
   0x1   :  { %5564 = sst [smem:[#allocation32_spill]] %s5532_s2 }
   0x2   :  { %5565 = sst [smem:[#allocation33_spill]] %s5533_s3 }
   0x3   :  { %5566 = sst [smem:[#allocation34_spill]] %s5535_s5 }
   0x4   :  { %10 = vsyncpa [#allocation3], 0 }
   0x5   :  { %12 = vsyncpa [#allocation3 + $0x1], 0 }
   0x6   :  { %13 = vsyncpa [#allocation6], 0 }
   0x7   :  { %15 = vsyncpa [#allocation6 + $0x1], 0 }
   0x8   :  { %16 = vsyncpa [#allocation9], 0 }
   0x9   :  { %18 = vsyncpa [#allocation9 + $0x1], 0 }
   0xa   :  { %19 = vsyncpa [#allocation4], 0 }
   0xb   :  { %21 = vsyncpa [#allocation4 + $0x1], 0  ;;  %s4654_s18 = smov 0   ;;  %s4656_s19 = smov 0  }
   0xc   :  { %s4658_s20 = smov 0   ;;  %s4660_s21 = smov 0  }
   0xd   :  { %s4662_s22 = smov 0   ;;  %s4664_s23 = smov 0  }
   0xe   :  { %s4666_s24 = smov 0   ;;  %s4668_s25 = smov 0  }
   0xf   :  { %s4670_s26 = smov 0   ;;  %s4672_s27 = smov 0  }
  0x10   :  { %s4674_s28 = smov 0   ;;  %s4676_s29 = smov 0  }
  0x11   :  { %s4678_s30 = smov 0   ;;  %s4680_s6 = smov 0  }
  0x12 LB: > { %5567 = sst [smem:[#allocation17_spill]] %s4554_s18  ;;  %s4723_s7 = sadd.s32 4294967295, %s4606_s6   ;;  %s4606_s6 = sphi %s4680_s6, %s27_s6   ;;  %s4602_s30 = sphi %s4678_s30, %s5647_s30   ;;  %s4598_s29 = sphi %s4676_s29, %s5636_s29   ;;  %s4594_s28 = sphi %s4674_s28, %s5646_s28   ;;  %s4590_s27 = sphi %s4672_s27, %s5645_s27   ;;  %s4586_s26 = sphi %s4670_s26, %s5644_s26   ;;  %s4582_s25 = sphi %s4668_s25, %s5643_s25   ;;  %s4578_s24 = sphi %s4666_s24, %s5634_s24   ;;  %s4574_s23 = sphi %s4664_s23, %s5642_s23   ;;  %s4570_s22 = sphi %s4662_s22, %s5641_s22   ;;  %s4566_s21 = sphi %s4660_s21, %s5633_s21   ;;  %s4562_s20 = sphi %s4658_s20, %s5640_s20   ;;  %s4558_s19 = sphi %s4656_s19, %s5639_s19   ;;  %s4554_s18 = sphi %s4654_s18, %s5632_s18  }
  0x13   : > { %5568 = sst [smem:[#allocation18_spill]] %s4558_s19  ;;  %s3068_s8 = sadd.s32 4294967294, %s4606_s6  }
  0x14   : > { %5569 = sst [smem:[#allocation19_spill]] %s4570_s22  ;;  %p59_p0 = scmp.ne.s32.totalorder %s4582_s25, %s4578_s24 }
  0x15   : > { %5570 = sst [smem:[#allocation20_spill]] %s4582_s25  ;;  %p5539_p1 = scmp.eq.s32.totalorder %s4723_s7, 0 }
  0x16   : > { %5571 = sst [smem:[#allocation21_spill]] %s4590_s27  ;;  %p183_p2 = scmp.ne.s32.totalorder %s4562_s20, %s4558_s19 }
  0x17   : > { %5572 = sst [smem:[#allocation22_spill]] %s4594_s28  ;;  %p184_p3 = scmp.eq.s32.totalorder %s4723_s7, 3 }
  0x18   : > { %5573 = sst [smem:[#allocation23_spill]] %s4598_s29  ;;  %p4733_p4 = por %p5539_p1, %p59_p0 }
  0x19   : > { %5574 = sst [smem:[#allocation24_spill]] %s4723_s7  ;;  %p189_p5 = scmp.ne.s32.totalorder %s4558_s19, %s4554_s18 }
  0x1a   : > { %s5575_s9 = scalar_select %p4733_p4, 1, 0 }
  0x1b   : > { %p4739_p6 = por %p184_p3, %p183_p2  ;;  %p190_p7 = scmp.eq.s32.totalorder %s3068_s8, 3 }
  0x1c   : > { %5576 = sst [smem:[#allocation25_spill]] %s5575_s9  ;;  %p3069_p8 = scmp.ge.s32.totalorder %s4606_s6, 1 }
  0x1d   : > { %s5577_s10 = scalar_select %p4739_p6, 1, 0 }
  0x1e   : > { %p197_p9 = scmp.lt.s32.totalorder %s4606_s6, 5  ;;  %p4745_p10 = por %p190_p7, %p189_p5 }
  0x1f   : > { %5578 = sst [smem:[#allocation26_spill]] %s5577_s10  ;;  %s4608_s13 = smov [#allocation7]  }
  0x20   : > { %s5579_s11 = scalar_select %p4745_p10, 1, 0 }
  0x21   : > { %p4749_p11 = pnand %p3069_p8, %p197_p9  ;;  %s209_s14 = sshll.u32 %s4608_s13, 4  ;;  %s210_s14 = int_to_ptr.vmem [resolvable:$true] %s209_s14 }
  0x22   : > { %5580 = sst [smem:[#allocation27_spill]] %s5579_s11  ;;  %s5584_s2 = sld [smem:[#allocation32_spill]] }
  0x23   : > { %s5581_s12 = scalar_select %p4749_p11, 1, 0 }
  0x24   : > { %p3712_p12 = pneg %p4749_p11 }
  0x25   : > { %5582 = sst [smem:[#allocation28_spill]] %s5581_s12 }
  0x26   : > { %p4757_p13 = pnand %p3712_p12, %p5539_p1 }
  0x28   : > { %s4300_s24 = scalar_lea.hbm %s5584_s2, 384  ;;  %p4302_p2 = pneg %p4757_p13 }
  0x29   : > { %p4301_p0 = scmp.ne.s32.totalorder %s5584_s2, %s4300_s24  ;;  %p4307_p7 = scmp.lt.u32.totalorder %s4300_s24, %s5584_s2 }
  0x2b   : > { %p4303_p3 = pnand %p4302_p2, %p4301_p0 }
  0x2d   : > { %p4304_p5 = pneg %p4303_p3 }
  0x2f   : > { %p4309_p8 = pnand %p4307_p7, %p4304_p5 }
  0x31   : > { %4312 = shalt.err (!%p4309_p8)
}
  0x32   : > { %s4313_s5 = scalar_lea.vmem %s210_s14, 384  ;;  %p4321_p10 = scmp.lt.s32.totalorder %s210_s14, %s210_s14 }
  0x33   : > { %p4314_p9 = scmp.ne.s32.totalorder %s210_s14, %s4313_s5  ;;  %p4322_p6 = scmp.lt.s32.totalorder %s4313_s5, %s4313_s5 }
  0x35   : > { %p4316_p12 = pnand %p4314_p9, %p4302_p2  ;;  %p4323_p4 = por %p4322_p6, %p4321_p10 }
  0x37   : > { %p4317_p1 = pneg %p4316_p12 }
  0x39   : > { %p4324_p11 = pnand %p4323_p4, %p4317_p1 }
  0x3b   : > { %4327 = shalt.err (!%p4324_p11)
}
  0x3c   : > { %s4609_s11 = smov 64   ;;  %s4610_s18 = smov 4  }
  0x3d   : > { %3715 = dma.hbm_to_vmem [thread:$0]  (!%p4757_p13), %s5584_s2, 384, %s210_s14, [#allocation6], %s4609_s11, %s4609_s11, %s4610_s18  }
  0x3e   : > { %p53_p1 = scmp.ne.s32.totalorder %s4586_s26, %s4582_s25  ;;  %p54_p4 = scmp.eq.s32.totalorder %s4606_s6, 0 }
  0x3f   : > { %p79_p6 = scmp.ne.s32.totalorder %s4574_s23, %s4570_s22  ;;  %p85_p10 = scmp.ne.s32.totalorder %s4570_s22, %s4566_s21 }
  0x40   : > { %p55_p11 = por %p54_p4, %p53_p1  ;;  %p3734_p0 = scmp.lt.s32.totalorder %s4606_s6, 4 }
  0x41   : > { %p81_p2 = por %p79_p6, %p54_p4  ;;  %p5585_p3 = scmp.eq.s32.totalorder %s4723_s7, 0 }
  0x42   : > { %p4793_p7 = pnand %p3734_p0, %p55_p11  ;;  %s246_s13 = sand.u32 1, %s4574_s23  }
  0x43   : > { %p4789_p5 = por %p85_p10, %p5585_p3  ;;  %s3695_s11 = smul.u32 2304, %s246_s13 }
  0x44   : > { %s5588_s15 = scalar_select %p4793_p7, 1, 0 }
  0x45   : > { %s5586_s8 = scalar_select %p4789_p5, 1, 0 }
  0x46   : > { %p4799_p13 = pnand %p3734_p0, %p81_p2  ;;  %s4803_s21 = sshll.u32 %s246_s13, 1 }
  0x47   : > { %5587 = sst [smem:[#allocation29_spill]] %s5586_s8  ;;  %s248_s5 = scalar_lea.vmem [#allocation5], %s3695_s11 }
  0x48   : > { %s5589_s18 = scalar_select %p4799_p13, 1, 0 }
  0x49   : > { %s255_s16 = sshll.u32 %s248_s5, 4  ;;  %s5545_s24 = sshll.u32 %s4602_s30, 5  ;;  %s4805_s16 = int_to_ptr.vmem [resolvable:$true] %s255_s16 }
  0x4a   : > { %s269_s17 = scalar_lea.vmem [#allocation8], %s4803_s21  ;;  %s5590_s3 = sld [smem:[#allocation33_spill]] }
  0x4b   : > { %s277_s2 = sshll.u32 %s269_s17, 4  ;;  %s5591_s13 = sand.u32 1, %s4606_s6   ;;  %s4816_s2 = int_to_ptr.vmem [resolvable:$true] %s277_s2 }
  0x4c   : > { %s4820_s11 = scalar_lea.sflag [#allocation9], %s5591_s13  ;;  %p4826_p9 = pneg %p4799_p13 }
  0x50   : > { %s4814_s27 = scalar_lea.hbm %s5590_s3, %s5545_s24  ;;  %s4333_s24 = scalar_lea.hbm %s5590_s3, 64 }
  0x51   : > { %s4328_s5 = scalar_lea.hbm %s4814_s27, 32  ;;  %p4334_p4 = scmp.lt.u32.totalorder %s4814_s27, %s5590_s3 }
  0x52   : > { %p4329_p8 = scmp.ne.s32.totalorder %s4814_s27, %s4328_s5  ;;  %p4335_p6 = scmp.lt.u32.totalorder %s4333_s24, %s4328_s5 }
  0x53   : > { %p4337_p11 = scmp.lt.u32.totalorder %s4328_s5, %s4814_s27 }
  0x54   : > { %p4331_p12 = pnand %p4826_p9, %p4329_p8  ;;  %p4336_p10 = por %p4335_p6, %p4334_p4 }
  0x56   : > { %p4332_p1 = pneg %p4331_p12  ;;  %p4338_p0 = por %p4337_p11, %p4336_p10 }
  0x58   : > { %p4339_p2 = pnand %p4338_p0, %p4332_p1 }
  0x5a   : > { %4342 = shalt.err (!%p4339_p2)
}
  0x5b   : > { %s4343_s13 = scalar_lea.vmem %s4816_s2, 32  ;;  %s4611_s10 = smov [#allocation8]  }
  0x5c   : > { %p4344_p3 = scmp.ne.s32.totalorder %s4816_s2, %s4343_s13  ;;  %s4348_s14 = sshll.u32 %s4611_s10, 4  ;;  %s4349_s14 = int_to_ptr.vmem [resolvable:$false] %s4348_s14 }
  0x5d   : > { %s4350_s19 = scalar_lea.vmem %s4349_s14, 64  ;;  %p4351_p5 = scmp.lt.s32.totalorder %s4816_s2, %s4349_s14 }
  0x5e   : > { %p4346_p8 = pnand %p4344_p3, %p4826_p9  ;;  %p4352_p7 = scmp.lt.s32.totalorder %s4350_s19, %s4343_s13 }
  0x60   : > { %p4347_p12 = pneg %p4346_p8  ;;  %p4353_p4 = por %p4352_p7, %p4351_p5 }
  0x62   : > { %p4354_p6 = pnand %p4353_p4, %p4347_p12 }
  0x64   : > { %4357 = shalt.err (!%p4354_p6)
}
  0x65   : > { %3725 = dma.hbm_to_vmem [thread:$0]  (!%p4799_p13), %s4814_s27, 32, %s4816_s2, %s4820_s11  }
  0x66   : > { %s5593_s28 = sshll.u32 %s4602_s30, 5  ;;  %s46_s10 = sadd.s32 1, %s4586_s26 }
  0x67   : > { %s4855_s13 = scalar_lea.hbm %s5534_s4, %s5593_s28  ;;  %s173_s14 = sadd.s32 1, %s4562_s20 }
  0x68   : > { %s36_s19 = sadd.s32 1, %s4598_s29  ;;  %s223_s3 = sand.u32 1, %s4586_s26  }
  0x69   : > { %p37_p5 = scmp.ge.s32.totalorder %s36_s19, 2  ;;  %s3693_s8 = smul.u32 24, %s223_s3 }
  0x6a   : > { %s5595_s22 = sadd.s32 1, %s4602_s30  ;;  %s3694_s27 = smul.u32 384, %s4598_s29 }
  0x6b   : > { %s5649_s19 = smov (%p37_p5, %s36_s19), 0  ;;  %s5651_s22 = smov (!%p37_p5, %s5595_s22), %s4602_s30 }
  0x6c   : > { %5594 = sst [smem:[#allocation30_spill]] %s5649_s19  ;;  %s43_s2 = ssub.s32 %s4598_s29, %s5649_s19 }
  0x6d   : > { %p41_p7 = scmp.ge.s32.totalorder %s5651_s22, 2  ;;  %p44_p1 = scmp.eq.s32.totalorder %s43_s2, 0 }
  0x6e   : > { %s227_s28 = scalar_lea.vmem [#allocation2], %s3693_s8  ;;  %s4879_s12 = scalar_lea.hbm %s5530_s0, %s3694_s27 }
  0x6f   : > { %s234_s24 = sshll.u32 %s227_s28, 4  ;;  %s5653_s22 = smov (%p41_p7, %s5651_s22), 0  ;;  %s4881_s24 = int_to_ptr.vmem [resolvable:$true] %s234_s24 }
  0x70   : > { %5596 = sst [smem:[#allocation31_spill]] %s5653_s22  ;;  %s69_s7 = ssub.s32 %s4602_s30, %s5653_s22 }
  0x71   : > { %s4872_s5 = scalar_select %p44_p1, %s4586_s26, %s46_s10  }
  0x72   : > { %p70_p10 = scmp.eq.s32.totalorder %s69_s7, 0  ;;  %s170_s19 = sor.u32 %s69_s7, %s43_s2 }
  0x73   : > { %p171_p11 = scmp.eq.s32.totalorder %s170_s19, 0  ;;  %s5597_s8 = sadd.s32 1, %s4574_s23 }
  0x74   : > { %s4886_s28 = scalar_select %p70_p10, %s4574_s23, %s5597_s8  }
  0x75   : > { %s4889_s10 = scalar_select %p171_p11, %s4562_s20, %s173_s14  }
  0x76   : > { %s3656_s22 = sshll.u32 %s4602_s30, 7  ;;  %s4892_s29 = scalar_lea.sflag [#allocation3], %s223_s3 }
  0x77   : > { %s4358_s25 = scalar_lea.hbm %s4879_s12, 384  ;;  %p5598_p2 = scmp.ne.s32.totalorder %s5588_s15, 0 }
  0x78   : > { %p4359_p0 = scmp.ne.s32.totalorder %s4879_s12, %s4358_s25  ;;  %s4363_s19 = scalar_lea.hbm %s5530_s0, 768 }
  0x79   : > { %p4360_p3 = pneg %p5598_p2  ;;  %p4364_p4 = scmp.lt.u32.totalorder %s4879_s12, %s5530_s0 }
  0x7a   : > { %p4365_p6 = scmp.lt.u32.totalorder %s4363_s19, %s4358_s25  ;;  %p4367_p7 = scmp.lt.u32.totalorder %s4358_s25, %s4879_s12 }
  0x7b   : > { %p4361_p8 = pnand %p4360_p3, %p4359_p0 }
  0x7c   : > { %p4366_p5 = por %p4365_p6, %p4364_p4 }
  0x7d   : > { %p4362_p12 = pneg %p4361_p8 }
  0x7e   : > { %p4368_p1 = por %p4367_p7, %p4366_p5 }
  0x80   : > { %p4369_p10 = pnand %p4368_p1, %p4362_p12 }
  0x82   : > { %4372 = shalt.err (!%p4369_p10)
}
  0x83   : > { %s4373_s3 = scalar_lea.vmem %s4881_s24, 384  ;;  %s4612_s14 = smov [#allocation2]  }
  0x84   : > { %p4374_p11 = scmp.ne.s32.totalorder %s4881_s24, %s4373_s3  ;;  %s4378_s8 = sshll.u32 %s4612_s14, 4  ;;  %s4379_s8 = int_to_ptr.vmem [resolvable:$false] %s4378_s8 }
  0x85   : > { %s4380_s7 = scalar_lea.vmem %s4379_s8, 768  ;;  %p4381_p13 = scmp.lt.s32.totalorder %s4881_s24, %s4379_s8 }
  0x86   : > { %p4376_p0 = pnand %p4374_p11, %p4360_p3  ;;  %p4382_p4 = scmp.lt.s32.totalorder %s4380_s7, %s4373_s3 }
  0x88   : > { %p4377_p8 = pneg %p4376_p0  ;;  %p4383_p6 = por %p4382_p4, %p4381_p13 }
  0x8a   : > { %p4384_p5 = pnand %p4383_p6, %p4377_p8 }
  0x8c   : > { %4387 = shalt.err (!%p4384_p5)
}
  0x8d   : > { %s4613_s25 = smov 128   ;;  %s4614_s9 = smov 8  }
  0x8e   : > { %3719 = dma.hbm_to_vmem [thread:$0]  (!%p5598_p2), %s4879_s12, 384, %s4881_s24, %s4892_s29, %s4613_s25, %s4613_s25, %s4614_s9  }
  0x8f   : > { %s4928_s27 = scalar_lea.hbm %s5531_s1, %s3656_s22  ;;  %s5599_s3 = sand.u32 1, %s4606_s6  }
  0x90   : > { %s4932_s14 = scalar_lea.sflag [#allocation6], %s5599_s3  ;;  %s4388_s8 = scalar_lea.hbm %s4928_s27, 36864 }
  0x91   : > { %p4389_p13 = scmp.ne.s32.totalorder %s4928_s27, %s4388_s8  ;;  %s4393_s12 = scalar_lea.hbm %s5531_s1, 73728 }
  0x92   : > { %p4394_p2 = scmp.lt.u32.totalorder %s4928_s27, %s5531_s1  ;;  %p4395_p7 = scmp.lt.u32.totalorder %s4393_s12, %s4388_s8 }
  0x93   : > { %p4391_p3 = pnand %p4389_p13, %p4826_p9  ;;  %p4397_p10 = scmp.lt.u32.totalorder %s4388_s8, %s4928_s27 }
  0x94   : > { %p4396_p1 = por %p4395_p7, %p4394_p2 }
  0x95   : > { %p4392_p12 = pneg %p4391_p3 }
  0x96   : > { %p4398_p11 = por %p4397_p10, %p4396_p1 }
  0x98   : > { %p4399_p0 = pnand %p4398_p11, %p4392_p12 }
  0x9a   : > { %4402 = shalt.err (!%p4399_p0)
}
  0x9b   : > { %s4403_s22 = scalar_lea.vmem %s4805_s16, 36864  ;;  %s4615_s19 = smov [#allocation5]  }
  0x9c   : > { %p4404_p8 = scmp.ne.s32.totalorder %s4805_s16, %s4403_s22  ;;  %s4408_s2 = sshll.u32 %s4615_s19, 4  ;;  %s4409_s2 = int_to_ptr.vmem [resolvable:$false] %s4408_s2 }
  0x9d   : > { %s4410_s3 = scalar_lea.vmem %s4409_s2, 73728  ;;  %p4411_p5 = scmp.lt.s32.totalorder %s4805_s16, %s4409_s2 }
  0x9e   : > { %p4406_p4 = pnand %p4404_p8, %p4826_p9  ;;  %p4412_p13 = scmp.lt.s32.totalorder %s4410_s3, %s4403_s22 }
  0xa0   : > { %p4407_p6 = pneg %p4406_p4  ;;  %p4413_p3 = por %p4412_p13, %p4411_p5 }
  0xa2   : > { %p4414_p2 = pnand %p4413_p3, %p4407_p6 }
  0xa4   : > { %4417 = shalt.err (!%p4414_p2)
}
  0xa5   : > { %s4616_s8 = smov 256   ;;  %p5600_p12 = scmp.ne.s32.totalorder %s5589_s18, 0 }
  0xa6   : > { %s288_s15 = scalar_lea.vmem [#allocation10], %s4803_s21  ;;  %s4418_s12 = scalar_lea.hbm %s4855_s13, 32 }
  0xa7   : > { %3722 = dma.hbm_to_vmem [thread:$0]  (!%p5600_p12), %s4928_s27, 36864, %s4805_s16, %s4932_s14, %s4616_s8, %s4613_s25, %s4614_s9  }
  0xa8   : > { %s296_s29 = sshll.u32 %s288_s15, 4  ;;  %p4419_p7 = scmp.ne.s32.totalorder %s4855_s13, %s4418_s12  ;;  %s297_s29 = int_to_ptr.vmem [resolvable:$true] %s296_s29 }
  0xa9   : > { %s4423_s22 = scalar_lea.hbm %s5534_s4, 64  ;;  %p4424_p11 = scmp.lt.u32.totalorder %s4855_s13, %s5534_s4 }
  0xaa   : > { %p4421_p1 = pnand %p4419_p7, %p4826_p9  ;;  %p4425_p0 = scmp.lt.u32.totalorder %s4423_s22, %s4418_s12 }
  0xab   : > { %p4427_p4 = scmp.lt.u32.totalorder %s4418_s12, %s4855_s13 }
  0xac   : > { %p4422_p10 = pneg %p4421_p1  ;;  %p4426_p8 = por %p4425_p0, %p4424_p11 }
  0xae   : > { %p4428_p6 = por %p4427_p4, %p4426_p8 }
  0xb0   : > { %p4429_p5 = pnand %p4428_p6, %p4422_p10 }
  0xb2   : > { %4432 = shalt.err (!%p4429_p5)
}
  0xb3   : > { %s4433_s21 = scalar_lea.vmem %s297_s29, 32  ;;  %s4617_s16 = smov [#allocation10]  }
  0xb4   : > { %p4434_p13 = scmp.ne.s32.totalorder %s297_s29, %s4433_s21  ;;  %s4438_s25 = sshll.u32 %s4617_s16, 4  ;;  %s4439_s25 = int_to_ptr.vmem [resolvable:$false] %s4438_s25 }
  0xb5   : > { %s4440_s9 = scalar_lea.vmem %s4439_s25, 64  ;;  %p4441_p7 = scmp.lt.s32.totalorder %s297_s29, %s4439_s25 }
  0xb6   : > { %p4436_p3 = pnand %p4434_p13, %p4826_p9  ;;  %p4442_p1 = scmp.lt.s32.totalorder %s4440_s9, %s4433_s21 }
  0xb8   : > { %p4437_p2 = pneg %p4436_p3  ;;  %p4443_p12 = por %p4442_p1, %p4441_p7 }
  0xba   : > { %p4444_p0 = pnand %p4443_p12, %p4437_p2 }
  0xbc   : > { %4447 = shalt.err (!%p4444_p0)
}
  0xbd   : > { %p5601_p11 = scmp.ne.s32.totalorder %s5589_s18, 0  ;;  %s5602_s27 = sld [smem:[#allocation28_spill]] }
  0xbf   : > { %3728 = dma.hbm_to_vmem [thread:$0]  (!%p5601_p11), %s4855_s13, 32, %s297_s29, %s4820_s11  }
  0xc3   : > { %p5603_p10 = scmp.ne.s32.totalorder %s5602_s27, 0 }
  0xc4   : > { %s5604_s17 = sld [smem:[#allocation20_spill]] (!%p5603_p10) }
  0xc5   : > { %305 = sbr.rel (%p5603_p10) target bundleno = 811 (0x32b), region = 40  ;;  %s5605_s14 = sld [smem:[#allocation25_spill]] (!%p5603_p10) }
  0xca   : > { %s307_s3 = sand.u32 (!%p5603_p10), 1, %s5604_s17  }
  0xcb   : > { %s3696_s8 = smul.u32 (!%p5603_p10), 24, %s307_s3  ;;  %s308_s15 = scalar_lea.sflag (!%p5603_p10), [#allocation3], %s307_s3 }
  0xcc   : > { %p5606_p9 = scmp.ne.s32.totalorder %s5605_s14, 0 }
  0xcd   : > { %s4980_s12 = scalar_lea.vmem [#allocation2], %s3696_s8 }
  0xce   : > { %4533 = dma.done.wait (%p5606_p9), %s308_s15, 384  }
  0xcf   : > { %4535 = vsyncadd (%p5606_p9), %s308_s15, 4294966912  ;;  %s5607_s24 = sld [smem:[#allocation24_spill]]  ;;  %s5609_s7 = sld [smem:[#allocation29_spill]] }
  0xd0   : > { %s5608_s18 = sld [smem:[#allocation19_spill]] }
  0xd5   : > { %s316_s22 = sand.u32 1, %s5607_s24   ;;  %p5610_p12 = scmp.ne.s32.totalorder %s5609_s7, 0 }
  0xd6   : > { %s318_s11 = sand.u32 1, %s5608_s18   ;;  %s317_s29 = scalar_lea.sflag [#allocation6], %s316_s22 }
  0xd7   : > { %s3697_s13 = smul.u32 2304, %s318_s11 }
  0xd9   : > { %s4988_s19 = scalar_lea.vmem [#allocation5], %s3697_s13 }
  0xda   : > { %4537 = dma.done.wait (%p5610_p12), %s317_s29, 36864  }
  0xdb   : > { %4539 = vsyncadd (%p5610_p12), %s317_s29, 4294930432  ;;  %p5611_p8 = scmp.eq.s32.totalorder %s5607_s24, 0 }
  0xdd   : > { %4541 = dma.done.wait (%p5611_p8), [#allocation6], 384   ;;  %p5612_p4 = pmov %p5611_p8 }
  0xde   : > { %s4998_s2 = sshll.u32 %s318_s11, 1  ;;  %s330_s21 = scalar_lea.sflag [#allocation9], %s316_s22 }
  0xdf   : > { %4543 = vsyncadd (%p5612_p4), [#allocation6], 4294966912  ;;  %s333_s16 = scalar_lea.vmem [#allocation8], %s4998_s2 }
  0xe0   : > { %4545 = dma.done.wait (%p5610_p12), %s330_s21, 64  }
  0xe1   : > { %4547 = vsyncadd (%p5610_p12), %s330_s21, 4294967232  ;;  %v4618_v0 = vmov 0   ;;  %v926_v1 = vld [vmem:[#allocation7 + $0x10] sm:$0xf]  ;;  %v390_v2 = vld [vmem:[#allocation7] sm:$0xf] }
  0xe2   : > { %3861 = vset.pattern.permute.xlu1 %v4618_v0  ;;  %3860 = vset.pattern.permute.xlu0 %v4618_v0  ;;  %v927_v3 = vld [vmem:[#allocation7 + $0x14] sm:$0x1]  ;;  %v391_v4 = vld [vmem:[#allocation7 + $0x4] sm:$0x1]  ;;  %v3864_v6 = vld [vmem:[%s4988_s19 + $0x100] ss:$8 sps:$4 sm:$0xff]  }
  0xe3   : > { %930 = vperm.xlu0 %3860, %v926_v1   ;;  %394 = vperm.xlu1 %3861, %v390_v2   ;;  %v3862_v5 = vld [vmem:[%s4988_s19 + $0x104] ss:$8 sps:$4 sm:$0xff]   ;;  %v3865_v7 = vld [vmem:[%s4988_s19 + $0x114] ss:$8 sps:$4 sm:$0xff]   ;;  %v3867_v8 = vld [vmem:[%s4988_s19 + $0x110] ss:$8 sps:$4 sm:$0xff]  }
  0xe4   : > { %667 = vmatprep.subr.bf16.mxu1 %v3862_v5  ;;  %v3871_v9 = vld [vmem:[%s4988_s19 + $0x404] ss:$8 sps:$4 sm:$0xff]   ;;  %v3875_v11 = vld [vmem:[%s4988_s19 + $0x400] ss:$8 sps:$4 sm:$0xff]   ;;  %v3877_v12 = vld [vmem:[%s4988_s19 + $0x414] ss:$8 sps:$4 sm:$0xff]  }
  0xe5   : > { %668 = vmatpush1.bf16.msra.mxu1 %v3864_v6  ;;  %v3868_v10 = vld [vmem:[%s4988_s19 + $0x124] ss:$8 sps:$4 sm:$0xff]   ;;  %1711 = vmatprep.subr.bf16.mxu0 %v3871_v9  ;;  %v3870_v13 = vld [vmem:[%s4988_s19 + $0x120] ss:$8 sps:$4 sm:$0xff]   ;;  %v3873_v14 = vld [vmem:[%s4988_s19 + $0x134] ss:$8 sps:$4 sm:$0xff]  }
  0xe6   : > { %669 = vmatprep.subr.bf16.mxu1 %v3865_v7  ;;  %1712 = vmatpush1.bf16.msra.mxu0 %v3875_v11  ;;  %v3881_v15 = vld [vmem:[%s4988_s19 + $0x410] ss:$8 sps:$4 sm:$0xff]   ;;  %v3883_v16 = vld [vmem:[%s4988_s19 + $0x424] ss:$8 sps:$4 sm:$0xff]   ;;  %v3887_v18 = vld [vmem:[%s4988_s19 + $0x420] ss:$8 sps:$4 sm:$0xff]  }
  0xe7   : > { %942 = vperm.xlu0 %3860, %v927_v3   ;;  %406 = vperm.xlu1 %3861, %v391_v4   ;;  %v3876_v17 = vld [vmem:[%s4988_s19 + $0x130] ss:$8 sps:$4 sm:$0xff]   ;;  %v3889_v19 = vld [vmem:[%s4988_s19 + $0x434] ss:$8 sps:$4 sm:$0xff]   ;;  %v3879_v20 = vld [vmem:[%s4988_s19 + $0x144] ss:$8 sps:$4 sm:$0xff]  }
  0xe8   : > { %1713 = vmatprep.subr.bf16.mxu0 %v3877_v12  ;;  %v3893_v21 = vld [vmem:[%s4988_s19 + $0x430] ss:$8 sps:$4 sm:$0xff]   ;;  %v3882_v22 = vld [vmem:[%s4988_s19 + $0x140] ss:$8 sps:$4 sm:$0xff]   ;;  %v3895_v23 = vld [vmem:[%s4988_s19 + $0x444] ss:$8 sps:$4 sm:$0xff]  }
  0xe9   : > { %670 = vmatpush1.bf16.msra.mxu1 %v3867_v8  ;;  %v3885_v24 = vld [vmem:[%s4988_s19 + $0x154] ss:$8 sps:$4 sm:$0xff]   ;;  %v3888_v25 = vld [vmem:[%s4988_s19 + $0x150] ss:$8 sps:$4 sm:$0xff]   ;;  %v3899_v26 = vld [vmem:[%s4988_s19 + $0x440] ss:$8 sps:$4 sm:$0xff]  }
  0xea   : > { %671 = vmatprep.subr.bf16.mxu1 %v3868_v10  ;;  %1714 = vmatpush1.bf16.msra.mxu0 %v3881_v15  ;;  %v3901_v27 = vld [vmem:[%s4988_s19 + $0x454] ss:$8 sps:$4 sm:$0xff]   ;;  %v3891_v28 = vld [vmem:[%s4988_s19 + $0x164] ss:$8 sps:$4 sm:$0xff]   ;;  %v3905_v29 = vld [vmem:[%s4988_s19 + $0x450] ss:$8 sps:$4 sm:$0xff]  }
  0xeb   : > { %1715 = vmatprep.subr.bf16.mxu0 %v3883_v16  ;;  %v3894_v30 = vld [vmem:[%s4988_s19 + $0x160] ss:$8 sps:$4 sm:$0xff]   ;;  %v3907_v31 = vld [vmem:[%s4988_s19 + $0x464] ss:$8 sps:$4 sm:$0xff]   ;;  %v3897_v32 = vld [vmem:[%s4988_s19 + $0x174] ss:$8 sps:$4 sm:$0xff]  }
  0xec   : > { %v3900_v33 = vld [vmem:[%s4988_s19 + $0x170] ss:$8 sps:$4 sm:$0xff]   ;;  %v3911_v34 = vld [vmem:[%s4988_s19 + $0x460] ss:$8 sps:$4 sm:$0xff]   ;;  %v3913_v35 = vld [vmem:[%s4988_s19 + $0x474] ss:$8 sps:$4 sm:$0xff]  }
  0xed   : > { %672 = vmatpush1.bf16.msra.mxu1 %v3870_v13  ;;  %v3903_v36 = vld [vmem:[%s4988_s19 + $0x184] ss:$8 sps:$4 sm:$0xff]   ;;  %v3917_v37 = vld [vmem:[%s4988_s19 + $0x470] ss:$8 sps:$4 sm:$0xff]   ;;  %v3906_v38 = vld [vmem:[%s4988_s19 + $0x180] ss:$8 sps:$4 sm:$0xff]  }
  0xee   : > { %673 = vmatprep.subr.bf16.mxu1 %v3873_v14  ;;  %1716 = vmatpush1.bf16.msra.mxu0 %v3887_v18  ;;  %v3919_v39 = vld [vmem:[%s4988_s19 + $0x484] ss:$8 sps:$4 sm:$0xff]   ;;  %v3909_v40 = vld [vmem:[%s4988_s19 + $0x194] ss:$8 sps:$4 sm:$0xff]   ;;  %v3912_v41 = vld [vmem:[%s4988_s19 + $0x190] ss:$8 sps:$4 sm:$0xff]  }
  0xef   : > { %1717 = vmatprep.subr.bf16.mxu0 %v3889_v19  ;;  %v3923_v42 = vld [vmem:[%s4988_s19 + $0x480] ss:$8 sps:$4 sm:$0xff]   ;;  %v3925_v43 = vld [vmem:[%s4988_s19 + $0x494] ss:$8 sps:$4 sm:$0xff]   ;;  %v3915_v44 = vld [vmem:[%s4988_s19 + $0x1a4] ss:$8 sps:$4 sm:$0xff]  }
  0xf0   : > { %v3929_v45 = vld [vmem:[%s4988_s19 + $0x490] ss:$8 sps:$4 sm:$0xff]   ;;  %v3918_v48 = vld [vmem:[%s4988_s19 + $0x1a0] ss:$8 sps:$4 sm:$0xff]   ;;  %v3931_v49 = vld [vmem:[%s4988_s19 + $0x4a4] ss:$8 sps:$4 sm:$0xff]  }
  0xf1   : > { %674 = vmatpush1.bf16.msra.mxu1 %v3876_v17  ;;  %v5047_v46 = vld [vmem:[%s4980_s12] sm:$0xff]  ;;  %v5050_v47 = vld [vmem:[%s4980_s12 + $0x8] sm:$0x11]  ;;  %vm2881_vm0 = vsmask.f32 256  ;;  %vm954_vm2 = vcmask 1040384  }
  0xf2   : > { %675 = vmatprep.subr.bf16.mxu1 %v3879_v20  ;;  %1718 = vmatpush1.bf16.msra.mxu0 %v3893_v21  ;;  %v3119_v50 = vcombine.high %v5047_v46, %v5050_v47  ;;  %v3921_v51 = vld [vmem:[%s4988_s19 + $0x1b4] ss:$8 sps:$4 sm:$0xff]   ;;  %v3935_v54 = vld [vmem:[%s4988_s19 + $0x4a0] ss:$8 sps:$4 sm:$0xff]   ;;  %v3924_v55 = vld [vmem:[%s4988_s19 + $0x1b0] ss:$8 sps:$4 sm:$0xff]   ;;  %v3118_v5 = vcombine.low %v5047_v46, %v5050_v47 }
  0xf3   : > { %1719 = vmatprep.subr.bf16.mxu0 %v3895_v23  ;;  %v3937_v56 = vld [vmem:[%s4988_s19 + $0x4b4] ss:$8 sps:$4 sm:$0xff]   ;;  %v3927_v58 = vld [vmem:[%s4988_s19 + $0x1c4] ss:$8 sps:$4 sm:$0xff]   ;;  %v3930_v59 = vld [vmem:[%s4988_s19 + $0x1c0] ss:$8 sps:$4 sm:$0xff]  }
  0xf4   : > { %v499_v52 = vshrl.u32 %v3119_v50, 16  ;;  %v501_v53 = vshll.u32 %v3119_v50, 16  ;;  %v3941_v61 = vld [vmem:[%s4988_s19 + $0x4b0] ss:$8 sps:$4 sm:$0xff]   ;;  %v3943_v62 = vld [vmem:[%s4988_s19 + $0x4c4] ss:$8 sps:$4 sm:$0xff]   ;;  %vm5119_vm4 = vmand %vm954_vm2, %vm2881_vm0 }
  0xf5   : > { %676 = vmatpush1.bf16.msra.mxu1 %v3882_v22  ;;  %v5065_v63 = vld [vmem:[%s4980_s12] sm:$0xcc]  ;;  %v5068_v0 = vld [vmem:[%s4980_s12 + $0x8] sm:$0x77]  ;;  %v494_v11 = vshll.u32 %v3118_v5, 16  ;;  %v492_v15 = vshrl.u32 %v3118_v5, 16 }
  0xf6   : > { %677 = vmatprep.subr.bf16.mxu1 %v3885_v24  ;;  %1720 = vmatpush1.bf16.msra.mxu0 %v3899_v26  ;;  %v503_v57 = vrot.slane %v501_v53, 1  ;;  %v3933_v1 = vld [vmem:[%s4988_s19 + $0x1d4] ss:$8 sps:$4 sm:$0xff]   ;;  %v3351_v2 = vcombine.high %v5065_v63, %v5068_v0  ;;  %v3936_v3 = vld [vmem:[%s4988_s19 + $0x1d0] ss:$8 sps:$4 sm:$0xff]   ;;  %v3350_v21 = vcombine.low %v5065_v63, %v5068_v0  ;;  %vm955_vm3 = vcmask 1044484  }
  0xf7   : > { %1721 = vmatprep.subr.bf16.mxu0 %v3901_v27  ;;  %v3947_v4 = vld [vmem:[%s4988_s19 + $0x4c0] ss:$8 sps:$4 sm:$0xff]   ;;  %v3949_v7 = vld [vmem:[%s4988_s19 + $0x4d4] ss:$8 sps:$4 sm:$0xff]   ;;  %v3939_v8 = vld [vmem:[%s4988_s19 + $0x1e4] ss:$8 sps:$4 sm:$0xff]  }
  0xf8   : > { %v504_v60 = vor.u32 %v503_v57, %v499_v52  ;;  %v1548_v6 = vrot.slane %v3351_v2, 2  ;;  %v3942_v9 = vld [vmem:[%s4988_s19 + $0x1e0] ss:$8 sps:$4 sm:$0xff]   ;;  %v3955_v10 = vld [vmem:[%s4988_s19 + $0x4d0] ss:$8 sps:$4 sm:$0xff]   ;;  %v496_v16 = vrot.slane %v494_v11, 1  ;;  %vm5181_vm10 = vmor %vm954_vm2, %vm955_vm3 }
  0xf9   : > { %678 = vmatpush1.bf16.msra.mxu1 %v3888_v25  ;;  %v3957_v12 = vld [vmem:[%s4988_s19 + $0x4e4] ss:$8 sps:$4 sm:$0xff]   ;;  %v3945_v13 = vld [vmem:[%s4988_s19 + $0x1f4] ss:$8 sps:$4 sm:$0xff]   ;;  %v3948_v14 = vld [vmem:[%s4988_s19 + $0x1f0] ss:$8 sps:$4 sm:$0xff]  }
  0xfa   : > { %679 = vmatprep.subr.bf16.mxu1 %v3891_v28  ;;  %1722 = vmatpush1.bf16.msra.mxu0 %v3905_v29  ;;  %v3962_v17 = vld [vmem:[%s4988_s19 + $0x4e0] ss:$8 sps:$4 sm:$0xff]   ;;  %v3963_v18 = vld [vmem:[%s4988_s19 + $0x4f4] ss:$8 sps:$4 sm:$0xff]   ;;  %v3954_v19 = vld [vmem:[%s4988_s19 + $0x4] ss:$8 sps:$4 sm:$0xff]   ;;  %v497_v22 = vor.u32 %v496_v16, %v492_v15 }
  0xfb   : > { %1723 = vmatprep.subr.bf16.mxu0 %v3907_v31  ;;  %699 = vmatprep.mubr.bf16.mxu1 %v504_v60  ;;  %v3952_v20 = vld [vmem:[%s4988_s19] ss:$8 sps:$4 sm:$0xff]   ;;  %v3968_v23 = vld [vmem:[%s4988_s19 + $0x4f0] ss:$8 sps:$4 sm:$0xff]   ;;  %v3972_v24 = vld [vmem:[%s4988_s19 + $0x504] ss:$8 sps:$4 sm:$0xff]  }
  0xfc   : > { %1743 = vmatprep.mubr.bf16.mxu0 %v1548_v6  ;;  %v3961_v25 = vld [vmem:[%s4988_s19 + $0x14] ss:$8 sps:$4 sm:$0xff]   ;;  %v3959_v26 = vld [vmem:[%s4988_s19 + $0x10] ss:$8 sps:$4 sm:$0xff]   ;;  %v1547_v27 = vrot.slane %v3350_v21, 2  ;;  %vm2049_vm9 = vcmask 1042432  }
  0xfd   : > { %680 = vmatpush1.bf16.msra.mxu1 %v3894_v30  ;;  %v3970_v28 = vld [vmem:[%s4988_s19 + $0x500] ss:$8 sps:$4 sm:$0xff]   ;;  %v3979_v29 = vld [vmem:[%s4988_s19 + $0x514] ss:$8 sps:$4 sm:$0xff]   ;;  %v3967_v30 = vld [vmem:[%s4988_s19 + $0x24] ss:$8 sps:$4 sm:$0xff]  }
  0xfe   : > { %681 = vmatprep.subr.bf16.mxu1 %v3897_v32  ;;  %1724 = vmatpush1.bf16.msra.mxu0 %v3911_v34  ;;  %v3965_v31 = vld [vmem:[%s4988_s19 + $0x20] ss:$8 sps:$4 sm:$0xff]   ;;  %v3977_v32 = vld [vmem:[%s4988_s19 + $0x510] ss:$8 sps:$4 sm:$0xff]   ;;  %v3975_v34 = vld [vmem:[%s4988_s19 + $0x34] ss:$8 sps:$4 sm:$0xff]  }
  0xff   : > { %1725 = vmatprep.subr.bf16.mxu0 %v3913_v35  ;;  %v3973_v35 = vld [vmem:[%s4988_s19 + $0x30] ss:$8 sps:$4 sm:$0xff]   ;;  %v3992_v50 = vld [vmem:[%s4988_s19 + $0x60] ss:$8 sps:$4 sm:$0xff]   ;;  %vm2883_vm1 = vsmask.f32 4352 }
 0x100   : > { %v4000_v52 = vld [vmem:[%s4988_s19 + $0x74] ss:$8 sps:$4 sm:$0xff]   ;;  %v3998_v53 = vld [vmem:[%s4988_s19 + $0x70] ss:$8 sps:$4 sm:$0xff]   ;;  %vm5125_vm5 = vmand %vm955_vm3, %vm2883_vm1  ;;  %vm1758_vm7 = vsmask.f32 2304 }
 0x101   : > { %682 = vmatpush1.bf16.msra.mxu1 %v3900_v33  ;;  %v3985_v33 = vld [vmem:[%s4988_s19 + $0x524] ss:$8 sps:$4 sm:$0xff]   ;;  %v4015_v57 = vld [vmem:[%s4988_s19 + $0x574] ss:$8 sps:$4 sm:$0xff]   ;;  %vm2885_vm6 = vmor %vm5125_vm5, %vm5119_vm4  ;;  %vm1759_vm8 = vsmask.f32 6416 }
 0x102   : > { %683 = vmatprep.subr.bf16.mxu1 %v3903_v36  ;;  %1726 = vmatpush1.bf16.msra.mxu0 %v3917_v37  ;;  %v3983_v36 = vld [vmem:[%s4988_s19 + $0x520] ss:$8 sps:$4 sm:$0xff]   ;;  %v3991_v37 = vld [vmem:[%s4988_s19 + $0x534] ss:$8 sps:$4 sm:$0xff]   ;;  %v4013_v60 = vld [vmem:[%s4988_s19 + $0x570] ss:$8 sps:$4 sm:$0xff]  }
 0x103   : > { %1727 = vmatprep.subr.bf16.mxu0 %v3919_v39  ;;  %v3989_v39 = vld [vmem:[%s4988_s19 + $0x530] ss:$8 sps:$4 sm:$0xff]   ;;  %v4019_v2 = vld [vmem:[%s4988_s19 + $0x580] ss:$8 sps:$4 sm:$0xff]   ;;  %v4039_v11 = vld [vmem:[%s4988_s19 + $0x5b4] ss:$8 sps:$4 sm:$0xff]  }
 0x104   : > { %v4016_v5 = vld [vmem:[%s4988_s19 + $0xa0] ss:$8 sps:$4 sm:$0xff]   ;;  %v4025_v6 = vld [vmem:[%s4988_s19 + $0x590] ss:$8 sps:$4 sm:$0xff]   ;;  %v4045_v15 = vld [vmem:[%s4988_s19 + $0x5c4] ss:$8 sps:$4 sm:$0xff]  }
 0x105   : > { %684 = vmatpush1.bf16.msra.mxu1 %v3906_v38  ;;  %v3982_v38 = vld [vmem:[%s4988_s19 + $0x44] ss:$8 sps:$4 sm:$0xff]   ;;  %v4036_v16 = vld [vmem:[%s4988_s19 + $0xd4] ss:$8 sps:$4 sm:$0xff]   ;;  %v4043_v21 = vld [vmem:[%s4988_s19 + $0x5c0] ss:$8 sps:$4 sm:$0xff]  }
 0x106   : > { %685 = vmatprep.subr.bf16.mxu1 %v3909_v40  ;;  %1728 = vmatpush1.bf16.msra.mxu0 %v3923_v42  ;;  %v3980_v40 = vld [vmem:[%s4988_s19 + $0x40] ss:$8 sps:$4 sm:$0xff]   ;;  %v3988_v42 = vld [vmem:[%s4988_s19 + $0x54] ss:$8 sps:$4 sm:$0xff]   ;;  %vm2050_vm11 = vcmask 1046532   ;;  %vm5189_vm12 = vmor %vm1758_vm7, %vm1759_vm8  ;;  %s5621_s25 = sld [smem:[#allocation18_spill]] }
 0x107   : > { %1729 = vmatprep.subr.bf16.mxu0 %v3925_v43  ;;  %v3995_v43 = vld [vmem:[%s4988_s19 + $0x540] ss:$8 sps:$4 sm:$0xff]   ;;  %vm2051_vm13 = vmor %vm2049_vm9, %vm2050_vm11  ;;  %vm1217_vm14 = vsmask.f32 1280  ;;  %vm1218_vm15 = vsmask.f32 5392 }
 0x108   : > { %vm1219_vm0 = vmor %vm1217_vm14, %vm1218_vm15  ;;  %s5622_s9 = sld [smem:[#allocation22_spill]]  ;;  %s342_s27 = scalar_lea.vmem [#allocation10], %s4998_s2 }
 0x109   : > { %686 = vmatpush1.bf16.msra.mxu1 %v3912_v41  ;;  %v3997_v41 = vld [vmem:[%s4988_s19 + $0x544] ss:$8 sps:$4 sm:$0xff]   ;;  %s5623_s17 = sld [smem:[#allocation21_spill]]  ;;  %s5624_s7 = sld [smem:[#allocation26_spill]] }
 0x10a   : > { %687 = vmatprep.subr.bf16.mxu1 %v3915_v44  ;;  %1730 = vmatpush1.bf16.msra.mxu0 %v3929_v45  ;;  %v3986_v44 = vld [vmem:[%s4988_s19 + $0x50] ss:$8 sps:$4 sm:$0xff]   ;;  %v4003_v45 = vld [vmem:[%s4988_s19 + $0x554] ss:$8 sps:$4 sm:$0xff]   ;;  %s5625_s29 = sld [smem:[#allocation34_spill]] }
 0x10b   : > { %1731 = vmatprep.subr.bf16.mxu0 %v3931_v49  ;;  %v4001_v49 = vld [vmem:[%s4988_s19 + $0x550] ss:$8 sps:$4 sm:$0xff]  }
 0x10c   : > { %s381_s14 = sand.u32 1, %s5621_s25  }
 0x10d   : > { %688 = vmatpush1.bf16.msra.mxu1 %v3918_v48  ;;  %v3994_v48 = vld [vmem:[%s4988_s19 + $0x64] ss:$8 sps:$4 sm:$0xff]   ;;  %s3085_s15 = sshll.u32 %s381_s14, 4  ;;  %s5454_s21 = scalar_lea.sflag [#allocation4], %s381_s14 }
 0x10e   : > { %689 = vmatprep.subr.bf16.mxu1 %v3921_v51  ;;  %1732 = vmatpush1.bf16.msra.mxu0 %v3935_v54  ;;  %v4009_v51 = vld [vmem:[%s4988_s19 + $0x564] ss:$8 sps:$4 sm:$0xff]   ;;  %s3651_s3 = sshll.u32 %s5622_s9, 1  ;;  %s383_s24 = scalar_lea.vmem [#allocation11], %s3085_s15 }
 0x10f   : > { %1733 = vmatprep.subr.bf16.mxu0 %v3937_v56  ;;  %s3652_s8 = sshll.u32 %s5623_s17, 3  ;;  %s2905_s18 = sshll.u32 %s383_s24, 4  ;;  %s5440_s18 = int_to_ptr.vmem [resolvable:$true] %s2905_s18 }
 0x110   : > { %s5626_s2 = smov %s5625_s29  ;;  %p5627_p5 = scmp.ne.s32.totalorder %s5624_s7, 0 }
 0x111   : > { %690 = vmatpush1.bf16.msra.mxu1 %v3924_v55  ;;  %v4007_v55 = vld [vmem:[%s4988_s19 + $0x560] ss:$8 sps:$4 sm:$0xff]   ;;  %s4620_s9 = smov [#allocation11]  }
 0x112   : > { %691 = vmatprep.subr.bf16.mxu1 %v3927_v58  ;;  %1734 = vmatpush1.bf16.msra.mxu0 %v3941_v61  ;;  %v4006_v58 = vld [vmem:[%s4988_s19 + $0x84] ss:$8 sps:$4 sm:$0xff]  }
 0x113   : > { %1735 = vmatprep.subr.bf16.mxu0 %v3943_v62  ;;  %v4021_v61 = vld [vmem:[%s4988_s19 + $0x584] ss:$8 sps:$4 sm:$0xff]   ;;  %v4012_v62 = vld [vmem:[%s4988_s19 + $0x94] ss:$8 sps:$4 sm:$0xff]  }
 0x115   : > { %692 = vmatpush1.bf16.msra.mxu1 %v3930_v59  ;;  %v4004_v59 = vld [vmem:[%s4988_s19 + $0x80] ss:$8 sps:$4 sm:$0xff]  }
 0x116   : > { %693 = vmatprep.subr.bf16.mxu1 %v3933_v1  ;;  %1736 = vmatpush1.bf16.msra.mxu0 %v3947_v4  ;;  %v4010_v1 = vld [vmem:[%s4988_s19 + $0x90] ss:$8 sps:$4 sm:$0xff]   ;;  %v4018_v4 = vld [vmem:[%s4988_s19 + $0xa4] ss:$8 sps:$4 sm:$0xff]  }
 0x117   : > { %1737 = vmatprep.subr.bf16.mxu0 %v3949_v7  ;;  %v4033_v7 = vld [vmem:[%s4988_s19 + $0x5a4] ss:$8 sps:$4 sm:$0xff]  }
 0x119   : > { %694 = vmatpush1.bf16.msra.mxu1 %v3936_v3  ;;  %v4027_v3 = vld [vmem:[%s4988_s19 + $0x594] ss:$8 sps:$4 sm:$0xff]  }
 0x11a   : > { %695 = vmatprep.subr.bf16.mxu1 %v3939_v8  ;;  %1738 = vmatpush1.bf16.msra.mxu0 %v3955_v10  ;;  %v4024_v8 = vld [vmem:[%s4988_s19 + $0xb4] ss:$8 sps:$4 sm:$0xff]   ;;  %v4031_v10 = vld [vmem:[%s4988_s19 + $0x5a0] ss:$8 sps:$4 sm:$0xff]  }
 0x11b   : > { %1739 = vmatprep.subr.bf16.mxu0 %v3957_v12  ;;  %v4030_v12 = vld [vmem:[%s4988_s19 + $0xc4] ss:$8 sps:$4 sm:$0xff]  }
 0x11d   : > { %696 = vmatpush1.bf16.msra.mxu1 %v3942_v9  ;;  %v4022_v9 = vld [vmem:[%s4988_s19 + $0xb0] ss:$8 sps:$4 sm:$0xff]  }
 0x11e   : > { %697 = vmatprep.subr.bf16.mxu1 %v3945_v13  ;;  %1740 = vmatpush1.bf16.msra.mxu0 %v3962_v17  ;;  %v4028_v13 = vld [vmem:[%s4988_s19 + $0xc0] ss:$8 sps:$4 sm:$0xff]   ;;  %v4034_v17 = vld [vmem:[%s4988_s19 + $0xd0] ss:$8 sps:$4 sm:$0xff]  }
 0x11f   : > { %1741 = vmatprep.subr.bf16.mxu0 %v3963_v18  ;;  %v4619_v18 = vmov 839922192  }
 0x121   : > { %698 = vmatpush1.bf16.msra.mxu1 %v3948_v14  ;;  %v4037_v14 = vld [vmem:[%s4988_s19 + $0x5b0] ss:$8 sps:$4 sm:$0xff]  }
 0x122   : > { %880 = vmatprep.subr.bf16.mxu1 %v3954_v19  ;;  %1742 = vmatpush1.bf16.msra.mxu0 %v3968_v23  ;;  %v398_v19 = vunpack.c.l.s4 %v4619_v18  ;;  %v4042_v23 = vld [vmem:[%s4988_s19 + $0xe4] ss:$8 sps:$4 sm:$0xff]  }
 0x123   : > { %1998 = vmatprep.subr.bf16.mxu0 %v3972_v24  ;;  %v2579_v18 = vld [vmem:[%s4980_s12 + $0x10] sm:$0x11] }
 0x124   : > { %700 = vmatmul.mubr.bf16.vlgmr.msra.gmra.mrb[0].mxu1 %v497_v22  ;;  %v4051_v22 = vld [vmem:[%s4988_s19 + $0x5d4] ss:$8 sps:$4 sm:$0xff]   ;;  %v399_v24 = vunpack.c.0.s8 %v398_v19 }
 0x125   : > { %881 = vmatpush1.bf16.msra.mxu1 %v3952_v20  ;;  %1744 = vmatmul.mubr.bf16.vlgmr.msra.gmra.mrb[0].mxu0 %v1547_v27  ;;  %v400_v20 = vlaneseq  ;;  %v4049_v27 = vld [vmem:[%s4988_s19 + $0x5d0] ss:$8 sps:$4 sm:$0xff]  }
 0x126   : > { %882 = vmatprep.subr.bf16.mxu1 %v3961_v25  ;;  %1999 = vmatpush1.bf16.msra.mxu0 %v3970_v28  ;;  %v4057_v28 = vld [vmem:[%s4988_s19 + $0x5e4] ss:$8 sps:$4 sm:$0xff]  }
 0x127   : > { %2000 = vmatprep.subr.bf16.mxu0 %v3979_v29  ;;  %v5159_v25 = vshrl.u32 %v400_v20, 7  ;;  %v4048_v29 = vld [vmem:[%s4988_s19 + $0xf4] ss:$8 sps:$4 sm:$0xff]  }
 0x129   : > { %883 = vmatpush1.bf16.msra.mxu1 %v3959_v26  ;;  %v4040_v26 = vld [vmem:[%s4988_s19 + $0xe0] ss:$8 sps:$4 sm:$0xff]  }
 0x12a   : > { %884 = vmatprep.subr.bf16.mxu1 %v3967_v30  ;;  %2001 = vmatpush1.bf16.msra.mxu0 %v3977_v32  ;;  %v402_v30 = vsub.s32 %v399_v24, %v5159_v25  ;;  %v4055_v32 = vld [vmem:[%s4988_s19 + $0x5e0] ss:$8 sps:$4 sm:$0xff]  }
 0x12b   : > { %2002 = vmatprep.subr.bf16.mxu0 %v3985_v33  ;;  %v4063_v33 = vld [vmem:[%s4988_s19 + $0x5f4] ss:$8 sps:$4 sm:$0xff]  }
 0x12d   : > { %885 = vmatpush1.bf16.msra.mxu1 %v3965_v31  ;;  %v4046_v31 = vld [vmem:[%s4988_s19 + $0xf0] ss:$8 sps:$4 sm:$0xff]  }
 0x12e   : > { %886 = vmatprep.subr.bf16.mxu1 %v3975_v34  ;;  %2003 = vmatpush1.bf16.msra.mxu0 %v3983_v36  ;;  %v4054_v34 = vld [vmem:[%s4988_s19 + $0x204] ss:$8 sps:$4 sm:$0xff]  }
 0x12f   : > { %2004 = vmatprep.subr.bf16.mxu0 %v3991_v37 }
 0x131   : > { %887 = vmatpush1.bf16.msra.mxu1 %v3973_v35 }
 0x132   : > { %888 = vmatprep.subr.bf16.mxu1 %v3982_v38  ;;  %2005 = vmatpush1.bf16.msra.mxu0 %v3989_v39  ;;  %v4061_v38 = vld [vmem:[%s4988_s19 + $0x5f0] ss:$8 sps:$4 sm:$0xff]  }
 0x133   : > { %2006 = vmatprep.subr.bf16.mxu0 %v3997_v41 }
 0x135   : > { %889 = vmatpush1.bf16.msra.mxu1 %v3980_v40  ;;  %v4069_v40 = vld [vmem:[%s4988_s19 + $0x604] ss:$8 sps:$4 sm:$0xff]  }
 0x136   : > { %890 = vmatprep.subr.bf16.mxu1 %v3988_v42  ;;  %2007 = vmatpush1.bf16.msra.mxu0 %v3995_v43 }
 0x137   : > { %2008 = vmatprep.subr.bf16.mxu0 %v4003_v45 }
 0x139   : > { %891 = vmatpush1.bf16.msra.mxu1 %v3986_v44 }
 0x13a   : > { %892 = vmatprep.subr.bf16.mxu1 %v3994_v48  ;;  %2009 = vmatpush1.bf16.msra.mxu0 %v4001_v49 }
 0x13b   : > { %2010 = vmatprep.subr.bf16.mxu0 %v4009_v51 }
 0x13d   : > { %893 = vmatpush1.bf16.msra.mxu1 %v3992_v50 }
 0x13e   : > { %894 = vmatprep.subr.bf16.mxu1 %v4000_v52  ;;  %2011 = vmatpush1.bf16.msra.mxu0 %v4007_v55  ;;  %v4073_v55 = vld [vmem:[%s4988_s19 + $0x610] ss:$8 sps:$4 sm:$0xff]  }
 0x13f   : > { %2012 = vmatprep.subr.bf16.mxu0 %v4015_v57 }
 0x141   : > { %895 = vmatpush1.bf16.msra.mxu1 %v3998_v53 }
 0x142   : > { %896 = vmatprep.subr.bf16.mxu1 %v4006_v58  ;;  %2013 = vmatpush1.bf16.msra.mxu0 %v4013_v60  ;;  %v5186_v58 = vld [vmem:[%s4980_s12] sm:$0xee] }
 0x143   : > { %2014 = vmatprep.subr.bf16.mxu0 %v4021_v61  ;;  %v4084_v60 = vld [vmem:[%s4988_s19 + $0x254] ss:$8 sps:$4 sm:$0xff]  }
 0x145   : > { %897 = vmatpush1.bf16.msra.mxu1 %v4004_v59 }
 0x146   : > { %898 = vmatprep.subr.bf16.mxu1 %v4012_v62  ;;  %2015 = vmatpush1.bf16.msra.mxu0 %v4019_v2 }
 0x147   : > { %2016 = vmatprep.subr.bf16.mxu0 %v4027_v3 }
 0x149   : > { %899 = vmatpush1.bf16.msra.mxu1 %v4010_v1  ;;  %v5196_v1 = vld [vmem:[%s4980_s12 + $0x8] sm:$0x33] }
 0x14a   : > { %900 = vmatprep.subr.bf16.mxu1 %v4018_v4  ;;  %2017 = vmatpush1.bf16.msra.mxu0 %v4025_v6 }
 0x14b   : > { %2018 = vmatprep.subr.bf16.mxu0 %v4033_v7 }
 0x14d   : > { %901 = vmatpush1.bf16.msra.mxu1 %v4016_v5  ;;  %v5200_v5 = vld [vmem:[%s4980_s12] sm:$0x88] }
 0x14e   : > { %902 = vmatprep.subr.bf16.mxu1 %v4024_v8  ;;  %2019 = vmatpush1.bf16.msra.mxu0 %v4031_v10  ;;  %v4052_v8 = vld [vmem:[%s4988_s19 + $0x200] ss:$8 sps:$4 sm:$0xff]  }
 0x14f   : > { %2020 = vmatprep.subr.bf16.mxu0 %v4039_v11 }
 0x151   : > { %903 = vmatpush1.bf16.msra.mxu1 %v4022_v9 }
 0x152   : > { %904 = vmatprep.subr.bf16.mxu1 %v4030_v12  ;;  %2021 = vmatpush1.bf16.msra.mxu0 %v4037_v14 }
 0x153   : > { %2022 = vmatprep.subr.bf16.mxu0 %v4045_v15 }
 0x155   : > { %905 = vmatpush1.bf16.msra.mxu1 %v4028_v13  ;;  %v5214_v13 = vld [vmem:[%s4980_s12 + $0x8] sm:$0xff]  ;;  %s2902_s12 = sadd.s32 %s3652_s8, %s3651_s3 }
 0x156   : > { %906 = vmatprep.subr.bf16.mxu1 %v4036_v16  ;;  %2023 = vmatpush1.bf16.msra.mxu0 %v4043_v21  ;;  %s3653_s22 = sshll.u32 %s2902_s12, 6 }
 0x157   : > { %2024 = vmatprep.subr.bf16.mxu0 %v4051_v22  ;;  %v4058_v22 = vld [vmem:[%s4988_s19 + $0x210] ss:$8 sps:$4 sm:$0xff]  }
 0x159   : > { %907 = vmatpush1.bf16.msra.mxu1 %v4034_v17  ;;  %v5223_v17 = vcombine.low %v5200_v5, %v5214_v13 }
 0x15a   : > { %908 = vmatprep.subr.bf16.mxu1 %v4042_v23  ;;  %2025 = vmatpush1.bf16.msra.mxu0 %v4049_v27  ;;  %v4066_v27 = vld [vmem:[%s4988_s19 + $0x224] ss:$8 sps:$4 sm:$0xff]  }
 0x15b   : > { %2026 = vmatprep.subr.bf16.mxu0 %v4057_v28 }
 0x15d   : > { %909 = vmatpush1.bf16.msra.mxu1 %v4040_v26 }
 0x15e   : > { %910 = vmatprep.subr.bf16.mxu1 %v4048_v29  ;;  %2027 = vmatpush1.bf16.msra.mxu0 %v4055_v32 }
 0x15f   : > { %2028 = vmatprep.subr.bf16.mxu0 %v4063_v33 }
 0x161   : > { %911 = vmatpush1.bf16.msra.mxu1 %v4046_v31 }
 0x162   : > { %v931_v35 = vpop.permute.xlu0 %930  ;;  %v395_v36 = vpop.permute.xlu1 %394  ;;  %1170 = vmatprep.subr.bf16.mxu1 %v4054_v34  ;;  %2029 = vmatpush1.bf16.msra.mxu0 %v4061_v38  ;;  %v4072_v38 = vld [vmem:[%s4988_s19 + $0x234] ss:$8 sps:$4 sm:$0xff]  }
 0x163   : > { %v939_v37 = vrot.slane %v931_v35, %v402_v30  ;;  %v5171_v39 = vrot.slane %v395_v36, %v402_v30  ;;  %2265 = vmatprep.subr.bf16.mxu0 %v4069_v40  ;;  %v4064_v35 = vld [vmem:[%s4988_s19 + $0x220] ss:$8 sps:$4 sm:$0xff]  }
 0x165   : > { %v1762_v41 = vshrl.u32 %v939_v37, 16  ;;  %v1765_v42 = vshll.u32 %v939_v37, 16  ;;  %v957_v45 = vrot.slane %v939_v37, 7  ;;  %v2052_v48 = vrot.slane %v5171_v39, 5 }
 0x166   : > { %v943_v43 = vpop.permute.xlu0 %942  ;;  %v407_v44 = vpop.permute.xlu1 %406  ;;  %v416_v53 = vmul.bf16 %v5171_v39, %v5047_v46  ;;  %v5235_v24 = vmul.bf16 %v5214_v13, %v939_v37 }
 0x167   : > { %v1764_v49 = vrot.slane %v1762_v41, 5  ;;  %v1767_v50 = vrot.slane %v1765_v42, 6  ;;  %v951_v51 = vrot.slane %v943_v43, %v402_v30  ;;  %v5175_v52 = vrot.slane %v407_v44, %v402_v30 }
 0x168   : > { %v958_v59 = vrot.slane %v957_v45, 4  ;;  %v2053_v2 = vrot.slane %v2052_v48, 4  ;;  %v5208_v11 = vmul.bf16 %v957_v45, %v5186_v58  ;;  %v5219_v16 = vmul.bf16 %v2052_v48, %v5200_v5  ;;  %v4067_v45 = vld [vmem:[%s4988_s19 + $0x600] ss:$8 sps:$4 sm:$0xff]  }
 0x169   : > { %v1768_v57 = vor.u32 %v1767_v50, %v1764_v49  ;;  %v959_v46 = vrot.slane %v951_v51, 7  ;;  %v1771_v61 = vshll.u32 %v951_v51, 16  ;;  %v417_v62 = vmul.bf16 %v5175_v52, %v5050_v47  ;;  %v4060_v47 = vld [vmem:[%s4988_s19 + $0x214] ss:$8 sps:$4 sm:$0xff]   ;;  %v4070_v50 = vld [vmem:[%s4988_s19 + $0x230] ss:$8 sps:$4 sm:$0xff]  }
 0x16a   : > { %v2054_v4 = vrot.slane %v5175_v52, 5  ;;  %v5238_v30 = vmul.bf16 %v2579_v18, %v951_v51  ;;  %v4075_v51 = vld [vmem:[%s4988_s19 + $0x614] ss:$8 sps:$4 sm:$0xff]   ;;  %v4097_v18 = vld [vmem:[%s4988_s19 + $0x650] ss:$8 sps:$4 sm:$0xff]  }
 0x16b   : > { %v1769_v3 = vrot.slane %v1768_v57, 4  ;;  %v1773_v6 = vrot.slane %v1771_v61, 6  ;;  %v3153_v7 = vcombine.high %v416_v53, %v417_v62  ;;  %v3152_v9 = vcombine.low %v416_v53, %v417_v62  ;;  %v4078_v53 = vld [vmem:[%s4988_s19 + $0x244] ss:$8 sps:$4 sm:$0xff]   ;;  %v4082_v61 = vld [vmem:[%s4988_s19 + $0x250] ss:$8 sps:$4 sm:$0xff]  }
 0x16c   : > { %v960_v10 = vsel %vm5181_vm10, %v958_v59, %v959_v46  ;;  %v2055_v15 = vsel %vm2051_vm13, %v2053_v2, %v2054_v4  ;;  %v1777_v20 = vmul.bf16 %v1768_v57, %v5065_v63  ;;  %v3615_v42 = vcombine.high %v5235_v24, %v5238_v30  ;;  %v4076_v57 = vld [vmem:[%s4988_s19 + $0x240] ss:$8 sps:$4 sm:$0xff]   ;;  %v4081_v59 = vld [vmem:[%s4988_s19 + $0x624] ss:$8 sps:$4 sm:$0xff]   ;;  %v4087_v62 = vld [vmem:[%s4988_s19 + $0x634] ss:$8 sps:$4 sm:$0xff]  }
 0x16d   : > { %v5211_v12 = vmul.bf16 %v960_v10, %v5196_v1  ;;  %v1774_v14 = vsel %vm5189_vm12, %v1769_v3, %v1773_v6  ;;  %912 = vmatprep.mubr.bf16.mxu1 %v3153_v7  ;;  %v5232_v23 = vmul.bf16 %v2055_v15, %v5214_v13  ;;  %v3614_v43 = vcombine.low %v5235_v24, %v5238_v30  ;;  %v4079_v46 = vld [vmem:[%s4988_s19 + $0x620] ss:$8 sps:$4 sm:$0xff]   ;;  %v4090_v2 = vld [vmem:[%s4988_s19 + $0x264] ss:$8 sps:$4 sm:$0xff]   ;;  %v4085_v3 = vld [vmem:[%s4988_s19 + $0x630] ss:$8 sps:$4 sm:$0xff]  }
 0x16e   : > { %913 = vmatmul.mubr.bf16.vlgmr.msra.gmra.mrb[0].mxu1 %v3152_v9  ;;  %v1778_v21 = vmul.bf16 %v1774_v14, %v5068_v0  ;;  %v4088_v4 = vld [vmem:[%s4988_s19 + $0x260] ss:$8 sps:$4 sm:$0xff]   ;;  %v4093_v6 = vld [vmem:[%s4988_s19 + $0x644] ss:$8 sps:$4 sm:$0xff]   ;;  %v4096_v7 = vld [vmem:[%s4988_s19 + $0x274] ss:$8 sps:$4 sm:$0xff]  }
 0x16f   : > { %v3219_v19 = vcombine.high %v5208_v11, %v5211_v12  ;;  %1171 = vmatpush1.bf16.msra.mxu1 %v4052_v8  ;;  %v3483_v63 = vcombine.high %v5219_v16, %v5232_v23  ;;  %v3482_v0 = vcombine.low %v5219_v16, %v5232_v23  ;;  %v4091_v8 = vld [vmem:[%s4988_s19 + $0x640] ss:$8 sps:$4 sm:$0xff]   ;;  %v4094_v9 = vld [vmem:[%s4988_s19 + $0x270] ss:$8 sps:$4 sm:$0xff]   ;;  %v4099_v10 = vld [vmem:[%s4988_s19 + $0x654] ss:$8 sps:$4 sm:$0xff]  }
 0x170   : > { %1172 = vmatprep.subr.bf16.mxu1 %v4060_v47  ;;  %v3417_v28 = vcombine.high %v1777_v20, %v1778_v21  ;;  %v3416_v29 = vcombine.low %v1777_v20, %v1778_v21  ;;  %v4102_v47 = vld [vmem:[%s4988_s19 + $0x284] ss:$8 sps:$4 sm:$0xff]   ;;  %v1221_v14 = vshrl.u32 %v5171_v39, 16  ;;  %v1224_v15 = vshll.u32 %v5171_v39, 16  ;;  %v4108_v21 = vld [vmem:[%s4988_s19 + $0x294] ss:$8 sps:$4 sm:$0xff]  }
 0x171   : > { %v1007_v26 = vrot.slane %v3219_v19, 1  ;;  %v2102_v49 = vrot.slane %v3483_v63, 3  ;;  %v4100_v19 = vld [vmem:[%s4988_s19 + $0x280] ss:$8 sps:$4 sm:$0xff]   ;;  %v4105_v20 = vld [vmem:[%s4988_s19 + $0x664] ss:$8 sps:$4 sm:$0xff]  }
 0x172   : > { %v1829_v31 = vshrl.u32 %v3417_v28, 16  ;;  %v1832_v32 = vshll.u32 %v3417_v28, 16  ;;  %v1821_v33 = vshrl.u32 %v3416_v29, 16  ;;  %v1824_v34 = vshll.u32 %v3416_v29, 16  ;;  %v4106_v39 = vld [vmem:[%s4988_s19 + $0x290] ss:$8 sps:$4 sm:$0xff]  }
 0x173   : > { %1202 = vmatprep.mubr.bf16.mxu1 %v1007_v26  ;;  %1173 = vmatpush1.bf16.msra.mxu1 %v4058_v22  ;;  %v1223_v22 = vrot.slane %v1221_v14, 6  ;;  %v1226_v26 = vrot.slane %v1224_v15, 7  ;;  %v4111_v28 = vld [vmem:[%s4988_s19 + $0x674] ss:$8 sps:$4 sm:$0xff]   ;;  %v4114_v29 = vld [vmem:[%s4988_s19 + $0x2a4] ss:$8 sps:$4 sm:$0xff]   ;;  %v3549_v15 = vcombine.high %v5200_v5, %v5214_v13 }
 0x174   : > { %1174 = vmatprep.subr.bf16.mxu1 %v4066_v27  ;;  %v1831_v36 = vrot.slane %v1829_v31, 2  ;;  %v1834_v37 = vrot.slane %v1832_v32, 3  ;;  %v1823_v40 = vrot.slane %v1821_v33, 2  ;;  %v1826_v41 = vrot.slane %v1824_v34, 3  ;;  %v4103_v27 = vld [vmem:[%s4988_s19 + $0x660] ss:$8 sps:$4 sm:$0xff]  }
 0x175   : > { %v1230_v63 = vshll.u32 %v5175_v52, 16  ;;  %v1227_v31 = vor.u32 %v1226_v26, %v1223_v22  ;;  %v4109_v32 = vld [vmem:[%s4988_s19 + $0x670] ss:$8 sps:$4 sm:$0xff]   ;;  %v4112_v33 = vld [vmem:[%s4988_s19 + $0x2a0] ss:$8 sps:$4 sm:$0xff]   ;;  %v2362_v22 = vshrl.u32 %v3549_v15, 16 }
 0x176   : > { %v1835_v44 = vor.u32 %v1834_v37, %v1831_v36  ;;  %v1827_v48 = vor.u32 %v1826_v41, %v1823_v40  ;;  %v4117_v34 = vld [vmem:[%s4988_s19 + $0x684] ss:$8 sps:$4 sm:$0xff]   ;;  %v4115_v52 = vld [vmem:[%s4988_s19 + $0x680] ss:$8 sps:$4 sm:$0xff]   ;;  %v4123_v40 = vld [vmem:[%s4988_s19 + $0x694] ss:$8 sps:$4 sm:$0xff]  }
 0x177   : > { %1175 = vmatpush1.bf16.msra.mxu1 %v4064_v35  ;;  %v4120_v35 = vld [vmem:[%s4988_s19 + $0x2b4] ss:$8 sps:$4 sm:$0xff]   ;;  %v1232_v36 = vrot.slane %v1230_v63, 7  ;;  %v1228_v37 = vrot.slane %v1227_v31, 4  ;;  %v4126_v41 = vld [vmem:[%s4988_s19 + $0x2c4] ss:$8 sps:$4 sm:$0xff]  }
 0x178   : > { %2030 = vmatprep.mubr.bf16.mxu0 %v1835_v44  ;;  %1176 = vmatprep.subr.bf16.mxu1 %v4072_v38  ;;  %v4118_v38 = vld [vmem:[%s4988_s19 + $0x2b0] ss:$8 sps:$4 sm:$0xff]   ;;  %v2365_v26 = vshll.u32 %v3549_v15, 16  ;;  %v4160_v13 = vld [vmem:[%s4988_s19 + $0x6f4] ss:$8 sps:$4 sm:$0xff]  }
 0x179   : > { %2031 = vmatmul.mubr.bf16.vlgmr.msra.gmra.mrb[0].mxu0 %v1827_v48  ;;  %v1233_v44 = vsel %vm1219_vm0, %v1228_v37, %v1232_v36  ;;  %v4124_v48 = vld [vmem:[%s4988_s19 + $0x2c0] ss:$8 sps:$4 sm:$0xff]   ;;  %v4145_v14 = vld [vmem:[%s4988_s19 + $0x6d0] ss:$8 sps:$4 sm:$0xff]   ;;  %v4172_v37 = vld [vmem:[%s4988_s19 + $0x714] ss:$8 sps:$4 sm:$0xff]  }
 0x17a   : > { %2266 = vmatpush1.bf16.msra.mxu0 %v4067_v45  ;;  %2297 = vmatprep.mubr.bf16.mxu0 %v2102_v49  ;;  %v4121_v45 = vld [vmem:[%s4988_s19 + $0x690] ss:$8 sps:$4 sm:$0xff]   ;;  %v4129_v49 = vld [vmem:[%s4988_s19 + $0x6a4] ss:$8 sps:$4 sm:$0xff]   ;;  %v4161_v63 = vld [vmem:[%s4988_s19 + $0x320] ss:$8 sps:$4 sm:$0xff]  }
 0x17b   : > { %1177 = vmatpush1.bf16.msra.mxu1 %v4070_v50  ;;  %2267 = vmatprep.subr.bf16.mxu0 %v4075_v51  ;;  %v5293_v50 = vmul.bf16 %v1227_v31, %v5186_v58  ;;  %v5296_v51 = vmul.bf16 %v1233_v44, %v5196_v1  ;;  %v4133_v1 = vld [vmem:[%s4988_s19 + $0x6b0] ss:$8 sps:$4 sm:$0xff]   ;;  %v4166_v31 = vld [vmem:[%s4988_s19 + $0x704] ss:$8 sps:$4 sm:$0xff]   ;;  %v4181_v23 = vld [vmem:[%s4988_s19 + $0x354] ss:$8 sps:$4 sm:$0xff]  }
 0x17c   : > { %1178 = vmatprep.subr.bf16.mxu1 %v4078_v53  ;;  %v4132_v53 = vld [vmem:[%s4988_s19 + $0x2d4] ss:$8 sps:$4 sm:$0xff]   ;;  %v4154_v5 = vld [vmem:[%s4988_s19 + $0x310] ss:$8 sps:$4 sm:$0xff]   ;;  %v4178_v16 = vld [vmem:[%s4988_s19 + $0x724] ss:$8 sps:$4 sm:$0xff]  }
 0x17d   : > { %v3285_v58 = vcombine.high %v5293_v50, %v5296_v51  ;;  %v4167_v36 = vld [vmem:[%s4988_s19 + $0x330] ss:$8 sps:$4 sm:$0xff]   ;;  %v4184_v44 = vld [vmem:[%s4988_s19 + $0x734] ss:$8 sps:$4 sm:$0xff]  }
 0x17e   : > { %2268 = vmatpush1.bf16.msra.mxu0 %v4073_v55  ;;  %v4127_v55 = vld [vmem:[%s4988_s19 + $0x6a0] ss:$8 sps:$4 sm:$0xff]   ;;  %v4220_v15 = vld [vmem:[%s4988_s19 + $0x794] ss:$8 sps:$4 sm:$0xff]  }
 0x17f   : > { %1179 = vmatpush1.bf16.msra.mxu1 %v4076_v57  ;;  %2269 = vmatprep.subr.bf16.mxu0 %v4081_v59  ;;  %v4130_v57 = vld [vmem:[%s4988_s19 + $0x2d0] ss:$8 sps:$4 sm:$0xff]   ;;  %v4135_v59 = vld [vmem:[%s4988_s19 + $0x6b4] ss:$8 sps:$4 sm:$0xff]  }
 0x180   : > { %1180 = vmatprep.subr.bf16.mxu1 %v4084_v60  ;;  %v4138_v60 = vld [vmem:[%s4988_s19 + $0x2e4] ss:$8 sps:$4 sm:$0xff]  }
 0x182   : > { %2270 = vmatpush1.bf16.msra.mxu0 %v4079_v46  ;;  %v4136_v46 = vld [vmem:[%s4988_s19 + $0x2e0] ss:$8 sps:$4 sm:$0xff]  }
 0x183   : > { %1181 = vmatpush1.bf16.msra.mxu1 %v4082_v61  ;;  %2271 = vmatprep.subr.bf16.mxu0 %v4087_v62  ;;  %v4141_v61 = vld [vmem:[%s4988_s19 + $0x6c4] ss:$8 sps:$4 sm:$0xff]   ;;  %v4144_v62 = vld [vmem:[%s4988_s19 + $0x2f4] ss:$8 sps:$4 sm:$0xff]  }
 0x184   : > { %1182 = vmatprep.subr.bf16.mxu1 %v4090_v2  ;;  %v1288_v2 = vshrl.u32 %v3285_v58, 16 }
 0x186   : > { %2272 = vmatpush1.bf16.msra.mxu0 %v4085_v3  ;;  %v1291_v3 = vshll.u32 %v3285_v58, 16  ;;  %v4199_v58 = vld [vmem:[%s4988_s19 + $0x384] ss:$8 sps:$4 sm:$0xff]  }
 0x187   : > { %1183 = vmatpush1.bf16.msra.mxu1 %v4088_v4  ;;  %2273 = vmatprep.subr.bf16.mxu0 %v4093_v6  ;;  %v4139_v4 = vld [vmem:[%s4988_s19 + $0x6c0] ss:$8 sps:$4 sm:$0xff]   ;;  %v4142_v6 = vld [vmem:[%s4988_s19 + $0x2f0] ss:$8 sps:$4 sm:$0xff]  }
 0x188   : > { %1184 = vmatprep.subr.bf16.mxu1 %v4096_v7  ;;  %v4147_v7 = vld [vmem:[%s4988_s19 + $0x6d4] ss:$8 sps:$4 sm:$0xff]  }
 0x18a   : > { %2274 = vmatpush1.bf16.msra.mxu0 %v4091_v8  ;;  %v4150_v8 = vld [vmem:[%s4988_s19 + $0x304] ss:$8 sps:$4 sm:$0xff]  }
 0x18b   : > { %1185 = vmatpush1.bf16.msra.mxu1 %v4094_v9  ;;  %2275 = vmatprep.subr.bf16.mxu0 %v4099_v10  ;;  %v3218_v9 = vcombine.low %v5208_v11, %v5211_v12  ;;  %v1290_v10 = vrot.slane %v1288_v2, 1  ;;  %v4151_v12 = vld [vmem:[%s4988_s19 + $0x6e0] ss:$8 sps:$4 sm:$0xff]  }
 0x18c   : > { %1186 = vmatprep.subr.bf16.mxu1 %v4102_v47  ;;  %v1293_v47 = vrot.slane %v1291_v3, 2  ;;  %v4200_v2 = vld [vmem:[%s4988_s19 + $0x760] ss:$8 sps:$4 sm:$0xff]   ;;  %v4203_v3 = vld [vmem:[%s4988_s19 + $0x390] ss:$8 sps:$4 sm:$0xff]  }
 0x18e   : > { %2276 = vmatpush1.bf16.msra.mxu0 %v4097_v18  ;;  %v4148_v18 = vld [vmem:[%s4988_s19 + $0x300] ss:$8 sps:$4 sm:$0xff]   ;;  %v1294_v11 = vor.u32 %v1293_v47, %v1290_v10  ;;  %v4217_v10 = vld [vmem:[%s4988_s19 + $0x3b4] ss:$8 sps:$4 sm:$0xff]  }
 0x18f   : > { %1187 = vmatpush1.bf16.msra.mxu1 %v4100_v19  ;;  %2277 = vmatprep.subr.bf16.mxu0 %v4105_v20  ;;  %v4153_v19 = vld [vmem:[%s4988_s19 + $0x6e4] ss:$8 sps:$4 sm:$0xff]   ;;  %v1006_v20 = vrot.slane %v3218_v9, 1  ;;  %v4212_v47 = vld [vmem:[%s4988_s19 + $0x780] ss:$8 sps:$4 sm:$0xff]  }
 0x190   : > { %1188 = vmatprep.subr.bf16.mxu1 %v4108_v21  ;;  %v4156_v21 = vld [vmem:[%s4988_s19 + $0x314] ss:$8 sps:$4 sm:$0xff]   ;;  %v4214_v9 = vld [vmem:[%s4988_s19 + $0x784] ss:$8 sps:$4 sm:$0xff]  }
 0x192   : > { %2278 = vmatpush1.bf16.msra.mxu0 %v4103_v27  ;;  %v4163_v27 = vld [vmem:[%s4988_s19 + $0x324] ss:$8 sps:$4 sm:$0xff]  }
 0x193   : > { %1189 = vmatpush1.bf16.msra.mxu1 %v4106_v39  ;;  %2279 = vmatprep.subr.bf16.mxu0 %v4111_v28  ;;  %v4158_v39 = vld [vmem:[%s4988_s19 + $0x6f0] ss:$8 sps:$4 sm:$0xff]   ;;  %v2364_v28 = vrot.slane %v2362_v22, 3 }
 0x194   : > { %1190 = vmatprep.subr.bf16.mxu1 %v4114_v29  ;;  %v2367_v29 = vrot.slane %v2365_v26, 4  ;;  %v4227_v22 = vld [vmem:[%s4988_s19 + $0x3d0] ss:$8 sps:$4 sm:$0xff]   ;;  %v4232_v26 = vld [vmem:[%s4988_s19 + $0x7b4] ss:$8 sps:$4 sm:$0xff]  }
 0x196   : > { %2280 = vmatpush1.bf16.msra.mxu0 %v4109_v32  ;;  %v4169_v32 = vld [vmem:[%s4988_s19 + $0x334] ss:$8 sps:$4 sm:$0xff]  }
 0x197   : > { %1191 = vmatpush1.bf16.msra.mxu1 %v4112_v33  ;;  %2281 = vmatprep.subr.bf16.mxu0 %v4117_v34  ;;  %v4164_v33 = vld [vmem:[%s4988_s19 + $0x700] ss:$8 sps:$4 sm:$0xff]   ;;  %v2368_v34 = vor.u32 %v2367_v29, %v2364_v28  ;;  %v4238_v28 = vld [vmem:[%s4988_s19 + $0x7c4] ss:$8 sps:$4 sm:$0xff]   ;;  %v4241_v29 = vld [vmem:[%s4988_s19 + $0x3f4] ss:$8 sps:$4 sm:$0xff]  }
 0x198   : > { %1192 = vmatprep.subr.bf16.mxu1 %v4120_v35  ;;  %v2101_v35 = vrot.slane %v3482_v0, 3  ;;  %v4176_v0 = vld [vmem:[%s4988_s19 + $0x720] ss:$8 sps:$4 sm:$0xff]  }
 0x19a   : > { %2282 = vmatpush1.bf16.msra.mxu0 %v4115_v52  ;;  %v4175_v52 = vld [vmem:[%s4988_s19 + $0x344] ss:$8 sps:$4 sm:$0xff]  }
 0x19b   : > { %1193 = vmatpush1.bf16.msra.mxu1 %v4118_v38  ;;  %2283 = vmatprep.subr.bf16.mxu0 %v4123_v40  ;;  %v4170_v38 = vld [vmem:[%s4988_s19 + $0x710] ss:$8 sps:$4 sm:$0xff]   ;;  %v4173_v40 = vld [vmem:[%s4988_s19 + $0x340] ss:$8 sps:$4 sm:$0xff]  }
 0x19c   : > { %1194 = vmatprep.subr.bf16.mxu1 %v4126_v41  ;;  %v4179_v41 = vld [vmem:[%s4988_s19 + $0x350] ss:$8 sps:$4 sm:$0xff]  }
 0x19e   : > { %2284 = vmatpush1.bf16.msra.mxu0 %v4121_v45  ;;  %v4187_v45 = vld [vmem:[%s4988_s19 + $0x364] ss:$8 sps:$4 sm:$0xff]  }
 0x19f   : > { %1195 = vmatpush1.bf16.msra.mxu1 %v4124_v48  ;;  %2285 = vmatprep.subr.bf16.mxu0 %v4129_v49  ;;  %v4182_v48 = vld [vmem:[%s4988_s19 + $0x730] ss:$8 sps:$4 sm:$0xff]   ;;  %v4185_v49 = vld [vmem:[%s4988_s19 + $0x360] ss:$8 sps:$4 sm:$0xff]  }
 0x1a0   : > { %1196 = vmatprep.subr.bf16.mxu1 %v4132_v53  ;;  %v4190_v53 = vld [vmem:[%s4988_s19 + $0x744] ss:$8 sps:$4 sm:$0xff]  }
 0x1a2   : > { %2286 = vmatpush1.bf16.msra.mxu0 %v4127_v55  ;;  %v4193_v55 = vld [vmem:[%s4988_s19 + $0x374] ss:$8 sps:$4 sm:$0xff]  }
 0x1a3   : > { %1197 = vmatpush1.bf16.msra.mxu1 %v4130_v57  ;;  %2287 = vmatprep.subr.bf16.mxu0 %v4135_v59  ;;  %v4188_v57 = vld [vmem:[%s4988_s19 + $0x740] ss:$8 sps:$4 sm:$0xff]   ;;  %v4191_v59 = vld [vmem:[%s4988_s19 + $0x370] ss:$8 sps:$4 sm:$0xff]  }
 0x1a4   : > { %1198 = vmatprep.subr.bf16.mxu1 %v4138_v60  ;;  %v4196_v60 = vld [vmem:[%s4988_s19 + $0x754] ss:$8 sps:$4 sm:$0xff]  }
 0x1a6   : > { %2288 = vmatpush1.bf16.msra.mxu0 %v4133_v1  ;;  %v4194_v1 = vld [vmem:[%s4988_s19 + $0x750] ss:$8 sps:$4 sm:$0xff]  }
 0x1a7   : > { %1199 = vmatpush1.bf16.msra.mxu1 %v4136_v46  ;;  %2289 = vmatprep.subr.bf16.mxu0 %v4141_v61  ;;  %v4197_v46 = vld [vmem:[%s4988_s19 + $0x380] ss:$8 sps:$4 sm:$0xff]   ;;  %v4202_v61 = vld [vmem:[%s4988_s19 + $0x764] ss:$8 sps:$4 sm:$0xff]  }
 0x1a8   : > { %1200 = vmatprep.subr.bf16.mxu1 %v4144_v62  ;;  %v4205_v62 = vld [vmem:[%s4988_s19 + $0x394] ss:$8 sps:$4 sm:$0xff]  }
 0x1aa   : > { %2290 = vmatpush1.bf16.msra.mxu0 %v4139_v4  ;;  %v4208_v4 = vld [vmem:[%s4988_s19 + $0x774] ss:$8 sps:$4 sm:$0xff]  }
 0x1ab   : > { %1201 = vmatpush1.bf16.msra.mxu1 %v4142_v6  ;;  %2291 = vmatprep.subr.bf16.mxu0 %v4147_v7  ;;  %v4211_v6 = vld [vmem:[%s4988_s19 + $0x3a4] ss:$8 sps:$4 sm:$0xff]   ;;  %v4206_v7 = vld [vmem:[%s4988_s19 + $0x770] ss:$8 sps:$4 sm:$0xff]  }
 0x1ac   : > { %1457 = vmatprep.subr.bf16.mxu1 %v4150_v8  ;;  %v4209_v8 = vld [vmem:[%s4988_s19 + $0x3a0] ss:$8 sps:$4 sm:$0xff]  }
 0x1ae   : > { %1203 = vmatmul.mubr.bf16.vlgmr.msra.gmra.mrb[0].mxu1 %v1006_v20  ;;  %2292 = vmatpush1.bf16.msra.mxu0 %v4145_v14  ;;  %v4215_v14 = vld [vmem:[%s4988_s19 + $0x3b0] ss:$8 sps:$4 sm:$0xff]   ;;  %v4221_v20 = vld [vmem:[%s4988_s19 + $0x3c0] ss:$8 sps:$4 sm:$0xff]  }
 0x1af   : > { %1458 = vmatpush1.bf16.msra.mxu1 %v4148_v18  ;;  %2293 = vmatprep.subr.bf16.mxu0 %v4153_v19  ;;  %v4223_v18 = vld [vmem:[%s4988_s19 + $0x3c4] ss:$8 sps:$4 sm:$0xff]   ;;  %v4218_v19 = vld [vmem:[%s4988_s19 + $0x790] ss:$8 sps:$4 sm:$0xff]  }
 0x1b0   : > { %1459 = vmatprep.subr.bf16.mxu1 %v4156_v21  ;;  %1489 = vmatprep.mubr.bf16.mxu1 %v1294_v11  ;;  %v4226_v21 = vld [vmem:[%s4988_s19 + $0x7a4] ss:$8 sps:$4 sm:$0xff]   ;;  %v4229_v11 = vld [vmem:[%s4988_s19 + $0x3d4] ss:$8 sps:$4 sm:$0xff]  }
 0x1b2   : > { %2294 = vmatpush1.bf16.msra.mxu0 %v4151_v12  ;;  %v4224_v12 = vld [vmem:[%s4988_s19 + $0x7a0] ss:$8 sps:$4 sm:$0xff]  }
 0x1b3   : > { %1460 = vmatpush1.bf16.msra.mxu1 %v4154_v5  ;;  %2295 = vmatprep.subr.bf16.mxu0 %v4160_v13  ;;  %v3284_v5 = vcombine.low %v5293_v50, %v5296_v51  ;;  %v4235_v13 = vld [vmem:[%s4988_s19 + $0x3e4] ss:$8 sps:$4 sm:$0xff]   ;;  %v4239_v50 = vld [vmem:[%s4988_s19 + $0x3f0] ss:$8 sps:$4 sm:$0xff]   ;;  %v4244_v51 = vld [vmem:[%s4988_s19 + $0x7d4] ss:$8 sps:$4 sm:$0xff]  }
 0x1b4   : > { %1461 = vmatprep.subr.bf16.mxu1 %v4163_v27  ;;  %v4230_v27 = vld [vmem:[%s4988_s19 + $0x7b0] ss:$8 sps:$4 sm:$0xff]  }
 0x1b6   : > { %2296 = vmatpush1.bf16.msra.mxu0 %v4158_v39  ;;  %v4233_v39 = vld [vmem:[%s4988_s19 + $0x3e0] ss:$8 sps:$4 sm:$0xff]  }
 0x1b7   : > { %1462 = vmatpush1.bf16.msra.mxu1 %v4161_v63  ;;  %2531 = vmatprep.subr.bf16.mxu0 %v4166_v31  ;;  %v1280_v63 = vshrl.u32 %v3284_v5, 16  ;;  %v1283_v31 = vshll.u32 %v3284_v5, 16 }
 0x1b8   : > { %1463 = vmatprep.subr.bf16.mxu1 %v4169_v32  ;;  %v4236_v32 = vld [vmem:[%s4988_s19 + $0x7c0] ss:$8 sps:$4 sm:$0xff]  }
 0x1b9   : > { %2298 = vmatmul.mubr.bf16.vlgmr.msra.gmra.mrb[0].mxu0 %v2101_v35  ;;  %v4242_v35 = vld [vmem:[%s4988_s19 + $0x7d0] ss:$8 sps:$4 sm:$0xff]  }
 0x1ba   : > { %2532 = vmatpush1.bf16.msra.mxu0 %v4164_v33  ;;  %2563 = vmatprep.mubr.bf16.mxu0 %v2368_v34  ;;  %v1282_v33 = vrot.slane %v1280_v63, 1  ;;  %v1285_v34 = vrot.slane %v1283_v31, 2 }
 0x1bb   : > { %1464 = vmatpush1.bf16.msra.mxu1 %v4167_v36  ;;  %2533 = vmatprep.subr.bf16.mxu0 %v4172_v37  ;;  %v4247_v36 = vld [vmem:[%s4988_s19 + $0x7e4] ss:$8 sps:$4 sm:$0xff]  }
 0x1bc   : > { %1465 = vmatprep.subr.bf16.mxu1 %v4175_v52  ;;  %v1286_v37 = vor.u32 %v1285_v34, %v1282_v33  ;;  %v2354_v52 = vshrl.u32 %v5223_v17, 16 }
 0x1be   : > { %2534 = vmatpush1.bf16.msra.mxu0 %v4170_v38  ;;  %v2357_v38 = vshll.u32 %v5223_v17, 16  ;;  %v4252_v17 = vld [vmem:[%s4988_s19 + $0x800] ss:$8 sps:$4 sm:$0xff]  }
 0x1bf   : > { %1466 = vmatpush1.bf16.msra.mxu1 %v4173_v40  ;;  %2535 = vmatprep.subr.bf16.mxu0 %v4178_v16  ;;  %v4245_v40 = vld [vmem:[%s4988_s19 + $0x7e0] ss:$8 sps:$4 sm:$0xff]   ;;  %v4250_v16 = vld [vmem:[%s4988_s19 + $0x7f4] ss:$8 sps:$4 sm:$0xff]  }
 0x1c0   : > { %1467 = vmatprep.subr.bf16.mxu1 %v4181_v23  ;;  %v2356_v23 = vrot.slane %v2354_v52, 3 }
 0x1c2   : > { %2536 = vmatpush1.bf16.msra.mxu0 %v4176_v0  ;;  %v2359_v0 = vrot.slane %v2357_v38, 4 }
 0x1c3   : > { %1468 = vmatpush1.bf16.msra.mxu1 %v4179_v41  ;;  %2537 = vmatprep.subr.bf16.mxu0 %v4184_v44  ;;  %v4248_v41 = vld [vmem:[%s4988_s19 + $0x7f0] ss:$8 sps:$4 sm:$0xff]   ;;  %v4254_v44 = vld [vmem:[%s4988_s19 + $0x804] ss:$8 sps:$4 sm:$0xff]  }
 0x1c4   : > { %1469 = vmatprep.subr.bf16.mxu1 %v4187_v45  ;;  %v2360_v45 = vor.u32 %v2359_v0, %v2356_v23 }
 0x1c6   : > { %2538 = vmatpush1.bf16.msra.mxu0 %v4182_v48  ;;  %v4257_v48 = vld [vmem:[%s4988_s19 + $0x814] ss:$8 sps:$4 sm:$0xff]  }
 0x1c7   : > { %1470 = vmatpush1.bf16.msra.mxu1 %v4185_v49  ;;  %2539 = vmatprep.subr.bf16.mxu0 %v4190_v53  ;;  %v4255_v49 = vld [vmem:[%s4988_s19 + $0x810] ss:$8 sps:$4 sm:$0xff]   ;;  %v4260_v53 = vld [vmem:[%s4988_s19 + $0x824] ss:$8 sps:$4 sm:$0xff]  }
 0x1c8   : > { %1471 = vmatprep.subr.bf16.mxu1 %v4193_v55  ;;  %v4258_v55 = vld [vmem:[%s4988_s19 + $0x820] ss:$8 sps:$4 sm:$0xff]  }
 0x1ca   : > { %2540 = vmatpush1.bf16.msra.mxu0 %v4188_v57  ;;  %v4263_v57 = vld [vmem:[%s4988_s19 + $0x834] ss:$8 sps:$4 sm:$0xff]  }
 0x1cb   : > { %1472 = vmatpush1.bf16.msra.mxu1 %v4191_v59  ;;  %2541 = vmatprep.subr.bf16.mxu0 %v4196_v60  ;;  %v4261_v59 = vld [vmem:[%s4988_s19 + $0x830] ss:$8 sps:$4 sm:$0xff]   ;;  %v4266_v60 = vld [vmem:[%s4988_s19 + $0x844] ss:$8 sps:$4 sm:$0xff]  }
 0x1cc   : > { %1473 = vmatprep.subr.bf16.mxu1 %v4199_v58  ;;  %v4264_v58 = vld [vmem:[%s4988_s19 + $0x840] ss:$8 sps:$4 sm:$0xff]  }
 0x1ce   : > { %2542 = vmatpush1.bf16.msra.mxu0 %v4194_v1  ;;  %v4267_v1 = vld [vmem:[%s4988_s19 + $0x850] ss:$8 sps:$4 sm:$0xff]  }
 0x1cf   : > { %1474 = vmatpush1.bf16.msra.mxu1 %v4197_v46  ;;  %2543 = vmatprep.subr.bf16.mxu0 %v4202_v61  ;;  %v4272_v46 = vld [vmem:[%s4988_s19 + $0x864] ss:$8 sps:$4 sm:$0xff]   ;;  %v4270_v61 = vld [vmem:[%s4988_s19 + $0x860] ss:$8 sps:$4 sm:$0xff]  }
 0x1d0   : > { %1475 = vmatprep.subr.bf16.mxu1 %v4205_v62  ;;  %v4275_v62 = vld [vmem:[%s4988_s19 + $0x874] ss:$8 sps:$4 sm:$0xff]  }
 0x1d2   : > { %2544 = vmatpush1.bf16.msra.mxu0 %v4200_v2  ;;  %v4273_v2 = vld [vmem:[%s4988_s19 + $0x870] ss:$8 sps:$4 sm:$0xff]  }
 0x1d3   : > { %1476 = vmatpush1.bf16.msra.mxu1 %v4203_v3  ;;  %2545 = vmatprep.subr.bf16.mxu0 %v4208_v4  ;;  %v4278_v3 = vld [vmem:[%s4988_s19 + $0x884] ss:$8 sps:$4 sm:$0xff]   ;;  %v4276_v4 = vld [vmem:[%s4988_s19 + $0x880] ss:$8 sps:$4 sm:$0xff]  }
 0x1d4   : > { %1477 = vmatprep.subr.bf16.mxu1 %v4211_v6  ;;  %v4281_v6 = vld [vmem:[%s4988_s19 + $0x894] ss:$8 sps:$4 sm:$0xff]  }
 0x1d6   : > { %2546 = vmatpush1.bf16.msra.mxu0 %v4206_v7  ;;  %v4279_v7 = vld [vmem:[%s4988_s19 + $0x890] ss:$8 sps:$4 sm:$0xff]  }
 0x1d7   : > { %1478 = vmatpush1.bf16.msra.mxu1 %v4209_v8  ;;  %2547 = vmatprep.subr.bf16.mxu0 %v4214_v9  ;;  %v4284_v8 = vld [vmem:[%s4988_s19 + $0x8a4] ss:$8 sps:$4 sm:$0xff]   ;;  %v4282_v9 = vld [vmem:[%s4988_s19 + $0x8a0] ss:$8 sps:$4 sm:$0xff]  }
 0x1d8   : > { %1479 = vmatprep.subr.bf16.mxu1 %v4217_v10  ;;  %v4287_v10 = vld [vmem:[%s4988_s19 + $0x8b4] ss:$8 sps:$4 sm:$0xff]  }
 0x1da   : > { %2548 = vmatpush1.bf16.msra.mxu0 %v4212_v47  ;;  %v4285_v47 = vld [vmem:[%s4988_s19 + $0x8b0] ss:$8 sps:$4 sm:$0xff]  }
 0x1db   : > { %1480 = vmatpush1.bf16.msra.mxu1 %v4215_v14  ;;  %2549 = vmatprep.subr.bf16.mxu0 %v4220_v15  ;;  %v4290_v14 = vld [vmem:[%s4988_s19 + $0x8c4] ss:$8 sps:$4 sm:$0xff]   ;;  %v4288_v15 = vld [vmem:[%s4988_s19 + $0x8c0] ss:$8 sps:$4 sm:$0xff]  }
 0x1dc   : > { %1481 = vmatprep.subr.bf16.mxu1 %v4223_v18  ;;  %v4293_v18 = vld [vmem:[%s4988_s19 + $0x8d4] ss:$8 sps:$4 sm:$0xff]  }
 0x1de   : > { %2550 = vmatpush1.bf16.msra.mxu0 %v4218_v19  ;;  %v4291_v19 = vld [vmem:[%s4988_s19 + $0x8d0] ss:$8 sps:$4 sm:$0xff]  }
 0x1df   : > { %1482 = vmatpush1.bf16.msra.mxu1 %v4221_v20  ;;  %2551 = vmatprep.subr.bf16.mxu0 %v4226_v21  ;;  %v4296_v20 = vld [vmem:[%s4988_s19 + $0x8e4] ss:$8 sps:$4 sm:$0xff]   ;;  %v4294_v21 = vld [vmem:[%s4988_s19 + $0x8e0] ss:$8 sps:$4 sm:$0xff]  }
 0x1e0   : > { %1483 = vmatprep.subr.bf16.mxu1 %v4229_v11  ;;  %v4299_v11 = vld [vmem:[%s4988_s19 + $0x8f4] ss:$8 sps:$4 sm:$0xff]  }
 0x1e2   : > { %2552 = vmatpush1.bf16.msra.mxu0 %v4224_v12  ;;  %v4297_v12 = vld [vmem:[%s4988_s19 + $0x8f0] ss:$8 sps:$4 sm:$0xff]  }
 0x1e3   : > { %1484 = vmatpush1.bf16.msra.mxu1 %v4227_v22  ;;  %2553 = vmatprep.subr.bf16.mxu0 %v4232_v26 }
 0x1e4   : > { %1485 = vmatprep.subr.bf16.mxu1 %v4235_v13 }
 0x1e6   : > { %2554 = vmatpush1.bf16.msra.mxu0 %v4230_v27  ;;  %v2836_v27 = vsub.s32 0, %v5159_v25 }
 0x1e7   : > { %1486 = vmatpush1.bf16.msra.mxu1 %v4233_v39  ;;  %2555 = vmatprep.subr.bf16.mxu0 %v4238_v28  ;;  %v2832_v39 = vld [vmem:[%s333_s16] sm:$0x3]  ;;  %v2840_v28 = vsub.s32 1, %v5159_v25  ;;  %s4448_s16 = scalar_lea.vmem %s5440_s18, 256 }
 0x1e8   : > { %1487 = vmatprep.subr.bf16.mxu1 %v4241_v29  ;;  %v2848_v29 = vld [vmem:[%s342_s27] sm:$0x3]  ;;  %v2837_v63 = vrot.slane %v2832_v39, %v2836_v27  ;;  %p4449_p6 = scmp.ne.s32.totalorder %s5440_s18, %s4448_s16  ;;  %s4452_s27 = sshll.u32 %s4620_s9, 4  ;;  %s4453_s27 = int_to_ptr.vmem [resolvable:$false] %s4452_s27 }
 0x1e9   : > { %v2841_v24 = vrot.slane %v2832_v39, %v2840_v28  ;;  %s4454_s17 = scalar_lea.vmem %s4453_s27, 512  ;;  %p4455_p2 = scmp.lt.s32.totalorder %s5440_s18, %s4453_s27 }
 0x1ea   : > { %2556 = vmatpush1.bf16.msra.mxu0 %v4236_v32  ;;  %p4450_p13 = pnand %p4449_p6, %p5627_p5  ;;  %p4456_p7 = scmp.lt.s32.totalorder %s4454_s17, %s4448_s16 }
 0x1eb   : > { %1488 = vmatpush1.bf16.msra.mxu1 %v4239_v50  ;;  %2557 = vmatprep.subr.bf16.mxu0 %v4244_v51  ;;  %v2857_v51 = vrot.slane %v2848_v29, %v2840_v28 }
 0x1ec   : > { %p4451_p3 = pneg %p4450_p13  ;;  %p4457_p1 = por %p4456_p7, %p4455_p2 }
 0x1ee   : > { %1490 = vmatmul.mubr.bf16.vlgmr.msra.gmra.mrb[0].mxu1 %v1286_v37  ;;  %2558 = vmatpush1.bf16.msra.mxu0 %v4242_v35  ;;  %p4458_p0 = pnand %p4457_p1, %p4451_p3 }
 0x1ef   : > { %2559 = vmatprep.subr.bf16.mxu0 %v4247_v36 }
 0x1f2   : > { %2560 = vmatpush1.bf16.msra.mxu0 %v4245_v40 }
 0x1f3   : > { %2561 = vmatprep.subr.bf16.mxu0 %v4250_v16 }
 0x1f6   : > { %2562 = vmatpush1.bf16.msra.mxu0 %v4248_v41 }
 0x1f7   : > { %2785 = vmatprep.subr.bf16.mxu0 %v4254_v44 }
 0x1f9   : > { %2564 = vmatmul.mubr.bf16.vlgmr.msra.gmra.mrb[0].mxu0 %v2360_v45 }
 0x1fa   : > { %2786 = vmatpush1.bf16.msra.mxu0 %v4252_v17  ;;  %2817 = vmatprep.mubr.bf16.mxu0 %v3615_v42  ;;  %v4269_v42 = vld [vmem:[%s4988_s19 + $0x854] ss:$8 sps:$4 sm:$0xff]   ;;  %s5445_s19 = scalar_lea.hbm %s5625_s29, %s3653_s22 }
 0x1fb   : > { %2787 = vmatprep.subr.bf16.mxu0 %v4257_v48 }
 0x1fe   : > { %2788 = vmatpush1.bf16.msra.mxu0 %v4255_v49  ;;  %v2886_v49 = vld [vmem:[%s383_s24 + $0x8] sm:$0x11] }
 0x1ff   : > { %2789 = vmatprep.subr.bf16.mxu0 %v4260_v53 }
 0x202   : > { %2790 = vmatpush1.bf16.msra.mxu0 %v4258_v55 }
 0x203   : > { %2791 = vmatprep.subr.bf16.mxu0 %v4263_v57 }
 0x206   : > { %2792 = vmatpush1.bf16.msra.mxu0 %v4261_v59 }
 0x207   : > { %2793 = vmatprep.subr.bf16.mxu0 %v4266_v60 }
 0x20a   : > { %2794 = vmatpush1.bf16.msra.mxu0 %v4264_v58 }
 0x20b   : > { %2795 = vmatprep.subr.bf16.mxu0 %v4269_v42 }
 0x20e   : > { %2796 = vmatpush1.bf16.msra.mxu0 %v4267_v1 }
 0x20f   : > { %2797 = vmatprep.subr.bf16.mxu0 %v4272_v46 }
 0x212   : > { %2798 = vmatpush1.bf16.msra.mxu0 %v4270_v61 }
 0x213   : > { %2799 = vmatprep.subr.bf16.mxu0 %v4275_v62 }
 0x216   : > { %2800 = vmatpush1.bf16.msra.mxu0 %v4273_v2 }
 0x217   : > { %2801 = vmatprep.subr.bf16.mxu0 %v4278_v3 }
 0x21a   : > { %2802 = vmatpush1.bf16.msra.mxu0 %v4276_v4 }
 0x21b   : > { %2803 = vmatprep.subr.bf16.mxu0 %v4281_v6 }
 0x21e   : > { %2804 = vmatpush1.bf16.msra.mxu0 %v4279_v7 }
 0x21f   : > { %2805 = vmatprep.subr.bf16.mxu0 %v4284_v8 }
 0x222   : > { %2806 = vmatpush1.bf16.msra.mxu0 %v4282_v9 }
 0x223   : > { %2807 = vmatprep.subr.bf16.mxu0 %v4287_v10 }
 0x226   : > { %2808 = vmatpush1.bf16.msra.mxu0 %v4285_v47 }
 0x227   : > { %2809 = vmatprep.subr.bf16.mxu0 %v4290_v14 }
 0x22a   : > { %2810 = vmatpush1.bf16.msra.mxu0 %v4288_v15 }
 0x22b   : > { %2811 = vmatprep.subr.bf16.mxu0 %v4293_v18 }
 0x22e   : > { %2812 = vmatpush1.bf16.msra.mxu0 %v4291_v19 }
 0x22f   : > { %2813 = vmatprep.subr.bf16.mxu0 %v4296_v20 }
 0x232   : > { %2814 = vmatpush1.bf16.msra.mxu0 %v4294_v21 }
 0x233   : > { %2815 = vmatprep.subr.bf16.mxu0 %v4299_v11 }
 0x236   : > { %2816 = vmatpush1.bf16.msra.mxu0 %v4297_v12 }
 0x239   : > { %2818 = vmatmul.mubr.bf16.vlgmr.msra.gmra.mrb[0].mxu0 %v3614_v43  ;;  %v2853_v43 = vrot.slane %v2848_v29, %v2836_v27 }
 0x2c1   : > { %v1491_v22 = vpop.f32.mrb[0].mxu1 }
 0x2c2   : > { %v1493_v26 = vpop.f32.mrb[1].mxu1 }
 0x2c3   : > { %v1495_v5 = vpop.f32.mrb[2].mxu1 }
 0x2c4   : > { %v1497_v13 = vpop.f32.mrb[3].mxu1 }
 0x30c   : > { %v2819_v31 = vpop.f32.mrb[0].mxu0 }
 0x30d   : > { %v3661_v30 = vadd.f32 %v2819_v31, %v1491_v22  ;;  %v2821_v32 = vpop.f32.mrb[1].mxu0 }
 0x30e   : > { %v3662_v50 = vadd.f32 %v2821_v32, %v1493_v26  ;;  %v2823_v33 = vpop.f32.mrb[2].mxu0 }
 0x30f   : > { %v2844_v34 = vmul.f32 %v3661_v30, %v2837_v63  ;;  %v3663_v35 = vadd.f32 %v2823_v33, %v1495_v5  ;;  %v2825_v36 = vpop.f32.mrb[3].mxu0 }
 0x310   : > { %v2845_v25 = vmul.f32 %v3662_v50, %v2841_v24  ;;  %v3664_v37 = vadd.f32 %v2825_v36, %v1497_v13 }
 0x311   : > { %v2860_v52 = vadd.f32 %v2853_v43, %v2844_v34  ;;  %v2846_v38 = vmul.f32 %v3663_v35, %v2837_v63 }
 0x312   : > { %v2861_v40 = vadd.f32 %v2857_v51, %v2845_v25  ;;  %v2847_v16 = vmul.f32 %v3664_v37, %v2841_v24 }
 0x313   : > { %v2864_v23 = vmax.f32 %v2860_v52, 0.0  ;;  %v2862_v0 = vadd.f32 %v2853_v43, %v2846_v38 }
 0x314   : > { %v2865_v41 = vmax.f32 %v2861_v40, 0.0  ;;  %v2863_v44 = vadd.f32 %v2857_v51, %v2847_v16 }
 0x315   : > { %v2866_v45 = vmax.f32 %v2862_v0, 0.0 }
 0x316   : > { %v3659_v17 = vpack.c.bf16 %v2865_v41, %v2864_v23  ;;  %v2867_v48 = vmax.f32 %v2863_v44, 0.0 }
 0x318   : > { %2880 = vst [vmem:[%s383_s24] sm:$0xff] %v3659_v17  ;;  %v3660_v53 = vpack.c.bf16 %v2867_v48, %v2866_v45 }
 0x31a   : > { %v2887_v55 = vsel %vm2885_vm6, %v3660_v53, %v2886_v49 }
 0x31b   : > { %2888 = vst [vmem:[%s383_s24 + $0x8] sm:$0x11] %v2887_v55 }
 0x31c   : > { %4461 = shalt.err (!%p4458_p0)
}
 0x31d   : > { %s4462_s25 = scalar_lea.hbm %s5445_s19, 256  ;;  %s4466_s8 = scalar_lea.hbm %s5626_s2, 1024 }
 0x31e   : > { %p4463_p11 = scmp.ne.s32.totalorder %s5445_s19, %s4462_s25  ;;  %p4467_p12 = scmp.lt.u32.totalorder %s5445_s19, %s5626_s2 }
 0x31f   : > { %p4468_p8 = scmp.lt.u32.totalorder %s4466_s8, %s4462_s25  ;;  %p4470_p6 = scmp.lt.u32.totalorder %s4462_s25, %s5445_s19 }
 0x320   : > { %p4464_p10 = pnand %p4463_p11, %p5627_p5 }
 0x321   : > { %p4469_p4 = por %p4468_p8, %p4467_p12 }
 0x322   : > { %p4465_p9 = pneg %p4464_p10 }
 0x323   : > { %p4471_p13 = por %p4470_p6, %p4469_p4 }
 0x325   : > { %p4472_p3 = pnand %p4471_p13, %p4465_p9 }
 0x327   : > { %4475 = shalt.err (!%p4472_p3)
}
 0x328   : > { %s4621_s24 = smov 128   ;;  %s4622_s22 = smov 256  }
 0x329   : > { %s4623_s11 = smov 8  }
 0x32a   : > { %3710 = dma.vmem_to_hbm [thread:$0]  (%p5627_p5), %s5440_s18, 256, %s5445_s19, %s5454_s21, %s4621_s24, %s4622_s22, %s4623_s11  }
 0x32b PF: > { %s5628_s13 = sld [smem:[#allocation17_spill]]  ;;  %s5629_s29 = sld [smem:[#allocation27_spill]] }
 0x32c   : > { %p3736_p2 = scmp.ge.s32.totalorder %s4606_s6, 2 }
 0x331   : > { %s2920_s16 = sand.u32 1, %s5628_s13   ;;  %p5630_p7 = scmp.ne.s32.totalorder %s5629_s29, 0 }
 0x332   : > { %s2921_s9 = scalar_lea.sflag [#allocation4], %s2920_s16 }
 0x333   : > { %p3730_p1 = pnand %p3736_p2, %p5630_p7 }
 0x335   : > { %4549 = dma.done.wait (!%p3730_p1), %s2921_s9, 256  }
 0x336   : > { %4551 = vsyncadd (!%p3730_p1), %s2921_s9, 4294967040  ;;  %s27_s6 = sadd.s32 1, %s4606_s6   ;;  %s5632_s18 = sld [smem:[#allocation18_spill]] }
 0x337   : > { %p5483_p0 = scmp.ge.s32.totalorder %s27_s6, 6   ;;  %s5633_s21 = sld [smem:[#allocation19_spill]] }
 0x338   : > { %s5634_s24 = sld [smem:[#allocation20_spill]]  ;;  %s5635_s7 = sld [smem:[#allocation23_spill]] }
 0x339   : > { %s5636_s29 = sld [smem:[#allocation30_spill]]  ;;  %s5637_s17 = sld [smem:[#allocation31_spill]] }
 0x33a   : > { %s5639_s19 = smov %s4562_s20  ;;  %s5640_s20 = smov %s4889_s10 }
 0x33b   : > { %s5641_s22 = smov %s4574_s23  ;;  %s5642_s23 = smov %s4886_s28 }
 0x33c   : > { %s5643_s25 = smov %s4586_s26  ;;  %s5644_s26 = smov %s4872_s5 }
 0x33d   : > { %s5646_s28 = smov %s4602_s30  ;;  %26 = sbr.rel (!%p5483_p0) target bundleno = 18 (0x12), region = 135 }
 0x33e   : > { %s5645_s27 = smov %s5635_s7 }
 0x33f   : > { %s5647_s30 = smov %s5637_s17 }
 0x344   :  { %2926 = vsyncpa [#allocation3], 1 }
 0x345   :  { %2928 = vsyncpa [#allocation3 + $0x1], 1 }
 0x346   :  { %2929 = vsyncpa [#allocation6], 1 }
 0x347   :  { %2931 = vsyncpa [#allocation6 + $0x1], 1 }
 0x348   :  { %2932 = vsyncpa [#allocation9], 1 }
 0x349   :  { %2934 = vsyncpa [#allocation9 + $0x1], 1 }
 0x34a   :  { %2935 = vsyncpa [#allocation4], 1 }
 0x34b   :  { %2937 = vsyncpa [#allocation4 + $0x1], 1 }

// kernel: test_et_al_forward.7
= control target key start
LH: loop header
LB: loop body
LE: loop exit
PB: predicated region body
PF: predicated region fallthrough
CT: control target
= control target key end

     0   :  { %9 = vsyncpa [#allocation3], 0  ;;  %s4641_s0 = inlined_call_operand.hbm [shape: bf16[2,4608], index: 0, kind: input, shape index: {}]   ;;  %s4642_s1 = inlined_call_operand.hbm [shape: bf16[4608,128], index: 1, kind: input, shape index: {}]   ;;  %s4643_s2 = inlined_call_operand.hbm [shape: f32[1,128], index: 2, kind: input, shape index: {}]   ;;  %s4644_s3 = inlined_call_operand.hbm [shape: f32[1,128], index: 3, kind: input, shape index: {}]   ;;  %s4645_s4 = inlined_call_operand.hbm [shape: f32[2,128], index: 4, kind: output, shape index: {}]  }
   0x1   :  { %10 = vsyncpa [#allocation6], 0 }
   0x2   :  { %11 = vsyncpa [#allocation9], 0 }
   0x3   :  { %12 = vsyncpa [#allocation4], 0  ;;  %s4497_s15 = smov [#allocation5]   ;;  %s4379_s19 = scalar_lea.hbm %s4642_s1, 36864 }
   0x4   :  { %s28_s16 = sshll.u32 %s4497_s15, 4  ;;  %p4380_p0 = scmp.ne.s32.totalorder %s4642_s1, %s4379_s19  ;;  %s29_s16 = int_to_ptr.vmem [resolvable:$true] %s28_s16 }
   0x5   :  { %p4383_p1 = scmp.lt.u32.totalorder %s4379_s19, %s4642_s1 }
   0x7   :  { %p4385_p2 = pnand %p4383_p1, %p4380_p0 }
   0x9   :  { %4388 = shalt.err (!%p4385_p2)
}
   0xa   :  { %s4389_s24 = scalar_lea.vmem %s29_s16, 36864  ;;  %p4394_p4 = scmp.lt.s32.totalorder %s29_s16, %s29_s16 }
   0xb   :  { %p4390_p3 = scmp.ne.s32.totalorder %s29_s16, %s4389_s24  ;;  %p4395_p5 = scmp.lt.s32.totalorder %s4389_s24, %s4389_s24 }
   0xd   :  { %p4396_p6 = por %p4395_p5, %p4394_p4 }
   0xf   :  { %p4397_p7 = pnand %p4396_p6, %p4390_p3 }
  0x11   :  { %4400 = shalt.err (!%p4397_p7)
}
  0x12   :  { %s4498_s25 = smov 64   ;;  %s4499_s26 = smov 4  }
  0x13   :  { %34 = dma.hbm_to_vmem [thread:$0]  %s4642_s1, 36864, %s29_s16, [#allocation6], %s4498_s25, %s4498_s25, %s4499_s26  }
  0x14   :  { %s4500_s29 = smov [#allocation2]   ;;  %s4501_s5 = smov [#allocation7]  }
  0x15   :  { %s19_s30 = sshll.u32 %s4500_s29, 4  ;;  %s41_s6 = sshll.u32 %s4501_s5, 4  ;;  %s20_s30 = int_to_ptr.vmem [resolvable:$true] %s19_s30  ;;  %s42_s6 = int_to_ptr.vmem [resolvable:$true] %s41_s6 }
  0x16   :  { %s4401_s9 = scalar_lea.hbm %s4641_s0, 576 }
  0x17   :  { %p4402_p8 = scmp.ne.s32.totalorder %s4641_s0, %s4401_s9  ;;  %p4405_p9 = scmp.lt.u32.totalorder %s4401_s9, %s4641_s0 }
  0x19   :  { %p4407_p10 = pnand %p4405_p9, %p4402_p8 }
  0x1b   :  { %4410 = shalt.err (!%p4407_p10)
}
  0x1c   :  { %s4411_s1 = scalar_lea.vmem %s20_s30, 576  ;;  %p4416_p12 = scmp.lt.s32.totalorder %s20_s30, %s20_s30 }
  0x1d   :  { %p4412_p11 = scmp.ne.s32.totalorder %s20_s30, %s4411_s1  ;;  %p4417_p13 = scmp.lt.s32.totalorder %s4411_s1, %s4411_s1 }
  0x1f   :  { %p4418_p0 = por %p4417_p13, %p4416_p12 }
  0x21   :  { %p4419_p1 = pnand %p4418_p0, %p4412_p11 }
  0x23   :  { %4422 = shalt.err (!%p4419_p1)
}
  0x24   :  { %22 = dma.hbm_to_vmem [thread:$0]  %s4641_s0, 576, %s20_s30, [#allocation3]  }
  0x25   :  { %s4423_s18 = scalar_lea.hbm %s4643_s2, 16 }
  0x26   :  { %p4424_p2 = scmp.ne.s32.totalorder %s4643_s2, %s4423_s18  ;;  %p4427_p3 = scmp.lt.u32.totalorder %s4423_s18, %s4643_s2 }
  0x28   :  { %p4429_p4 = pnand %p4427_p3, %p4424_p2 }
  0x2a   :  { %4432 = shalt.err (!%p4429_p4)
}
  0x2b   :  { %s4433_s23 = scalar_lea.vmem %s42_s6, 16  ;;  %s4437_s24 = scalar_lea.vmem %s42_s6, 32 }
  0x2c   :  { %p4434_p5 = scmp.ne.s32.totalorder %s42_s6, %s4433_s23  ;;  %p4438_p6 = scmp.lt.s32.totalorder %s42_s6, %s42_s6 }
  0x2d   :  { %p4439_p7 = scmp.lt.s32.totalorder %s4437_s24, %s4433_s23 }
  0x2f   :  { %p4440_p8 = por %p4439_p7, %p4438_p6 }
  0x31   :  { %p4441_p9 = pnand %p4440_p8, %p4434_p5 }
  0x33   :  { %4444 = shalt.err (!%p4441_p9)
}
  0x34   :  { %44 = dma.hbm_to_vmem [thread:$0]  %s4643_s2, 16, %s42_s6, [#allocation6]  }
  0x35   :  { %s4502_s26 = smov [#allocation8]   ;;  %s4445_s30 = scalar_lea.hbm %s4644_s3, 16 }
  0x36   :  { %s51_s27 = sshll.u32 %s4502_s26, 4  ;;  %p4446_p10 = scmp.ne.s32.totalorder %s4644_s3, %s4445_s30  ;;  %s52_s27 = int_to_ptr.vmem [resolvable:$true] %s51_s27 }
  0x37   :  { %p4449_p11 = scmp.lt.u32.totalorder %s4445_s30, %s4644_s3 }
  0x39   :  { %p4451_p12 = pnand %p4449_p11, %p4446_p10 }
  0x3b   :  { %4454 = shalt.err (!%p4451_p12)
}
  0x3c   :  { %s4455_s10 = scalar_lea.vmem %s52_s27, 16  ;;  %s4459_s2 = scalar_lea.vmem %s52_s27, 32 }
  0x3d   :  { %p4456_p13 = scmp.ne.s32.totalorder %s52_s27, %s4455_s10  ;;  %p4460_p0 = scmp.lt.s32.totalorder %s52_s27, %s52_s27 }
  0x3e   :  { %p4461_p1 = scmp.lt.s32.totalorder %s4459_s2, %s4455_s10 }
  0x40   :  { %p4462_p2 = por %p4461_p1, %p4460_p0 }
  0x42   :  { %p4463_p3 = pnand %p4462_p2, %p4456_p13 }
  0x44   :  { %4466 = shalt.err (!%p4463_p3)
}
  0x45   :  { %54 = dma.hbm_to_vmem [thread:$0]  %s4644_s3, 16, %s52_s27, [#allocation9]  }
  0x46   :  { %4489 = dma.done.wait [#allocation3], 576  }
  0x47   :  { %4490 = vsyncadd [#allocation3], 4294966720 }
  0x48   :  { %4491 = dma.done.wait [#allocation6], 36880  }
  0x49   :  { %4492 = vsyncadd [#allocation6], 4294930416 }
  0x4a   :  { %4493 = dma.done.wait [#allocation9], 16  }
  0x4b   :  { %4494 = vsyncadd [#allocation9], 4294967280  ;;  %v4087_v0 = vld [vmem:[#allocation5 + $0x40] sm:$0xff]   ;;  %v4091_v4 = vld [vmem:[#allocation5 + $0x48] sm:$0xff]   ;;  %v4503_v22 = vmov 1966171168   ;;  %v658_v24 = vlaneseq }
  0x4c   :  { %v4088_v1 = vld [vmem:[#allocation5 + $0xc0] sm:$0xff]   ;;  %3683 = vmatprep.subr.bf16.mxu0 %v4087_v0  ;;  %v4092_v5 = vld [vmem:[#allocation5 + $0xc8] sm:$0xff]   ;;  %v4095_v8 = vld [vmem:[#allocation5 + $0x50] sm:$0xff]   ;;  %v656_v23 = vunpack.c.l.s4 %v4503_v22  ;;  %s4504_s3 = smov [#allocation10]  }
  0x4d   :  { %v4089_v2 = vld [vmem:[#allocation5] sm:$0xff]   ;;  %3705 = vmatprep.subr.bf16.mxu1 %v4088_v1  ;;  %v4093_v6 = vld [vmem:[#allocation5 + $0x8] sm:$0xff]   ;;  %v4096_v9 = vld [vmem:[#allocation5 + $0xd0] sm:$0xff]   ;;  %v659_v30 = vshrl.u32 %v658_v24, 7  ;;  %s3381_s12 = sshll.u32 %s4504_s3, 4  ;;  %s3382_s12 = int_to_ptr.vmem [resolvable:$true] %s3381_s12 }
  0x4e   :  { %v4090_v3 = vld [vmem:[#allocation5 + $0x80] sm:$0xff]   ;;  %3684 = vmatpush3.bf16.msra.mxu0 %v4089_v2  ;;  %v4094_v7 = vld [vmem:[#allocation5 + $0x88] sm:$0xff]   ;;  %v4097_v10 = vld [vmem:[#allocation5 + $0x10] sm:$0xff]   ;;  %v657_v29 = vunpack.c.0.s8 %v656_v23  ;;  %s4467_s13 = scalar_lea.vmem %s3382_s12, 32  ;;  %p4472_p5 = scmp.lt.s32.totalorder %s3382_s12, %s3382_s12 }
  0x4f   :  { %3706 = vmatpush3.bf16.msra.mxu1 %v4090_v3  ;;  %3685 = vmatprep.subr.bf16.mxu0 %v4091_v4  ;;  %v4098_v11 = vld [vmem:[#allocation5 + $0x90] sm:$0xff]   ;;  %v4099_v12 = vld [vmem:[#allocation5 + $0x58] sm:$0xff]   ;;  %v4103_v16 = vld [vmem:[#allocation5 + $0x60] sm:$0xff]   ;;  %p4468_p4 = scmp.ne.s32.totalorder %s3382_s12, %s4467_s13  ;;  %p4473_p6 = scmp.lt.s32.totalorder %s4467_s13, %s4467_s13 }
  0x50   :  { %3707 = vmatprep.subr.bf16.mxu1 %v4092_v5  ;;  %v4100_v13 = vld [vmem:[#allocation5 + $0xd8] sm:$0xff]   ;;  %v4104_v17 = vld [vmem:[#allocation5 + $0xe0] sm:$0xff]   ;;  %v4107_v20 = vld [vmem:[#allocation5 + $0x68] sm:$0xff]   ;;  %v4578_v35 = vsub.s32 %v657_v29, %v659_v30 }
  0x51   :  { %v4101_v14 = vld [vmem:[#allocation5 + $0x18] sm:$0xff]   ;;  %v4105_v18 = vld [vmem:[#allocation5 + $0x20] sm:$0xff]   ;;  %v4108_v21 = vld [vmem:[#allocation5 + $0xe8] sm:$0xff]   ;;  %p4474_p7 = por %p4473_p6, %p4472_p5 }
  0x52   :  { %3686 = vmatpush3.bf16.msra.mxu0 %v4093_v6  ;;  %v4102_v15 = vld [vmem:[#allocation5 + $0x98] sm:$0xff]   ;;  %v4106_v19 = vld [vmem:[#allocation5 + $0xa0] sm:$0xff]   ;;  %v4109_v25 = vld [vmem:[#allocation5 + $0x28] sm:$0xff]  }
  0x53   :  { %3708 = vmatpush3.bf16.msra.mxu1 %v4094_v7  ;;  %3687 = vmatprep.subr.bf16.mxu0 %v4095_v8  ;;  %v4110_v26 = vld [vmem:[#allocation5 + $0xa8] sm:$0xff]   ;;  %v4111_v27 = vld [vmem:[#allocation5 + $0x70] sm:$0xff]   ;;  %v4115_v33 = vld [vmem:[#allocation5 + $0x78] sm:$0xff]   ;;  %p4475_p8 = pnand %p4474_p7, %p4468_p4 }
  0x54   :  { %3709 = vmatprep.subr.bf16.mxu1 %v4096_v9  ;;  %v4112_v28 = vld [vmem:[#allocation5 + $0xf0] sm:$0xff]   ;;  %v4116_v34 = vld [vmem:[#allocation5 + $0xf8] sm:$0xff]   ;;  %v4120_v41 = vld [vmem:[#allocation5 + $0x140] sm:$0xff]  }
  0x55   :  { %v4113_v31 = vld [vmem:[#allocation5 + $0x30] sm:$0xff]   ;;  %v4117_v36 = vld [vmem:[#allocation5 + $0x38] sm:$0xff]   ;;  %v4121_v42 = vld [vmem:[#allocation5 + $0x1c0] sm:$0xff]  }
  0x56   :  { %3688 = vmatpush3.bf16.msra.mxu0 %v4097_v10  ;;  %v4114_v32 = vld [vmem:[#allocation5 + $0xb0] sm:$0xff]   ;;  %v4118_v37 = vld [vmem:[#allocation5 + $0xb8] sm:$0xff]   ;;  %v4122_v46 = vld [vmem:[#allocation5 + $0x100] sm:$0xff]  }
  0x57   :  { %3710 = vmatpush3.bf16.msra.mxu1 %v4098_v11  ;;  %3689 = vmatprep.subr.bf16.mxu0 %v4099_v12  ;;  %v68_v38 = vld [vmem:[#allocation2] sm:$0xff]  ;;  %v4124_v51 = vld [vmem:[#allocation5 + $0x148] sm:$0xff]   ;;  %v4128_v58 = vld [vmem:[#allocation5 + $0x150] sm:$0xff]  }
  0x58   :  { %3711 = vmatprep.subr.bf16.mxu1 %v4100_v13  ;;  %v654_v39 = vcombine.high %v68_v38, %v68_v38  ;;  %v661_v40 = vrot.slane %v68_v38, %v4578_v35  ;;  %v4123_v48 = vld [vmem:[#allocation5 + $0x180] sm:$0xff]   ;;  %v4125_v53 = vld [vmem:[#allocation5 + $0x1c8] sm:$0xff]   ;;  %v4129_v59 = vld [vmem:[#allocation5 + $0x1d0] sm:$0xff]  }
  0x59   :  { %v4126_v55 = vld [vmem:[#allocation5 + $0x108] sm:$0xff]   ;;  %v4130_v60 = vld [vmem:[#allocation5 + $0x110] sm:$0xff]   ;;  %v4132_v62 = vld [vmem:[#allocation5 + $0x158] sm:$0xff]  }
  0x5a   :  { %3690 = vmatpush3.bf16.msra.mxu0 %v4101_v14  ;;  %v669_v43 = vcombine.high %v661_v40, %v661_v40  ;;  %v677_v44 = vrot.slane %v661_v40, %v4578_v35  ;;  %v4583_v45 = vrot.slane %v654_v39, %v4578_v35  ;;  %v4127_v56 = vld [vmem:[#allocation5 + $0x188] sm:$0xff]   ;;  %v4131_v61 = vld [vmem:[#allocation5 + $0x190] sm:$0xff]   ;;  %v4133_v63 = vld [vmem:[#allocation5 + $0x1d8] sm:$0xff]  }
  0x5b   :  { %3712 = vmatpush3.bf16.msra.mxu1 %v4102_v15  ;;  %3691 = vmatprep.subr.bf16.mxu0 %v4103_v16  ;;  %v4134_v0 = vld [vmem:[#allocation5 + $0x118] sm:$0xff]   ;;  %v4136_v2 = vld [vmem:[#allocation5 + $0x160] sm:$0xff]   ;;  %v4140_v6 = vld [vmem:[#allocation5 + $0x168] sm:$0xff]  }
  0x5c   :  { %3713 = vmatprep.subr.bf16.mxu1 %v4104_v17  ;;  %v691_v47 = vrot.slane %v669_v43, %v4578_v35  ;;  %v670_v49 = vcombine.high %v4583_v45, %v4583_v45  ;;  %v699_v50 = vcombine.high %v677_v44, %v677_v44  ;;  %v4135_v1 = vld [vmem:[#allocation5 + $0x198] sm:$0xff]   ;;  %v4137_v3 = vld [vmem:[#allocation5 + $0x1e0] sm:$0xff]   ;;  %v4141_v7 = vld [vmem:[#allocation5 + $0x1e8] sm:$0xff]  }
  0x5d   :  { %v4138_v4 = vld [vmem:[#allocation5 + $0x120] sm:$0xff]   ;;  %v4142_v8 = vld [vmem:[#allocation5 + $0x128] sm:$0xff]   ;;  %v4144_v10 = vld [vmem:[#allocation5 + $0x170] sm:$0xff]  }
  0x5e   :  { %3692 = vmatpush3.bf16.msra.mxu0 %v4105_v18  ;;  %2670 = vmatprep.mubr.bf16.mxu0 %v691_v47  ;;  %v701_v52 = vcombine.high %v691_v47, %v691_v47  ;;  %v698_v54 = vrot.slane %v670_v49, %v4578_v35  ;;  %v4139_v5 = vld [vmem:[#allocation5 + $0x1a0] sm:$0xff]   ;;  %v4143_v9 = vld [vmem:[#allocation5 + $0x1a8] sm:$0xff]   ;;  %v4145_v11 = vld [vmem:[#allocation5 + $0x1f0] sm:$0xff]   ;;  %v684_v18 = vrot.slane %v4583_v45, %v4578_v35 }
  0x5f   :  { %3714 = vmatpush3.bf16.msra.mxu1 %v4106_v19  ;;  %3693 = vmatprep.subr.bf16.mxu0 %v4107_v20  ;;  %v4146_v12 = vld [vmem:[#allocation5 + $0x130] sm:$0xff]   ;;  %v4148_v14 = vld [vmem:[#allocation5 + $0x178] sm:$0xff]   ;;  %v4152_v19 = vld [vmem:[#allocation5 + $0x240] sm:$0xff]  }
  0x60   :  { %3715 = vmatprep.subr.bf16.mxu1 %v4108_v21  ;;  %2710 = vmatprep.mubr.bf16.mxu1 %v701_v52  ;;  %v702_v57 = vcombine.high %v698_v54, %v698_v54  ;;  %v4147_v13 = vld [vmem:[#allocation5 + $0x1b0] sm:$0xff]   ;;  %v4149_v15 = vld [vmem:[#allocation5 + $0x1f8] sm:$0xff]   ;;  %v4153_v20 = vld [vmem:[#allocation5 + $0x2c0] sm:$0xff]   ;;  %v700_v23 = vcombine.high %v684_v18, %v684_v18 }
  0x61   :  { %v4150_v16 = vld [vmem:[#allocation5 + $0x138] sm:$0xff]   ;;  %v4154_v21 = vld [vmem:[#allocation5 + $0x200] sm:$0xff]   ;;  %v4156_v24 = vld [vmem:[#allocation5 + $0x248] sm:$0xff]  }
  0x62   :  { %3694 = vmatpush3.bf16.msra.mxu0 %v4109_v25  ;;  %v4151_v17 = vld [vmem:[#allocation5 + $0x1b8] sm:$0xff]   ;;  %v4155_v22 = vld [vmem:[#allocation5 + $0x280] sm:$0xff]   ;;  %v4157_v25 = vld [vmem:[#allocation5 + $0x2c8] sm:$0xff]  }
  0x63   :  { %3716 = vmatpush3.bf16.msra.mxu1 %v4110_v26  ;;  %3695 = vmatprep.subr.bf16.mxu0 %v4111_v27  ;;  %v4158_v26 = vld [vmem:[#allocation5 + $0x208] sm:$0xff]   ;;  %v4161_v29 = vld [vmem:[#allocation5 + $0x2d0] sm:$0xff]   ;;  %v4169_v38 = vld [vmem:[#allocation5 + $0x2e0] sm:$0xff]  }
  0x64   :  { %3717 = vmatprep.subr.bf16.mxu1 %v4112_v28  ;;  %v4159_v27 = vld [vmem:[#allocation5 + $0x288] sm:$0xff]   ;;  %v4160_v28 = vld [vmem:[#allocation5 + $0x250] sm:$0xff]   ;;  %v4170_v39 = vld [vmem:[#allocation5 + $0x220] sm:$0xff]  }
  0x65   :  { %v4162_v30 = vld [vmem:[#allocation5 + $0x210] sm:$0xff]   ;;  %v4171_v40 = vld [vmem:[#allocation5 + $0x2a0] sm:$0xff]   ;;  %v4174_v43 = vld [vmem:[#allocation5 + $0x228] sm:$0xff]  }
  0x66   :  { %3696 = vmatpush3.bf16.msra.mxu0 %v4113_v31  ;;  %v4163_v31 = vld [vmem:[#allocation5 + $0x290] sm:$0xff]   ;;  %v4180_v49 = vld [vmem:[#allocation5 + $0x278] sm:$0xff]   ;;  %v69_v52 = vld [vmem:[#allocation2 + $0x8] sm:$0xff] }
  0x67   :  { %3718 = vmatpush3.bf16.msra.mxu1 %v4114_v32  ;;  %3697 = vmatprep.subr.bf16.mxu0 %v4115_v33  ;;  %v4164_v32 = vld [vmem:[#allocation5 + $0x258] sm:$0xff]   ;;  %v4176_v45 = vld [vmem:[#allocation5 + $0x270] sm:$0xff]  }
  0x68   :  { %3719 = vmatprep.subr.bf16.mxu1 %v4116_v34  ;;  %v4165_v33 = vld [vmem:[#allocation5 + $0x2d8] sm:$0xff]   ;;  %v4178_v47 = vld [vmem:[#allocation5 + $0x230] sm:$0xff]  }
  0x69   :  { %v4166_v34 = vld [vmem:[#allocation5 + $0x218] sm:$0xff]  }
  0x6a   :  { %3698 = vmatpush3.bf16.msra.mxu0 %v4117_v36  ;;  %v4167_v36 = vld [vmem:[#allocation5 + $0x298] sm:$0xff]  }
  0x6b   :  { %3720 = vmatpush3.bf16.msra.mxu1 %v4118_v37  ;;  %3727 = vmatprep.subr.bf16.mxu0 %v4120_v41  ;;  %v4168_v37 = vld [vmem:[#allocation5 + $0x260] sm:$0xff]   ;;  %v4172_v41 = vld [vmem:[#allocation5 + $0x268] sm:$0xff]  }
  0x6c   :  { %3749 = vmatprep.subr.bf16.mxu1 %v4121_v42  ;;  %v4173_v42 = vld [vmem:[#allocation5 + $0x2e8] sm:$0xff]  }
  0x6d   :  { %2671 = vmatmul.mubr.bf16.vlgmr.msra.gmra.mrb[0].mxu0 %v677_v44  ;;  %v4175_v44 = vld [vmem:[#allocation5 + $0x2a8] sm:$0xff]  }
  0x6e   :  { %3728 = vmatpush3.bf16.msra.mxu0 %v4122_v46  ;;  %2711 = vmatmul.mubr.bf16.vlgmr.msra.gmra.mrb[0].mxu1 %v699_v50  ;;  %v4177_v46 = vld [vmem:[#allocation5 + $0x2f0] sm:$0xff]   ;;  %v4181_v50 = vld [vmem:[#allocation5 + $0x2f8] sm:$0xff]  }
  0x6f   :  { %3729 = vmatprep.subr.bf16.mxu0 %v4124_v51  ;;  %3750 = vmatpush3.bf16.msra.mxu1 %v4123_v48  ;;  %v4179_v48 = vld [vmem:[#allocation5 + $0x2b0] sm:$0xff]   ;;  %v4182_v51 = vld [vmem:[#allocation5 + $0x238] sm:$0xff]  }
  0x70   :  { %2750 = vmatprep.mubr.bf16.mxu0 %v698_v54  ;;  %3751 = vmatprep.subr.bf16.mxu1 %v4125_v53  ;;  %v4183_v53 = vld [vmem:[#allocation5 + $0x2b8] sm:$0xff]   ;;  %v710_v54 = vrot.slane %v69_v52, %v4578_v35 }
  0x71   :  { %2790 = vmatprep.mubr.bf16.mxu1 %v702_v57 }
  0x72   :  { %3730 = vmatpush3.bf16.msra.mxu0 %v4126_v55  ;;  %v703_v55 = vcombine.high %v69_v52, %v69_v52  ;;  %v718_v57 = vcombine.high %v710_v54, %v710_v54  ;;  %v4233_v52 = vld [vmem:[#allocation5 + $0x460] sm:$0xff]  }
  0x73   :  { %3731 = vmatprep.subr.bf16.mxu0 %v4128_v58  ;;  %3752 = vmatpush3.bf16.msra.mxu1 %v4127_v56  ;;  %v4184_v56 = vld [vmem:[#allocation5 + $0x340] sm:$0xff]   ;;  %v726_v58 = vrot.slane %v710_v54, %v4578_v35 }
  0x74   :  { %3753 = vmatprep.subr.bf16.mxu1 %v4129_v59  ;;  %v4185_v59 = vld [vmem:[#allocation5 + $0x3c0] sm:$0xff]  }
  0x75   :  { %v4235_v54 = vld [vmem:[#allocation5 + $0x420] sm:$0xff]  }
  0x76   :  { %3732 = vmatpush3.bf16.msra.mxu0 %v4130_v60  ;;  %v4594_v60 = vrot.slane %v703_v55, %v4578_v35  ;;  %v4236_v55 = vld [vmem:[#allocation5 + $0x4a0] sm:$0xff]  }
  0x77   :  { %3733 = vmatprep.subr.bf16.mxu0 %v4132_v62  ;;  %3754 = vmatpush3.bf16.msra.mxu1 %v4131_v61  ;;  %v4186_v61 = vld [vmem:[#allocation5 + $0x300] sm:$0xff]   ;;  %v740_v62 = vrot.slane %v718_v57, %v4578_v35  ;;  %v4238_v57 = vld [vmem:[#allocation5 + $0x4e8] sm:$0xff]  }
  0x78   :  { %3755 = vmatprep.subr.bf16.mxu1 %v4133_v63  ;;  %v4187_v63 = vld [vmem:[#allocation5 + $0x380] sm:$0xff]  }
  0x7a   :  { %3734 = vmatpush3.bf16.msra.mxu0 %v4134_v0  ;;  %v719_v0 = vcombine.high %v4594_v60, %v4594_v60 }
  0x7b   :  { %3735 = vmatprep.subr.bf16.mxu0 %v4136_v2  ;;  %3756 = vmatpush3.bf16.msra.mxu1 %v4135_v1  ;;  %v748_v1 = vcombine.high %v726_v58, %v726_v58  ;;  %v4188_v2 = vld [vmem:[#allocation5 + $0x348] sm:$0xff]  }
  0x7c   :  { %3757 = vmatprep.subr.bf16.mxu1 %v4137_v3  ;;  %v750_v3 = vcombine.high %v740_v62, %v740_v62 }
  0x7e   :  { %3736 = vmatpush3.bf16.msra.mxu0 %v4138_v4  ;;  %v4189_v4 = vld [vmem:[#allocation5 + $0x3c8] sm:$0xff]  }
  0x7f   :  { %3737 = vmatprep.subr.bf16.mxu0 %v4140_v6  ;;  %3758 = vmatpush3.bf16.msra.mxu1 %v4139_v5  ;;  %v747_v5 = vrot.slane %v719_v0, %v4578_v35  ;;  %v4190_v6 = vld [vmem:[#allocation5 + $0x308] sm:$0xff]   ;;  %v4245_v0 = vld [vmem:[#allocation5 + $0x478] sm:$0xff]  }
  0x80   :  { %3759 = vmatprep.subr.bf16.mxu1 %v4141_v7  ;;  %v4191_v7 = vld [vmem:[#allocation5 + $0x388] sm:$0xff]  }
  0x82   :  { %3738 = vmatpush3.bf16.msra.mxu0 %v4142_v8  ;;  %v751_v8 = vcombine.high %v747_v5, %v747_v5 }
  0x83   :  { %3739 = vmatprep.subr.bf16.mxu0 %v4144_v10  ;;  %3760 = vmatpush3.bf16.msra.mxu1 %v4143_v9  ;;  %v4192_v9 = vld [vmem:[#allocation5 + $0x350] sm:$0xff]  }
  0x84   :  { %3761 = vmatprep.subr.bf16.mxu1 %v4145_v11  ;;  %v4193_v10 = vld [vmem:[#allocation5 + $0x3d0] sm:$0xff]  }
  0x85   :  { %v4194_v11 = vld [vmem:[#allocation5 + $0x310] sm:$0xff]  }
  0x86   :  { %3740 = vmatpush3.bf16.msra.mxu0 %v4146_v12  ;;  %v4195_v12 = vld [vmem:[#allocation5 + $0x390] sm:$0xff]  }
  0x87   :  { %3741 = vmatprep.subr.bf16.mxu0 %v4148_v14  ;;  %3762 = vmatpush3.bf16.msra.mxu1 %v4147_v13  ;;  %v4196_v13 = vld [vmem:[#allocation5 + $0x358] sm:$0xff]  }
  0x88   :  { %3763 = vmatprep.subr.bf16.mxu1 %v4149_v15  ;;  %v4197_v14 = vld [vmem:[#allocation5 + $0x3d8] sm:$0xff]  }
  0x89   :  { %v4198_v15 = vld [vmem:[#allocation5 + $0x318] sm:$0xff]  }
  0x8a   :  { %3742 = vmatpush3.bf16.msra.mxu0 %v4150_v16  ;;  %v4199_v16 = vld [vmem:[#allocation5 + $0x398] sm:$0xff]  }
  0x8b   :  { %3771 = vmatprep.subr.bf16.mxu0 %v4152_v19  ;;  %3764 = vmatpush3.bf16.msra.mxu1 %v4151_v17  ;;  %v4200_v17 = vld [vmem:[#allocation5 + $0x360] sm:$0xff]  }
  0x8c   :  { %3793 = vmatprep.subr.bf16.mxu1 %v4153_v20  ;;  %v4202_v19 = vld [vmem:[#allocation5 + $0x320] sm:$0xff]  }
  0x8d   :  { %2751 = vmatmul.mubr.bf16.vlgmr.msra.gmra.mrb[4].mxu0 %v684_v18  ;;  %v4201_v18 = vld [vmem:[#allocation5 + $0x3e0] sm:$0xff]  }
  0x8e   :  { %3772 = vmatpush3.bf16.msra.mxu0 %v4154_v21  ;;  %2791 = vmatmul.mubr.bf16.vlgmr.msra.gmra.mrb[4].mxu1 %v700_v23  ;;  %v4203_v20 = vld [vmem:[#allocation5 + $0x3a0] sm:$0xff]   ;;  %v4204_v21 = vld [vmem:[#allocation5 + $0x368] sm:$0xff]  }
  0x8f   :  { %3773 = vmatprep.subr.bf16.mxu0 %v4156_v24  ;;  %3794 = vmatpush3.bf16.msra.mxu1 %v4155_v22  ;;  %v4205_v22 = vld [vmem:[#allocation5 + $0x3e8] sm:$0xff]  }
  0x90   :  { %3795 = vmatprep.subr.bf16.mxu1 %v4157_v25  ;;  %2830 = vmatprep.mubr.bf16.mxu0 %v740_v62  ;;  %v4206_v23 = vld [vmem:[#allocation5 + $0x328] sm:$0xff]   ;;  %v4208_v25 = vld [vmem:[#allocation5 + $0x370] sm:$0xff]  }
  0x91   :  { %2870 = vmatprep.mubr.bf16.mxu1 %v750_v3  ;;  %v4207_v24 = vld [vmem:[#allocation5 + $0x3a8] sm:$0xff]   ;;  %v4243_v62 = vld [vmem:[#allocation5 + $0x430] sm:$0xff]  }
  0x92   :  { %3774 = vmatpush3.bf16.msra.mxu0 %v4158_v26  ;;  %v4209_v26 = vld [vmem:[#allocation5 + $0x3f0] sm:$0xff]  }
  0x93   :  { %3775 = vmatprep.subr.bf16.mxu0 %v4160_v28  ;;  %3796 = vmatpush3.bf16.msra.mxu1 %v4159_v27  ;;  %v4210_v27 = vld [vmem:[#allocation5 + $0x330] sm:$0xff]  }
  0x94   :  { %3797 = vmatprep.subr.bf16.mxu1 %v4161_v29  ;;  %v4211_v28 = vld [vmem:[#allocation5 + $0x3b0] sm:$0xff]   ;;  %v4212_v29 = vld [vmem:[#allocation5 + $0x378] sm:$0xff]  }
  0x95   :  { %v70_v3 = vld [vmem:[#allocation2 + $0x10] sm:$0xff] }
  0x96   :  { %3776 = vmatpush3.bf16.msra.mxu0 %v4162_v30  ;;  %v4213_v30 = vld [vmem:[#allocation5 + $0x3f8] sm:$0xff]  }
  0x97   :  { %3777 = vmatprep.subr.bf16.mxu0 %v4164_v32  ;;  %3798 = vmatpush3.bf16.msra.mxu1 %v4163_v31  ;;  %v4214_v31 = vld [vmem:[#allocation5 + $0x338] sm:$0xff]  }
  0x98   :  { %3799 = vmatprep.subr.bf16.mxu1 %v4165_v33  ;;  %v4215_v32 = vld [vmem:[#allocation5 + $0x3b8] sm:$0xff]   ;;  %v733_v33 = vrot.slane %v4594_v60, %v4578_v35  ;;  %v4241_v60 = vld [vmem:[#allocation5 + $0x470] sm:$0xff]  }
  0x9a   :  { %3778 = vmatpush3.bf16.msra.mxu0 %v4166_v34  ;;  %v4217_v34 = vld [vmem:[#allocation5 + $0x440] sm:$0xff]  }
  0x9b   :  { %3779 = vmatprep.subr.bf16.mxu0 %v4168_v37  ;;  %3800 = vmatpush3.bf16.msra.mxu1 %v4167_v36  ;;  %v4218_v36 = vld [vmem:[#allocation5 + $0x4c0] sm:$0xff]  }
  0x9c   :  { %3801 = vmatprep.subr.bf16.mxu1 %v4169_v38  ;;  %v4219_v37 = vld [vmem:[#allocation5 + $0x400] sm:$0xff]  }
  0x9d   :  { %v4220_v38 = vld [vmem:[#allocation5 + $0x480] sm:$0xff]  }
  0x9e   :  { %3780 = vmatpush3.bf16.msra.mxu0 %v4170_v39  ;;  %v749_v39 = vcombine.high %v733_v33, %v733_v33 }
  0x9f   :  { %3781 = vmatprep.subr.bf16.mxu0 %v4172_v41  ;;  %3802 = vmatpush3.bf16.msra.mxu1 %v4171_v40  ;;  %v4221_v40 = vld [vmem:[#allocation5 + $0x448] sm:$0xff]  }
  0xa0   :  { %3803 = vmatprep.subr.bf16.mxu1 %v4173_v42  ;;  %v4222_v41 = vld [vmem:[#allocation5 + $0x4c8] sm:$0xff]  }
  0xa1   :  { %v4223_v42 = vld [vmem:[#allocation5 + $0x408] sm:$0xff]  }
  0xa2   :  { %3782 = vmatpush3.bf16.msra.mxu0 %v4174_v43  ;;  %v4224_v43 = vld [vmem:[#allocation5 + $0x488] sm:$0xff]  }
  0xa3   :  { %3783 = vmatprep.subr.bf16.mxu0 %v4176_v45  ;;  %3804 = vmatpush3.bf16.msra.mxu1 %v4175_v44  ;;  %v4225_v44 = vld [vmem:[#allocation5 + $0x450] sm:$0xff]  }
  0xa4   :  { %3805 = vmatprep.subr.bf16.mxu1 %v4177_v46  ;;  %v4226_v45 = vld [vmem:[#allocation5 + $0x4d0] sm:$0xff]  }
  0xa5   :  { %v4227_v46 = vld [vmem:[#allocation5 + $0x410] sm:$0xff]  }
  0xa6   :  { %3784 = vmatpush3.bf16.msra.mxu0 %v4178_v47  ;;  %v4228_v47 = vld [vmem:[#allocation5 + $0x490] sm:$0xff]  }
  0xa7   :  { %3785 = vmatprep.subr.bf16.mxu0 %v4180_v49  ;;  %3806 = vmatpush3.bf16.msra.mxu1 %v4179_v48  ;;  %v4229_v48 = vld [vmem:[#allocation5 + $0x458] sm:$0xff]  }
  0xa8   :  { %3807 = vmatprep.subr.bf16.mxu1 %v4181_v50  ;;  %v4230_v49 = vld [vmem:[#allocation5 + $0x4d8] sm:$0xff]  }
  0xa9   :  { %v4231_v50 = vld [vmem:[#allocation5 + $0x418] sm:$0xff]  }
  0xaa   :  { %3786 = vmatpush3.bf16.msra.mxu0 %v4182_v51  ;;  %v4232_v51 = vld [vmem:[#allocation5 + $0x498] sm:$0xff]  }
  0xab   :  { %3815 = vmatprep.subr.bf16.mxu0 %v4184_v56  ;;  %3808 = vmatpush3.bf16.msra.mxu1 %v4183_v53  ;;  %v4234_v53 = vld [vmem:[#allocation5 + $0x4e0] sm:$0xff]   ;;  %v4237_v56 = vld [vmem:[#allocation5 + $0x468] sm:$0xff]  }
  0xac   :  { %3837 = vmatprep.subr.bf16.mxu1 %v4185_v59  ;;  %v4240_v59 = vld [vmem:[#allocation5 + $0x4a8] sm:$0xff]  }
  0xad   :  { %2831 = vmatmul.mubr.bf16.vlgmr.msra.gmra.mrb[8].mxu0 %v726_v58  ;;  %v4239_v58 = vld [vmem:[#allocation5 + $0x428] sm:$0xff]  }
  0xae   :  { %3816 = vmatpush3.bf16.msra.mxu0 %v4186_v61  ;;  %2871 = vmatmul.mubr.bf16.vlgmr.msra.gmra.mrb[8].mxu1 %v748_v1  ;;  %v4242_v61 = vld [vmem:[#allocation5 + $0x4f0] sm:$0xff]   ;;  %v4246_v1 = vld [vmem:[#allocation5 + $0x4f8] sm:$0xff]  }
  0xaf   :  { %3817 = vmatprep.subr.bf16.mxu0 %v4188_v2  ;;  %3838 = vmatpush3.bf16.msra.mxu1 %v4187_v63  ;;  %v4244_v63 = vld [vmem:[#allocation5 + $0x4b0] sm:$0xff]   ;;  %v4247_v2 = vld [vmem:[#allocation5 + $0x438] sm:$0xff]  }
  0xb0   :  { %2910 = vmatprep.mubr.bf16.mxu0 %v747_v5  ;;  %3839 = vmatprep.subr.bf16.mxu1 %v4189_v4  ;;  %v4248_v4 = vld [vmem:[#allocation5 + $0x4b8] sm:$0xff]   ;;  %v759_v5 = vrot.slane %v70_v3, %v4578_v35 }
  0xb1   :  { %2950 = vmatprep.mubr.bf16.mxu1 %v751_v8 }
  0xb2   :  { %3818 = vmatpush3.bf16.msra.mxu0 %v4190_v6  ;;  %v752_v6 = vcombine.high %v70_v3, %v70_v3  ;;  %v767_v8 = vcombine.high %v759_v5, %v759_v5  ;;  %v4298_v3 = vld [vmem:[#allocation5 + $0x660] sm:$0xff]  }
  0xb3   :  { %3819 = vmatprep.subr.bf16.mxu0 %v4192_v9  ;;  %3840 = vmatpush3.bf16.msra.mxu1 %v4191_v7  ;;  %v4249_v7 = vld [vmem:[#allocation5 + $0x540] sm:$0xff]   ;;  %v775_v9 = vrot.slane %v759_v5, %v4578_v35 }
  0xb4   :  { %3841 = vmatprep.subr.bf16.mxu1 %v4193_v10  ;;  %v4250_v10 = vld [vmem:[#allocation5 + $0x5c0] sm:$0xff]  }
  0xb5   :  { %v4300_v5 = vld [vmem:[#allocation5 + $0x620] sm:$0xff]  }
  0xb6   :  { %3820 = vmatpush3.bf16.msra.mxu0 %v4194_v11  ;;  %v4605_v11 = vrot.slane %v752_v6, %v4578_v35  ;;  %v4301_v6 = vld [vmem:[#allocation5 + $0x6a0] sm:$0xff]  }
  0xb7   :  { %3821 = vmatprep.subr.bf16.mxu0 %v4196_v13  ;;  %3842 = vmatpush3.bf16.msra.mxu1 %v4195_v12  ;;  %v4251_v12 = vld [vmem:[#allocation5 + $0x500] sm:$0xff]   ;;  %v789_v13 = vrot.slane %v767_v8, %v4578_v35  ;;  %v4303_v8 = vld [vmem:[#allocation5 + $0x6e8] sm:$0xff]  }
  0xb8   :  { %3843 = vmatprep.subr.bf16.mxu1 %v4197_v14  ;;  %v4252_v14 = vld [vmem:[#allocation5 + $0x580] sm:$0xff]  }
  0xba   :  { %3822 = vmatpush3.bf16.msra.mxu0 %v4198_v15  ;;  %v768_v15 = vcombine.high %v4605_v11, %v4605_v11 }
  0xbb   :  { %3823 = vmatprep.subr.bf16.mxu0 %v4200_v17  ;;  %3844 = vmatpush3.bf16.msra.mxu1 %v4199_v16  ;;  %v797_v16 = vcombine.high %v775_v9, %v775_v9  ;;  %v4253_v17 = vld [vmem:[#allocation5 + $0x548] sm:$0xff]  }
  0xbc   :  { %3845 = vmatprep.subr.bf16.mxu1 %v4201_v18  ;;  %v799_v18 = vcombine.high %v789_v13, %v789_v13 }
  0xbe   :  { %3824 = vmatpush3.bf16.msra.mxu0 %v4202_v19  ;;  %v4254_v19 = vld [vmem:[#allocation5 + $0x5c8] sm:$0xff]  }
  0xbf   :  { %3825 = vmatprep.subr.bf16.mxu0 %v4204_v21  ;;  %3846 = vmatpush3.bf16.msra.mxu1 %v4203_v20  ;;  %v796_v20 = vrot.slane %v768_v15, %v4578_v35  ;;  %v4255_v21 = vld [vmem:[#allocation5 + $0x508] sm:$0xff]   ;;  %v4310_v15 = vld [vmem:[#allocation5 + $0x678] sm:$0xff]  }
  0xc0   :  { %3847 = vmatprep.subr.bf16.mxu1 %v4205_v22  ;;  %v4256_v22 = vld [vmem:[#allocation5 + $0x588] sm:$0xff]  }
  0xc2   :  { %3826 = vmatpush3.bf16.msra.mxu0 %v4206_v23  ;;  %v800_v23 = vcombine.high %v796_v20, %v796_v20 }
  0xc3   :  { %3827 = vmatprep.subr.bf16.mxu0 %v4208_v25  ;;  %3848 = vmatpush3.bf16.msra.mxu1 %v4207_v24  ;;  %v4257_v24 = vld [vmem:[#allocation5 + $0x550] sm:$0xff]  }
  0xc4   :  { %3849 = vmatprep.subr.bf16.mxu1 %v4209_v26  ;;  %v4258_v25 = vld [vmem:[#allocation5 + $0x5d0] sm:$0xff]  }
  0xc5   :  { %v4259_v26 = vld [vmem:[#allocation5 + $0x510] sm:$0xff]  }
  0xc6   :  { %3828 = vmatpush3.bf16.msra.mxu0 %v4210_v27  ;;  %v4260_v27 = vld [vmem:[#allocation5 + $0x590] sm:$0xff]  }
  0xc7   :  { %3829 = vmatprep.subr.bf16.mxu0 %v4212_v29  ;;  %3850 = vmatpush3.bf16.msra.mxu1 %v4211_v28  ;;  %v4261_v28 = vld [vmem:[#allocation5 + $0x558] sm:$0xff]  }
  0xc8   :  { %3851 = vmatprep.subr.bf16.mxu1 %v4213_v30  ;;  %v4262_v29 = vld [vmem:[#allocation5 + $0x5d8] sm:$0xff]  }
  0xc9   :  { %v4263_v30 = vld [vmem:[#allocation5 + $0x518] sm:$0xff]  }
  0xca   :  { %3830 = vmatpush3.bf16.msra.mxu0 %v4214_v31  ;;  %v4264_v31 = vld [vmem:[#allocation5 + $0x598] sm:$0xff]  }
  0xcb   :  { %3859 = vmatprep.subr.bf16.mxu0 %v4217_v34  ;;  %3852 = vmatpush3.bf16.msra.mxu1 %v4215_v32  ;;  %v4265_v32 = vld [vmem:[#allocation5 + $0x560] sm:$0xff]  }
  0xcc   :  { %3881 = vmatprep.subr.bf16.mxu1 %v4218_v36  ;;  %v4267_v34 = vld [vmem:[#allocation5 + $0x520] sm:$0xff]  }
  0xcd   :  { %2911 = vmatmul.mubr.bf16.vlgmr.msra.gmra.mrb[12].mxu0 %v733_v33  ;;  %v4266_v33 = vld [vmem:[#allocation5 + $0x5e0] sm:$0xff]  }
  0xce   :  { %3860 = vmatpush3.bf16.msra.mxu0 %v4219_v37  ;;  %2951 = vmatmul.mubr.bf16.vlgmr.msra.gmra.mrb[12].mxu1 %v749_v39  ;;  %v4268_v36 = vld [vmem:[#allocation5 + $0x5a0] sm:$0xff]   ;;  %v4269_v37 = vld [vmem:[#allocation5 + $0x568] sm:$0xff]  }
  0xcf   :  { %3861 = vmatprep.subr.bf16.mxu0 %v4221_v40  ;;  %3882 = vmatpush3.bf16.msra.mxu1 %v4220_v38  ;;  %v4270_v38 = vld [vmem:[#allocation5 + $0x5e8] sm:$0xff]  }
  0xd0   :  { %3883 = vmatprep.subr.bf16.mxu1 %v4222_v41  ;;  %2990 = vmatprep.mubr.bf16.mxu0 %v789_v13  ;;  %v4271_v39 = vld [vmem:[#allocation5 + $0x528] sm:$0xff]   ;;  %v4273_v41 = vld [vmem:[#allocation5 + $0x570] sm:$0xff]  }
  0xd1   :  { %3030 = vmatprep.mubr.bf16.mxu1 %v799_v18  ;;  %v4272_v40 = vld [vmem:[#allocation5 + $0x5a8] sm:$0xff]   ;;  %v4308_v13 = vld [vmem:[#allocation5 + $0x630] sm:$0xff]  }
  0xd2   :  { %3862 = vmatpush3.bf16.msra.mxu0 %v4223_v42  ;;  %v4274_v42 = vld [vmem:[#allocation5 + $0x5f0] sm:$0xff]  }
  0xd3   :  { %3863 = vmatprep.subr.bf16.mxu0 %v4225_v44  ;;  %3884 = vmatpush3.bf16.msra.mxu1 %v4224_v43  ;;  %v4275_v43 = vld [vmem:[#allocation5 + $0x530] sm:$0xff]  }
  0xd4   :  { %3885 = vmatprep.subr.bf16.mxu1 %v4226_v45  ;;  %v4276_v44 = vld [vmem:[#allocation5 + $0x5b0] sm:$0xff]   ;;  %v4277_v45 = vld [vmem:[#allocation5 + $0x578] sm:$0xff]  }
  0xd5   :  { %v71_v18 = vld [vmem:[#allocation2 + $0x18] sm:$0xff] }
  0xd6   :  { %3864 = vmatpush3.bf16.msra.mxu0 %v4227_v46  ;;  %v4278_v46 = vld [vmem:[#allocation5 + $0x5f8] sm:$0xff]  }
  0xd7   :  { %3865 = vmatprep.subr.bf16.mxu0 %v4229_v48  ;;  %3886 = vmatpush3.bf16.msra.mxu1 %v4228_v47  ;;  %v4279_v47 = vld [vmem:[#allocation5 + $0x538] sm:$0xff]  }
  0xd8   :  { %3887 = vmatprep.subr.bf16.mxu1 %v4230_v49  ;;  %v4280_v48 = vld [vmem:[#allocation5 + $0x5b8] sm:$0xff]   ;;  %v782_v49 = vrot.slane %v4605_v11, %v4578_v35  ;;  %v4306_v11 = vld [vmem:[#allocation5 + $0x670] sm:$0xff]  }
  0xda   :  { %3866 = vmatpush3.bf16.msra.mxu0 %v4231_v50  ;;  %v4282_v50 = vld [vmem:[#allocation5 + $0x640] sm:$0xff]  }
  0xdb   :  { %3867 = vmatprep.subr.bf16.mxu0 %v4233_v52  ;;  %3888 = vmatpush3.bf16.msra.mxu1 %v4232_v51  ;;  %v4283_v51 = vld [vmem:[#allocation5 + $0x6c0] sm:$0xff]  }
  0xdc   :  { %3889 = vmatprep.subr.bf16.mxu1 %v4234_v53  ;;  %v4284_v52 = vld [vmem:[#allocation5 + $0x600] sm:$0xff]  }
  0xdd   :  { %v4285_v53 = vld [vmem:[#allocation5 + $0x680] sm:$0xff]  }
  0xde   :  { %3868 = vmatpush3.bf16.msra.mxu0 %v4235_v54  ;;  %v798_v54 = vcombine.high %v782_v49, %v782_v49 }
  0xdf   :  { %3869 = vmatprep.subr.bf16.mxu0 %v4237_v56  ;;  %3890 = vmatpush3.bf16.msra.mxu1 %v4236_v55  ;;  %v4286_v55 = vld [vmem:[#allocation5 + $0x648] sm:$0xff]  }
  0xe0   :  { %3891 = vmatprep.subr.bf16.mxu1 %v4238_v57  ;;  %v4287_v56 = vld [vmem:[#allocation5 + $0x6c8] sm:$0xff]  }
  0xe1   :  { %v4288_v57 = vld [vmem:[#allocation5 + $0x608] sm:$0xff]  }
  0xe2   :  { %3870 = vmatpush3.bf16.msra.mxu0 %v4239_v58  ;;  %v4289_v58 = vld [vmem:[#allocation5 + $0x688] sm:$0xff]  }
  0xe3   :  { %3871 = vmatprep.subr.bf16.mxu0 %v4241_v60  ;;  %3892 = vmatpush3.bf16.msra.mxu1 %v4240_v59  ;;  %v4290_v59 = vld [vmem:[#allocation5 + $0x650] sm:$0xff]  }
  0xe4   :  { %3893 = vmatprep.subr.bf16.mxu1 %v4242_v61  ;;  %v4291_v60 = vld [vmem:[#allocation5 + $0x6d0] sm:$0xff]  }
  0xe5   :  { %v4292_v61 = vld [vmem:[#allocation5 + $0x610] sm:$0xff]  }
  0xe6   :  { %3872 = vmatpush3.bf16.msra.mxu0 %v4243_v62  ;;  %v4293_v62 = vld [vmem:[#allocation5 + $0x690] sm:$0xff]  }
  0xe7   :  { %3873 = vmatprep.subr.bf16.mxu0 %v4245_v0  ;;  %3894 = vmatpush3.bf16.msra.mxu1 %v4244_v63  ;;  %v4294_v63 = vld [vmem:[#allocation5 + $0x658] sm:$0xff]  }
  0xe8   :  { %3895 = vmatprep.subr.bf16.mxu1 %v4246_v1  ;;  %v4295_v0 = vld [vmem:[#allocation5 + $0x6d8] sm:$0xff]  }
  0xe9   :  { %v4296_v1 = vld [vmem:[#allocation5 + $0x618] sm:$0xff]  }
  0xea   :  { %3874 = vmatpush3.bf16.msra.mxu0 %v4247_v2  ;;  %v4297_v2 = vld [vmem:[#allocation5 + $0x698] sm:$0xff]  }
  0xeb   :  { %3903 = vmatprep.subr.bf16.mxu0 %v4249_v7  ;;  %3896 = vmatpush3.bf16.msra.mxu1 %v4248_v4  ;;  %v4299_v4 = vld [vmem:[#allocation5 + $0x6e0] sm:$0xff]   ;;  %v4302_v7 = vld [vmem:[#allocation5 + $0x668] sm:$0xff]  }
  0xec   :  { %3925 = vmatprep.subr.bf16.mxu1 %v4250_v10  ;;  %v4305_v10 = vld [vmem:[#allocation5 + $0x6a8] sm:$0xff]  }
  0xed   :  { %2991 = vmatmul.mubr.bf16.vlgmr.msra.gmra.mrb[16].mxu0 %v775_v9  ;;  %v4304_v9 = vld [vmem:[#allocation5 + $0x628] sm:$0xff]  }
  0xee   :  { %3904 = vmatpush3.bf16.msra.mxu0 %v4251_v12  ;;  %3031 = vmatmul.mubr.bf16.vlgmr.msra.gmra.mrb[16].mxu1 %v797_v16  ;;  %v4307_v12 = vld [vmem:[#allocation5 + $0x6f0] sm:$0xff]   ;;  %v4311_v16 = vld [vmem:[#allocation5 + $0x6f8] sm:$0xff]  }
  0xef   :  { %3905 = vmatprep.subr.bf16.mxu0 %v4253_v17  ;;  %3926 = vmatpush3.bf16.msra.mxu1 %v4252_v14  ;;  %v4309_v14 = vld [vmem:[#allocation5 + $0x6b0] sm:$0xff]   ;;  %v4312_v17 = vld [vmem:[#allocation5 + $0x638] sm:$0xff]  }
  0xf0   :  { %3070 = vmatprep.mubr.bf16.mxu0 %v796_v20  ;;  %3927 = vmatprep.subr.bf16.mxu1 %v4254_v19  ;;  %v808_v19 = vrot.slane %v71_v18, %v4578_v35  ;;  %v4314_v20 = vld [vmem:[#allocation5 + $0x740] sm:$0xff]  }
  0xf1   :  { %3110 = vmatprep.mubr.bf16.mxu1 %v800_v23 }
  0xf2   :  { %3906 = vmatpush3.bf16.msra.mxu0 %v4255_v21  ;;  %v801_v21 = vcombine.high %v71_v18, %v71_v18  ;;  %v816_v23 = vcombine.high %v808_v19, %v808_v19  ;;  %v4352_v18 = vld [vmem:[#allocation5 + $0x8c8] sm:$0xff]  }
  0xf3   :  { %3907 = vmatprep.subr.bf16.mxu0 %v4257_v24  ;;  %3928 = vmatpush3.bf16.msra.mxu1 %v4256_v22  ;;  %v4313_v22 = vld [vmem:[#allocation5 + $0x6b8] sm:$0xff]   ;;  %v824_v24 = vrot.slane %v808_v19, %v4578_v35  ;;  %v4353_v19 = vld [vmem:[#allocation5 + $0x808] sm:$0xff]  }
  0xf4   :  { %3929 = vmatprep.subr.bf16.mxu1 %v4258_v25  ;;  %v4315_v25 = vld [vmem:[#allocation5 + $0x7c0] sm:$0xff]  }
  0xf6   :  { %3908 = vmatpush3.bf16.msra.mxu0 %v4259_v26  ;;  %v4616_v26 = vrot.slane %v801_v21, %v4578_v35  ;;  %v4354_v21 = vld [vmem:[#allocation5 + $0x888] sm:$0xff]  }
  0xf7   :  { %3909 = vmatprep.subr.bf16.mxu0 %v4261_v28  ;;  %3930 = vmatpush3.bf16.msra.mxu1 %v4260_v27  ;;  %v838_v27 = vrot.slane %v816_v23, %v4578_v35  ;;  %v4316_v28 = vld [vmem:[#allocation5 + $0x700] sm:$0xff]   ;;  %v4357_v23 = vld [vmem:[#allocation5 + $0x810] sm:$0xff]  }
  0xf8   :  { %3931 = vmatprep.subr.bf16.mxu1 %v4262_v29  ;;  %v817_v29 = vcombine.high %v4616_v26, %v4616_v26 }
  0xfa   :  { %3910 = vmatpush3.bf16.msra.mxu0 %v4263_v30  ;;  %v846_v30 = vcombine.high %v824_v24, %v824_v24 }
  0xfb   :  { %3911 = vmatprep.subr.bf16.mxu0 %v4265_v32  ;;  %3932 = vmatpush3.bf16.msra.mxu1 %v4264_v31  ;;  %v4318_v31 = vld [vmem:[#allocation5 + $0x748] sm:$0xff]   ;;  %v848_v32 = vcombine.high %v838_v27, %v838_v27 }
  0xfc   :  { %3933 = vmatprep.subr.bf16.mxu1 %v4266_v33  ;;  %v4317_v33 = vld [vmem:[#allocation5 + $0x780] sm:$0xff]  }
  0xfe   :  { %3912 = vmatpush3.bf16.msra.mxu0 %v4267_v34  ;;  %v845_v34 = vrot.slane %v817_v29, %v4578_v35  ;;  %v4362_v29 = vld [vmem:[#allocation5 + $0x898] sm:$0xff]  }
  0xff   :  { %3913 = vmatprep.subr.bf16.mxu0 %v4269_v37  ;;  %3934 = vmatpush3.bf16.msra.mxu1 %v4268_v36  ;;  %v4319_v36 = vld [vmem:[#allocation5 + $0x7c8] sm:$0xff]  }
 0x100   :  { %3935 = vmatprep.subr.bf16.mxu1 %v4270_v38  ;;  %v4320_v37 = vld [vmem:[#allocation5 + $0x708] sm:$0xff]   ;;  %v849_v38 = vcombine.high %v845_v34, %v845_v34 }
 0x102   :  { %3914 = vmatpush3.bf16.msra.mxu0 %v4271_v39  ;;  %v4322_v39 = vld [vmem:[#allocation5 + $0x750] sm:$0xff]  }
 0x103   :  { %3915 = vmatprep.subr.bf16.mxu0 %v4273_v41  ;;  %3936 = vmatpush3.bf16.msra.mxu1 %v4272_v40  ;;  %v4321_v40 = vld [vmem:[#allocation5 + $0x788] sm:$0xff]   ;;  %v4323_v41 = vld [vmem:[#allocation5 + $0x7d0] sm:$0xff]  }
 0x104   :  { %3937 = vmatprep.subr.bf16.mxu1 %v4274_v42  ;;  %v4324_v42 = vld [vmem:[#allocation5 + $0x710] sm:$0xff]  }
 0x106   :  { %3916 = vmatpush3.bf16.msra.mxu0 %v4275_v43  ;;  %v4326_v43 = vld [vmem:[#allocation5 + $0x758] sm:$0xff]  }
 0x107   :  { %3917 = vmatprep.subr.bf16.mxu0 %v4277_v45  ;;  %3938 = vmatpush3.bf16.msra.mxu1 %v4276_v44  ;;  %v4325_v44 = vld [vmem:[#allocation5 + $0x790] sm:$0xff]   ;;  %v4327_v45 = vld [vmem:[#allocation5 + $0x7d8] sm:$0xff]  }
 0x108   :  { %3939 = vmatprep.subr.bf16.mxu1 %v4278_v46  ;;  %v4328_v46 = vld [vmem:[#allocation5 + $0x718] sm:$0xff]  }
 0x10a   :  { %3918 = vmatpush3.bf16.msra.mxu0 %v4279_v47  ;;  %v4330_v47 = vld [vmem:[#allocation5 + $0x760] sm:$0xff]  }
 0x10b   :  { %3947 = vmatprep.subr.bf16.mxu0 %v4282_v50  ;;  %3940 = vmatpush3.bf16.msra.mxu1 %v4280_v48  ;;  %v4329_v48 = vld [vmem:[#allocation5 + $0x798] sm:$0xff]   ;;  %v4332_v50 = vld [vmem:[#allocation5 + $0x720] sm:$0xff]  }
 0x10c   :  { %3969 = vmatprep.subr.bf16.mxu1 %v4283_v51  ;;  %v4334_v51 = vld [vmem:[#allocation5 + $0x768] sm:$0xff]  }
 0x10d   :  { %3071 = vmatmul.mubr.bf16.vlgmr.msra.gmra.mrb[20].mxu0 %v782_v49  ;;  %v4331_v49 = vld [vmem:[#allocation5 + $0x7e0] sm:$0xff]  }
 0x10e   :  { %3948 = vmatpush3.bf16.msra.mxu0 %v4284_v52  ;;  %3111 = vmatmul.mubr.bf16.vlgmr.msra.gmra.mrb[20].mxu1 %v798_v54  ;;  %v4333_v52 = vld [vmem:[#allocation5 + $0x7a0] sm:$0xff]   ;;  %v4336_v54 = vld [vmem:[#allocation5 + $0x728] sm:$0xff]  }
 0x10f   :  { %3949 = vmatprep.subr.bf16.mxu0 %v4286_v55  ;;  %3970 = vmatpush3.bf16.msra.mxu1 %v4285_v53  ;;  %v4335_v53 = vld [vmem:[#allocation5 + $0x7e8] sm:$0xff]  }
 0x110   :  { %3971 = vmatprep.subr.bf16.mxu1 %v4287_v56  ;;  %3150 = vmatprep.mubr.bf16.mxu0 %v838_v27  ;;  %v4338_v56 = vld [vmem:[#allocation5 + $0x770] sm:$0xff]   ;;  %v4361_v27 = vld [vmem:[#allocation5 + $0x818] sm:$0xff]  }
 0x111   :  { %3190 = vmatprep.mubr.bf16.mxu1 %v848_v32  ;;  %v4367_v32 = vld [vmem:[#allocation5 + $0x868] sm:$0xff]  }
 0x112   :  { %3950 = vmatpush3.bf16.msra.mxu0 %v4288_v57 }
 0x113   :  { %3951 = vmatprep.subr.bf16.mxu0 %v4290_v59  ;;  %3972 = vmatpush3.bf16.msra.mxu1 %v4289_v58  ;;  %v4337_v58 = vld [vmem:[#allocation5 + $0x7a8] sm:$0xff]  }
 0x114   :  { %3973 = vmatprep.subr.bf16.mxu1 %v4291_v60 }
 0x116   :  { %3952 = vmatpush3.bf16.msra.mxu0 %v4292_v61 }
 0x117   :  { %3953 = vmatprep.subr.bf16.mxu0 %v4294_v63  ;;  %3974 = vmatpush3.bf16.msra.mxu1 %v4293_v62  ;;  %v4339_v62 = vld [vmem:[#allocation5 + $0x7f0] sm:$0xff]  }
 0x118   :  { %3975 = vmatprep.subr.bf16.mxu1 %v4295_v0  ;;  %v4340_v63 = vld [vmem:[#allocation5 + $0x730] sm:$0xff]  }
 0x11a   :  { %3954 = vmatpush3.bf16.msra.mxu0 %v4296_v1 }
 0x11b   :  { %3955 = vmatprep.subr.bf16.mxu0 %v4298_v3  ;;  %3976 = vmatpush3.bf16.msra.mxu1 %v4297_v2 }
 0x11c   :  { %3977 = vmatprep.subr.bf16.mxu1 %v4299_v4  ;;  %v4342_v4 = vld [vmem:[#allocation5 + $0x778] sm:$0xff]  }
 0x11e   :  { %3956 = vmatpush3.bf16.msra.mxu0 %v4300_v5 }
 0x11f   :  { %3957 = vmatprep.subr.bf16.mxu0 %v4302_v7  ;;  %3978 = vmatpush3.bf16.msra.mxu1 %v4301_v6  ;;  %v4341_v6 = vld [vmem:[#allocation5 + $0x7b0] sm:$0xff]  }
 0x120   :  { %3979 = vmatprep.subr.bf16.mxu1 %v4303_v8  ;;  %v4343_v8 = vld [vmem:[#allocation5 + $0x7f8] sm:$0xff]  }
 0x122   :  { %3958 = vmatpush3.bf16.msra.mxu0 %v4304_v9  ;;  %v4344_v9 = vld [vmem:[#allocation5 + $0x738] sm:$0xff]  }
 0x123   :  { %3959 = vmatprep.subr.bf16.mxu0 %v4306_v11  ;;  %3980 = vmatpush3.bf16.msra.mxu1 %v4305_v10  ;;  %v831_v10 = vrot.slane %v4616_v26, %v4578_v35  ;;  %v4347_v11 = vld [vmem:[#allocation5 + $0x840] sm:$0xff]   ;;  %v4360_v26 = vld [vmem:[#allocation5 + $0x8d8] sm:$0xff]  }
 0x124   :  { %3981 = vmatprep.subr.bf16.mxu1 %v4307_v12  ;;  %v4345_v12 = vld [vmem:[#allocation5 + $0x7b8] sm:$0xff]  }
 0x126   :  { %3960 = vmatpush3.bf16.msra.mxu0 %v4308_v13  ;;  %v4348_v13 = vld [vmem:[#allocation5 + $0x8c0] sm:$0xff]  }
 0x127   :  { %3961 = vmatprep.subr.bf16.mxu0 %v4310_v15  ;;  %3982 = vmatpush3.bf16.msra.mxu1 %v4309_v14  ;;  %v4349_v14 = vld [vmem:[#allocation5 + $0x800] sm:$0xff]   ;;  %v847_v15 = vcombine.high %v831_v10, %v831_v10 }
 0x128   :  { %3983 = vmatprep.subr.bf16.mxu1 %v4311_v16  ;;  %v4351_v16 = vld [vmem:[#allocation5 + $0x848] sm:$0xff]  }
 0x12a   :  { %3962 = vmatpush3.bf16.msra.mxu0 %v4312_v17  ;;  %v4350_v17 = vld [vmem:[#allocation5 + $0x880] sm:$0xff]  }
 0x12b   :  { %3991 = vmatprep.subr.bf16.mxu0 %v4314_v20  ;;  %3984 = vmatpush3.bf16.msra.mxu1 %v4313_v22  ;;  %v4355_v20 = vld [vmem:[#allocation5 + $0x850] sm:$0xff]  }
 0x12c   :  { %4013 = vmatprep.subr.bf16.mxu1 %v4315_v25  ;;  %v4356_v22 = vld [vmem:[#allocation5 + $0x8d0] sm:$0xff]  }
 0x12d   :  { %3151 = vmatmul.mubr.bf16.vlgmr.msra.gmra.mrb[24].mxu0 %v824_v24  ;;  %v4359_v24 = vld [vmem:[#allocation5 + $0x858] sm:$0xff]   ;;  %v4358_v25 = vld [vmem:[#allocation5 + $0x890] sm:$0xff]  }
 0x12e   :  { %3992 = vmatpush3.bf16.msra.mxu0 %v4316_v28  ;;  %3191 = vmatmul.mubr.bf16.vlgmr.msra.gmra.mrb[24].mxu1 %v846_v30  ;;  %v4363_v28 = vld [vmem:[#allocation5 + $0x860] sm:$0xff]  }
 0x12f   :  { %3993 = vmatprep.subr.bf16.mxu0 %v4318_v31  ;;  %4014 = vmatpush3.bf16.msra.mxu1 %v4317_v33  ;;  %v4364_v30 = vld [vmem:[#allocation5 + $0x8e0] sm:$0xff]  }
 0x130   :  { %3230 = vmatprep.mubr.bf16.mxu0 %v845_v34  ;;  %4015 = vmatprep.subr.bf16.mxu1 %v4319_v36  ;;  %v4365_v31 = vld [vmem:[#allocation5 + $0x820] sm:$0xff]   ;;  %v4368_v34 = vld [vmem:[#allocation5 + $0x8e8] sm:$0xff]  }
 0x131   :  { %3270 = vmatprep.mubr.bf16.mxu1 %v849_v38  ;;  %v4366_v33 = vld [vmem:[#allocation5 + $0x8a0] sm:$0xff]   ;;  %v4369_v36 = vld [vmem:[#allocation5 + $0x828] sm:$0xff]   ;;  %v4371_v38 = vld [vmem:[#allocation5 + $0x870] sm:$0xff]  }
 0x132   :  { %3994 = vmatpush3.bf16.msra.mxu0 %v4320_v37 }
 0x133   :  { %3995 = vmatprep.subr.bf16.mxu0 %v4322_v39  ;;  %4016 = vmatpush3.bf16.msra.mxu1 %v4321_v40  ;;  %v4370_v40 = vld [vmem:[#allocation5 + $0x8a8] sm:$0xff]  }
 0x134   :  { %4017 = vmatprep.subr.bf16.mxu1 %v4323_v41 }
 0x136   :  { %3996 = vmatpush3.bf16.msra.mxu0 %v4324_v42 }
 0x137   :  { %3997 = vmatprep.subr.bf16.mxu0 %v4326_v43  ;;  %4018 = vmatpush3.bf16.msra.mxu1 %v4325_v44  ;;  %v4372_v44 = vld [vmem:[#allocation5 + $0x8f0] sm:$0xff]  }
 0x138   :  { %4019 = vmatprep.subr.bf16.mxu1 %v4327_v45  ;;  %v4373_v45 = vld [vmem:[#allocation5 + $0x830] sm:$0xff]  }
 0x13a   :  { %3998 = vmatpush3.bf16.msra.mxu0 %v4328_v46 }
 0x13b   :  { %3999 = vmatprep.subr.bf16.mxu0 %v4330_v47  ;;  %4020 = vmatpush3.bf16.msra.mxu1 %v4329_v48 }
 0x13c   :  { %4021 = vmatprep.subr.bf16.mxu1 %v4331_v49 }
 0x13e   :  { %4000 = vmatpush3.bf16.msra.mxu0 %v4332_v50 }
 0x13f   :  { %4001 = vmatprep.subr.bf16.mxu0 %v4334_v51  ;;  %4022 = vmatpush3.bf16.msra.mxu1 %v4333_v52  ;;  %v4375_v51 = vld [vmem:[#allocation5 + $0x878] sm:$0xff]  }
 0x140   :  { %v3699_v55 = vpop.f32.mrb[0].mxu0  ;;  %4023 = vmatprep.subr.bf16.mxu1 %v4335_v53  ;;  %v4374_v53 = vld [vmem:[#allocation5 + $0x8b0] sm:$0xff]  }
 0x141   :  { %v3700_v57 = vpop.f32.mrb[1].mxu0  ;;  %v3721_v59 = vpop.f32.mrb[0].mxu1 }
 0x142   :  { %v3701_v60 = vadd.f32 %v3700_v57, %v3699_v55  ;;  %v3702_v61 = vpop.f32.mrb[2].mxu0  ;;  %v3722_v0 = vpop.f32.mrb[1].mxu1  ;;  %4002 = vmatpush3.bf16.msra.mxu0 %v4336_v54  ;;  %v4376_v55 = vld [vmem:[#allocation5 + $0x8f8] sm:$0xff]  }
 0x143   :  { %v3703_v1 = vpop.f32.mrb[3].mxu0  ;;  %v3723_v2 = vadd.f32 %v3722_v0, %v3721_v59  ;;  %v3724_v3 = vpop.f32.mrb[2].mxu1  ;;  %4003 = vmatprep.subr.bf16.mxu0 %v4338_v56  ;;  %4024 = vmatpush3.bf16.msra.mxu1 %v4337_v58  ;;  %v4377_v56 = vld [vmem:[#allocation5 + $0x838] sm:$0xff]  }
 0x144   :  { %v3725_v5 = vpop.f32.mrb[3].mxu1  ;;  %4025 = vmatprep.subr.bf16.mxu1 %v4339_v62  ;;  %v3392_v57 = vld.sshfl [vmem:[#allocation2 + $0x20] sm:$0x33 pattern:$0x75316420] }
 0x145   :  { %v4622_v7 = vadd.f32 %v3723_v2, %v3701_v60  ;;  %v857_v58 = vcombine.high %v3392_v57, %v3392_v57  ;;  %v864_v59 = vrot.slane %v3392_v57, %v4578_v35  ;;  %v4378_v60 = vld [vmem:[#allocation5 + $0x8b8] sm:$0xff]  }
 0x146   :  { %4004 = vmatpush3.bf16.msra.mxu0 %v4340_v63 }
 0x147   :  { %4005 = vmatprep.subr.bf16.mxu0 %v4342_v4  ;;  %4026 = vmatpush3.bf16.msra.mxu1 %v4341_v6  ;;  %v871_v61 = vrot.slane %v857_v58, %v4578_v35  ;;  %v872_v63 = vcombine.high %v864_v59, %v864_v59 }
 0x148   :  { %4027 = vmatprep.subr.bf16.mxu1 %v4343_v8 }
 0x149   :  { %v873_v62 = vcombine.high %v871_v61, %v871_v61 }
 0x14a   :  { %4006 = vmatpush3.bf16.msra.mxu0 %v4344_v9 }
 0x14b   :  { %4035 = vmatprep.subr.bf16.mxu0 %v4347_v11  ;;  %4028 = vmatpush3.bf16.msra.mxu1 %v4345_v12 }
 0x14c   :  { %4057 = vmatprep.subr.bf16.mxu1 %v4348_v13 }
 0x14d   :  { %3231 = vmatmul.mubr.bf16.vlgmr.msra.gmra.mrb[28].mxu0 %v831_v10 }
 0x14e   :  { %4036 = vmatpush3.bf16.msra.mxu0 %v4349_v14  ;;  %3271 = vmatmul.mubr.bf16.vlgmr.msra.gmra.mrb[28].mxu1 %v847_v15 }
 0x14f   :  { %4037 = vmatprep.subr.bf16.mxu0 %v4351_v16  ;;  %4058 = vmatpush3.bf16.msra.mxu1 %v4350_v17 }
 0x150   :  { %4059 = vmatprep.subr.bf16.mxu1 %v4352_v18  ;;  %3310 = vmatprep.mubr.bf16.mxu0 %v871_v61 }
 0x151   :  { %3350 = vmatprep.mubr.bf16.mxu1 %v873_v62 }
 0x152   :  { %4038 = vmatpush3.bf16.msra.mxu0 %v4353_v19 }
 0x153   :  { %4039 = vmatprep.subr.bf16.mxu0 %v4355_v20  ;;  %4060 = vmatpush3.bf16.msra.mxu1 %v4354_v21 }
 0x154   :  { %4061 = vmatprep.subr.bf16.mxu1 %v4356_v22 }
 0x156   :  { %4040 = vmatpush3.bf16.msra.mxu0 %v4357_v23 }
 0x157   :  { %4041 = vmatprep.subr.bf16.mxu0 %v4359_v24  ;;  %4062 = vmatpush3.bf16.msra.mxu1 %v4358_v25 }
 0x158   :  { %4063 = vmatprep.subr.bf16.mxu1 %v4360_v26 }
 0x15a   :  { %4042 = vmatpush3.bf16.msra.mxu0 %v4361_v27 }
 0x15b   :  { %4043 = vmatprep.subr.bf16.mxu0 %v4363_v28  ;;  %4064 = vmatpush3.bf16.msra.mxu1 %v4362_v29 }
 0x15c   :  { %4065 = vmatprep.subr.bf16.mxu1 %v4364_v30 }
 0x15e   :  { %4044 = vmatpush3.bf16.msra.mxu0 %v4365_v31 }
 0x15f   :  { %4045 = vmatprep.subr.bf16.mxu0 %v4367_v32  ;;  %4066 = vmatpush3.bf16.msra.mxu1 %v4366_v33 }
 0x160   :  { %v3743_v37 = vpop.f32.mrb[4].mxu0  ;;  %4067 = vmatprep.subr.bf16.mxu1 %v4368_v34 }
 0x161   :  { %v3744_v39 = vpop.f32.mrb[5].mxu0  ;;  %v3765_v41 = vpop.f32.mrb[4].mxu1 }
 0x162   :  { %v3745_v42 = vadd.f32 %v3744_v39, %v3743_v37  ;;  %v3746_v43 = vpop.f32.mrb[6].mxu0  ;;  %v3766_v46 = vpop.f32.mrb[5].mxu1  ;;  %4046 = vmatpush3.bf16.msra.mxu0 %v4369_v36 }
 0x163   :  { %v3747_v47 = vpop.f32.mrb[7].mxu0  ;;  %v3767_v49 = vadd.f32 %v3766_v46, %v3765_v41  ;;  %v3768_v50 = vpop.f32.mrb[6].mxu1  ;;  %4047 = vmatprep.subr.bf16.mxu0 %v4371_v38  ;;  %4068 = vmatpush3.bf16.msra.mxu1 %v4370_v40 }
 0x164   :  { %v2753_v48 = vadd.f32 %v3745_v42, %v4622_v7  ;;  %v3769_v52 = vpop.f32.mrb[7].mxu1  ;;  %4069 = vmatprep.subr.bf16.mxu1 %v4372_v44 }
 0x166   :  { %v2793_v54 = vadd.f32 %v3767_v49, %v2753_v48  ;;  %4048 = vmatpush3.bf16.msra.mxu0 %v4373_v45 }
 0x167   :  { %4049 = vmatprep.subr.bf16.mxu0 %v4375_v51  ;;  %4070 = vmatpush3.bf16.msra.mxu1 %v4374_v53 }
 0x168   :  { %4071 = vmatprep.subr.bf16.mxu1 %v4376_v55 }
 0x16a   :  { %4050 = vmatpush3.bf16.msra.mxu0 %v4377_v56 }
 0x16b   :  { %4072 = vmatpush3.bf16.msra.mxu1 %v4378_v60 }
 0x16d   :  { %3311 = vmatmul.mubr.bf16.vlgmr.msra.gmra.mrb[32].mxu0 %v864_v59 }
 0x16e   :  { %3351 = vmatmul.mubr.bf16.vlgmr.msra.gmra.mrb[32].mxu1 %v872_v63 }
 0x180   :  { %v3787_v0 = vpop.f32.mrb[8].mxu0 }
 0x181   :  { %v3788_v1 = vpop.f32.mrb[9].mxu0  ;;  %v3809_v2 = vpop.f32.mrb[8].mxu1 }
 0x182   :  { %v3789_v3 = vadd.f32 %v3788_v1, %v3787_v0  ;;  %v3790_v4 = vpop.f32.mrb[10].mxu0  ;;  %v3810_v5 = vpop.f32.mrb[9].mxu1 }
 0x183   :  { %v3791_v6 = vpop.f32.mrb[11].mxu0  ;;  %v3811_v8 = vadd.f32 %v3810_v5, %v3809_v2  ;;  %v3812_v9 = vpop.f32.mrb[10].mxu1 }
 0x184   :  { %v2833_v7 = vadd.f32 %v3789_v3, %v2793_v54  ;;  %v3813_v10 = vpop.f32.mrb[11].mxu1 }
 0x186   :  { %v2873_v35 = vadd.f32 %v3811_v8, %v2833_v7 }
 0x1a0   :  { %v3831_v11 = vpop.f32.mrb[12].mxu0 }
 0x1a1   :  { %v3832_v12 = vpop.f32.mrb[13].mxu0  ;;  %v3853_v13 = vpop.f32.mrb[12].mxu1 }
 0x1a2   :  { %v3833_v14 = vadd.f32 %v3832_v12, %v3831_v11  ;;  %v3834_v15 = vpop.f32.mrb[14].mxu0  ;;  %v3854_v16 = vpop.f32.mrb[13].mxu1 }
 0x1a3   :  { %v3835_v17 = vpop.f32.mrb[15].mxu0  ;;  %v3855_v19 = vadd.f32 %v3854_v16, %v3853_v13  ;;  %v3856_v20 = vpop.f32.mrb[14].mxu1 }
 0x1a4   :  { %v2913_v18 = vadd.f32 %v3833_v14, %v2873_v35  ;;  %v3857_v21 = vpop.f32.mrb[15].mxu1  ;;  %v3681_v17 = vld [vmem:[#allocation7] ss:$0 sm:$0xff]  ;;  %v3682_v20 = vld [vmem:[#allocation8] ss:$0 sm:$0xff] }
 0x1a6   :  { %v2953_v22 = vadd.f32 %v3855_v19, %v2913_v18 }
 0x1c0   :  { %v3875_v23 = vpop.f32.mrb[16].mxu0 }
 0x1c1   :  { %v3876_v24 = vpop.f32.mrb[17].mxu0  ;;  %v3897_v25 = vpop.f32.mrb[16].mxu1 }
 0x1c2   :  { %v3877_v26 = vadd.f32 %v3876_v24, %v3875_v23  ;;  %v3878_v27 = vpop.f32.mrb[18].mxu0  ;;  %v3898_v28 = vpop.f32.mrb[17].mxu1 }
 0x1c3   :  { %v3879_v29 = vpop.f32.mrb[19].mxu0  ;;  %v3899_v31 = vadd.f32 %v3898_v28, %v3897_v25  ;;  %v3900_v32 = vpop.f32.mrb[18].mxu1 }
 0x1c4   :  { %v2993_v30 = vadd.f32 %v3877_v26, %v2953_v22  ;;  %v3901_v33 = vpop.f32.mrb[19].mxu1 }
 0x1c6   :  { %v3033_v34 = vadd.f32 %v3899_v31, %v2993_v30 }
 0x1e0   :  { %v3919_v36 = vpop.f32.mrb[20].mxu0 }
 0x1e1   :  { %v3920_v37 = vpop.f32.mrb[21].mxu0  ;;  %v3941_v38 = vpop.f32.mrb[20].mxu1 }
 0x1e2   :  { %v3921_v39 = vadd.f32 %v3920_v37, %v3919_v36  ;;  %v3922_v40 = vpop.f32.mrb[22].mxu0  ;;  %v3942_v41 = vpop.f32.mrb[21].mxu1 }
 0x1e3   :  { %v3923_v42 = vpop.f32.mrb[23].mxu0  ;;  %v3943_v44 = vadd.f32 %v3942_v41, %v3941_v38  ;;  %v3944_v45 = vpop.f32.mrb[22].mxu1 }
 0x1e4   :  { %v3073_v43 = vadd.f32 %v3921_v39, %v3033_v34  ;;  %v3945_v46 = vpop.f32.mrb[23].mxu1 }
 0x1e6   :  { %v3113_v47 = vadd.f32 %v3943_v44, %v3073_v43 }
 0x200   :  { %v3963_v48 = vpop.f32.mrb[24].mxu0 }
 0x201   :  { %v3964_v49 = vpop.f32.mrb[25].mxu0  ;;  %v3985_v50 = vpop.f32.mrb[24].mxu1 }
 0x202   :  { %v3965_v51 = vadd.f32 %v3964_v49, %v3963_v48  ;;  %v3966_v52 = vpop.f32.mrb[26].mxu0  ;;  %v3986_v53 = vpop.f32.mrb[25].mxu1 }
 0x203   :  { %v3967_v54 = vpop.f32.mrb[27].mxu0  ;;  %v3987_v56 = vadd.f32 %v3986_v53, %v3985_v50  ;;  %v3988_v57 = vpop.f32.mrb[26].mxu1 }
 0x204   :  { %v3153_v55 = vadd.f32 %v3965_v51, %v3113_v47  ;;  %v3989_v58 = vpop.f32.mrb[27].mxu1 }
 0x206   :  { %v3193_v59 = vadd.f32 %v3987_v56, %v3153_v55 }
 0x220   :  { %v4007_v60 = vpop.f32.mrb[28].mxu0 }
 0x221   :  { %v4008_v61 = vpop.f32.mrb[29].mxu0  ;;  %v4029_v62 = vpop.f32.mrb[28].mxu1 }
 0x222   :  { %v4009_v63 = vadd.f32 %v4008_v61, %v4007_v60  ;;  %v4010_v0 = vpop.f32.mrb[30].mxu0  ;;  %v4030_v1 = vpop.f32.mrb[29].mxu1 }
 0x223   :  { %v4011_v2 = vpop.f32.mrb[31].mxu0  ;;  %v4031_v4 = vadd.f32 %v4030_v1, %v4029_v62  ;;  %v4032_v5 = vpop.f32.mrb[30].mxu1 }
 0x224   :  { %v3233_v3 = vadd.f32 %v4009_v63, %v3193_v59  ;;  %v4033_v6 = vpop.f32.mrb[31].mxu1 }
 0x226   :  { %v3273_v7 = vadd.f32 %v4031_v4, %v3233_v3 }
 0x240   :  { %v4051_v8 = vpop.f32.mrb[32].mxu0 }
 0x241   :  { %v4052_v9 = vpop.f32.mrb[33].mxu0  ;;  %v4073_v10 = vpop.f32.mrb[32].mxu1 }
 0x242   :  { %v4053_v35 = vadd.f32 %v4052_v9, %v4051_v8  ;;  %v4054_v11 = vpop.f32.mrb[34].mxu0  ;;  %v4074_v12 = vpop.f32.mrb[33].mxu1 }
 0x243   :  { %v4055_v13 = vpop.f32.mrb[35].mxu0  ;;  %v4075_v15 = vadd.f32 %v4074_v12, %v4073_v10  ;;  %v4076_v16 = vpop.f32.mrb[34].mxu1 }
 0x244   :  { %v3313_v14 = vadd.f32 %v4053_v35, %v3273_v7  ;;  %v4077_v18 = vpop.f32.mrb[35].mxu1 }
 0x246   :  { %v3353_v19 = vadd.f32 %v4075_v15, %v3313_v14 }
 0x248   :  { %v3365_v21 = vmul.f32 %v3681_v17, %v3353_v19 }
 0x24a   :  { %v3373_v22 = vadd.f32 %v3682_v20, %v3365_v21 }
 0x24c   :  { %3374 = vst [vmem:[#allocation10] sm:$0x3] %v3373_v22 }
 0x24d   :  { %4478 = shalt.err (!%p4475_p8)
}
 0x24e   :  { %s4479_s15 = scalar_lea.hbm %s4645_s4, 32 }
 0x24f   :  { %p4480_p9 = scmp.ne.s32.totalorder %s4645_s4, %s4479_s15  ;;  %p4483_p10 = scmp.lt.u32.totalorder %s4479_s15, %s4645_s4 }
 0x251   :  { %p4485_p11 = pnand %p4483_p10, %p4480_p9 }
 0x253   :  { %4488 = shalt.err (!%p4485_p11)
}
 0x254   :  { %3384 = dma.vmem_to_hbm [thread:$0]  %s3382_s12, 32, %s4645_s4, [#allocation4]  }
 0x255   :  { %4495 = dma.done.wait [#allocation4], 32  }
 0x256   :  { %4496 = vsyncadd [#allocation4], 4294967264 }
 0x257   :  { %3388 = vsyncpa [#allocation3], 1 }
 0x258   :  { %3389 = vsyncpa [#allocation6], 1 }
 0x259   :  { %3390 = vsyncpa [#allocation9], 1 }
 0x25a   :  { %3391 = vsyncpa [#allocation4], 1 }

</bundles_post_ra>
